<compile_context>
chip_gen: v6e
topology: v6e:2x2x1
jax: 0.10.0
libtpu: 0.0.40
codegen_flags: <defaults>
</compile_context>

<pallas_src>
import functools

import jax
import jax.numpy as jnp
from jax.experimental import pallas as pl
from jax.experimental.pallas import tpu as pltpu

# MXU operand dtype (accumulation stays f32, all elementwise math stays f32).
# Switch to jnp.float32 for bit-exact comparison against the f32 PyTorch reference.
MXU_DTYPE = jnp.bfloat16

_VMEM = pltpu.MemorySpace.VMEM


# ----------------------------- Pallas kernels --------------------------------

def _conv3x3_flat(h, wmat, mask, W):
    """3x3 conv (stride 1, pad 1) on channels-major flat activations.

    h:    (C, L) f32, L = images flattened row-major (n, y, x).
    wmat: (Cout, 9*C) MXU_DTYPE, tap-major [(dy+1)*3+(dx+1)] with BN output scale folded in.
    mask: (9, L) f32 {0,1}; zeroes taps that would read across an image border.
    """
    C, L = h.shape
    P = W + 1                                     # max |tap offset| in flat coordinates
    pad = jnp.zeros((C, P), h.dtype)
    hz = jnp.concatenate([pad, h, pad], axis=1)   # halo handled in VMEM, not HBM
    taps = []
    k = 0
    for dy in (-1, 0, 1):
        for dx in (-1, 0, 1):
            off = P + dy * W + dx
            taps.append(hz[:, off:off + L] * mask[k:k + 1, :])
            k += 1
    cols = jnp.concatenate(taps, axis=0)          # (9*C, L) im2col matrix
    return jnp.dot(wmat, cols.astype(wmat.dtype),
                   preferred_element_type=jnp.float32)   # single MXU pass, K = 9*C


def _bottleneck_kernel(*refs, W, has_add, conv_shortcut):
    # Fused BottleneckIR ('ir' mode, stride 1), eval-mode BN folded into weights/bias.
    it = iter(refs)
    x_ref = next(it)
    add_ref = next(it) if has_add else None
    mask_ref = next(it)
    bn1s_ref = next(it)
    bn1b_ref = next(it)
    w1_ref = next(it)
    b1_ref = next(it)
    alpha_ref = next(it)
    w2_ref = next(it)
    b2_ref = next(it)
    ws_ref = next(it) if conv_shortcut else None
    bs_ref = next(it) if conv_shortcut else None
    o_ref = next(it)

    x = x_ref[...]                                # (Cin, L) f32
    if has_add:
        x = x + add_ref[...]                      # fused residual-add prologue (mask branch)
    mask = mask_ref[...]                          # (9, L)

    h = x * bn1s_ref[...] + bn1b_ref[...]                         # BN1 (per-channel affine)
    y = _conv3x3_flat(h, w1_ref[...], mask, W) + b1_ref[...]      # conv1 (+ folded BN2)
    y = jnp.where(y > 0.0, y, alpha_ref[...] * y)                 # PReLU (per-channel)
    z = _conv3x3_flat(y, w2_ref[...], mask, W) + b2_ref[...]      # conv2 (+ folded BN3)

    if conv_shortcut:                                             # 1x1 conv + BN shortcut
        sc = jnp.dot(ws_ref[...], x.astype(ws_ref.dtype),
                     preferred_element_type=jnp.float32) + bs_ref[...]
    else:                                                         # identity shortcut
        sc = x
    o_ref[...] = z + sc


def _mask_helper_kernel(m_ref, t_ref, w1_ref, b1_ref, w2_ref, b2_ref, o_ref):
    # mask_helper (1x1 conv+BN+ReLU, 1x1 conv+BN+Sigmoid) fused with out = trunk * (mask + 1).
    m = m_ref[...]
    h = jnp.dot(w1_ref[...], m.astype(w1_ref.dtype),
                preferred_element_type=jnp.float32) + b1_ref[...]
    h = jnp.maximum(h, 0.0)
    s = jnp.dot(w2_ref[...], h.astype(w2_ref.dtype),
                preferred_element_type=jnp.float32) + b2_ref[...]
    s = jax.nn.sigmoid(s)
    o_ref[...] = t_ref[...] * (s + 1.0)


def _maxpool_kernel(x_ref, o_ref):
    # x_ref: (C*N*Hp, 2, Wp, 2); 2x2/stride-2 max pool = elementwise max of the 4 window corners.
    x = x_ref[...]
    o_ref[...] = jnp.maximum(jnp.maximum(x[:, 0:1, :, 0:1], x[:, 0:1, :, 1:2]),
                             jnp.maximum(x[:, 1:2, :, 0:1], x[:, 1:2, :, 1:2]))


def _bilinear_kernel(x_ref, uh_ref, uwt_ref, o_ref):
    # Separable bilinear resize (align_corners=False) as two constant-matrix matmuls; the
    # interleaved output is written directly (no external re-stacking).
    x = x_ref[...]                                        # (B, h, w)
    B = x.shape[0]
    uh = jnp.broadcast_to(uh_ref[...], (B,) + uh_ref.shape)     # (B, th, h)
    uwt = jnp.broadcast_to(uwt_ref[...], (B,) + uwt_ref.shape)  # (B, w, tw)
    t = jnp.einsum('bph,bhw->bpw', uh, x, preferred_element_type=jnp.float32)
    o_ref[...] = jnp.einsum('bpw,bwq->bpq', t, uwt, preferred_element_type=jnp.float32)


# ----------------------------- pallas_call wrappers ---------------------------

def _conv_tap_masks(N, H, W):
    # (9, N*H*W) {0,1}: tap k=(dy+1)*3+(dx+1) is valid where (y+dy, x+dx) stays inside its image.
    # Trace-time constant (tiny); lets the kernel do the conv halo without HBM padding.
    l = jnp.arange(N * H * W, dtype=jnp.int32)
    xx = l % W
    yy = (l // W) % H
    rows = []
    for dy in (-1, 0, 1):
        vy = jnp.logical_and(yy + dy >= 0, yy + dy <= H - 1)
        for dx in (-1, 0, 1):
            vx = jnp.logical_and(xx + dx >= 0, xx + dx <= W - 1)
            rows.append(jnp.logical_and(vy, vx).astype(jnp.float32))
    return jnp.stack(rows, axis=0)


def _interp_matrix(n_out, n_in):
    # PyTorch F.interpolate bilinear (align_corners=False) 1-D weights as an (n_out, n_in) matrix.
    p = jnp.arange(n_out, dtype=jnp.float32)
    src = jnp.clip((p + 0.5) * (n_in / n_out) - 0.5, 0.0, float(n_in - 1))
    lo = jnp.floor(src)
    frac = src - lo
    lo_i = lo.astype(jnp.int32)
    hi_i = jnp.minimum(lo_i + 1, n_in - 1)
    j = jnp.arange(n_in, dtype=jnp.int32)[None, :]
    return ((j == lo_i[:, None]) * (1.0 - frac[:, None]) +
            (j == hi_i[:, None]) * frac[:, None]).astype(jnp.float32)


def bottleneck_ir(x, p, N, H, W, add=None):
    """One fused BottleneckIR block. x: (Cin, N*H*W) f32 -> (Cout, N*H*W) f32."""
    Cin = p["bn1_scale"].shape[0]
    Cout = p["b1"].shape[0]
    L = N * H * W
    conv_shortcut = "ws" in p
    has_add = add is not None

    # Shard the batch across TensorCores (v7x megacore) when per-image lane width is 128-aligned.
    grid_n = N if (N > 1 and (H * W) % 128 == 0) else 1
    lb = L // grid_n

    masks = _conv_tap_masks(N, H, W)

    def dspec(c):
        return pl.BlockSpec((c, lb), lambda n: (0, n))

    def pspec(arr):
        return pl.BlockSpec(arr.shape, lambda n: (0, 0))

    args, specs = [x], [dspec(Cin)]
    if has_add:
        args.append(add)
        specs.append(dspec(add.shape[0]))
    args.append(masks)
    specs.append(dspec(9))
    for name in ("bn1_scale", "bn1_shift", "w1", "b1", "alpha", "w2", "b2"):
        args.append(p[name])
        specs.append(pspec(p[name]))
    if conv_shortcut:
        for name in ("ws", "bs"):
            args.append(p[name])
            specs.append(pspec(p[name]))

    kern = functools.partial(_bottleneck_kernel, W=W,
                             has_add=has_add, conv_shortcut=conv_shortcut)
    return pl.pallas_call(
        kern,
        out_shape=jax.ShapeDtypeStruct((Cout, L), jnp.float32),
        grid=(grid_n,),
        in_specs=specs,
        out_specs=pl.BlockSpec((Cout, lb), lambda n: (0, n)),
        compiler_params=pltpu.CompilerParams(dimension_semantics=("parallel",)),
    )(*args)


def mask_helper_combine(mask, trunk, P, N, H, W):
    C, L = trunk.shape
    grid_n = N if (N > 1 and (H * W) % 128 == 0) else 1
    lb = L // grid_n

    def dspec():
        return pl.BlockSpec((C, lb), lambda n: (0, n))

    def pspec(a):
        return pl.BlockSpec(a.shape, lambda n: (0, 0))

    return pl.pallas_call(
        _mask_helper_kernel,
        out_shape=jax.ShapeDtypeStruct((C, L), jnp.float32),
        grid=(grid_n,),
        in_specs=[dspec(), dspec(), pspec(P["hw1"]), pspec(P["hb1"]),
                  pspec(P["hw2"]), pspec(P["hb2"])],
        out_specs=dspec(),
        compiler_params=pltpu.CompilerParams(dimension_semantics=("parallel",)),
    )(mask, trunk, P["hw1"], P["hb1"], P["hw2"], P["hb2"])


def maxpool2x2(x, N, H, W):
    # x: (C, N*H*W) -> (C, N*(H//2)*(W//2)); MaxPool2d(2, 2) semantics.
    # TODO(synk): kept as its own tiny kernel — fusing it into the following bottleneck would need
    # an every-other-lane compaction (gather) in the flat layout; revisit for production sizes.
    C = x.shape[0]
    hp, wp = H // 2, W // 2
    xr = x.reshape(C, N, H, W)[:, :, :2 * hp, :2 * wp]     # metadata reshape (+crop only if odd)
    xr = xr.reshape(C * N * hp, 2, wp, 2)
    out = pl.pallas_call(
        _maxpool_kernel,
        out_shape=jax.ShapeDtypeStruct((C * N * hp, 1, wp, 1), jnp.float32),
        in_specs=[pl.BlockSpec(memory_space=_VMEM)],
        out_specs=pl.BlockSpec(memory_space=_VMEM),
    )(xr)
    return out.reshape(C, N * hp * wp)


def bilinear_upsample(x, N, h, w, th, tw):
    # F.interpolate(..., size=(th, tw), mode='bilinear', align_corners=False).
    C = x.shape[0]
    uh = _interp_matrix(th, h)          # (th, h)  trace-time constant
    uwt = _interp_matrix(tw, w).T       # (w, tw)
    xr = x.reshape(C * N, h, w)         # metadata reshape
    out = pl.pallas_call(
        _bilinear_kernel,
        out_shape=jax.ShapeDtypeStruct((C * N, th, tw), jnp.float32),
        in_specs=[pl.BlockSpec(memory_space=_VMEM)] * 3,
        out_specs=pl.BlockSpec(memory_space=_VMEM),
    )(xr, uh, uwt)
    return out.reshape(C, N * th * tw)


# ----------------------------- module composition -----------------------------

def mask_module(x, mp, N, H, W):
    # MaskModule.mask_branch recursion (generic in down_sample_times).
    D = len(mp["prev"])

    def branch(t, d, h, w):
        hp, wp = h // 2, w // 2
        t = maxpool2x2(t, N, h, w)
        for blk in mp["prev"][D - d]:
            t = bottleneck_ir(t, blk, N, hp, wp)
        if d - 1 <= 0:
            return bilinear_upsample(t, N, hp, wp, h, w)
        t = bottleneck_ir(t, mp["mid"][D - d], N, hp, wp)
        shortcut = t
        v = branch(t, d - 1, hp, wp)
        post = mp["post"][D - d]
        t = bottleneck_ir(v, post[0], N, hp, wp, add=shortcut)   # fused (shortcut + v)
        for blk in post[1:]:
            t = bottleneck_ir(t, blk, N, hp, wp)
        return bilinear_upsample(t, N, hp, wp, h, w)

    return branch(x, D, H, W)


def attention_module_forward(x_nchw, params):
    N, Cin, H, W = x_nchw.shape
    # Boundary glue: NCHW -> channels-major flat (C, N*H*W) so every kernel store is lane-dense.
    x = jnp.transpose(x_nchw, (1, 0, 2, 3)).reshape(Cin, N * H * W).astype(jnp.float32)
    for blk in params["start"]:
        x = bottleneck_ir(x, blk, N, H, W)
    y = x
    for blk in params["trunk"]:
        x = bottleneck_ir(x, blk, N, H, W)
    trunk = x
    mask = mask_module(y, params["mask"], N, H, W)
    out = mask_helper_combine(mask, trunk, params, N, H, W)      # helper convs + trunk*(mask+1)
    for blk in params["out"]:
        out = bottleneck_ir(out, blk, N, H, W)
    Cout = out.shape[0]
    return jnp.transpose(out.reshape(Cout, N, H, W), (1, 0, 2, 3))   # back to NCHW


# ----------------------------- deterministic params ---------------------------

def _init_bn(key, c, eps=1e-5):
    # Eval-mode BatchNorm folded into a per-channel scale/shift.
    k1, k2, k3 = jax.random.split(key, 3)
    gamma = 1.0 + 0.1 * jax.random.normal(k1, (c,), jnp.float32)
    beta = 0.05 * jax.random.normal(k2, (c,), jnp.float32)
    running_mean = 0.02 * jax.random.normal(k3, (c,), jnp.float32)
    running_var = jnp.ones((c,), jnp.float32)
    scale = gamma / jnp.sqrt(running_var + eps)
    shift = beta - running_mean * scale
    return scale, shift


def _fold_conv3x3(w_hwio, bn_scale, bn_shift):
    # HWIO (3,3,Cin,Cout) -> (Cout, 9*Cin) tap-major matrix with the output BN scale folded in.
    cin, cout = w_hwio.shape[2], w_hwio.shape[3]
    wmat = jnp.transpose(w_hwio, (3, 0, 1, 2)).reshape(cout, 9 * cin) * bn_scale[:, None]
    return wmat.astype(MXU_DTYPE), bn_shift.reshape(cout, 1)


def _init_ir(key, cin, cout):
    ks = jax.random.split(key, 6)
    p = {}
    s1, b1 = _init_bn(ks[0], cin)
    p["bn1_scale"] = s1.reshape(cin, 1)
    p["bn1_shift"] = b1.reshape(cin, 1)
    w1 = 0.1 * jax.random.normal(ks[1], (3, 3, cin, cout), jnp.float32)
    s2, b2 = _init_bn(ks[2], cout)
    p["w1"], p["b1"] = _fold_conv3x3(w1, s2, b2)
    p["alpha"] = 0.25 * jnp.ones((cout, 1), jnp.float32)        # PReLU default init
    w2 = 0.1 * jax.random.normal(ks[3], (3, 3, cout, cout), jnp.float32)
    s3, b3 = _init_bn(ks[4], cout)
    p["w2"], p["b2"] = _fold_conv3x3(w2, s3, b3)
    if cin != cout:                                             # 1x1 conv + BN shortcut
        kw, kb = jax.random.split(ks[5])
        wsc = 0.1 * jax.random.normal(kw, (cout, cin), jnp.float32)
        ss, sb = _init_bn(kb, cout)
        p["ws"] = (wsc * ss[:, None]).astype(MXU_DTYPE)
        p["bs"] = sb.reshape(cout, 1)
    return p


def compute_num_downsample(spatial):
    # replicates AttentionModule.__init__ resolution loop
    n = 0
    res = spatial
    while res > 4 and res not in (8, 7, 6, 5):
        n += 1
        res = (res - 2) / 2 + 1
    return n


def init_attention_params(key, in_c, out_c, spatial, p=1, t=2, r=1):
    keys = iter(jax.random.split(key, 128))
    P = {}
    P["start"] = [_init_ir(next(keys), in_c, out_c)]
    for _ in range(p - 1):
        P["start"].append(_init_ir(next(keys), out_c, out_c))
    P["trunk"] = [_init_ir(next(keys), out_c, out_c) for _ in range(t)]
    D = compute_num_downsample(spatial)
    assert D >= 1, "mask branch requires at least one downsample"
    P["mask"] = {
        "prev": [[_init_ir(next(keys), out_c, out_c) for _ in range(r)] for _ in range(D)],
        "mid": [_init_ir(next(keys), out_c, out_c) for _ in range(D - 1)],
        "post": [[_init_ir(next(keys), out_c, out_c) for _ in range(r)] for _ in range(D - 1)],
    }
    w = 0.1 * jax.random.normal(next(keys), (out_c, out_c), jnp.float32)
    s, b = _init_bn(next(keys), out_c)
    P["hw1"] = (w * s[:, None]).astype(MXU_DTYPE)
    P["hb1"] = b.reshape(out_c, 1)
    w = 0.1 * jax.random.normal(next(keys), (out_c, out_c), jnp.float32)
    s, b = _init_bn(next(keys), out_c)
    P["hw2"] = (w * s[:, None]).astype(MXU_DTYPE)
    P["hb2"] = b.reshape(out_c, 1)
    P["out"] = [_init_ir(next(keys), out_c, out_c) for _ in range(p)]
    return P


if __name__ == "__main__":
    root = jax.random.PRNGKey(0)
    kx, kp = jax.random.split(root)
    # PyTorch-style NCHW input: batch=2, in_channels=4, spatial=16x16
    x = jax.random.normal(kx, (2, 4, 16, 16), jnp.float32)
    params = init_attention_params(kp, in_c=4, out_c=8, spatial=16, p=1, t=2, r=1)

    fwd = jax.jit(attention_module_forward)
    out = jax.block_until_ready(fwd(x, params))

    assert out.shape == (2, 8, 16, 16), out.shape
    assert bool(jnp.all(jnp.isfinite(out)))
    print("KERNEL_OK")
</pallas_src>

<mosaic_0001>
module attributes {stable_mosaic.version = 11 : i64} {
  func.func @_maxpool_kernel(%arg0: memref<128x2x8x2xf32, #tpu.memory_space<vmem>>, %arg1: memref<128x1x8x1xf32, #tpu.memory_space<vmem>>) attributes {dimension_semantics = [], scalar_prefetch = 0 : i64, scratch_operands = 0 : i64, tpu.core_type = #tpu.core_type<tc>} {
    %c0 = arith.constant 0 : index
    %c0_0 = arith.constant 0 : index
    %c0_1 = arith.constant 0 : index
    %c0_2 = arith.constant 0 : index
    %0 = vector.load %arg0[%c0, %c0_0, %c0_1, %c0_2] : memref<128x2x8x2xf32, #tpu.memory_space<vmem>>, vector<128x2x8x2xf32>
    %1 = vector.extract_strided_slice %0 {offsets = [0, 0, 0, 0], sizes = [128, 1, 8, 1], strides = [1, 1, 1, 1]} : vector<128x2x8x2xf32> to vector<128x1x8x1xf32>
    %2 = vector.extract_strided_slice %0 {offsets = [0, 0, 0, 1], sizes = [128, 1, 8, 1], strides = [1, 1, 1, 1]} : vector<128x2x8x2xf32> to vector<128x1x8x1xf32>
    %3 = arith.maximumf %1, %2 : vector<128x1x8x1xf32>
    %4 = vector.extract_strided_slice %0 {offsets = [0, 1, 0, 0], sizes = [128, 1, 8, 1], strides = [1, 1, 1, 1]} : vector<128x2x8x2xf32> to vector<128x1x8x1xf32>
    %5 = vector.extract_strided_slice %0 {offsets = [0, 1, 0, 1], sizes = [128, 1, 8, 1], strides = [1, 1, 1, 1]} : vector<128x2x8x2xf32> to vector<128x1x8x1xf32>
    %6 = arith.maximumf %4, %5 : vector<128x1x8x1xf32>
    %7 = arith.maximumf %3, %6 : vector<128x1x8x1xf32>
    %c0_3 = arith.constant 0 : index
    %c0_4 = arith.constant 0 : index
    %c0_5 = arith.constant 0 : index
    %c0_6 = arith.constant 0 : index
    %8 = vector.load %arg1[%c0_3, %c0_4, %c0_5, %c0_6] : memref<128x1x8x1xf32, #tpu.memory_space<vmem>>, vector<128x1x8x1xf32>
    tpu.vector_store %arg1[%c0_3, %c0_4, %c0_5, %c0_6], %7 {strides = array<i32>} : memref<128x1x8x1xf32, #tpu.memory_space<vmem>>, vector<128x1x8x1xf32>,
    return
  }
}

module attributes {stable_mosaic.version = 11 : i64} {
  func.func @_bottleneck_kernel(%arg0: i32, %arg1: memref<8x256xf32, #tpu.memory_space<vmem>>, %arg2: memref<9x256xf32, #tpu.memory_space<vmem>>, %arg3: memref<8x1xf32, #tpu.memory_space<vmem>>, %arg4: memref<8x1xf32, #tpu.memory_space<vmem>>, %arg5: memref<8x72xbf16, #tpu.memory_space<vmem>>, %arg6: memref<8x1xf32, #tpu.memory_space<vmem>>, %arg7: memref<8x1xf32, #tpu.memory_space<vmem>>, %arg8: memref<8x72xbf16, #tpu.memory_space<vmem>>, %arg9: memref<8x1xf32, #tpu.memory_space<vmem>>, %arg10: memref<8x256xf32, #tpu.memory_space<vmem>>) attributes {dimension_semantics = [#tpu.dimension_semantics<parallel>], iteration_bounds = array<i64: 2>, scalar_prefetch = 0 : i64, scratch_operands = 0 : i64, tpu.core_type = #tpu.core_type<tc>, window_params = [{transform_indices = @transform_0, window_bounds = array<i64: 8, 256>}, {transform_indices = @transform_1, window_bounds = array<i64: 9, 256>}, {pipeline_mode = #tpu.pipeline_mode<synchronous>, transform_indices = @transform_2, window_bounds = array<i64: 8, 1>}, {pipeline_mode = #tpu.pipeline_mode<synchronous>, transform_indices = @transform_3, window_bounds = array<i64: 8, 1>}, {pipeline_mode = #tpu.pipeline_mode<synchronous>, transform_indices = @transform_4, window_bounds = array<i64: 8, 72>}, {pipeline_mode = #tpu.pipeline_mode<synchronous>, transform_indices = @transform_5, window_bounds = array<i64: 8, 1>}, {pipeline_mode = #tpu.pipeline_mode<synchronous>, transform_indices = @transform_6, window_bounds = array<i64: 8, 1>}, {pipeline_mode = #tpu.pipeline_mode<synchronous>, transform_indices = @transform_7, window_bounds = array<i64: 8, 72>}, {pipeline_mode = #tpu.pipeline_mode<synchronous>, transform_indices = @transform_8, window_bounds = array<i64: 8, 1>}, {transform_indices = @transform_9, window_bounds = array<i64: 8, 256>}]} {
    %c0 = arith.constant 0 : index
    %c0_0 = arith.constant 0 : index
    %0 = vector.load %arg1[%c0, %c0_0] : memref<8x256xf32, #tpu.memory_space<vmem>>, vector<8x256xf32>
    %c0_1 = arith.constant 0 : index
    %c0_2 = arith.constant 0 : index
    %1 = vector.load %arg2[%c0_1, %c0_2] : memref<9x256xf32, #tpu.memory_space<vmem>>, vector<9x256xf32>
    %c0_3 = arith.constant 0 : index
    %c0_4 = arith.constant 0 : index
    %2 = vector.load %arg3[%c0_3, %c0_4] : memref<8x1xf32, #tpu.memory_space<vmem>>, vector<8x1xf32>
    %3 = vector.broadcast %2 : vector<8x1xf32> to vector<8x256xf32>
    %4 = arith.mulf %0, %3 : vector<8x256xf32>
    %c0_5 = arith.constant 0 : index
    %c0_6 = arith.constant 0 : index
    %5 = vector.load %arg4[%c0_5, %c0_6] : memref<8x1xf32, #tpu.memory_space<vmem>>, vector<8x1xf32>
    %6 = vector.broadcast %5 : vector<8x1xf32> to vector<8x256xf32>
    %7 = arith.addf %4, %6 : vector<8x256xf32>
    %c0_7 = arith.constant 0 : index
    %c0_8 = arith.constant 0 : index
    %8 = vector.load %arg5[%c0_7, %c0_8] : memref<8x72xbf16, #tpu.memory_space<vmem>>, vector<8x72xbf16>
    %cst = arith.constant 0.000000e+00 : f32
    %9 = vector.broadcast %cst : f32 to vector<8x17xf32>
    %10 = tpu.concatenate %9, %7, %9 in 1 : vector<8x17xf32>, vector<8x256xf32>, vector<8x17xf32> -> vector<8x290xf32>
    %11 = vector.extract_strided_slice %10 {offsets = [0, 0], sizes = [8, 256], strides = [1, 1]} : vector<8x290xf32> to vector<8x256xf32>
    %12 = vector.extract_strided_slice %1 {offsets = [0, 0], sizes = [1, 256], strides = [1, 1]} : vector<9x256xf32> to vector<1x256xf32>
    %13 = vector.broadcast %12 : vector<1x256xf32> to vector<8x256xf32>
    %14 = arith.mulf %11, %13 : vector<8x256xf32>
    %15 = vector.extract_strided_slice %10 {offsets = [0, 1], sizes = [8, 256], strides = [1, 1]} : vector<8x290xf32> to vector<8x256xf32>
    %16 = vector.extract_strided_slice %1 {offsets = [1, 0], sizes = [1, 256], strides = [1, 1]} : vector<9x256xf32> to vector<1x256xf32>
    %17 = vector.broadcast %16 : vector<1x256xf32> to vector<8x256xf32>
    %18 = arith.mulf %15, %17 : vector<8x256xf32>
    %19 = vector.extract_strided_slice %10 {offsets = [0, 2], sizes = [8, 256], strides = [1, 1]} : vector<8x290xf32> to vector<8x256xf32>
    %20 = vector.extract_strided_slice %1 {offsets = [2, 0], sizes = [1, 256], strides = [1, 1]} : vector<9x256xf32> to vector<1x256xf32>
    %21 = vector.broadcast %20 : vector<1x256xf32> to vector<8x256xf32>
    %22 = arith.mulf %19, %21 : vector<8x256xf32>
    %23 = vector.extract_strided_slice %10 {offsets = [0, 16], sizes = [8, 256], strides = [1, 1]} : vector<8x290xf32> to vector<8x256xf32>
    %24 = vector.extract_strided_slice %1 {offsets = [3, 0], sizes = [1, 256], strides = [1, 1]} : vector<9x256xf32> to vector<1x256xf32>
    %25 = vector.broadcast %24 : vector<1x256xf32> to vector<8x256xf32>
    %26 = arith.mulf %23, %25 : vector<8x256xf32>
    %27 = vector.extract_strided_slice %10 {offsets = [0, 17], sizes = [8, 256], strides = [1, 1]} : vector<8x290xf32> to vector<8x256xf32>
    %28 = vector.extract_strided_slice %1 {offsets = [4, 0], sizes = [1, 256], strides = [1, 1]} : vector<9x256xf32> to vector<1x256xf32>
    %29 = vector.broadcast %28 : vector<1x256xf32> to vector<8x256xf32>
    %30 = arith.mulf %27, %29 : vector<8x256xf32>
    %31 = vector.extract_strided_slice %10 {offsets = [0, 18], sizes = [8, 256], strides = [1, 1]} : vector<8x290xf32> to vector<8x256xf32>
    %32 = vector.extract_strided_slice %1 {offsets = [5, 0], sizes = [1, 256], strides = [1, 1]} : vector<9x256xf32> to vector<1x256xf32>
    %33 = vector.broadcast %32 : vector<1x256xf32> to vector<8x256xf32>
    %34 = arith.mulf %31, %33 : vector<8x256xf32>
    %35 = vector.extract_strided_slice %10 {offsets = [0, 32], sizes = [8, 256], strides = [1, 1]} : vector<8x290xf32> to vector<8x256xf32>
    %36 = vector.extract_strided_slice %1 {offsets = [6, 0], sizes = [1, 256], strides = [1, 1]} : vector<9x256xf32> to vector<1x256xf32>
    %37 = vector.broadcast %36 : vector<1x256xf32> to vector<8x256xf32>
    %38 = arith.mulf %35, %37 : vector<8x256xf32>
    %39 = vector.extract_strided_slice %10 {offsets = [0, 33], sizes = [8, 256], strides = [1, 1]} : vector<8x290xf32> to vector<8x256xf32>
    %40 = vector.extract_strided_slice %1 {offsets = [7, 0], sizes = [1, 256], strides = [1, 1]} : vector<9x256xf32> to vector<1x256xf32>
    %41 = vector.broadcast %40 : vector<1x256xf32> to vector<8x256xf32>
    %42 = arith.mulf %39, %41 : vector<8x256xf32>
    %43 = vector.extract_strided_slice %10 {offsets = [0, 34], sizes = [8, 256], strides = [1, 1]} : vector<8x290xf32> to vector<8x256xf32>
    %44 = vector.extract_strided_slice %1 {offsets = [8, 0], sizes = [1, 256], strides = [1, 1]} : vector<9x256xf32> to vector<1x256xf32>
    %45 = vector.broadcast %44 : vector<1x256xf32> to vector<8x256xf32>
    %46 = arith.mulf %43, %45 : vector<8x256xf32>
    %47 = tpu.concatenate %14, %18, %22, %26, %30, %34, %38, %42, %46 in 0 : vector<8x256xf32>, vector<8x256xf32>, vector<8x256xf32>, vector<8x256xf32>, vector<8x256xf32>, vector<8x256xf32>, vector<8x256xf32>, vector<8x256xf32>, vector<8x256xf32> -> vector<72x256xf32>
    %48 = arith.truncf %47 : vector<72x256xf32> to vector<72x256xbf16>
    %cst_9 = arith.constant dense<0.000000e+00> : vector<8x256xf32>
    %49 = tpu.matmul %8, %48, %cst_9 {dimension_numbers = #tpu.dot_dimension_numbers<[1], [0], [0], [1], [0, 0, 1, 1], [], []>} : vector<8x72xbf16>, vector<72x256xbf16>, vector<8x256xf32> -> vector<8x256xf32>
    %c0_10 = arith.constant 0 : index
    %c0_11 = arith.constant 0 : index
    %50 = vector.load %arg6[%c0_10, %c0_11] : memref<8x1xf32, #tpu.memory_space<vmem>>, vector<8x1xf32>
    %51 = vector.broadcast %50 : vector<8x1xf32> to vector<8x256xf32>
    %52 = arith.addf %49, %51 : vector<8x256xf32>
    %cst_12 = arith.constant 0.000000e+00 : f32
    %53 = vector.broadcast %cst_12 : f32 to vector<8x256xf32>
    %54 = arith.cmpf ogt, %52, %53 : vector<8x256xf32>
    %c0_13 = arith.constant 0 : index
    %c0_14 = arith.constant 0 : index
    %55 = vector.load %arg7[%c0_13, %c0_14] : memref<8x1xf32, #tpu.memory_space<vmem>>, vector<8x1xf32>
    %56 = vector.broadcast %55 : vector<8x1xf32> to vector<8x256xf32>
    %57 = arith.mulf %56, %52 : vector<8x256xf32>
    %58 = arith.select %54, %52, %57 : vector<8x256xi1>, vector<8x256xf32>
    %c0_15 = arith.constant 0 : index
    %c0_16 = arith.constant 0 : index
    %59 = vector.load %arg8[%c0_15, %c0_16] : memref<8x72xbf16, #tpu.memory_space<vmem>>, vector<8x72xbf16>
    %cst_17 = arith.constant 0.000000e+00 : f32
    %60 = vector.broadcast %cst_17 : f32 to vector<8x17xf32>
    %61 = tpu.concatenate %60, %58, %60 in 1 : vector<8x17xf32>, vector<8x256xf32>, vector<8x17xf32> -> vector<8x290xf32>
    %62 = vector.extract_strided_slice %61 {offsets = [0, 0], sizes = [8, 256], strides = [1, 1]} : vector<8x290xf32> to vector<8x256xf32>
    %63 = vector.extract_strided_slice %1 {offsets = [0, 0], sizes = [1, 256], strides = [1, 1]} : vector<9x256xf32> to vector<1x256xf32>
    %64 = vector.broadcast %63 : vector<1x256xf32> to vector<8x256xf32>
    %65 = arith.mulf %62, %64 : vector<8x256xf32>
    %66 = vector.extract_strided_slice %61 {offsets = [0, 1], sizes = [8, 256], strides = [1, 1]} : vector<8x290xf32> to vector<8x256xf32>
    %67 = vector.extract_strided_slice %1 {offsets = [1, 0], sizes = [1, 256], strides = [1, 1]} : vector<9x256xf32> to vector<1x256xf32>
    %68 = vector.broadcast %67 : vector<1x256xf32> to vector<8x256xf32>
    %69 = arith.mulf %66, %68 : vector<8x256xf32>
    %70 = vector.extract_strided_slice %61 {offsets = [0, 2], sizes = [8, 256], strides = [1, 1]} : vector<8x290xf32> to vector<8x256xf32>
    %71 = vector.extract_strided_slice %1 {offsets = [2, 0], sizes = [1, 256], strides = [1, 1]} : vector<9x256xf32> to vector<1x256xf32>
    %72 = vector.broadcast %71 : vector<1x256xf32> to vector<8x256xf32>
    %73 = arith.mulf %70, %72 : vector<8x256xf32>
    %74 = vector.extract_strided_slice %61 {offsets = [0, 16], sizes = [8, 256], strides = [1, 1]} : vector<8x290xf32> to vector<8x256xf32>
    %75 = vector.extract_strided_slice %1 {offsets = [3, 0], sizes = [1, 256], strides = [1, 1]} : vector<9x256xf32> to vector<1x256xf32>
    %76 = vector.broadcast %75 : vector<1x256xf32> to vector<8x256xf32>
    %77 = arith.mulf %74, %76 : vector<8x256xf32>
    %78 = vector.extract_strided_slice %61 {offsets = [0, 17], sizes = [8, 256], strides = [1, 1]} : vector<8x290xf32> to vector<8x256xf32>
    %79 = vector.extract_strided_slice %1 {offsets = [4, 0], sizes = [1, 256], strides = [1, 1]} : vector<9x256xf32> to vector<1x256xf32>
    %80 = vector.broadcast %79 : vector<1x256xf32> to vector<8x256xf32>
    %81 = arith.mulf %78, %80 : vector<8x256xf32>
    %82 = vector.extract_strided_slice %61 {offsets = [0, 18], sizes = [8, 256], strides = [1, 1]} : vector<8x290xf32> to vector<8x256xf32>
    %83 = vector.extract_strided_slice %1 {offsets = [5, 0], sizes = [1, 256], strides = [1, 1]} : vector<9x256xf32> to vector<1x256xf32>
    %84 = vector.broadcast %83 : vector<1x256xf32> to vector<8x256xf32>
    %85 = arith.mulf %82, %84 : vector<8x256xf32>
    %86 = vector.extract_strided_slice %61 {offsets = [0, 32], sizes = [8, 256], strides = [1, 1]} : vector<8x290xf32> to vector<8x256xf32>
    %87 = vector.extract_strided_slice %1 {offsets = [6, 0], sizes = [1, 256], strides = [1, 1]} : vector<9x256xf32> to vector<1x256xf32>
    %88 = vector.broadcast %87 : vector<1x256xf32> to vector<8x256xf32>
    %89 = arith.mulf %86, %88 : vector<8x256xf32>
    %90 = vector.extract_strided_slice %61 {offsets = [0, 33], sizes = [8, 256], strides = [1, 1]} : vector<8x290xf32> to vector<8x256xf32>
    %91 = vector.extract_strided_slice %1 {offsets = [7, 0], sizes = [1, 256], strides = [1, 1]} : vector<9x256xf32> to vector<1x256xf32>
    %92 = vector.broadcast %91 : vector<1x256xf32> to vector<8x256xf32>
    %93 = arith.mulf %90, %92 : vector<8x256xf32>
    %94 = vector.extract_strided_slice %61 {offsets = [0, 34], sizes = [8, 256], strides = [1, 1]} : vector<8x290xf32> to vector<8x256xf32>
    %95 = vector.extract_strided_slice %1 {offsets = [8, 0], sizes = [1, 256], strides = [1, 1]} : vector<9x256xf32> to vector<1x256xf32>
    %96 = vector.broadcast %95 : vector<1x256xf32> to vector<8x256xf32>
    %97 = arith.mulf %94, %96 : vector<8x256xf32>
    %98 = tpu.concatenate %65, %69, %73, %77, %81, %85, %89, %93, %97 in 0 : vector<8x256xf32>, vector<8x256xf32>, vector<8x256xf32>, vector<8x256xf32>, vector<8x256xf32>, vector<8x256xf32>, vector<8x256xf32>, vector<8x256xf32>, vector<8x256xf32> -> vector<72x256xf32>
    %99 = arith.truncf %98 : vector<72x256xf32> to vector<72x256xbf16>
    %cst_18 = arith.constant dense<0.000000e+00> : vector<8x256xf32>
    %100 = tpu.matmul %59, %99, %cst_18 {dimension_numbers = #tpu.dot_dimension_numbers<[1], [0], [0], [1], [0, 0, 1, 1], [], []>} : vector<8x72xbf16>, vector<72x256xbf16>, vector<8x256xf32> -> vector<8x256xf32>
    %c0_19 = arith.constant 0 : index
    %c0_20 = arith.constant 0 : index
    %101 = vector.load %arg9[%c0_19, %c0_20] : memref<8x1xf32, #tpu.memory_space<vmem>>, vector<8x1xf32>
    %102 = vector.broadcast %101 : vector<8x1xf32> to vector<8x256xf32>
    %103 = arith.addf %100, %102 : vector<8x256xf32>
    %104 = arith.addf %103, %0 : vector<8x256xf32>
    %c0_21 = arith.constant 0 : index
    %c0_22 = arith.constant 0 : index
    %105 = vector.load %arg10[%c0_21, %c0_22] : memref<8x256xf32, #tpu.memory_space<vmem>>, vector<8x256xf32>
    tpu.vector_store %arg10[%c0_21, %c0_22], %104 {strides = array<i32>} : memref<8x256xf32, #tpu.memory_space<vmem>>, vector<8x256xf32>,
    return
  }
  func.func @transform_0(%arg0: i32) -> (i32, i32) {
    %c0_i32 = arith.constant 0 : i32
    %c0_i32_0 = arith.constant 0 : i32
    return %c0_i32, %arg0 : i32, i32
  }
  func.func @transform_1(%arg0: i32) -> (i32, i32) {
    %c0_i32 = arith.constant 0 : i32
    %c0_i32_0 = arith.constant 0 : i32
    return %c0_i32, %arg0 : i32, i32
  }
  func.func @transform_2(%arg0: i32) -> (i32, i32) {
    %c0_i32 = arith.constant 0 : i32
    %c0_i32_0 = arith.constant 0 : i32
    %c0_i32_1 = arith.constant 0 : i32
    return %c0_i32, %c0_i32_0 : i32, i32
  }
  func.func @transform_3(%arg0: i32) -> (i32, i32) {
    %c0_i32 = arith.constant 0 : i32
    %c0_i32_0 = arith.constant 0 : i32
    %c0_i32_1 = arith.constant 0 : i32
    return %c0_i32, %c0_i32_0 : i32, i32
  }
  func.func @transform_4(%arg0: i32) -> (i32, i32) {
    %c0_i32 = arith.constant 0 : i32
    %c0_i32_0 = arith.constant 0 : i32
    %c0_i32_1 = arith.constant 0 : i32
    return %c0_i32, %c0_i32_0 : i32, i32
  }
  func.func @transform_5(%arg0: i32) -> (i32, i32) {
    %c0_i32 = arith.constant 0 : i32
    %c0_i32_0 = arith.constant 0 : i32
    %c0_i32_1 = arith.constant 0 : i32
    return %c0_i32, %c0_i32_0 : i32, i32
  }
  func.func @transform_6(%arg0: i32) -> (i32, i32) {
    %c0_i32 = arith.constant 0 : i32
    %c0_i32_0 = arith.constant 0 : i32
    %c0_i32_1 = arith.constant 0 : i32
    return %c0_i32, %c0_i32_0 : i32, i32
  }
  func.func @transform_7(%arg0: i32) -> (i32, i32) {
    %c0_i32 = arith.constant 0 : i32
    %c0_i32_0 = arith.constant 0 : i32
    %c0_i32_1 = arith.constant 0 : i32
    return %c0_i32, %c0_i32_0 : i32, i32
  }
  func.func @transform_8(%arg0: i32) -> (i32, i32) {
    %c0_i32 = arith.constant 0 : i32
    %c0_i32_0 = arith.constant 0 : i32
    %c0_i32_1 = arith.constant 0 : i32
    return %c0_i32, %c0_i32_0 : i32, i32
  }
  func.func @transform_9(%arg0: i32) -> (i32, i32) {
    %c0_i32 = arith.constant 0 : i32
    %c0_i32_0 = arith.constant 0 : i32
    return %c0_i32, %arg0 : i32, i32
  }
}

module attributes {stable_mosaic.version = 11 : i64} {
  func.func @_bottleneck_kernel(%arg0: i32, %arg1: memref<4x256xf32, #tpu.memory_space<vmem>>, %arg2: memref<9x256xf32, #tpu.memory_space<vmem>>, %arg3: memref<4x1xf32, #tpu.memory_space<vmem>>, %arg4: memref<4x1xf32, #tpu.memory_space<vmem>>, %arg5: memref<8x36xbf16, #tpu.memory_space<vmem>>, %arg6: memref<8x1xf32, #tpu.memory_space<vmem>>, %arg7: memref<8x1xf32, #tpu.memory_space<vmem>>, %arg8: memref<8x72xbf16, #tpu.memory_space<vmem>>, %arg9: memref<8x1xf32, #tpu.memory_space<vmem>>, %arg10: memref<8x4xbf16, #tpu.memory_space<vmem>>, %arg11: memref<8x1xf32, #tpu.memory_space<vmem>>, %arg12: memref<8x256xf32, #tpu.memory_space<vmem>>) attributes {dimension_semantics = [#tpu.dimension_semantics<parallel>], iteration_bounds = array<i64: 2>, scalar_prefetch = 0 : i64, scratch_operands = 0 : i64, tpu.core_type = #tpu.core_type<tc>, window_params = [{transform_indices = @transform_0, window_bounds = array<i64: 4, 256>}, {transform_indices = @transform_1, window_bounds = array<i64: 9, 256>}, {pipeline_mode = #tpu.pipeline_mode<synchronous>, transform_indices = @transform_2, window_bounds = array<i64: 4, 1>}, {pipeline_mode = #tpu.pipeline_mode<synchronous>, transform_indices = @transform_3, window_bounds = array<i64: 4, 1>}, {pipeline_mode = #tpu.pipeline_mode<synchronous>, transform_indices = @transform_4, window_bounds = array<i64: 8, 36>}, {pipeline_mode = #tpu.pipeline_mode<synchronous>, transform_indices = @transform_5, window_bounds = array<i64: 8, 1>}, {pipeline_mode = #tpu.pipeline_mode<synchronous>, transform_indices = @transform_6, window_bounds = array<i64: 8, 1>}, {pipeline_mode = #tpu.pipeline_mode<synchronous>, transform_indices = @transform_7, window_bounds = array<i64: 8, 72>}, {pipeline_mode = #tpu.pipeline_mode<synchronous>, transform_indices = @transform_8, window_bounds = array<i64: 8, 1>}, {pipeline_mode = #tpu.pipeline_mode<synchronous>, transform_indices = @transform_9, window_bounds = array<i64: 8, 4>}, {pipeline_mode = #tpu.pipeline_mode<synchronous>, transform_indices = @transform_10, window_bounds = array<i64: 8, 1>}, {transform_indices = @transform_11, window_bounds = array<i64: 8, 256>}]} {
    %c0 = arith.constant 0 : index
    %c0_0 = arith.constant 0 : index
    %0 = vector.load %arg1[%c0, %c0_0] : memref<4x256xf32, #tpu.memory_space<vmem>>, vector<4x256xf32>
    %c0_1 = arith.constant 0 : index
    %c0_2 = arith.constant 0 : index
    %1 = vector.load %arg2[%c0_1, %c0_2] : memref<9x256xf32, #tpu.memory_space<vmem>>, vector<9x256xf32>
    %c0_3 = arith.constant 0 : index
    %c0_4 = arith.constant 0 : index
    %2 = vector.load %arg3[%c0_3, %c0_4] : memref<4x1xf32, #tpu.memory_space<vmem>>, vector<4x1xf32>
    %3 = vector.broadcast %2 : vector<4x1xf32> to vector<4x256xf32>
    %4 = arith.mulf %0, %3 : vector<4x256xf32>
    %c0_5 = arith.constant 0 : index
    %c0_6 = arith.constant 0 : index
    %5 = vector.load %arg4[%c0_5, %c0_6] : memref<4x1xf32, #tpu.memory_space<vmem>>, vector<4x1xf32>
    %6 = vector.broadcast %5 : vector<4x1xf32> to vector<4x256xf32>
    %7 = arith.addf %4, %6 : vector<4x256xf32>
    %c0_7 = arith.constant 0 : index
    %c0_8 = arith.constant 0 : index
    %8 = vector.load %arg5[%c0_7, %c0_8] : memref<8x36xbf16, #tpu.memory_space<vmem>>, vector<8x36xbf16>
    %cst = arith.constant 0.000000e+00 : f32
    %9 = vector.broadcast %cst : f32 to vector<4x17xf32>
    %10 = tpu.concatenate %9, %7, %9 in 1 : vector<4x17xf32>, vector<4x256xf32>, vector<4x17xf32> -> vector<4x290xf32>
    %11 = vector.extract_strided_slice %10 {offsets = [0, 0], sizes = [4, 256], strides = [1, 1]} : vector<4x290xf32> to vector<4x256xf32>
    %12 = vector.extract_strided_slice %1 {offsets = [0, 0], sizes = [1, 256], strides = [1, 1]} : vector<9x256xf32> to vector<1x256xf32>
    %13 = vector.broadcast %12 : vector<1x256xf32> to vector<4x256xf32>
    %14 = arith.mulf %11, %13 : vector<4x256xf32>
    %15 = vector.extract_strided_slice %10 {offsets = [0, 1], sizes = [4, 256], strides = [1, 1]} : vector<4x290xf32> to vector<4x256xf32>
    %16 = vector.extract_strided_slice %1 {offsets = [1, 0], sizes = [1, 256], strides = [1, 1]} : vector<9x256xf32> to vector<1x256xf32>
    %17 = vector.broadcast %16 : vector<1x256xf32> to vector<4x256xf32>
    %18 = arith.mulf %15, %17 : vector<4x256xf32>
    %19 = vector.extract_strided_slice %10 {offsets = [0, 2], sizes = [4, 256], strides = [1, 1]} : vector<4x290xf32> to vector<4x256xf32>
    %20 = vector.extract_strided_slice %1 {offsets = [2, 0], sizes = [1, 256], strides = [1, 1]} : vector<9x256xf32> to vector<1x256xf32>
    %21 = vector.broadcast %20 : vector<1x256xf32> to vector<4x256xf32>
    %22 = arith.mulf %19, %21 : vector<4x256xf32>
    %23 = vector.extract_strided_slice %10 {offsets = [0, 16], sizes = [4, 256], strides = [1, 1]} : vector<4x290xf32> to vector<4x256xf32>
    %24 = vector.extract_strided_slice %1 {offsets = [3, 0], sizes = [1, 256], strides = [1, 1]} : vector<9x256xf32> to vector<1x256xf32>
    %25 = vector.broadcast %24 : vector<1x256xf32> to vector<4x256xf32>
    %26 = arith.mulf %23, %25 : vector<4x256xf32>
    %27 = vector.extract_strided_slice %10 {offsets = [0, 17], sizes = [4, 256], strides = [1, 1]} : vector<4x290xf32> to vector<4x256xf32>
    %28 = vector.extract_strided_slice %1 {offsets = [4, 0], sizes = [1, 256], strides = [1, 1]} : vector<9x256xf32> to vector<1x256xf32>
    %29 = vector.broadcast %28 : vector<1x256xf32> to vector<4x256xf32>
    %30 = arith.mulf %27, %29 : vector<4x256xf32>
    %31 = vector.extract_strided_slice %10 {offsets = [0, 18], sizes = [4, 256], strides = [1, 1]} : vector<4x290xf32> to vector<4x256xf32>
    %32 = vector.extract_strided_slice %1 {offsets = [5, 0], sizes = [1, 256], strides = [1, 1]} : vector<9x256xf32> to vector<1x256xf32>
    %33 = vector.broadcast %32 : vector<1x256xf32> to vector<4x256xf32>
    %34 = arith.mulf %31, %33 : vector<4x256xf32>
    %35 = vector.extract_strided_slice %10 {offsets = [0, 32], sizes = [4, 256], strides = [1, 1]} : vector<4x290xf32> to vector<4x256xf32>
    %36 = vector.extract_strided_slice %1 {offsets = [6, 0], sizes = [1, 256], strides = [1, 1]} : vector<9x256xf32> to vector<1x256xf32>
    %37 = vector.broadcast %36 : vector<1x256xf32> to vector<4x256xf32>
    %38 = arith.mulf %35, %37 : vector<4x256xf32>
    %39 = vector.extract_strided_slice %10 {offsets = [0, 33], sizes = [4, 256], strides = [1, 1]} : vector<4x290xf32> to vector<4x256xf32>
    %40 = vector.extract_strided_slice %1 {offsets = [7, 0], sizes = [1, 256], strides = [1, 1]} : vector<9x256xf32> to vector<1x256xf32>
    %41 = vector.broadcast %40 : vector<1x256xf32> to vector<4x256xf32>
    %42 = arith.mulf %39, %41 : vector<4x256xf32>
    %43 = vector.extract_strided_slice %10 {offsets = [0, 34], sizes = [4, 256], strides = [1, 1]} : vector<4x290xf32> to vector<4x256xf32>
    %44 = vector.extract_strided_slice %1 {offsets = [8, 0], sizes = [1, 256], strides = [1, 1]} : vector<9x256xf32> to vector<1x256xf32>
    %45 = vector.broadcast %44 : vector<1x256xf32> to vector<4x256xf32>
    %46 = arith.mulf %43, %45 : vector<4x256xf32>
    %47 = tpu.concatenate %14, %18, %22, %26, %30, %34, %38, %42, %46 in 0 : vector<4x256xf32>, vector<4x256xf32>, vector<4x256xf32>, vector<4x256xf32>, vector<4x256xf32>, vector<4x256xf32>, vector<4x256xf32>, vector<4x256xf32>, vector<4x256xf32> -> vector<36x256xf32>
    %48 = arith.truncf %47 : vector<36x256xf32> to vector<36x256xbf16>
    %cst_9 = arith.constant dense<0.000000e+00> : vector<8x256xf32>
    %49 = tpu.matmul %8, %48, %cst_9 {dimension_numbers = #tpu.dot_dimension_numbers<[1], [0], [0], [1], [0, 0, 1, 1], [], []>} : vector<8x36xbf16>, vector<36x256xbf16>, vector<8x256xf32> -> vector<8x256xf32>
    %c0_10 = arith.constant 0 : index
    %c0_11 = arith.constant 0 : index
    %50 = vector.load %arg6[%c0_10, %c0_11] : memref<8x1xf32, #tpu.memory_space<vmem>>, vector<8x1xf32>
    %51 = vector.broadcast %50 : vector<8x1xf32> to vector<8x256xf32>
    %52 = arith.addf %49, %51 : vector<8x256xf32>
    %cst_12 = arith.constant 0.000000e+00 : f32
    %53 = vector.broadcast %cst_12 : f32 to vector<8x256xf32>
    %54 = arith.cmpf ogt, %52, %53 : vector<8x256xf32>
    %c0_13 = arith.constant 0 : index
    %c0_14 = arith.constant 0 : index
    %55 = vector.load %arg7[%c0_13, %c0_14] : memref<8x1xf32, #tpu.memory_space<vmem>>, vector<8x1xf32>
    %56 = vector.broadcast %55 : vector<8x1xf32> to vector<8x256xf32>
    %57 = arith.mulf %56, %52 : vector<8x256xf32>
    %58 = arith.select %54, %52, %57 : vector<8x256xi1>, vector<8x256xf32>
    %c0_15 = arith.constant 0 : index
    %c0_16 = arith.constant 0 : index
    %59 = vector.load %arg8[%c0_15, %c0_16] : memref<8x72xbf16, #tpu.memory_space<vmem>>, vector<8x72xbf16>
    %cst_17 = arith.constant 0.000000e+00 : f32
    %60 = vector.broadcast %cst_17 : f32 to vector<8x17xf32>
    %61 = tpu.concatenate %60, %58, %60 in 1 : vector<8x17xf32>, vector<8x256xf32>, vector<8x17xf32> -> vector<8x290xf32>
    %62 = vector.extract_strided_slice %61 {offsets = [0, 0], sizes = [8, 256], strides = [1, 1]} : vector<8x290xf32> to vector<8x256xf32>
    %63 = vector.extract_strided_slice %1 {offsets = [0, 0], sizes = [1, 256], strides = [1, 1]} : vector<9x256xf32> to vector<1x256xf32>
    %64 = vector.broadcast %63 : vector<1x256xf32> to vector<8x256xf32>
    %65 = arith.mulf %62, %64 : vector<8x256xf32>
    %66 = vector.extract_strided_slice %61 {offsets = [0, 1], sizes = [8, 256], strides = [1, 1]} : vector<8x290xf32> to vector<8x256xf32>
    %67 = vector.extract_strided_slice %1 {offsets = [1, 0], sizes = [1, 256], strides = [1, 1]} : vector<9x256xf32> to vector<1x256xf32>
    %68 = vector.broadcast %67 : vector<1x256xf32> to vector<8x256xf32>
    %69 = arith.mulf %66, %68 : vector<8x256xf32>
    %70 = vector.extract_strided_slice %61 {offsets = [0, 2], sizes = [8, 256], strides = [1, 1]} : vector<8x290xf32> to vector<8x256xf32>
    %71 = vector.extract_strided_slice %1 {offsets = [2, 0], sizes = [1, 256], strides = [1, 1]} : vector<9x256xf32> to vector<1x256xf32>
    %72 = vector.broadcast %71 : vector<1x256xf32> to vector<8x256xf32>
    %73 = arith.mulf %70, %72 : vector<8x256xf32>
    %74 = vector.extract_strided_slice %61 {offsets = [0, 16], sizes = [8, 256], strides = [1, 1]} : vector<8x290xf32> to vector<8x256xf32>
    %75 = vector.extract_strided_slice %1 {offsets = [3, 0], sizes = [1, 256], strides = [1, 1]} : vector<9x256xf32> to vector<1x256xf32>
    %76 = vector.broadcast %75 : vector<1x256xf32> to vector<8x256xf32>
    %77 = arith.mulf %74, %76 : vector<8x256xf32>
    %78 = vector.extract_strided_slice %61 {offsets = [0, 17], sizes = [8, 256], strides = [1, 1]} : vector<8x290xf32> to vector<8x256xf32>
    %79 = vector.extract_strided_slice %1 {offsets = [4, 0], sizes = [1, 256], strides = [1, 1]} : vector<9x256xf32> to vector<1x256xf32>
    %80 = vector.broadcast %79 : vector<1x256xf32> to vector<8x256xf32>
    %81 = arith.mulf %78, %80 : vector<8x256xf32>
    %82 = vector.extract_strided_slice %61 {offsets = [0, 18], sizes = [8, 256], strides = [1, 1]} : vector<8x290xf32> to vector<8x256xf32>
    %83 = vector.extract_strided_slice %1 {offsets = [5, 0], sizes = [1, 256], strides = [1, 1]} : vector<9x256xf32> to vector<1x256xf32>
    %84 = vector.broadcast %83 : vector<1x256xf32> to vector<8x256xf32>
    %85 = arith.mulf %82, %84 : vector<8x256xf32>
    %86 = vector.extract_strided_slice %61 {offsets = [0, 32], sizes = [8, 256], strides = [1, 1]} : vector<8x290xf32> to vector<8x256xf32>
    %87 = vector.extract_strided_slice %1 {offsets = [6, 0], sizes = [1, 256], strides = [1, 1]} : vector<9x256xf32> to vector<1x256xf32>
    %88 = vector.broadcast %87 : vector<1x256xf32> to vector<8x256xf32>
    %89 = arith.mulf %86, %88 : vector<8x256xf32>
    %90 = vector.extract_strided_slice %61 {offsets = [0, 33], sizes = [8, 256], strides = [1, 1]} : vector<8x290xf32> to vector<8x256xf32>
    %91 = vector.extract_strided_slice %1 {offsets = [7, 0], sizes = [1, 256], strides = [1, 1]} : vector<9x256xf32> to vector<1x256xf32>
    %92 = vector.broadcast %91 : vector<1x256xf32> to vector<8x256xf32>
    %93 = arith.mulf %90, %92 : vector<8x256xf32>
    %94 = vector.extract_strided_slice %61 {offsets = [0, 34], sizes = [8, 256], strides = [1, 1]} : vector<8x290xf32> to vector<8x256xf32>
    %95 = vector.extract_strided_slice %1 {offsets = [8, 0], sizes = [1, 256], strides = [1, 1]} : vector<9x256xf32> to vector<1x256xf32>
    %96 = vector.broadcast %95 : vector<1x256xf32> to vector<8x256xf32>
    %97 = arith.mulf %94, %96 : vector<8x256xf32>
    %98 = tpu.concatenate %65, %69, %73, %77, %81, %85, %89, %93, %97 in 0 : vector<8x256xf32>, vector<8x256xf32>, vector<8x256xf32>, vector<8x256xf32>, vector<8x256xf32>, vector<8x256xf32>, vector<8x256xf32>, vector<8x256xf32>, vector<8x256xf32> -> vector<72x256xf32>
    %99 = arith.truncf %98 : vector<72x256xf32> to vector<72x256xbf16>
    %cst_18 = arith.constant dense<0.000000e+00> : vector<8x256xf32>
    %100 = tpu.matmul %59, %99, %cst_18 {dimension_numbers = #tpu.dot_dimension_numbers<[1], [0], [0], [1], [0, 0, 1, 1], [], []>} : vector<8x72xbf16>, vector<72x256xbf16>, vector<8x256xf32> -> vector<8x256xf32>
    %c0_19 = arith.constant 0 : index
    %c0_20 = arith.constant 0 : index
    %101 = vector.load %arg9[%c0_19, %c0_20] : memref<8x1xf32, #tpu.memory_space<vmem>>, vector<8x1xf32>
    %102 = vector.broadcast %101 : vector<8x1xf32> to vector<8x256xf32>
    %103 = arith.addf %100, %102 : vector<8x256xf32>
    %c0_21 = arith.constant 0 : index
    %c0_22 = arith.constant 0 : index
    %104 = vector.load %arg10[%c0_21, %c0_22] : memref<8x4xbf16, #tpu.memory_space<vmem>>, vector<8x4xbf16>
    %105 = arith.truncf %0 : vector<4x256xf32> to vector<4x256xbf16>
    %cst_23 = arith.constant dense<0.000000e+00> : vector<8x256xf32>
    %106 = tpu.matmul %104, %105, %cst_23 {dimension_numbers = #tpu.dot_dimension_numbers<[1], [0], [0], [1], [0, 0, 1, 1], [], []>} : vector<8x4xbf16>, vector<4x256xbf16>, vector<8x256xf32> -> vector<8x256xf32>
    %c0_24 = arith.constant 0 : index
    %c0_25 = arith.constant 0 : index
    %107 = vector.load %arg11[%c0_24, %c0_25] : memref<8x1xf32, #tpu.memory_space<vmem>>, vector<8x1xf32>
    %108 = vector.broadcast %107 : vector<8x1xf32> to vector<8x256xf32>
    %109 = arith.addf %106, %108 : vector<8x256xf32>
    %110 = arith.addf %103, %109 : vector<8x256xf32>
    %c0_26 = arith.constant 0 : index
    %c0_27 = arith.constant 0 : index
    %111 = vector.load %arg12[%c0_26, %c0_27] : memref<8x256xf32, #tpu.memory_space<vmem>>, vector<8x256xf32>
    tpu.vector_store %arg12[%c0_26, %c0_27], %110 {strides = array<i32>} : memref<8x256xf32, #tpu.memory_space<vmem>>, vector<8x256xf32>,
    return
  }
  func.func @transform_0(%arg0: i32) -> (i32, i32) {
    %c0_i32 = arith.constant 0 : i32
    %c0_i32_0 = arith.constant 0 : i32
    return %c0_i32, %arg0 : i32, i32
  }
  func.func @transform_1(%arg0: i32) -> (i32, i32) {
    %c0_i32 = arith.constant 0 : i32
    %c0_i32_0 = arith.constant 0 : i32
    return %c0_i32, %arg0 : i32, i32
  }
  func.func @transform_2(%arg0: i32) -> (i32, i32) {
    %c0_i32 = arith.constant 0 : i32
    %c0_i32_0 = arith.constant 0 : i32
    %c0_i32_1 = arith.constant 0 : i32
    return %c0_i32, %c0_i32_0 : i32, i32
  }
  func.func @transform_3(%arg0: i32) -> (i32, i32) {
    %c0_i32 = arith.constant 0 : i32
    %c0_i32_0 = arith.constant 0 : i32
    %c0_i32_1 = arith.constant 0 : i32
    return %c0_i32, %c0_i32_0 : i32, i32
  }
  func.func @transform_4(%arg0: i32) -> (i32, i32) {
    %c0_i32 = arith.constant 0 : i32
    %c0_i32_0 = arith.constant 0 : i32
    %c0_i32_1 = arith.constant 0 : i32
    return %c0_i32, %c0_i32_0 : i32, i32
  }
  func.func @transform_5(%arg0: i32) -> (i32, i32) {
    %c0_i32 = arith.constant 0 : i32
    %c0_i32_0 = arith.constant 0 : i32
    %c0_i32_1 = arith.constant 0 : i32
    return %c0_i32, %c0_i32_0 : i32, i32
  }
  func.func @transform_6(%arg0: i32) -> (i32, i32) {
    %c0_i32 = arith.constant 0 : i32
    %c0_i32_0 = arith.constant 0 : i32
    %c0_i32_1 = arith.constant 0 : i32
    return %c0_i32, %c0_i32_0 : i32, i32
  }
  func.func @transform_7(%arg0: i32) -> (i32, i32) {
    %c0_i32 = arith.constant 0 : i32
    %c0_i32_0 = arith.constant 0 : i32
    %c0_i32_1 = arith.constant 0 : i32
    return %c0_i32, %c0_i32_0 : i32, i32
  }
  func.func @transform_8(%arg0: i32) -> (i32, i32) {
    %c0_i32 = arith.constant 0 : i32
    %c0_i32_0 = arith.constant 0 : i32
    %c0_i32_1 = arith.constant 0 : i32
    return %c0_i32, %c0_i32_0 : i32, i32
  }
  func.func @transform_9(%arg0: i32) -> (i32, i32) {
    %c0_i32 = arith.constant 0 : i32
    %c0_i32_0 = arith.constant 0 : i32
    %c0_i32_1 = arith.constant 0 : i32
    return %c0_i32, %c0_i32_0 : i32, i32
  }
  func.func @transform_10(%arg0: i32) -> (i32, i32) {
    %c0_i32 = arith.constant 0 : i32
    %c0_i32_0 = arith.constant 0 : i32
    %c0_i32_1 = arith.constant 0 : i32
    return %c0_i32, %c0_i32_0 : i32, i32
  }
  func.func @transform_11(%arg0: i32) -> (i32, i32) {
    %c0_i32 = arith.constant 0 : i32
    %c0_i32_0 = arith.constant 0 : i32
    return %c0_i32, %arg0 : i32, i32
  }
}

module attributes {stable_mosaic.version = 11 : i64} {
  func.func @_bottleneck_kernel(%arg0: i32, %arg1: memref<8x128xf32, #tpu.memory_space<vmem>>, %arg2: memref<9x128xf32, #tpu.memory_space<vmem>>, %arg3: memref<8x1xf32, #tpu.memory_space<vmem>>, %arg4: memref<8x1xf32, #tpu.memory_space<vmem>>, %arg5: memref<8x72xbf16, #tpu.memory_space<vmem>>, %arg6: memref<8x1xf32, #tpu.memory_space<vmem>>, %arg7: memref<8x1xf32, #tpu.memory_space<vmem>>, %arg8: memref<8x72xbf16, #tpu.memory_space<vmem>>, %arg9: memref<8x1xf32, #tpu.memory_space<vmem>>, %arg10: memref<8x128xf32, #tpu.memory_space<vmem>>) attributes {dimension_semantics = [#tpu.dimension_semantics<parallel>], iteration_bounds = array<i64: 1>, scalar_prefetch = 0 : i64, scratch_operands = 0 : i64, tpu.core_type = #tpu.core_type<tc>, window_params = [{transform_indices = @transform_0, window_bounds = array<i64: 8, 128>}, {transform_indices = @transform_1, window_bounds = array<i64: 9, 128>}, {pipeline_mode = #tpu.pipeline_mode<synchronous>, transform_indices = @transform_2, window_bounds = array<i64: 8, 1>}, {pipeline_mode = #tpu.pipeline_mode<synchronous>, transform_indices = @transform_3, window_bounds = array<i64: 8, 1>}, {pipeline_mode = #tpu.pipeline_mode<synchronous>, transform_indices = @transform_4, window_bounds = array<i64: 8, 72>}, {pipeline_mode = #tpu.pipeline_mode<synchronous>, transform_indices = @transform_5, window_bounds = array<i64: 8, 1>}, {pipeline_mode = #tpu.pipeline_mode<synchronous>, transform_indices = @transform_6, window_bounds = array<i64: 8, 1>}, {pipeline_mode = #tpu.pipeline_mode<synchronous>, transform_indices = @transform_7, window_bounds = array<i64: 8, 72>}, {pipeline_mode = #tpu.pipeline_mode<synchronous>, transform_indices = @transform_8, window_bounds = array<i64: 8, 1>}, {transform_indices = @transform_9, window_bounds = array<i64: 8, 128>}]} {
    %c0 = arith.constant 0 : index
    %c0_0 = arith.constant 0 : index
    %0 = vector.load %arg1[%c0, %c0_0] : memref<8x128xf32, #tpu.memory_space<vmem>>, vector<8x128xf32>
    %c0_1 = arith.constant 0 : index
    %c0_2 = arith.constant 0 : index
    %1 = vector.load %arg2[%c0_1, %c0_2] : memref<9x128xf32, #tpu.memory_space<vmem>>, vector<9x128xf32>
    %c0_3 = arith.constant 0 : index
    %c0_4 = arith.constant 0 : index
    %2 = vector.load %arg3[%c0_3, %c0_4] : memref<8x1xf32, #tpu.memory_space<vmem>>, vector<8x1xf32>
    %3 = vector.broadcast %2 : vector<8x1xf32> to vector<8x128xf32>
    %4 = arith.mulf %0, %3 : vector<8x128xf32>
    %c0_5 = arith.constant 0 : index
    %c0_6 = arith.constant 0 : index
    %5 = vector.load %arg4[%c0_5, %c0_6] : memref<8x1xf32, #tpu.memory_space<vmem>>, vector<8x1xf32>
    %6 = vector.broadcast %5 : vector<8x1xf32> to vector<8x128xf32>
    %7 = arith.addf %4, %6 : vector<8x128xf32>
    %c0_7 = arith.constant 0 : index
    %c0_8 = arith.constant 0 : index
    %8 = vector.load %arg5[%c0_7, %c0_8] : memref<8x72xbf16, #tpu.memory_space<vmem>>, vector<8x72xbf16>
    %cst = arith.constant 0.000000e+00 : f32
    %9 = vector.broadcast %cst : f32 to vector<8x9xf32>
    %10 = tpu.concatenate %9, %7, %9 in 1 : vector<8x9xf32>, vector<8x128xf32>, vector<8x9xf32> -> vector<8x146xf32>
    %11 = vector.extract_strided_slice %10 {offsets = [0, 0], sizes = [8, 128], strides = [1, 1]} : vector<8x146xf32> to vector<8x128xf32>
    %12 = vector.extract_strided_slice %1 {offsets = [0, 0], sizes = [1, 128], strides = [1, 1]} : vector<9x128xf32> to vector<1x128xf32>
    %13 = vector.broadcast %12 : vector<1x128xf32> to vector<8x128xf32>
    %14 = arith.mulf %11, %13 : vector<8x128xf32>
    %15 = vector.extract_strided_slice %10 {offsets = [0, 1], sizes = [8, 128], strides = [1, 1]} : vector<8x146xf32> to vector<8x128xf32>
    %16 = vector.extract_strided_slice %1 {offsets = [1, 0], sizes = [1, 128], strides = [1, 1]} : vector<9x128xf32> to vector<1x128xf32>
    %17 = vector.broadcast %16 : vector<1x128xf32> to vector<8x128xf32>
    %18 = arith.mulf %15, %17 : vector<8x128xf32>
    %19 = vector.extract_strided_slice %10 {offsets = [0, 2], sizes = [8, 128], strides = [1, 1]} : vector<8x146xf32> to vector<8x128xf32>
    %20 = vector.extract_strided_slice %1 {offsets = [2, 0], sizes = [1, 128], strides = [1, 1]} : vector<9x128xf32> to vector<1x128xf32>
    %21 = vector.broadcast %20 : vector<1x128xf32> to vector<8x128xf32>
    %22 = arith.mulf %19, %21 : vector<8x128xf32>
    %23 = vector.extract_strided_slice %10 {offsets = [0, 8], sizes = [8, 128], strides = [1, 1]} : vector<8x146xf32> to vector<8x128xf32>
    %24 = vector.extract_strided_slice %1 {offsets = [3, 0], sizes = [1, 128], strides = [1, 1]} : vector<9x128xf32> to vector<1x128xf32>
    %25 = vector.broadcast %24 : vector<1x128xf32> to vector<8x128xf32>
    %26 = arith.mulf %23, %25 : vector<8x128xf32>
    %27 = vector.extract_strided_slice %10 {offsets = [0, 9], sizes = [8, 128], strides = [1, 1]} : vector<8x146xf32> to vector<8x128xf32>
    %28 = vector.extract_strided_slice %1 {offsets = [4, 0], sizes = [1, 128], strides = [1, 1]} : vector<9x128xf32> to vector<1x128xf32>
    %29 = vector.broadcast %28 : vector<1x128xf32> to vector<8x128xf32>
    %30 = arith.mulf %27, %29 : vector<8x128xf32>
    %31 = vector.extract_strided_slice %10 {offsets = [0, 10], sizes = [8, 128], strides = [1, 1]} : vector<8x146xf32> to vector<8x128xf32>
    %32 = vector.extract_strided_slice %1 {offsets = [5, 0], sizes = [1, 128], strides = [1, 1]} : vector<9x128xf32> to vector<1x128xf32>
    %33 = vector.broadcast %32 : vector<1x128xf32> to vector<8x128xf32>
    %34 = arith.mulf %31, %33 : vector<8x128xf32>
    %35 = vector.extract_strided_slice %10 {offsets = [0, 16], sizes = [8, 128], strides = [1, 1]} : vector<8x146xf32> to vector<8x128xf32>
    %36 = vector.extract_strided_slice %1 {offsets = [6, 0], sizes = [1, 128], strides = [1, 1]} : vector<9x128xf32> to vector<1x128xf32>
    %37 = vector.broadcast %36 : vector<1x128xf32> to vector<8x128xf32>
    %38 = arith.mulf %35, %37 : vector<8x128xf32>
    %39 = vector.extract_strided_slice %10 {offsets = [0, 17], sizes = [8, 128], strides = [1, 1]} : vector<8x146xf32> to vector<8x128xf32>
    %40 = vector.extract_strided_slice %1 {offsets = [7, 0], sizes = [1, 128], strides = [1, 1]} : vector<9x128xf32> to vector<1x128xf32>
    %41 = vector.broadcast %40 : vector<1x128xf32> to vector<8x128xf32>
    %42 = arith.mulf %39, %41 : vector<8x128xf32>
    %43 = vector.extract_strided_slice %10 {offsets = [0, 18], sizes = [8, 128], strides = [1, 1]} : vector<8x146xf32> to vector<8x128xf32>
    %44 = vector.extract_strided_slice %1 {offsets = [8, 0], sizes = [1, 128], strides = [1, 1]} : vector<9x128xf32> to vector<1x128xf32>
    %45 = vector.broadcast %44 : vector<1x128xf32> to vector<8x128xf32>
    %46 = arith.mulf %43, %45 : vector<8x128xf32>
    %47 = tpu.concatenate %14, %18, %22, %26, %30, %34, %38, %42, %46 in 0 : vector<8x128xf32>, vector<8x128xf32>, vector<8x128xf32>, vector<8x128xf32>, vector<8x128xf32>, vector<8x128xf32>, vector<8x128xf32>, vector<8x128xf32>, vector<8x128xf32> -> vector<72x128xf32>
    %48 = arith.truncf %47 : vector<72x128xf32> to vector<72x128xbf16>
    %cst_9 = arith.constant dense<0.000000e+00> : vector<8x128xf32>
    %49 = tpu.matmul %8, %48, %cst_9 {dimension_numbers = #tpu.dot_dimension_numbers<[1], [0], [0], [1], [0, 0, 1, 1], [], []>} : vector<8x72xbf16>, vector<72x128xbf16>, vector<8x128xf32> -> vector<8x128xf32>
    %c0_10 = arith.constant 0 : index
    %c0_11 = arith.constant 0 : index
    %50 = vector.load %arg6[%c0_10, %c0_11] : memref<8x1xf32, #tpu.memory_space<vmem>>, vector<8x1xf32>
    %51 = vector.broadcast %50 : vector<8x1xf32> to vector<8x128xf32>
    %52 = arith.addf %49, %51 : vector<8x128xf32>
    %cst_12 = arith.constant 0.000000e+00 : f32
    %53 = vector.broadcast %cst_12 : f32 to vector<8x128xf32>
    %54 = arith.cmpf ogt, %52, %53 : vector<8x128xf32>
    %c0_13 = arith.constant 0 : index
    %c0_14 = arith.constant 0 : index
    %55 = vector.load %arg7[%c0_13, %c0_14] : memref<8x1xf32, #tpu.memory_space<vmem>>, vector<8x1xf32>
    %56 = vector.broadcast %55 : vector<8x1xf32> to vector<8x128xf32>
    %57 = arith.mulf %56, %52 : vector<8x128xf32>
    %58 = arith.select %54, %52, %57 : vector<8x128xi1>, vector<8x128xf32>
    %c0_15 = arith.constant 0 : index
    %c0_16 = arith.constant 0 : index
    %59 = vector.load %arg8[%c0_15, %c0_16] : memref<8x72xbf16, #tpu.memory_space<vmem>>, vector<8x72xbf16>
    %cst_17 = arith.constant 0.000000e+00 : f32
    %60 = vector.broadcast %cst_17 : f32 to vector<8x9xf32>
    %61 = tpu.concatenate %60, %58, %60 in 1 : vector<8x9xf32>, vector<8x128xf32>, vector<8x9xf32> -> vector<8x146xf32>
    %62 = vector.extract_strided_slice %61 {offsets = [0, 0], sizes = [8, 128], strides = [1, 1]} : vector<8x146xf32> to vector<8x128xf32>
    %63 = vector.extract_strided_slice %1 {offsets = [0, 0], sizes = [1, 128], strides = [1, 1]} : vector<9x128xf32> to vector<1x128xf32>
    %64 = vector.broadcast %63 : vector<1x128xf32> to vector<8x128xf32>
    %65 = arith.mulf %62, %64 : vector<8x128xf32>
    %66 = vector.extract_strided_slice %61 {offsets = [0, 1], sizes = [8, 128], strides = [1, 1]} : vector<8x146xf32> to vector<8x128xf32>
    %67 = vector.extract_strided_slice %1 {offsets = [1, 0], sizes = [1, 128], strides = [1, 1]} : vector<9x128xf32> to vector<1x128xf32>
    %68 = vector.broadcast %67 : vector<1x128xf32> to vector<8x128xf32>
    %69 = arith.mulf %66, %68 : vector<8x128xf32>
    %70 = vector.extract_strided_slice %61 {offsets = [0, 2], sizes = [8, 128], strides = [1, 1]} : vector<8x146xf32> to vector<8x128xf32>
    %71 = vector.extract_strided_slice %1 {offsets = [2, 0], sizes = [1, 128], strides = [1, 1]} : vector<9x128xf32> to vector<1x128xf32>
    %72 = vector.broadcast %71 : vector<1x128xf32> to vector<8x128xf32>
    %73 = arith.mulf %70, %72 : vector<8x128xf32>
    %74 = vector.extract_strided_slice %61 {offsets = [0, 8], sizes = [8, 128], strides = [1, 1]} : vector<8x146xf32> to vector<8x128xf32>
    %75 = vector.extract_strided_slice %1 {offsets = [3, 0], sizes = [1, 128], strides = [1, 1]} : vector<9x128xf32> to vector<1x128xf32>
    %76 = vector.broadcast %75 : vector<1x128xf32> to vector<8x128xf32>
    %77 = arith.mulf %74, %76 : vector<8x128xf32>
    %78 = vector.extract_strided_slice %61 {offsets = [0, 9], sizes = [8, 128], strides = [1, 1]} : vector<8x146xf32> to vector<8x128xf32>
    %79 = vector.extract_strided_slice %1 {offsets = [4, 0], sizes = [1, 128], strides = [1, 1]} : vector<9x128xf32> to vector<1x128xf32>
    %80 = vector.broadcast %79 : vector<1x128xf32> to vector<8x128xf32>
    %81 = arith.mulf %78, %80 : vector<8x128xf32>
    %82 = vector.extract_strided_slice %61 {offsets = [0, 10], sizes = [8, 128], strides = [1, 1]} : vector<8x146xf32> to vector<8x128xf32>
    %83 = vector.extract_strided_slice %1 {offsets = [5, 0], sizes = [1, 128], strides = [1, 1]} : vector<9x128xf32> to vector<1x128xf32>
    %84 = vector.broadcast %83 : vector<1x128xf32> to vector<8x128xf32>
    %85 = arith.mulf %82, %84 : vector<8x128xf32>
    %86 = vector.extract_strided_slice %61 {offsets = [0, 16], sizes = [8, 128], strides = [1, 1]} : vector<8x146xf32> to vector<8x128xf32>
    %87 = vector.extract_strided_slice %1 {offsets = [6, 0], sizes = [1, 128], strides = [1, 1]} : vector<9x128xf32> to vector<1x128xf32>
    %88 = vector.broadcast %87 : vector<1x128xf32> to vector<8x128xf32>
    %89 = arith.mulf %86, %88 : vector<8x128xf32>
    %90 = vector.extract_strided_slice %61 {offsets = [0, 17], sizes = [8, 128], strides = [1, 1]} : vector<8x146xf32> to vector<8x128xf32>
    %91 = vector.extract_strided_slice %1 {offsets = [7, 0], sizes = [1, 128], strides = [1, 1]} : vector<9x128xf32> to vector<1x128xf32>
    %92 = vector.broadcast %91 : vector<1x128xf32> to vector<8x128xf32>
    %93 = arith.mulf %90, %92 : vector<8x128xf32>
    %94 = vector.extract_strided_slice %61 {offsets = [0, 18], sizes = [8, 128], strides = [1, 1]} : vector<8x146xf32> to vector<8x128xf32>
    %95 = vector.extract_strided_slice %1 {offsets = [8, 0], sizes = [1, 128], strides = [1, 1]} : vector<9x128xf32> to vector<1x128xf32>
    %96 = vector.broadcast %95 : vector<1x128xf32> to vector<8x128xf32>
    %97 = arith.mulf %94, %96 : vector<8x128xf32>
    %98 = tpu.concatenate %65, %69, %73, %77, %81, %85, %89, %93, %97 in 0 : vector<8x128xf32>, vector<8x128xf32>, vector<8x128xf32>, vector<8x128xf32>, vector<8x128xf32>, vector<8x128xf32>, vector<8x128xf32>, vector<8x128xf32>, vector<8x128xf32> -> vector<72x128xf32>
    %99 = arith.truncf %98 : vector<72x128xf32> to vector<72x128xbf16>
    %cst_18 = arith.constant dense<0.000000e+00> : vector<8x128xf32>
    %100 = tpu.matmul %59, %99, %cst_18 {dimension_numbers = #tpu.dot_dimension_numbers<[1], [0], [0], [1], [0, 0, 1, 1], [], []>} : vector<8x72xbf16>, vector<72x128xbf16>, vector<8x128xf32> -> vector<8x128xf32>
    %c0_19 = arith.constant 0 : index
    %c0_20 = arith.constant 0 : index
    %101 = vector.load %arg9[%c0_19, %c0_20] : memref<8x1xf32, #tpu.memory_space<vmem>>, vector<8x1xf32>
    %102 = vector.broadcast %101 : vector<8x1xf32> to vector<8x128xf32>
    %103 = arith.addf %100, %102 : vector<8x128xf32>
    %104 = arith.addf %103, %0 : vector<8x128xf32>
    %c0_21 = arith.constant 0 : index
    %c0_22 = arith.constant 0 : index
    %105 = vector.load %arg10[%c0_21, %c0_22] : memref<8x128xf32, #tpu.memory_space<vmem>>, vector<8x128xf32>
    tpu.vector_store %arg10[%c0_21, %c0_22], %104 {strides = array<i32>} : memref<8x128xf32, #tpu.memory_space<vmem>>, vector<8x128xf32>,
    return
  }
  func.func @transform_0(%arg0: i32) -> (i32, i32) {
    %c0_i32 = arith.constant 0 : i32
    %c0_i32_0 = arith.constant 0 : i32
    return %c0_i32, %arg0 : i32, i32
  }
  func.func @transform_1(%arg0: i32) -> (i32, i32) {
    %c0_i32 = arith.constant 0 : i32
    %c0_i32_0 = arith.constant 0 : i32
    return %c0_i32, %arg0 : i32, i32
  }
  func.func @transform_2(%arg0: i32) -> (i32, i32) {
    %c0_i32 = arith.constant 0 : i32
    %c0_i32_0 = arith.constant 0 : i32
    %c0_i32_1 = arith.constant 0 : i32
    return %c0_i32, %c0_i32_0 : i32, i32
  }
  func.func @transform_3(%arg0: i32) -> (i32, i32) {
    %c0_i32 = arith.constant 0 : i32
    %c0_i32_0 = arith.constant 0 : i32
    %c0_i32_1 = arith.constant 0 : i32
    return %c0_i32, %c0_i32_0 : i32, i32
  }
  func.func @transform_4(%arg0: i32) -> (i32, i32) {
    %c0_i32 = arith.constant 0 : i32
    %c0_i32_0 = arith.constant 0 : i32
    %c0_i32_1 = arith.constant 0 : i32
    return %c0_i32, %c0_i32_0 : i32, i32
  }
  func.func @transform_5(%arg0: i32) -> (i32, i32) {
    %c0_i32 = arith.constant 0 : i32
    %c0_i32_0 = arith.constant 0 : i32
    %c0_i32_1 = arith.constant 0 : i32
    return %c0_i32, %c0_i32_0 : i32, i32
  }
  func.func @transform_6(%arg0: i32) -> (i32, i32) {
    %c0_i32 = arith.constant 0 : i32
    %c0_i32_0 = arith.constant 0 : i32
    %c0_i32_1 = arith.constant 0 : i32
    return %c0_i32, %c0_i32_0 : i32, i32
  }
  func.func @transform_7(%arg0: i32) -> (i32, i32) {
    %c0_i32 = arith.constant 0 : i32
    %c0_i32_0 = arith.constant 0 : i32
    %c0_i32_1 = arith.constant 0 : i32
    return %c0_i32, %c0_i32_0 : i32, i32
  }
  func.func @transform_8(%arg0: i32) -> (i32, i32) {
    %c0_i32 = arith.constant 0 : i32
    %c0_i32_0 = arith.constant 0 : i32
    %c0_i32_1 = arith.constant 0 : i32
    return %c0_i32, %c0_i32_0 : i32, i32
  }
  func.func @transform_9(%arg0: i32) -> (i32, i32) {
    %c0_i32 = arith.constant 0 : i32
    %c0_i32_0 = arith.constant 0 : i32
    return %c0_i32, %arg0 : i32, i32
  }
}

module attributes {stable_mosaic.version = 11 : i64} {
  func.func @_bilinear_kernel(%arg0: memref<16x8x8xf32, #tpu.memory_space<vmem>>, %arg1: memref<16x8xf32, #tpu.memory_space<vmem>>, %arg2: memref<8x16xf32, #tpu.memory_space<vmem>>, %arg3: memref<16x16x16xf32, #tpu.memory_space<vmem>>) attributes {dimension_semantics = [], scalar_prefetch = 0 : i64, scratch_operands = 0 : i64, tpu.core_type = #tpu.core_type<tc>} {
    %c0 = arith.constant 0 : index
    %c0_0 = arith.constant 0 : index
    %c0_1 = arith.constant 0 : index
    %0 = vector.load %arg0[%c0, %c0_0, %c0_1] : memref<16x8x8xf32, #tpu.memory_space<vmem>>, vector<16x8x8xf32>
    %c0_2 = arith.constant 0 : index
    %c0_3 = arith.constant 0 : index
    %1 = vector.load %arg1[%c0_2, %c0_3] : memref<16x8xf32, #tpu.memory_space<vmem>>, vector<16x8xf32>
    %2 = vector.shape_cast %1 : vector<16x8xf32> to vector<1x16x8xf32>
    %3 = vector.broadcast %2 : vector<1x16x8xf32> to vector<16x16x8xf32>
    %c0_4 = arith.constant 0 : index
    %c0_5 = arith.constant 0 : index
    %4 = vector.load %arg2[%c0_4, %c0_5] : memref<8x16xf32, #tpu.memory_space<vmem>>, vector<8x16xf32>
    %5 = vector.shape_cast %4 : vector<8x16xf32> to vector<1x8x16xf32>
    %6 = vector.broadcast %5 : vector<1x8x16xf32> to vector<16x8x16xf32>
    "tpu.trace_start"() <{level = 10 : i32, message = "bph,bhw->bpw"}> : () -> ()
    %cst = arith.constant dense<0.000000e+00> : vector<16x16x8xf32>
    %7 = tpu.matmul %3, %0, %cst {dimension_numbers = #tpu.dot_dimension_numbers<[2], [1], [1], [2], [0, 0, 0, 1, 1, 2], [0], [0]>} : vector<16x16x8xf32>, vector<16x8x8xf32>, vector<16x16x8xf32> -> vector<16x16x8xf32>
    "tpu.trace_stop"() : () -> ()
    "tpu.trace_start"() <{level = 10 : i32, message = "bpw,bwq->bpq"}> : () -> ()
    %cst_6 = arith.constant dense<0.000000e+00> : vector<16x16x16xf32>
    %8 = tpu.matmul %7, %6, %cst_6 {dimension_numbers = #tpu.dot_dimension_numbers<[2], [1], [1], [2], [0, 0, 0, 1, 1, 2], [0], [0]>} : vector<16x16x8xf32>, vector<16x8x16xf32>, vector<16x16x16xf32> -> vector<16x16x16xf32>
    "tpu.trace_stop"() : () -> ()
    %c0_7 = arith.constant 0 : index
    %c0_8 = arith.constant 0 : index
    %c0_9 = arith.constant 0 : index
    %9 = vector.load %arg3[%c0_7, %c0_8, %c0_9] : memref<16x16x16xf32, #tpu.memory_space<vmem>>, vector<16x16x16xf32>
    tpu.vector_store %arg3[%c0_7, %c0_8, %c0_9], %8 {strides = array<i32>} : memref<16x16x16xf32, #tpu.memory_space<vmem>>, vector<16x16x16xf32>,
    return
  }
}

module attributes {stable_mosaic.version = 11 : i64} {
  func.func @_mask_helper_kernel(%arg0: i32, %arg1: memref<8x256xf32, #tpu.memory_space<vmem>>, %arg2: memref<8x256xf32, #tpu.memory_space<vmem>>, %arg3: memref<8x8xbf16, #tpu.memory_space<vmem>>, %arg4: memref<8x1xf32, #tpu.memory_space<vmem>>, %arg5: memref<8x8xbf16, #tpu.memory_space<vmem>>, %arg6: memref<8x1xf32, #tpu.memory_space<vmem>>, %arg7: memref<8x256xf32, #tpu.memory_space<vmem>>) attributes {dimension_semantics = [#tpu.dimension_semantics<parallel>], iteration_bounds = array<i64: 2>, scalar_prefetch = 0 : i64, scratch_operands = 0 : i64, tpu.core_type = #tpu.core_type<tc>, window_params = [{transform_indices = @transform_0, window_bounds = array<i64: 8, 256>}, {transform_indices = @transform_1, window_bounds = array<i64: 8, 256>}, {pipeline_mode = #tpu.pipeline_mode<synchronous>, transform_indices = @transform_2, window_bounds = array<i64: 8, 8>}, {pipeline_mode = #tpu.pipeline_mode<synchronous>, transform_indices = @transform_3, window_bounds = array<i64: 8, 1>}, {pipeline_mode = #tpu.pipeline_mode<synchronous>, transform_indices = @transform_4, window_bounds = array<i64: 8, 8>}, {pipeline_mode = #tpu.pipeline_mode<synchronous>, transform_indices = @transform_5, window_bounds = array<i64: 8, 1>}, {transform_indices = @transform_6, window_bounds = array<i64: 8, 256>}]} {
    %c0 = arith.constant 0 : index
    %c0_0 = arith.constant 0 : index
    %0 = vector.load %arg1[%c0, %c0_0] : memref<8x256xf32, #tpu.memory_space<vmem>>, vector<8x256xf32>
    %c0_1 = arith.constant 0 : index
    %c0_2 = arith.constant 0 : index
    %1 = vector.load %arg3[%c0_1, %c0_2] : memref<8x8xbf16, #tpu.memory_space<vmem>>, vector<8x8xbf16>
    %2 = arith.truncf %0 : vector<8x256xf32> to vector<8x256xbf16>
    %cst = arith.constant dense<0.000000e+00> : vector<8x256xf32>
    %3 = tpu.matmul %1, %2, %cst {dimension_numbers = #tpu.dot_dimension_numbers<[1], [0], [0], [1], [0, 0, 1, 1], [], []>} : vector<8x8xbf16>, vector<8x256xbf16>, vector<8x256xf32> -> vector<8x256xf32>
    %c0_3 = arith.constant 0 : index
    %c0_4 = arith.constant 0 : index
    %4 = vector.load %arg4[%c0_3, %c0_4] : memref<8x1xf32, #tpu.memory_space<vmem>>, vector<8x1xf32>
    %5 = vector.broadcast %4 : vector<8x1xf32> to vector<8x256xf32>
    %6 = arith.addf %3, %5 : vector<8x256xf32>
    %cst_5 = arith.constant 0.000000e+00 : f32
    %7 = vector.broadcast %cst_5 : f32 to vector<8x256xf32>
    %8 = arith.maximumf %6, %7 : vector<8x256xf32>
    %c0_6 = arith.constant 0 : index
    %c0_7 = arith.constant 0 : index
    %9 = vector.load %arg5[%c0_6, %c0_7] : memref<8x8xbf16, #tpu.memory_space<vmem>>, vector<8x8xbf16>
    %10 = arith.truncf %8 : vector<8x256xf32> to vector<8x256xbf16>
    %cst_8 = arith.constant dense<0.000000e+00> : vector<8x256xf32>
    %11 = tpu.matmul %9, %10, %cst_8 {dimension_numbers = #tpu.dot_dimension_numbers<[1], [0], [0], [1], [0, 0, 1, 1], [], []>} : vector<8x8xbf16>, vector<8x256xbf16>, vector<8x256xf32> -> vector<8x256xf32>
    %c0_9 = arith.constant 0 : index
    %c0_10 = arith.constant 0 : index
    %12 = vector.load %arg6[%c0_9, %c0_10] : memref<8x1xf32, #tpu.memory_space<vmem>>, vector<8x1xf32>
    %13 = vector.broadcast %12 : vector<8x1xf32> to vector<8x256xf32>
    %14 = arith.addf %11, %13 : vector<8x256xf32>
    %15 = arith.negf %14 : vector<8x256xf32>
    %16 = math.exp %15 : vector<8x256xf32>
    %cst_11 = arith.constant 1.000000e+00 : f32
    %17 = vector.broadcast %cst_11 : f32 to vector<8x256xf32>
    %18 = arith.addf %17, %16 : vector<8x256xf32>
    %19 = arith.divf %17, %18 : vector<8x256xf32>
    %c0_12 = arith.constant 0 : index
    %c0_13 = arith.constant 0 : index
    %20 = vector.load %arg2[%c0_12, %c0_13] : memref<8x256xf32, #tpu.memory_space<vmem>>, vector<8x256xf32>
    %cst_14 = arith.constant 1.000000e+00 : f32
    %21 = vector.broadcast %cst_14 : f32 to vector<8x256xf32>
    %22 = arith.addf %19, %21 : vector<8x256xf32>
    %23 = arith.mulf %20, %22 : vector<8x256xf32>
    %c0_15 = arith.constant 0 : index
    %c0_16 = arith.constant 0 : index
    %24 = vector.load %arg7[%c0_15, %c0_16] : memref<8x256xf32, #tpu.memory_space<vmem>>, vector<8x256xf32>
    tpu.vector_store %arg7[%c0_15, %c0_16], %23 {strides = array<i32>} : memref<8x256xf32, #tpu.memory_space<vmem>>, vector<8x256xf32>,
    return
  }
  func.func @transform_0(%arg0: i32) -> (i32, i32) {
    %c0_i32 = arith.constant 0 : i32
    %c0_i32_0 = arith.constant 0 : i32
    return %c0_i32, %arg0 : i32, i32
  }
  func.func @transform_1(%arg0: i32) -> (i32, i32) {
    %c0_i32 = arith.constant 0 : i32
    %c0_i32_0 = arith.constant 0 : i32
    return %c0_i32, %arg0 : i32, i32
  }
  func.func @transform_2(%arg0: i32) -> (i32, i32) {
    %c0_i32 = arith.constant 0 : i32
    %c0_i32_0 = arith.constant 0 : i32
    %c0_i32_1 = arith.constant 0 : i32
    return %c0_i32, %c0_i32_0 : i32, i32
  }
  func.func @transform_3(%arg0: i32) -> (i32, i32) {
    %c0_i32 = arith.constant 0 : i32
    %c0_i32_0 = arith.constant 0 : i32
    %c0_i32_1 = arith.constant 0 : i32
    return %c0_i32, %c0_i32_0 : i32, i32
  }
  func.func @transform_4(%arg0: i32) -> (i32, i32) {
    %c0_i32 = arith.constant 0 : i32
    %c0_i32_0 = arith.constant 0 : i32
    %c0_i32_1 = arith.constant 0 : i32
    return %c0_i32, %c0_i32_0 : i32, i32
  }
  func.func @transform_5(%arg0: i32) -> (i32, i32) {
    %c0_i32 = arith.constant 0 : i32
    %c0_i32_0 = arith.constant 0 : i32
    %c0_i32_1 = arith.constant 0 : i32
    return %c0_i32, %c0_i32_0 : i32, i32
  }
  func.func @transform_6(%arg0: i32) -> (i32, i32) {
    %c0_i32 = arith.constant 0 : i32
    %c0_i32_0 = arith.constant 0 : i32
    return %c0_i32, %arg0 : i32, i32
  }
}

</mosaic_0001>

<bundles_post_ra>
// kernel: attention_module_forward.8
= control target key start
LH: loop header
LB: loop body
LE: loop exit
PB: predicated region body
PF: predicated region fallthrough
CT: control target
= control target key end

     0   :  { %s1481_s17 = smov 0   ;;  %s1483_s18 = smov 0   ;;  %s1876_s0 = inlined_call_operand.vmem [shape: f32[4,512], index: 0, kind: input, shape index: {}]   ;;  %s1877_s1 = inlined_call_operand.vmem [shape: f32[9,512], index: 1, kind: input, shape index: {}]   ;;  %s1878_s2 = inlined_call_operand.vmem [shape: f32[4,1], index: 2, kind: input, shape index: {}]   ;;  %s1879_s3 = inlined_call_operand.vmem [shape: f32[4,1], index: 3, kind: input, shape index: {}]   ;;  %s1880_s4 = inlined_call_operand.vmem [shape: bf16[8,36], index: 4, kind: input, shape index: {}]   ;;  %s1881_s5 = inlined_call_operand.vmem [shape: f32[8,1], index: 5, kind: input, shape index: {}]   ;;  %s1882_s6 = inlined_call_operand.vmem [shape: f32[8,1], index: 6, kind: input, shape index: {}]   ;;  %s1883_s7 = inlined_call_operand.vmem [shape: bf16[8,72], index: 7, kind: input, shape index: {}]   ;;  %s1884_s8 = inlined_call_operand.vmem [shape: f32[8,1], index: 8, kind: input, shape index: {}]   ;;  %s1885_s9 = inlined_call_operand.vmem [shape: bf16[8,4], index: 9, kind: input, shape index: {}]   ;;  %s1886_s10 = inlined_call_operand.vmem [shape: f32[8,1], index: 10, kind: input, shape index: {}]   ;;  %s1887_s11 = inlined_call_operand.vmem [shape: f32[8,512], index: 11, kind: output, shape index: {}]  }
   0x1   :  { %s1485_s19 = smov 0  }
   0x2 LB: > { %s1230_s20 = sadd.s32 4294967295, %s1401_s19   ;;  %s1498_s21 = sadd.s32 1, %s1401_s19   ;;  %s1401_s19 = sphi %s1485_s19, %s1890_s19   ;;  %s1397_s18 = sphi %s1483_s18, %s1889_s18   ;;  %s1393_s17 = sphi %s1481_s17, %s1888_s17  }
   0x3   : > { %s51_s22 = ssub.s32 %s1401_s19, %s1498_s21  ;;  %s54_s23 = sadd.s32 1, %s1397_s18 }
   0x4   : > { %p52_p0 = scmp.eq.s32.totalorder %s51_s22, 0  ;;  %p61_p1 = scmp.ne.s32.totalorder %s1397_s18, %s1393_s17 }
   0x5   : > { %p62_p2 = scmp.eq.s32.totalorder %s1401_s19, 0  ;;  %p1233_p4 = scmp.ge.s32.totalorder %s1401_s19, 2 }
   0x6   : > { %s1507_s24 = scalar_select %p52_p0, %s1397_s18, %s54_s23  }
   0x7   : > { %p63_p3 = por %p62_p2, %p61_p1  ;;  %329 = sbr.rel (%p1233_p4) target bundleno = 18 (0x12), region = 52 }
   0xc   : > { %341 = sbr.rel (!%p63_p3) target bundleno = 18 (0x12), region = 60  ;;  %s343_s25 = sand.u32 (%p63_p3), 1, %s1397_s18  }
   0xd   : > { %s1253_s26 = sshll.u32 (%p63_p3), %s1401_s19, 4  ;;  %s1234_s27 = sshll.u32 (%p63_p3), %s343_s25, 5 }
   0xe   : > { %s348_s30 = scalar_lea.vmem (%p63_p3), %s1877_s1, %s1253_s26  ;;  %s345_s12 = scalar_lea.vmem (%p63_p3), [#allocation2], %s1234_s27 }
   0xf   : > { %v361_v0 = vld [vmem:[%s348_s30] sm:$0xff] (%p63_p3)  ;;  %v363_v1 = vld [vmem:[%s348_s30 + $0x8] sm:$0xff] (%p63_p3) }
  0x10   : > { %v365_v2 = vld [vmem:[%s348_s30 + $0x20] sm:$0xff] (%p63_p3)  ;;  %362 = vst [vmem:[%s345_s12] sm:$0xff] (%p63_p3), %v361_v0  ;;  %364 = vst [vmem:[%s345_s12 + $0x8] sm:$0xff] (%p63_p3), %v363_v1  ;;  %v367_v3 = vld [vmem:[%s348_s30 + $0x28] sm:$0xff] (%p63_p3) }
  0x11   : > { %366 = vst [vmem:[%s345_s12 + $0x10] sm:$0xff] %v365_v2  ;;  %368 = vst [vmem:[%s345_s12 + $0x18] sm:$0xff] %v367_v3 }
  0x12 PF: > { %p1237_p5 = scmp.ge.s32.totalorder %s1401_s19, 1  ;;  %p373_p6 = scmp.lt.s32.totalorder %s1401_s19, 3 }
  0x14   : > { %p374_p7 = pnand %p1237_p5, %p373_p6 }
  0x15   : > { %s380_s15 = sand.u32 (!%p374_p7), 1, %s1393_s17   ;;  %s1404_s17 = smov (!%p374_p7), 34  }
  0x16   : > { %377 = sbr.rel (%p374_p7) target bundleno = 1101 (0x44d), region = 83  ;;  %s1238_s16 = sshll.u32 (!%p374_p7), %s380_s15, 5 }
  0x17   : > { %s382_s25 = scalar_lea.vmem (!%p374_p7), [#allocation2], %s1238_s16  ;;  %s1405_s26 = smov (!%p374_p7), 18  }
  0x18   : > { %s1406_s27 = smov (!%p374_p7), 33   ;;  %s1407_s28 = smov (!%p374_p7), 17  }
  0x19   : > { %s1408_s29 = smov (!%p374_p7), 32   ;;  %s1409_s30 = smov (!%p374_p7), 1  }
  0x1a   : > { %s1410_s12 = smov (!%p374_p7), 16   ;;  %s1411_s13 = smov (!%p374_p7), 2  }
  0x1b   : > { %v443_v4 = vld [vmem:[%s1878_s2] sm:$0xf]  ;;  %v451_v5 = vlaneseq  ;;  %v1403_v6 = vmov 0   ;;  %v1529_v9 = vld [vmem:[%s382_s25 + $0x8] sm:$0xff]  ;;  %v1244_v10 = vld [vmem:[%s382_s25 + $0x18] ss:$0 sm:$0xff] }
  0x1c   : > { %1296 = vset.pattern.permute.xlu0 %v1403_v6  ;;  %858 = vmatprep.mubr.bf16.mxu0 %v1403_v6  ;;  %v457_v8 = vld [vmem:[%s1879_s3] sm:$0xf]  ;;  %v1243_v13 = vld [vmem:[%s382_s25 + $0x10] ss:$0 sm:$0xff]  ;;  %s1239_s14 = sshll.u32 %s1230_s20, 1  ;;  %vm478_vm0 = vcmask 138240  }
  0x1d   : > { %446 = vperm.xlu0 %1296, %v443_v4   ;;  %v1523_v7 = vshrl.u32 %v451_v5, 7  ;;  %1337 = vset.pattern.permute.xlu1 %v1403_v6  ;;  %v1534_v14 = vld [vmem:[%s382_s25] sm:$0xff]  ;;  %p425_p8 = scmp.lt.s32.totalorder %s1239_s14, 3  ;;  %v1412_v32 = vmov 839922192   ;;  %vm662_vm1 = vcmask 277504  }
  0x1e   : > { %1080 = vmatprep.mubr.bf16.mxu1 %v1403_v6  ;;  %660 = vrot.lane.b32.xlu1 %v1244_v10, %s1404_s17  ;;  %v449_v33 = vunpack.c.l.s4 %v1412_v32  ;;  %s1413_s19 = smov 111   ;;  %vm596_vm2 = vcmask 146432   ;;  %vm618_vm3 = vcmask 261120   ;;  %vm509_vm4 = vcmask 7168   ;;  %s1414_s20 = smov 94  }
  0x1f   : > { %v584_v11 = vsub.s32 5, %v1523_v7  ;;  %v628_v15 = vsub.s32 7, %v1523_v7  ;;  %v563_v18 = vsub.s32 4, %v1523_v7  ;;  %v606_v21 = vsub.s32 6, %v1523_v7  ;;  %s1892_s14 = smov (!%p425_p8, %s1239_s14), 3  ;;  %s1415_s25 = smov 96  }
  0x20   : > { %v497_v24 = vsub.s32 1, %v1523_v7  ;;  %v541_v28 = vsub.s32 3, %v1523_v7  ;;  %v519_v30 = vsub.s32 2, %v1523_v7  ;;  %v450_v34 = vunpack.c.0.s8 %v449_v33  ;;  %s1240_s15 = sshll.u32 %s1892_s14, 2 }
  0x21   : > { %460 = vperm.xlu0 %1296, %v457_v8   ;;  %v589_v12 = vrot.slane %v1529_v9, %v584_v11  ;;  %v633_v16 = vrot.slane %v1529_v9, %v628_v15  ;;  %v585_v17 = vrot.slane %v1534_v14, %v584_v11  ;;  %v568_v19 = vrot.slane %v1529_v9, %v563_v18  ;;  %s428_s23 = scalar_lea.vmem %s1876_s0, %s1240_s15 }
  0x22   : > { %v629_v20 = vrot.slane %v1534_v14, %v628_v15  ;;  %v611_v22 = vrot.slane %v1529_v9, %v606_v21  ;;  %v564_v23 = vrot.slane %v1534_v14, %v563_v18  ;;  %v502_v25 = vrot.slane %v1529_v9, %v497_v24  ;;  %v1564_v38 = vld [vmem:[%s428_s23] sm:$0xff] }
  0x23   : > { %594 = vrot.lane.b32.xlu1 %v589_v12, %s1405_s26  ;;  %v607_v26 = vrot.slane %v1534_v14, %v606_v21  ;;  %v498_v27 = vrot.slane %v1534_v14, %v497_v24  ;;  %v542_v29 = vrot.slane %v1534_v14, %v541_v28  ;;  %v520_v31 = vrot.slane %v1534_v14, %v519_v30 }
  0x24   : > { %v453_v35 = vsub.s32 %v450_v34, %v1523_v7  ;;  %v546_v44 = vrot.slane %v1529_v9, %v541_v28  ;;  %v524_v45 = vrot.slane %v1529_v9, %v519_v30  ;;  %vm640_vm5 = vcmask 269312  }
  0x25   : > { %658 = vrot.lane.b32.xlu0 %v1243_v13, %s1404_s17  ;;  %vm531_vm6 = vcmask 15360   ;;  %vm553_vm7 = vcmask 130048   ;;  %s1416_s17 = smov 110   ;;  %vm789_vm8 = vcmask 769024   ;;  %vm819_vm9 = vcmask 1041408  }
  0x26   : > { %vm727_vm10 = vcmask 908288   ;;  %vm758_vm11 = vcmask 785408   ;;  %vm744_vm12 = vcmask 900096   ;;  %vm775_vm13 = vcmask 777216  }
  0x27   : > { %638 = vrot.lane.b32.xlu1 %v633_v16, %s1406_s27  ;;  %vm696_vm14 = vcmask 1031168   ;;  %vm682_vm15 = vcmask 1039360  }
  0x29   : > { %592 = vrot.lane.b32.xlu0 %v585_v17, %s1405_s26  ;;  %s1417_s26 = smov 95  }
  0x2b   : > { %573 = vrot.lane.b32.xlu1 %v568_v19, %s1407_s28 }
  0x2d   : > { %636 = vrot.lane.b32.xlu0 %v629_v20, %s1406_s27  ;;  %s1418_s27 = smov 126  }
  0x2f   : > { %616 = vrot.lane.b32.xlu1 %v611_v22, %s1408_s29 }
  0x31   : > { %571 = vrot.lane.b32.xlu0 %v564_v23, %s1407_s28 }
  0x33   : > { %507 = vrot.lane.b32.xlu1 %v502_v25, %s1409_s30 }
  0x35   : > { %614 = vrot.lane.b32.xlu0 %v607_v26, %s1408_s29  ;;  %s1419_s29 = smov 127  }
  0x39   : > { %505 = vrot.lane.b32.xlu0 %v498_v27, %s1409_s30  ;;  %s1420_s30 = smov 112  }
  0x3d   : > { %549 = vrot.lane.b32.xlu0 %v542_v29, %s1410_s12 }
  0x41   : > { %527 = vrot.lane.b32.xlu0 %v520_v31, %s1411_s13 }
  0x90   : > { %v1571_v46 = vpop.permute.xlu1 %660 }
  0x95   : > { %v1575_v48 = vpop.permute.xlu1 %594 }
  0x98   : > { %v447_v36 = vpop.permute.xlu0 %446 }
  0x99   : > { %v454_v37 = vrot.slane %v447_v36, %v453_v35  ;;  %v1579_v50 = vpop.permute.xlu1 %638 }
  0x9b   : > { %v456_v40 = vmul.f32 %v454_v37, %v1564_v38 }
  0x9c   : > { %v461_v39 = vpop.permute.xlu0 %460 }
  0x9d   : > { %v468_v41 = vrot.slane %v461_v39, %v453_v35  ;;  %v1583_v52 = vpop.permute.xlu1 %573 }
  0x9f   : > { %v470_v42 = vadd.f32 %v468_v41, %v456_v40 }
  0xa0   : > { %v1573_v47 = vpop.permute.xlu0 %658 }
  0xa1   : > { %474 = vrot.lane.b32.xlu1 %v470_v42, %s1407_s28  ;;  %v473_v43 = vcombine.high %v470_v42, %v470_v42  ;;  %v1587_v54 = vpop.permute.xlu1 %616  ;;  %v1603_v62 = vsel %vm662_vm1, %v1573_v47, %v1571_v46  ;;  %vm794_vm1 = vcmask 1043456  }
  0xa4   : > { %v1577_v49 = vpop.permute.xlu0 %592 }
  0xa5   : > { %476 = vrot.lane.b32.xlu1 %v473_v43, %s1407_s28  ;;  %v1591_v56 = vpop.permute.xlu1 %507  ;;  %v1637_v18 = vsel %vm596_vm2, %v1577_v49, %v1575_v48  ;;  %vm713_vm2 = vcmask 916480  }
  0xa8   : > { %v1581_v51 = vpop.permute.xlu0 %636 }
  0xa9   : > { %551 = vrot.lane.b32.xlu1 %v546_v44, %s1410_s12  ;;  %v1679_v35 = vsel %vm640_vm5, %v1581_v51, %v1579_v50 }
  0xac   : > { %v1585_v53 = vpop.permute.xlu0 %571 }
  0xad   : > { %529 = vrot.lane.b32.xlu1 %v524_v45, %s1411_s13  ;;  %v1621_v8 = vsel %vm478_vm0, %v1585_v53, %v1583_v52 }
  0xb0   : > { %v1589_v55 = vpop.permute.xlu0 %614 }
  0xb1   : > { %v1642_v19 = vsel %vm618_vm3, %v1589_v55, %v1587_v54  ;;  %vm815_vm3 = vcmask 293888  }
  0xb4   : > { %v1593_v57 = vpop.permute.xlu0 %505 }
  0xb5   : > { %v1647_v20 = vsel %vm509_vm4, %v1593_v57, %v1591_v56  ;;  %vm1101_vm4 = vcmask 31744  }
  0xb8   : > { %v1609_v1 = vpop.permute.xlu0 %549 }
  0xbc   : > { %v1649_v21 = vpop.permute.xlu0 %527 }
 0x113   : > { %v475_v58 = vpop.permute.xlu1 %474 }
 0x114   : > { %v1596_v59 = vsel %vm478_vm0, 0.0, %v475_v58 }
 0x115   : > { %v579_v60 = vmul.f32 %v1585_v53, %v1596_v59  ;;  %v623_v3 = vmul.f32 %v1589_v55, %v1596_v59  ;;  %v601_v4 = vmul.f32 %v1577_v49, %v1596_v59  ;;  %v667_v11 = vmul.f32 %v1573_v47, %v1596_v59 }
 0x116   : > { %v645_v12 = vmul.f32 %v1581_v51, %v1596_v59 }
 0x117   : > { %v477_v61 = vpop.permute.xlu1 %476  ;;  %721 = vrot.lane.b32.xlu0 %v579_v60, %s1413_s19  ;;  %v735_v16 = vrot.slane %v601_v4, 4 }
 0x118   : > { %v1606_v63 = vsel %vm478_vm0, %v475_v58, %v477_v61  ;;  %v484_v0 = vsel %vm478_vm0, %v477_v61, 0.0  ;;  %v766_v23 = vrot.slane %v645_v12, 4 }
 0x119   : > { %v669_v2 = vmul.f32 %v1571_v46, %v484_v0  ;;  %v668_v5 = vmul.f32 %v1603_v62, %v1606_v63  ;;  %v580_v13 = vmul.f32 %v1621_v8, %v1606_v63  ;;  %v581_v15 = vmul.f32 %v1583_v52, %v484_v0 }
 0x11a   : > { %v624_v24 = vmul.f32 %v1642_v19, %v1606_v63  ;;  %v625_v25 = vmul.f32 %v1587_v54, %v484_v0  ;;  %v515_v26 = vmul.f32 %v1647_v20, %v1606_v63  ;;  %v516_v29 = vmul.f32 %v1591_v56, %v484_v0 }
 0x11b   : > { %787 = vrot.lane.b32.xlu1 %v669_v2, %s1414_s20  ;;  %v1624_v10 = vpop.permute.xlu1 %551  ;;  %752 = vrot.lane.b32.xlu0 %v623_v3, %s1415_s25  ;;  %v1297_v17 = vpack.i.bf16 %v668_v5, %v667_v11  ;;  %v1302_v28 = vpack.i.bf16 %v581_v15, %v580_v13  ;;  %v602_v30 = vmul.f32 %v1637_v18, %v1606_v63 }
 0x11c   : > { %v1670_v31 = vsel %vm553_vm7, %v1609_v1, %v1624_v10  ;;  %v603_v34 = vmul.f32 %v1575_v48, %v484_v0  ;;  %v560_v36 = vmul.f32 %v1624_v10, %v484_v0  ;;  %v1307_v37 = vpack.i.bf16 %v625_v25, %v624_v24  ;;  %v869_v24 = vld [vmem:[%s1882_s6] sm:$0xff] }
 0x11d   : > { %v559_v39 = vmul.f32 %v1670_v31, %v1606_v63  ;;  %v674_v40 = vrot.slane %v515_v26, 4  ;;  %v675_v41 = vrot.slane %v516_v29, 4  ;;  %v736_v42 = vrot.slane %v602_v30, 4 }
 0x11e   : > { %v737_v44 = vrot.slane %v603_v34, 4  ;;  %v646_v45 = vmul.f32 %v1679_v35, %v1606_v63  ;;  %v647_v58 = vmul.f32 %v1579_v50, %v484_v0  ;;  %v706_v61 = vrot.slane %v560_v36, 4 }
 0x11f   : > { %v1651_v22 = vpop.permute.xlu1 %529  ;;  %738 = vrot.lane.b32.xlu1 %v735_v16, %s1416_s17  ;;  %1298 = vrot.lane.b32.xlu0 %v1297_v17, %s1414_s20  ;;  %v705_v60 = vrot.slane %v559_v39, 4  ;;  %v1327_v2 = vpack.i.bf16 %v675_v41, %v674_v40  ;;  %v536_v13 = vmul.f32 %v1649_v21, %v1596_v59  ;;  %v558_v16 = vmul.f32 %v1609_v1, %v1596_v59  ;;  %v809_v17 = vld [vmem:[%s1881_s5] sm:$0xff] }
 0x120   : > { %v1663_v27 = vsel %vm531_vm6, %v1649_v21, %v1651_v22  ;;  %v538_v33 = vmul.f32 %v1651_v22, %v484_v0  ;;  %v1317_v3 = vpack.i.bf16 %v737_v44, %v736_v42  ;;  %v767_v4 = vrot.slane %v646_v45, 4 }
 0x121   : > { %v537_v32 = vmul.f32 %v1663_v27, %v1606_v63  ;;  %v768_v5 = vrot.slane %v647_v58, 4  ;;  %v1332_v11 = vpack.i.bf16 %v706_v61, %v705_v60  ;;  %v514_v0 = vmul.f32 %v1593_v57, %v1596_v59 }
 0x123   : > { %769 = vrot.lane.b32.xlu1 %v766_v23, %s1417_s26  ;;  %1303 = vrot.lane.b32.xlu0 %v1302_v28, %s1413_s19  ;;  %v1312_v43 = vpack.i.bf16 %v538_v33, %v537_v32  ;;  %v1322_v12 = vpack.i.bf16 %v768_v5, %v767_v4  ;;  %v673_v15 = vrot.slane %v514_v0, 4  ;;  %v704_v23 = vrot.slane %v558_v16, 4 }
 0x127   : > { %1308 = vrot.lane.b32.xlu0 %v1307_v37, %s1415_s25  ;;  %1313 = vrot.lane.b32.xlu1 %v1312_v43, %s1418_s27  ;;  %v487_v43 = vsub.s32 0, %v1523_v7 }
 0x129   : > { %v1716_v58 = vrot.slane %v1534_v14, %v487_v43  ;;  %v1719_v60 = vrot.slane %v1529_v9, %v487_v43 }
 0x12b   : > { %1328 = vrot.lane.b32.xlu0 %v1327_v2, %s1419_s29  ;;  %1318 = vrot.lane.b32.xlu1 %v1317_v3, %s1416_s17  ;;  %v494_v9 = vmul.f32 %v1719_v60, %v1606_v63 }
 0x12f   : > { %1333 = vrot.lane.b32.xlu0 %v1332_v11, %s1420_s30  ;;  %1323 = vrot.lane.b32.xlu1 %v1322_v12, %s1417_s26 }
 0x133   : > { %690 = vrot.lane.b32.xlu0 %v536_v13, %s1418_s27  ;;  %676 = vrot.lane.b32.xlu1 %v673_v15, %s1419_s29 }
 0x137   : > { %812 = vperm.xlu0 %1296, %v809_v17   ;;  %707 = vrot.lane.b32.xlu1 %v704_v23, %s1420_s30 }
 0x13b   : > { %872 = vperm.xlu1 %1337, %v869_v24  }
 0x189   : > { %v722_v25 = vpop.permute.xlu0 %721 }
 0x18d   : > { %v788_v26 = vpop.permute.xlu1 %787  ;;  %v753_v28 = vpop.permute.xlu0 %752 }
 0x191   : > { %v739_v29 = vpop.permute.xlu1 %738  ;;  %v1299_v30 = vpop.permute.xlu0 %1298 }
 0x192   : > { %v1301_v32 = vunpack.i.h.bf16 %v1299_v30  ;;  %v1300_v33 = vunpack.i.l.bf16 %v1299_v30 }
 0x194   : > { %v791_v34 = vsel %vm789_vm8, %v1301_v32, %v788_v26  ;;  %v790_v36 = vsel %vm789_vm8, %v1300_v33, %v1301_v32 }
 0x195   : > { %v770_v37 = vpop.permute.xlu1 %769  ;;  %v1304_v39 = vpop.permute.xlu0 %1303  ;;  %v808_v40 = vpack.c.bf16 %v791_v34, %v791_v34  ;;  %v807_v41 = vpack.c.bf16 %v790_v36, %v790_v36 }
 0x196   : > { %v1306_v61 = vunpack.i.h.bf16 %v1304_v39  ;;  %v1305_v2 = vunpack.i.l.bf16 %v1304_v39 }
 0x197   : > { %1245 = vmatprep.subr.msk.bf16.mxu0 %vm819_vm9, %v808_v40  ;;  %v821_v42 = vsel %vm819_vm9, %v807_v41, 0 }
 0x198   : > { %837 = vmatpush1.bf16.msra.mxu0 %v821_v42  ;;  %v728_v16 = vsel %vm727_vm10, %v722_v25, %v1305_v2  ;;  %v729_v17 = vsel %vm727_vm10, %v1305_v2, %v1306_v61 }
 0x199   : > { %v1314_v44 = vpop.permute.xlu1 %1313  ;;  %v1309_v45 = vpop.permute.xlu0 %1308 }
 0x19a   : > { %v1316_v5 = vunpack.i.h.bf16 %v1314_v44  ;;  %v1315_v7 = vunpack.i.l.bf16 %v1314_v44  ;;  %v1311_v0 = vunpack.i.h.bf16 %v1309_v45  ;;  %v1310_v13 = vunpack.i.l.bf16 %v1309_v45 }
 0x19c   : > { %v759_v39 = vsel %vm758_vm11, %v753_v28, %v1310_v13  ;;  %v760_v40 = vsel %vm758_vm11, %v1310_v13, %v1311_v0  ;;  %v698_v25 = vsel %vm696_vm14, %v1315_v7, %v1316_v5  ;;  %v493_v0 = vmul.f32 %v1716_v58, %v1596_v59 }
 0x19d   : > { %v1319_v3 = vpop.permute.xlu1 %1318  ;;  %v1329_v4 = vpop.permute.xlu0 %1328  ;;  %v1091_v59 = vcombine.high %v1564_v38, %v1564_v38 }
 0x19e   : > { %v1321_v11 = vunpack.i.h.bf16 %v1319_v3  ;;  %v1320_v12 = vunpack.i.l.bf16 %v1319_v3  ;;  %v1331_v14 = vunpack.i.h.bf16 %v1329_v4  ;;  %v1330_v15 = vunpack.i.l.bf16 %v1329_v4 }
 0x1a0   : > { %v745_v23 = vsel %vm744_vm12, %v739_v29, %v1320_v12  ;;  %v746_v24 = vsel %vm744_vm12, %v1320_v12, %v1321_v11  ;;  %v684_v63 = vsel %vm682_vm15, %v1330_v15, %v1331_v14 }
 0x1a1   : > { %v1324_v26 = vpop.permute.xlu1 %1323  ;;  %v1334_v30 = vpop.permute.xlu0 %1333  ;;  %v800_v42 = vsel %vm794_vm1, %v729_v17, %v746_v24  ;;  %v799_v61 = vsel %vm794_vm1, %v728_v16, %v745_v23 }
 0x1a2   : > { %v1326_v32 = vunpack.i.h.bf16 %v1324_v26  ;;  %v1325_v33 = vunpack.i.l.bf16 %v1324_v26  ;;  %v1336_v34 = vunpack.i.h.bf16 %v1334_v30  ;;  %v1335_v36 = vunpack.i.l.bf16 %v1334_v30  ;;  %v1089_v30 = vld [vmem:[%s1885_s9] sm:$0xf] }
 0x1a4   : > { %v776_v41 = vsel %vm775_vm13, %v770_v37, %v1325_v33  ;;  %v777_v29 = vsel %vm775_vm13, %v1325_v33, %v1326_v32  ;;  %v715_v43 = vsel %vm713_vm2, %v1335_v36, %v1336_v34  ;;  %v796_v37 = vsel %vm794_vm1, %v494_v9, %v684_v63 }
 0x1a5   : > { %v677_v44 = vpop.permute.xlu1 %676  ;;  %v802_v45 = vsel %vm794_vm1, %v760_v40, %v777_v29  ;;  %v801_v28 = vsel %vm794_vm1, %v759_v39, %v776_v41  ;;  %v798_v2 = vsel %vm794_vm1, %v698_v25, %v715_v43  ;;  %v691_v5 = vpop.permute.xlu0 %690  ;;  %v1093_v9 = vpack.c.bf16 %v1564_v38, %v1564_v38 }
 0x1a6   : > { %v806_v3 = vpack.c.bf16 %v802_v45, %v800_v42  ;;  %v805_v4 = vpack.c.bf16 %v801_v28, %v799_v61  ;;  %v683_v11 = vsel %vm682_vm15, %v677_v44, %v1330_v15  ;;  %v804_v12 = vpack.c.bf16 %v798_v2, %v796_v37  ;;  %v471_v15 = vld [vmem:[%s1880_s4] sm:$0xf] }
 0x1a7   : > { %v697_v14 = vsel %vm696_vm14, %v691_v5, %v1315_v7  ;;  %v795_v17 = vsel %vm794_vm1, %v493_v0, %v683_v11  ;;  %v1094_v7 = vpack.c.bf16 %v1091_v59, %v1091_v59  ;;  %v1106_v26 = vsel %vm819_vm9, %v1093_v9, 0 }
 0x1a8   : > { %838 = vmatprep.subr.bf16.mxu0 %v806_v3 }
 0x1a9   : > { %v708_v13 = vpop.permute.xlu1 %707  ;;  %839 = vmatpush1.bf16.msra.mxu0 %v805_v4 }
 0x1aa   : > { %v714_v16 = vsel %vm713_vm2, %v708_v13, %v1335_v36  ;;  %840 = vmatprep.subr.bf16.mxu0 %v804_v12 }
 0x1ab   : > { %v797_v23 = vsel %vm794_vm1, %v697_v14, %v714_v16 }
 0x1ac   : > { %v803_v24 = vpack.c.bf16 %v797_v23, %v795_v17 }
 0x1ae   : > { %841 = vmatpush1.bf16.msra.mxu0 %v803_v24 }
 0x1af   : > { %1249 = vmatprep.subr.msk.bf16.mxu0 %vm819_vm9, %v1094_v7 }
 0x1b1   : > { %1246 = vmatmul.mubr.msk.bf16.vlgmr.msra.gmra.mxu0 %vm815_vm3, %v471_v15 }
 0x1b2   : > { %1143 = vmatprep.mubr.bf16.mxu0 %v1403_v6  ;;  %1126 = vmatpush1.bf16.msra.mxu0 %v1106_v26  ;;  %v813_v32 = vpop.permute.xlu0 %812 }
 0x1b6   : > { %v873_v33 = vpop.permute.xlu1 %872 }
 0x1b9   : > { %1250 = vmatmul.mubr.msk.bf16.vlgmr.msra.gmra.mxu0 %vm1101_vm4, %v1089_v30 }
 0x271   : > { %v860_v6 = vpop.f32.mrf.mxu0 }
 0x272   : > { %v861_v34 = vadd.f32 %v860_v6, %v813_v32 }
 0x273   : > { %v862_v36 = vpop.f32.mrf.mxu0 }
 0x274   : > { %v875_v39 = vmul.f32 %v873_v33, %v861_v34  ;;  %v863_v40 = vadd.f32 %v862_v36, %v813_v32  ;;  %vm867_vm5 = vcmp.gt.f32.partialorder %v861_v34, 0.0 }
 0x275   : > { %v864_v38 = vpop.f32.mrf.mxu0 }
 0x276   : > { %v876_v63 = vmul.f32 %v873_v33, %v863_v40  ;;  %v877_v25 = vsel %vm867_vm5, %v861_v34, %v875_v39  ;;  %vm868_vm6 = vcmp.gt.f32.partialorder %v863_v40, 0.0 }
 0x277   : > { %v865_v41 = vpop.f32.mrf.mxu0  ;;  %882 = vrot.lane.b32.xlu0 %v877_v25, %s1407_s28 }
 0x278   : > { %v878_v29 = vsel %vm868_vm6, %v863_v40, %v876_v63 }
 0x279   : > { %884 = vrot.lane.b32.xlu1 %v878_v29, %s1407_s28 }
 0x2e9   : > { %v883_v42 = vpop.permute.xlu0 %882 }
 0x2ea   : > { %v1763_v43 = vsel %vm478_vm0, 0.0, %v883_v42 }
 0x2eb   : > { %v912_v44 = vmul.f32 %v1763_v43, %v1581_v51  ;;  %v909_v45 = vmul.f32 %v1763_v43, %v1589_v55  ;;  %v885_v61 = vpop.permute.xlu1 %884  ;;  %v906_v28 = vmul.f32 %v1763_v43, %v1577_v49  ;;  %v903_v2 = vmul.f32 %v1763_v43, %v1585_v53 }
 0x2ec   : > { %v1776_v3 = vsel %vm478_vm0, %v883_v42, %v885_v61  ;;  %v891_v4 = vsel %vm478_vm0, %v885_v61, 0.0  ;;  %v897_v51 = vmul.f32 %v1763_v43, %v1649_v21  ;;  %v915_v37 = vmul.f32 %v1763_v43, %v1573_v47 }
 0x2ed   : > { %999 = vrot.lane.b32.xlu1 %v912_v44, %s1417_s26  ;;  %986 = vrot.lane.b32.xlu0 %v909_v45, %s1415_s25  ;;  %v917_v55 = vmul.f32 %v891_v4, %v1571_v46  ;;  %v916_v49 = vmul.f32 %v1776_v3, %v1603_v62  ;;  %v913_v53 = vmul.f32 %v1776_v3, %v1679_v35  ;;  %vm1038_vm0 = vcmask 588800  }
 0x2ee   : > { %v914_v5 = vmul.f32 %v891_v4, %v1579_v50  ;;  %v910_v21 = vmul.f32 %v1776_v3, %v1642_v19  ;;  %v911_v46 = vmul.f32 %v891_v4, %v1587_v54  ;;  %v907_v62 = vmul.f32 %v1776_v3, %v1637_v18 }
 0x2ef   : > { %v1338_v11 = vpack.i.bf16 %v916_v49, %v915_v37  ;;  %v908_v35 = vmul.f32 %v891_v4, %v1575_v48  ;;  %v904_v50 = vmul.f32 %v1776_v3, %v1621_v8  ;;  %v905_v47 = vmul.f32 %v891_v4, %v1583_v52 }
 0x2f0   : > { %v1348_v12 = vpack.i.bf16 %v914_v5, %v913_v53  ;;  %v1343_v0 = vpack.i.bf16 %v911_v46, %v910_v21  ;;  %v901_v54 = vmul.f32 %v1776_v3, %v1670_v31  ;;  %v902_v13 = vmul.f32 %v891_v4, %v1624_v10 }
 0x2f1   : > { %973 = vrot.lane.b32.xlu1 %v906_v28, %s1416_s17  ;;  %960 = vrot.lane.b32.xlu0 %v903_v2, %s1413_s19  ;;  %v1358_v19 = vpack.i.bf16 %v908_v35, %v907_v62  ;;  %v1353_v48 = vpack.i.bf16 %v905_v47, %v904_v50  ;;  %v898_v14 = vmul.f32 %v1776_v3, %v1663_v27  ;;  %v1821_v27 = vpop.f32.mrf.mxu0 }
 0x2f2   : > { %v1368_v18 = vpack.i.bf16 %v902_v13, %v901_v54  ;;  %v899_v8 = vmul.f32 %v891_v4, %v1651_v22  ;;  %v900_v52 = vmul.f32 %v1763_v43, %v1609_v1  ;;  %v895_v10 = vmul.f32 %v1776_v3, %v1647_v20  ;;  %v1032_v20 = vld [vmem:[%s1884_s8] sm:$0xff] }
 0x2f3   : > { %v896_v16 = vmul.f32 %v891_v4, %v1591_v56  ;;  %v894_v22 = vmul.f32 %v1763_v43, %v1593_v57  ;;  %v1825_v23 = vpop.f32.mrf.mxu0  ;;  %v1095_v56 = vld [vmem:[%s1886_s10] sm:$0xff] }
 0x2f4   : > { %v1363_v31 = vpack.i.bf16 %v899_v8, %v898_v14 }
 0x2f5   : > { %1016 = vrot.lane.b32.xlu1 %v917_v55, %s1414_s20  ;;  %934 = vrot.lane.b32.xlu0 %v897_v51, %s1418_s27  ;;  %v1373_v17 = vpack.i.bf16 %v896_v16, %v895_v10  ;;  %v1149_v1 = vpop.f32.mrf.mxu0 }
 0x2f7   : > { %v1150_v24 = vpop.f32.mrf.mxu0 }
 0x2f9   : > { %1339 = vrot.lane.b32.xlu0 %v1338_v11, %s1414_s20  ;;  %1349 = vrot.lane.b32.xlu1 %v1348_v12, %s1417_s26 }
 0x2fd   : > { %1344 = vrot.lane.b32.xlu0 %v1343_v0, %s1415_s25  ;;  %1359 = vrot.lane.b32.xlu1 %v1358_v19, %s1416_s17 }
 0x301   : > { %1354 = vrot.lane.b32.xlu0 %v1353_v48, %s1413_s19  ;;  %1369 = vrot.lane.b32.xlu1 %v1368_v18, %s1420_s30 }
 0x305   : > { %947 = vrot.lane.b32.xlu1 %v900_v52, %s1420_s30  ;;  %1364 = vrot.lane.b32.xlu0 %v1363_v31, %s1418_s27  ;;  %s1242_s27 = sshll.u32 %s1892_s14, 3 }
 0x306   : > { %s435_s15 = scalar_lea.vmem %s1887_s11, %s1242_s27 }
 0x309   : > { %921 = vrot.lane.b32.xlu1 %v894_v22, %s1419_s29  ;;  %1374 = vrot.lane.b32.xlu0 %v1373_v17, %s1419_s29 }
 0x30d   : > { %1098 = vperm.xlu1 %1337, %v1095_v56   ;;  %1035 = vperm.xlu0 %1296, %v1032_v20   ;;  %v893_v56 = vmul.f32 %v1776_v3, %v1719_v60  ;;  %v892_v20 = vmul.f32 %v1763_v43, %v1716_v58 }
 0x35f   : > { %v1000_v57 = vpop.permute.xlu1 %999  ;;  %v987_v15 = vpop.permute.xlu0 %986 }
 0x363   : > { %v974_v59 = vpop.permute.xlu1 %973  ;;  %v961_v7 = vpop.permute.xlu0 %960 }
 0x367   : > { %v1017_v9 = vpop.permute.xlu1 %1016  ;;  %v935_v26 = vpop.permute.xlu0 %934 }
 0x36b   : > { %v1340_v30 = vpop.permute.xlu0 %1339  ;;  %v1350_v32 = vpop.permute.xlu1 %1349 }
 0x36c   : > { %v1342_v6 = vunpack.i.h.bf16 %v1340_v30  ;;  %v1341_v33 = vunpack.i.l.bf16 %v1340_v30  ;;  %v1352_v34 = vunpack.i.h.bf16 %v1350_v32  ;;  %v1351_v36 = vunpack.i.l.bf16 %v1350_v32 }
 0x36e   : > { %v1019_v39 = vsel %vm789_vm8, %v1342_v6, %v1017_v9  ;;  %v1018_v40 = vsel %vm789_vm8, %v1341_v33, %v1342_v6  ;;  %v1006_v2 = vsel %vm775_vm13, %v1351_v36, %v1352_v34  ;;  %v1005_v51 = vsel %vm775_vm13, %v1000_v57, %v1351_v36 }
 0x36f   : > { %v1345_v38 = vpop.permute.xlu0 %1344  ;;  %v1360_v63 = vpop.permute.xlu1 %1359  ;;  %v1031_v25 = vpack.c.bf16 %v1019_v39, %v1019_v39  ;;  %v1030_v41 = vpack.c.bf16 %v1018_v40, %v1018_v40 }
 0x370   : > { %v1347_v29 = vunpack.i.h.bf16 %v1345_v38  ;;  %v1346_v42 = vunpack.i.l.bf16 %v1345_v38  ;;  %v1362_v44 = vunpack.i.h.bf16 %v1360_v63  ;;  %v1361_v45 = vunpack.i.l.bf16 %v1360_v63 }
 0x371   : > { %1247 = vmatprep.subr.msk.bf16.mxu1 %vm794_vm1, %v1031_v25  ;;  %v1043_v61 = vsel %vm794_vm1, %v1030_v41, 0 }
 0x372   : > { %1055 = vmatpush1.bf16.msra.mxu1 %v1043_v61  ;;  %v993_v28 = vsel %vm758_vm11, %v1346_v42, %v1347_v29  ;;  %v992_v4 = vsel %vm758_vm11, %v987_v15, %v1346_v42  ;;  %v980_v46 = vsel %vm744_vm12, %v1361_v45, %v1362_v44  ;;  %v979_v11 = vsel %vm744_vm12, %v974_v59, %v1361_v45 }
 0x373   : > { %v1355_v55 = vpop.permute.xlu0 %1354  ;;  %v1370_v49 = vpop.permute.xlu1 %1369  ;;  %v1029_v53 = vpack.c.bf16 %v1006_v2, %v993_v28  ;;  %v1028_v5 = vpack.c.bf16 %v1005_v51, %v992_v4 }
 0x374   : > { %v1357_v37 = vunpack.i.h.bf16 %v1355_v55  ;;  %v1356_v21 = vunpack.i.l.bf16 %v1355_v55  ;;  %v1372_v12 = vunpack.i.h.bf16 %v1370_v49  ;;  %v1371_v62 = vunpack.i.l.bf16 %v1370_v49 }
 0x375   : > { %1056 = vmatprep.subr.bf16.mxu1 %v1029_v53 }
 0x376   : > { %1057 = vmatpush1.bf16.msra.mxu1 %v1028_v5  ;;  %v967_v35 = vsel %vm727_vm10, %v1356_v21, %v1357_v37  ;;  %v966_v50 = vsel %vm727_vm10, %v961_v7, %v1356_v21  ;;  %v954_v8 = vsel %vm713_vm2, %v1371_v62, %v1372_v12  ;;  %v879_v7 = vld [vmem:[%s1883_s7] sm:$0xf] }
 0x377   : > { %v948_v47 = vpop.permute.xlu1 %947  ;;  %v1365_v0 = vpop.permute.xlu0 %1364  ;;  %v1027_v19 = vpack.c.bf16 %v980_v46, %v967_v35  ;;  %v1026_v54 = vpack.c.bf16 %v979_v11, %v966_v50 }
 0x378   : > { %v1367_v13 = vunpack.i.h.bf16 %v1365_v0  ;;  %v1366_v48 = vunpack.i.l.bf16 %v1365_v0  ;;  %v953_v18 = vsel %vm713_vm2, %v948_v47, %v1371_v62 }
 0x379   : > { %1058 = vmatprep.subr.bf16.mxu1 %v1027_v19 }
 0x37a   : > { %1059 = vmatpush1.bf16.msra.mxu1 %v1026_v54  ;;  %v941_v14 = vsel %vm696_vm14, %v1366_v48, %v1367_v13  ;;  %v940_v52 = vsel %vm696_vm14, %v935_v26, %v1366_v48 }
 0x37b   : > { %v1375_v31 = vpop.permute.xlu0 %1374  ;;  %v1025_v10 = vpack.c.bf16 %v954_v8, %v941_v14  ;;  %v1024_v16 = vpack.c.bf16 %v953_v18, %v940_v52  ;;  %v922_v1 = vpop.permute.xlu1 %921 }
 0x37c   : > { %v1377_v22 = vunpack.i.h.bf16 %v1375_v31  ;;  %v1376_v17 = vunpack.i.l.bf16 %v1375_v31 }
 0x37d   : > { %1060 = vmatprep.subr.bf16.mxu1 %v1025_v10 }
 0x37e   : > { %1061 = vmatpush1.bf16.msra.mxu1 %v1024_v16  ;;  %v928_v24 = vsel %vm682_vm15, %v1376_v17, %v1377_v22  ;;  %v927_v57 = vsel %vm682_vm15, %v922_v1, %v1376_v17 }
 0x37f   : > { %v1023_v15 = vpack.c.bf16 %v928_v24, %v893_v56  ;;  %v1022_v59 = vpack.c.bf16 %v927_v57, %v892_v20 }
 0x381   : > { %1062 = vmatprep.subr.bf16.mxu1 %v1023_v15 }
 0x382   : > { %1063 = vmatpush1.bf16.msra.mxu1 %v1022_v59 }
 0x385   : > { %1248 = vmatmul.mubr.msk.bf16.vlgmr.msra.gmra.mxu1 %vm1038_vm0, %v879_v7 }
 0x388   : > { %v1099_v9 = vpop.permute.xlu1 %1098  ;;  %v1036_v60 = vpop.permute.xlu0 %1035 }
 0x389   : > { %v1146_v58 = vadd.f32 %v1821_v27, %v1099_v9  ;;  %v1148_v30 = vadd.f32 %v1825_v23, %v1099_v9 }
 0x445   : > { %v1082_v3 = vpop.f32.mrf.mxu1 }
 0x446   : > { %v1083_v43 = vadd.f32 %v1082_v3, %v1036_v60 }
 0x447   : > { %v1084_v26 = vpop.f32.mrf.mxu1 }
 0x448   : > { %v1152_v32 = vadd.f32 %v1146_v58, %v1083_v43  ;;  %v1085_v6 = vadd.f32 %v1084_v26, %v1036_v60 }
 0x449   : > { %v1086_v33 = vpop.f32.mrf.mxu1 }
 0x44a   : > { %1154 = vst [vmem:[%s435_s15] sm:$0xff] %v1152_v32  ;;  %v1153_v34 = vadd.f32 %v1148_v30, %v1085_v6 }
 0x44b   : > { %v1087_v36 = vpop.f32.mrf.mxu1 }
 0x44c   : > { %1155 = vst [vmem:[%s435_s15 + $0x8] sm:$0xff] %v1153_v34 }
 0x44d PF: > { %p18_p9 = scmp.ge.s32.totalorder %s1498_s21, 4   ;;  %s1888_s17 = smov %s1397_s18 }
 0x44e   : > { %s1889_s18 = smov %s1507_s24  ;;  %s1890_s19 = smov %s1498_s21 }
 0x44f   :  { %20 = sbr.rel (!%p18_p9) target bundleno = 2 (0x2), region = 125 }

// kernel: attention_module_forward.9
= control target key start
LH: loop header
LB: loop body
LE: loop exit
PB: predicated region body
PF: predicated region fallthrough
CT: control target
= control target key end

     0   :  { %s1320_s30 = smov 0   ;;  %s1322_s10 = smov 0   ;;  %s1698_s0 = inlined_call_operand.vmem [shape: f32[8,512], index: 0, kind: input, shape index: {}]   ;;  %s1699_s1 = inlined_call_operand.vmem [shape: f32[9,512], index: 1, kind: input, shape index: {}]   ;;  %s1700_s2 = inlined_call_operand.vmem [shape: f32[8,1], index: 2, kind: input, shape index: {}]   ;;  %s1701_s3 = inlined_call_operand.vmem [shape: f32[8,1], index: 3, kind: input, shape index: {}]   ;;  %s1702_s4 = inlined_call_operand.vmem [shape: bf16[8,72], index: 4, kind: input, shape index: {}]   ;;  %s1703_s5 = inlined_call_operand.vmem [shape: f32[8,1], index: 5, kind: input, shape index: {}]   ;;  %s1704_s6 = inlined_call_operand.vmem [shape: f32[8,1], index: 6, kind: input, shape index: {}]   ;;  %s1705_s7 = inlined_call_operand.vmem [shape: bf16[8,72], index: 7, kind: input, shape index: {}]   ;;  %s1706_s8 = inlined_call_operand.vmem [shape: f32[8,1], index: 8, kind: input, shape index: {}]   ;;  %s1707_s9 = inlined_call_operand.vmem [shape: f32[8,512], index: 9, kind: output, shape index: {}]  }
   0x1   :  { %s1324_s11 = smov 0  }
   0x2 LB: > { %s1084_s12 = sadd.s32 4294967295, %s1251_s11   ;;  %s1337_s13 = sadd.s32 1, %s1251_s11   ;;  %s1251_s11 = sphi %s1324_s11, %s1710_s11   ;;  %s1247_s10 = sphi %s1322_s10, %s1709_s10   ;;  %s1243_s30 = sphi %s1320_s30, %s1708_s30  }
   0x3   : > { %s49_s14 = ssub.s32 %s1251_s11, %s1337_s13  ;;  %s52_s15 = sadd.s32 1, %s1247_s10 }
   0x4   : > { %p50_p0 = scmp.eq.s32.totalorder %s49_s14, 0  ;;  %p59_p1 = scmp.ne.s32.totalorder %s1247_s10, %s1243_s30 }
   0x5   : > { %p60_p2 = scmp.eq.s32.totalorder %s1251_s11, 0  ;;  %p1087_p4 = scmp.ge.s32.totalorder %s1251_s11, 2 }
   0x6   : > { %s1346_s16 = scalar_select %p50_p0, %s1247_s10, %s52_s15  }
   0x7   : > { %p61_p3 = por %p60_p2, %p59_p1  ;;  %279 = sbr.rel (%p1087_p4) target bundleno = 18 (0x12), region = 44 }
   0xc   : > { %291 = sbr.rel (!%p61_p3) target bundleno = 18 (0x12), region = 52  ;;  %s293_s17 = sand.u32 (%p61_p3), 1, %s1247_s10  }
   0xd   : > { %s1105_s18 = sshll.u32 (%p61_p3), %s1251_s11, 4  ;;  %s1088_s19 = sshll.u32 (%p61_p3), %s293_s17, 5 }
   0xe   : > { %s298_s22 = scalar_lea.vmem (%p61_p3), %s1699_s1, %s1105_s18  ;;  %s295_s23 = scalar_lea.vmem (%p61_p3), [#allocation2], %s1088_s19 }
   0xf   : > { %v311_v0 = vld [vmem:[%s298_s22] sm:$0xff] (%p61_p3)  ;;  %v313_v1 = vld [vmem:[%s298_s22 + $0x8] sm:$0xff] (%p61_p3) }
  0x10   : > { %v315_v2 = vld [vmem:[%s298_s22 + $0x20] sm:$0xff] (%p61_p3)  ;;  %312 = vst [vmem:[%s295_s23] sm:$0xff] (%p61_p3), %v311_v0  ;;  %314 = vst [vmem:[%s295_s23 + $0x8] sm:$0xff] (%p61_p3), %v313_v1  ;;  %v317_v3 = vld [vmem:[%s298_s22 + $0x28] sm:$0xff] (%p61_p3) }
  0x11   : > { %316 = vst [vmem:[%s295_s23 + $0x10] sm:$0xff] %v315_v2  ;;  %318 = vst [vmem:[%s295_s23 + $0x18] sm:$0xff] %v317_v3 }
  0x12 PF: > { %p1091_p5 = scmp.ge.s32.totalorder %s1251_s11, 1  ;;  %p323_p6 = scmp.lt.s32.totalorder %s1251_s11, 3 }
  0x14   : > { %p324_p7 = pnand %p1091_p5, %p323_p6 }
  0x15   : > { %s330_s26 = sand.u32 (!%p324_p7), 1, %s1243_s30   ;;  %s1254_s30 = smov (!%p324_p7), 34  }
  0x16   : > { %327 = sbr.rel (%p324_p7) target bundleno = 1103 (0x44f), region = 75  ;;  %s1092_s27 = sshll.u32 (!%p324_p7), %s330_s26, 5 }
  0x17   : > { %s332_s14 = scalar_lea.vmem (!%p324_p7), [#allocation2], %s1092_s27  ;;  %s1255_s15 = smov (!%p324_p7), 32  }
  0x18   : > { %s1256_s17 = smov (!%p324_p7), 33   ;;  %s1257_s18 = smov (!%p324_p7), 17  }
  0x19   : > { %s1258_s19 = smov (!%p324_p7), 18   ;;  %s1259_s20 = smov (!%p324_p7), 2  }
  0x1a   : > { %s1260_s21 = smov (!%p324_p7), 16   ;;  %s1261_s22 = smov (!%p324_p7), 1  }
  0x1b   : > { %v390_v4 = vld [vmem:[%s1700_s2] sm:$0xff]  ;;  %v420_v5 = vlaneseq  ;;  %v1253_v6 = vmov 0   ;;  %v1365_v9 = vld [vmem:[%s332_s14 + $0x8] sm:$0xff]  ;;  %v1098_v11 = vld [vmem:[%s332_s14 + $0x18] ss:$0 sm:$0xff]  ;;  %s1093_s23 = sshll.u32 %s1084_s12, 1 }
  0x1c   : > { %1147 = vset.pattern.permute.xlu0 %v1253_v6  ;;  %776 = vmatprep.mubr.bf16.mxu0 %v1253_v6  ;;  %v398_v8 = vld [vmem:[%s1701_s3] sm:$0xff]  ;;  %v1097_v13 = vld [vmem:[%s332_s14 + $0x10] ss:$0 sm:$0xff]  ;;  %p371_p8 = scmp.lt.s32.totalorder %s1093_s23, 3  ;;  %vm597_vm0 = vcmask 277504   ;;  %vm413_vm1 = vcmask 138240  }
  0x1d   : > { %393 = vperm.xlu0 %1147, %v390_v4   ;;  %v1360_v7 = vshrl.u32 %v420_v5, 7  ;;  %1188 = vset.pattern.permute.xlu1 %v1253_v6  ;;  %v1369_v14 = vld [vmem:[%s332_s14] sm:$0xff]  ;;  %vm575_vm2 = vcmask 269312   ;;  %vm553_vm3 = vcmask 261120   ;;  %vm531_vm4 = vcmask 146432   ;;  %s1262_s11 = smov 94  }
  0x1e   : > { %997 = vmatprep.mubr.bf16.mxu1 %v1253_v6  ;;  %595 = vrot.lane.b32.xlu1 %v1098_v11, %s1254_s30  ;;  %s1712_s23 = smov (!%p371_p8, %s1093_s23), 3  ;;  %s1263_s12 = smov 95   ;;  %vm488_vm5 = vcmask 130048   ;;  %vm466_vm6 = vcmask 15360   ;;  %vm444_vm7 = vcmask 7168   ;;  %vm712_vm8 = vcmask 769024  }
  0x1f   : > { %v541_v10 = vsub.s32 6, %v1360_v7  ;;  %v563_v15 = vsub.s32 7, %v1360_v7  ;;  %v498_v18 = vsub.s32 4, %v1360_v7  ;;  %v519_v22 = vsub.s32 5, %v1360_v7  ;;  %s1094_s24 = sshll.u32 %s1712_s23, 3  ;;  %s1264_s28 = smov 96  }
  0x20   : > { %v454_v24 = vsub.s32 2, %v1360_v7  ;;  %v476_v26 = vsub.s32 3, %v1360_v7  ;;  %v432_v28 = vsub.s32 1, %v1360_v7  ;;  %s374_s27 = scalar_lea.vmem %s1698_s0, %s1094_s24  ;;  %s1265_s29 = smov 110   ;;  %vm737_vm9 = vcmask 1043456  }
  0x21   : > { %401 = vperm.xlu0 %1147, %v398_v8   ;;  %v546_v12 = vrot.slane %v1365_v9, %v541_v10  ;;  %v568_v16 = vrot.slane %v1365_v9, %v563_v15  ;;  %v542_v17 = vrot.slane %v1369_v14, %v541_v10  ;;  %v503_v19 = vrot.slane %v1365_v9, %v498_v18  ;;  %v1398_v31 = vld [vmem:[%s374_s27] sm:$0xff]  ;;  %v1401_v33 = vld [vmem:[%s374_s27 + $0x8] sm:$0xff]  ;;  %s1266_s14 = smov 111  }
  0x22   : > { %v564_v20 = vrot.slane %v1369_v14, %v563_v15  ;;  %v499_v21 = vrot.slane %v1369_v14, %v498_v18  ;;  %v520_v23 = vrot.slane %v1369_v14, %v519_v22  ;;  %v455_v25 = vrot.slane %v1369_v14, %v454_v24 }
  0x23   : > { %551 = vrot.lane.b32.xlu1 %v546_v12, %s1255_s15  ;;  %v477_v27 = vrot.slane %v1369_v14, %v476_v26  ;;  %v433_v29 = vrot.slane %v1369_v14, %v432_v28  ;;  %v524_v38 = vrot.slane %v1365_v9, %v519_v22  ;;  %v459_v39 = vrot.slane %v1365_v9, %v454_v24 }
  0x24   : > { %v481_v40 = vrot.slane %v1365_v9, %v476_v26  ;;  %v437_v41 = vrot.slane %v1365_v9, %v432_v28  ;;  %vm698_vm10 = vcmask 777216   ;;  %vm684_vm11 = vcmask 785408  }
  0x25   : > { %593 = vrot.lane.b32.xlu0 %v1097_v13, %s1254_s30  ;;  %s1267_s30 = smov 112   ;;  %vm670_vm12 = vcmask 900096   ;;  %vm656_vm13 = vcmask 908288   ;;  %vm642_vm14 = vcmask 916480   ;;  %vm628_vm15 = vcmask 1031168  }
  0x27   : > { %573 = vrot.lane.b32.xlu1 %v568_v16, %s1256_s17 }
  0x29   : > { %549 = vrot.lane.b32.xlu0 %v542_v17, %s1255_s15  ;;  %s1268_s15 = smov 126  }
  0x2b   : > { %508 = vrot.lane.b32.xlu1 %v503_v19, %s1257_s18 }
  0x2d   : > { %571 = vrot.lane.b32.xlu0 %v564_v20, %s1256_s17  ;;  %s1269_s17 = smov 127  }
  0x31   : > { %506 = vrot.lane.b32.xlu0 %v499_v21, %s1257_s18 }
  0x35   : > { %527 = vrot.lane.b32.xlu0 %v520_v23, %s1258_s19 }
  0x39   : > { %462 = vrot.lane.b32.xlu0 %v455_v25, %s1259_s20 }
  0x3d   : > { %484 = vrot.lane.b32.xlu0 %v477_v27, %s1260_s21 }
  0x41   : > { %440 = vrot.lane.b32.xlu0 %v433_v29, %s1261_s22 }
  0x90   : > { %v1410_v42 = vpop.permute.xlu1 %595 }
  0x95   : > { %v1414_v44 = vpop.permute.xlu1 %551 }
  0x98   : > { %v394_v30 = vpop.permute.xlu0 %393 }
  0x99   : > { %v396_v32 = vmul.f32 %v394_v30, %v1398_v31  ;;  %v397_v36 = vmul.f32 %v394_v30, %v1401_v33  ;;  %v1418_v46 = vpop.permute.xlu1 %573 }
  0x9c   : > { %v402_v34 = vpop.permute.xlu0 %401 }
  0x9d   : > { %v404_v35 = vadd.f32 %v402_v34, %v396_v32  ;;  %v405_v37 = vadd.f32 %v402_v34, %v397_v36  ;;  %v1422_v48 = vpop.permute.xlu1 %508 }
  0x9f   : > { %409 = vrot.lane.b32.xlu1 %v404_v35, %s1257_s18 }
  0xa0   : > { %v1412_v43 = vpop.permute.xlu0 %593 }
  0xa1   : > { %v1431_v52 = vsel %vm597_vm0, %v1412_v43, %v1410_v42  ;;  %vm614_vm0 = vcmask 1039360  }
  0xa3   : > { %411 = vrot.lane.b32.xlu1 %v405_v37, %s1257_s18 }
  0xa4   : > { %v1416_v45 = vpop.permute.xlu0 %549 }
  0xa5   : > { %v1457_v63 = vsel %vm553_vm3, %v1416_v45, %v1414_v44 }
  0xa7   : > { %529 = vrot.lane.b32.xlu1 %v524_v38, %s1258_s19 }
  0xa8   : > { %v1420_v47 = vpop.permute.xlu0 %571 }
  0xa9   : > { %v1435_v54 = vsel %vm575_vm2, %v1420_v47, %v1418_v46  ;;  %vm733_vm2 = vcmask 588800  }
  0xab   : > { %464 = vrot.lane.b32.xlu1 %v459_v39, %s1259_s20 }
  0xac   : > { %v1424_v49 = vpop.permute.xlu0 %506 }
  0xad   : > { %v1486_v15 = vsel %vm413_vm1, %v1424_v49, %v1422_v48 }
  0xaf   : > { %486 = vrot.lane.b32.xlu1 %v481_v40, %s1260_s21 }
  0xb0   : > { %v1445_v58 = vpop.permute.xlu0 %527 }
  0xb3   : > { %442 = vrot.lane.b32.xlu1 %v437_v41, %s1261_s22 }
  0xb4   : > { %v1471_v6 = vpop.permute.xlu0 %462 }
  0xb8   : > { %v1497_v20 = vpop.permute.xlu0 %484 }
  0xbc   : > { %v1526_v35 = vpop.permute.xlu0 %440 }
 0x111   : > { %v410_v50 = vpop.permute.xlu1 %409 }
 0x112   : > { %v1427_v51 = vsel %vm413_vm1, 0.0, %v410_v50 }
 0x113   : > { %v602_v57 = vmul.f32 %v1412_v43, %v1427_v51  ;;  %v580_v13 = vmul.f32 %v1420_v47, %v1427_v51  ;;  %v558_v17 = vmul.f32 %v1416_v45, %v1427_v51  ;;  %v536_v27 = vmul.f32 %v1445_v58, %v1427_v51 }
 0x114   : > { %v514_v30 = vmul.f32 %v1424_v49, %v1427_v51  ;;  %v493_v38 = vmul.f32 %v1497_v20, %v1427_v51  ;;  %v471_v41 = vmul.f32 %v1471_v6, %v1427_v51 }
 0x115   : > { %v412_v53 = vpop.permute.xlu1 %411 }
 0x116   : > { %v1438_v55 = vsel %vm413_vm1, %v410_v50, %v412_v53  ;;  %v1441_v56 = vsel %vm413_vm1, %v412_v53, 0.0  ;;  %v449_v50 = vmul.f32 %v1526_v35, %v1427_v51 }
 0x117   : > { %v604_v59 = vmul.f32 %v1410_v42, %v1441_v56  ;;  %v603_v60 = vmul.f32 %v1431_v52, %v1438_v55  ;;  %v581_v61 = vmul.f32 %v1435_v54, %v1438_v55  ;;  %v582_v62 = vmul.f32 %v1418_v46, %v1441_v56 }
 0x118   : > { %v559_v2 = vmul.f32 %v1457_v63, %v1438_v55  ;;  %v560_v3 = vmul.f32 %v1414_v44, %v1441_v56  ;;  %v515_v18 = vmul.f32 %v1486_v15, %v1438_v55  ;;  %v516_v19 = vmul.f32 %v1422_v48, %v1441_v56 }
 0x119   : > { %v1459_v0 = vpop.permute.xlu1 %529  ;;  %710 = vrot.lane.b32.xlu1 %v604_v59, %s1262_s11  ;;  %v1148_v1 = vpack.i.bf16 %v603_v60, %v602_v57  ;;  %v1158_v4 = vpack.i.bf16 %v582_v62, %v581_v61  ;;  %v787_v57 = vld [vmem:[%s1704_s6] sm:$0xff] }
 0x11a   : > { %v1469_v5 = vsel %vm531_vm4, %v1445_v58, %v1459_v0  ;;  %v1153_v10 = vpack.i.bf16 %v560_v3, %v559_v2  ;;  %v538_v12 = vmul.f32 %v1459_v0, %v1441_v56  ;;  %v1163_v23 = vpack.i.bf16 %v516_v19, %v515_v18 }
 0x11b   : > { %1149 = vrot.lane.b32.xlu0 %v1148_v1, %s1262_s11  ;;  %v537_v11 = vmul.f32 %v1469_v5, %v1438_v55 }
 0x11d   : > { %v1473_v8 = vpop.permute.xlu1 %464  ;;  %1159 = vrot.lane.b32.xlu1 %v1158_v4, %s1263_s12  ;;  %v1168_v21 = vpack.i.bf16 %v538_v12, %v537_v11 }
 0x11e   : > { %v1507_v24 = vsel %vm466_vm6, %v1471_v6, %v1473_v8  ;;  %v473_v29 = vmul.f32 %v1473_v8, %v1441_v56 }
 0x11f   : > { %1154 = vrot.lane.b32.xlu0 %v1153_v10, %s1264_s28  ;;  %v472_v28 = vmul.f32 %v1507_v24, %v1438_v55 }
 0x121   : > { %v1488_v16 = vpop.permute.xlu1 %486  ;;  %692 = vrot.lane.b32.xlu1 %v580_v13, %s1263_s12  ;;  %v1173_v36 = vpack.i.bf16 %v473_v29, %v472_v28 }
 0x122   : > { %v1502_v22 = vsel %vm488_vm5, %v1497_v20, %v1488_v16  ;;  %v495_v26 = vmul.f32 %v1488_v16, %v1441_v56 }
 0x123   : > { %678 = vrot.lane.b32.xlu0 %v558_v17, %s1264_s28  ;;  %v494_v25 = vmul.f32 %v1502_v22, %v1438_v55 }
 0x125   : > { %1169 = vrot.lane.b32.xlu1 %v1168_v21, %s1265_s29  ;;  %v1523_v32 = vpop.permute.xlu1 %442  ;;  %v1178_v34 = vpack.i.bf16 %v495_v26, %v494_v25 }
 0x126   : > { %v1531_v37 = vsel %vm444_vm7, %v1526_v35, %v1523_v32  ;;  %v451_v40 = vmul.f32 %v1523_v32, %v1441_v56  ;;  %v727_v56 = vld [vmem:[%s1703_s5] sm:$0xff] }
 0x127   : > { %1164 = vrot.lane.b32.xlu0 %v1163_v23, %s1266_s14  ;;  %v450_v39 = vmul.f32 %v1531_v37, %v1438_v55 }
 0x129   : > { %664 = vrot.lane.b32.xlu1 %v536_v27, %s1265_s29  ;;  %v1183_v53 = vpack.i.bf16 %v451_v40, %v450_v39 }
 0x12b   : > { %650 = vrot.lane.b32.xlu0 %v514_v30, %s1266_s14 }
 0x12d   : > { %1179 = vrot.lane.b32.xlu1 %v1178_v34, %s1267_s30 }
 0x12f   : > { %1174 = vrot.lane.b32.xlu0 %v1173_v36, %s1268_s15 }
 0x131   : > { %636 = vrot.lane.b32.xlu1 %v493_v38, %s1267_s30 }
 0x133   : > { %622 = vrot.lane.b32.xlu0 %v471_v41, %s1268_s15 }
 0x135   : > { %608 = vrot.lane.b32.xlu1 %v449_v50, %s1269_s17 }
 0x137   : > { %1184 = vrot.lane.b32.xlu0 %v1183_v53, %s1269_s17 }
 0x139   : > { %790 = vperm.xlu1 %1188, %v787_v57  }
 0x13b   : > { %730 = vperm.xlu0 %1147, %v727_v56  }
 0x18b   : > { %v711_v59 = vpop.permute.xlu1 %710 }
 0x18d   : > { %v1150_v60 = vpop.permute.xlu0 %1149 }
 0x18e   : > { %v1152_v61 = vunpack.i.h.bf16 %v1150_v60  ;;  %v1151_v62 = vunpack.i.l.bf16 %v1150_v60 }
 0x18f   : > { %v1160_v1 = vpop.permute.xlu1 %1159 }
 0x190   : > { %v1162_v2 = vunpack.i.h.bf16 %v1160_v1  ;;  %v1161_v3 = vunpack.i.l.bf16 %v1160_v1  ;;  %v714_v4 = vsel %vm712_vm8, %v1152_v61, %v711_v59  ;;  %v713_v10 = vsel %vm712_vm8, %v1151_v62, %v1152_v61 }
 0x191   : > { %v1155_v11 = vpop.permute.xlu0 %1154  ;;  %v726_v12 = vpack.c.bf16 %v714_v4, %v714_v4  ;;  %v725_v13 = vpack.c.bf16 %v713_v10, %v713_v10 }
 0x192   : > { %v1157_v17 = vunpack.i.h.bf16 %v1155_v11  ;;  %v1156_v18 = vunpack.i.l.bf16 %v1155_v11  ;;  %v700_v25 = vsel %vm698_vm10, %v1161_v3, %v1162_v2 }
 0x193   : > { %v693_v19 = vpop.permute.xlu1 %692  ;;  %1099 = vmatprep.subr.msk.bf16.mxu0 %vm737_vm9, %v726_v12  ;;  %v739_v21 = vsel %vm737_vm9, %v725_v13, 0  ;;  %v422_v13 = vsub.s32 0, %v1360_v7 }
 0x194   : > { %751 = vmatpush1.bf16.msra.mxu0 %v739_v21  ;;  %v686_v23 = vsel %vm684_vm11, %v1156_v18, %v1157_v17  ;;  %v699_v28 = vsel %vm698_vm10, %v693_v19, %v1161_v3 }
 0x195   : > { %v679_v26 = vpop.permute.xlu0 %678  ;;  %v724_v27 = vpack.c.bf16 %v700_v25, %v686_v23 }
 0x196   : > { %v685_v29 = vsel %vm684_vm11, %v679_v26, %v1156_v18 }
 0x197   : > { %v723_v30 = vpack.c.bf16 %v699_v28, %v685_v29  ;;  %v1170_v34 = vpop.permute.xlu1 %1169  ;;  %752 = vmatprep.subr.bf16.mxu0 %v724_v27  ;;  %v1572_v27 = vrot.slane %v1365_v9, %v422_v13  ;;  %v1575_v28 = vrot.slane %v1369_v14, %v422_v13  ;;  %v406_v14 = vld [vmem:[%s1702_s4] sm:$0xf] }
 0x198   : > { %v1172_v36 = vunpack.i.h.bf16 %v1170_v34  ;;  %v1171_v38 = vunpack.i.l.bf16 %v1170_v34 }
 0x199   : > { %v1165_v39 = vpop.permute.xlu0 %1164  ;;  %753 = vmatpush1.bf16.msra.mxu0 %v723_v30 }
 0x19a   : > { %v1167_v40 = vunpack.i.h.bf16 %v1165_v39  ;;  %v1166_v41 = vunpack.i.l.bf16 %v1165_v39  ;;  %v672_v57 = vsel %vm670_vm12, %v1171_v38, %v1172_v36  ;;  %v429_v36 = vmul.f32 %v1572_v27, %v1438_v55 }
 0x19b   : > { %v665_v50 = vpop.permute.xlu1 %664 }
 0x19c   : > { %v658_v53 = vsel %vm656_vm13, %v1166_v41, %v1167_v40  ;;  %v671_v60 = vsel %vm670_vm12, %v665_v50, %v1171_v38  ;;  %v428_v38 = vmul.f32 %v1575_v28, %v1427_v51 }
 0x19d   : > { %v651_v56 = vpop.permute.xlu0 %650  ;;  %v722_v59 = vpack.c.bf16 %v672_v57, %v658_v53 }
 0x19e   : > { %v657_v61 = vsel %vm656_vm13, %v651_v56, %v1166_v41 }
 0x19f   : > { %v721_v62 = vpack.c.bf16 %v671_v60, %v657_v61  ;;  %v1180_v1 = vpop.permute.xlu1 %1179  ;;  %754 = vmatprep.subr.bf16.mxu0 %v722_v59 }
 0x1a0   : > { %v1182_v2 = vunpack.i.h.bf16 %v1180_v1  ;;  %v1181_v3 = vunpack.i.l.bf16 %v1180_v1 }
 0x1a1   : > { %v1175_v4 = vpop.permute.xlu0 %1174  ;;  %755 = vmatpush1.bf16.msra.mxu0 %v721_v62 }
 0x1a2   : > { %v1177_v10 = vunpack.i.h.bf16 %v1175_v4  ;;  %v1176_v11 = vunpack.i.l.bf16 %v1175_v4  ;;  %v644_v18 = vsel %vm642_vm14, %v1181_v3, %v1182_v2 }
 0x1a3   : > { %v637_v12 = vpop.permute.xlu1 %636 }
 0x1a4   : > { %v630_v17 = vsel %vm628_vm15, %v1176_v11, %v1177_v10  ;;  %v643_v23 = vsel %vm642_vm14, %v637_v12, %v1181_v3 }
 0x1a5   : > { %v623_v19 = vpop.permute.xlu0 %622  ;;  %v720_v21 = vpack.c.bf16 %v644_v18, %v630_v17 }
 0x1a6   : > { %v629_v25 = vsel %vm628_vm15, %v623_v19, %v1176_v11 }
 0x1a7   : > { %v719_v26 = vpack.c.bf16 %v643_v23, %v629_v25  ;;  %756 = vmatprep.subr.bf16.mxu0 %v720_v21  ;;  %v609_v34 = vpop.permute.xlu1 %608 }
 0x1a9   : > { %v1185_v29 = vpop.permute.xlu0 %1184  ;;  %757 = vmatpush1.bf16.msra.mxu0 %v719_v26 }
 0x1aa   : > { %v1187_v7 = vunpack.i.h.bf16 %v1185_v29  ;;  %v1186_v30 = vunpack.i.l.bf16 %v1185_v29 }
 0x1ac   : > { %v616_v39 = vsel %vm614_vm0, %v1186_v30, %v1187_v7  ;;  %v615_v9 = vsel %vm614_vm0, %v609_v34, %v1186_v30 }
 0x1ad   : > { %v718_v40 = vpack.c.bf16 %v616_v39, %v429_v36  ;;  %v717_v41 = vpack.c.bf16 %v615_v9, %v428_v38 }
 0x1af   : > { %758 = vmatprep.subr.bf16.mxu0 %v718_v40 }
 0x1b0   : > { %759 = vmatpush1.bf16.msra.mxu0 %v717_v41 }
 0x1b3   : > { %1100 = vmatmul.mubr.msk.bf16.vlgmr.msra.gmra.mxu0 %vm733_vm2, %v406_v14 }
 0x1b4   : > { %v791_v53 = vpop.permute.xlu1 %790 }
 0x1b6   : > { %v731_v50 = vpop.permute.xlu0 %730 }
 0x273   : > { %v778_v55 = vpop.f32.mrf.mxu0 }
 0x274   : > { %v779_v57 = vadd.f32 %v778_v55, %v731_v50 }
 0x275   : > { %v780_v51 = vpop.f32.mrf.mxu0 }
 0x276   : > { %v793_v56 = vmul.f32 %v791_v53, %v779_v57  ;;  %v781_v59 = vadd.f32 %v780_v51, %v731_v50  ;;  %vm785_vm3 = vcmp.gt.f32.partialorder %v779_v57, 0.0 }
 0x277   : > { %v782_v60 = vpop.f32.mrf.mxu0 }
 0x278   : > { %v794_v61 = vmul.f32 %v791_v53, %v781_v59  ;;  %v795_v62 = vsel %vm785_vm3, %v779_v57, %v793_v56  ;;  %vm786_vm4 = vcmp.gt.f32.partialorder %v781_v59, 0.0 }
 0x279   : > { %v783_v1 = vpop.f32.mrf.mxu0  ;;  %800 = vrot.lane.b32.xlu0 %v795_v62, %s1257_s18 }
 0x27a   : > { %v796_v2 = vsel %vm786_vm4, %v781_v59, %v794_v61 }
 0x27b   : > { %802 = vrot.lane.b32.xlu1 %v796_v2, %s1257_s18 }
 0x2eb   : > { %v801_v3 = vpop.permute.xlu0 %800 }
 0x2ec   : > { %v1590_v4 = vsel %vm413_vm1, 0.0, %v801_v3 }
 0x2ed   : > { %v830_v10 = vmul.f32 %v1590_v4, %v1420_v47  ;;  %v827_v11 = vmul.f32 %v1590_v4, %v1416_v45  ;;  %v803_v12 = vpop.permute.xlu1 %802  ;;  %v824_v13 = vmul.f32 %v1590_v4, %v1445_v58  ;;  %v821_v17 = vmul.f32 %v1590_v4, %v1424_v49 }
 0x2ee   : > { %v1603_v18 = vsel %vm413_vm1, %v801_v3, %v803_v12  ;;  %v809_v19 = vsel %vm413_vm1, %v803_v12, 0.0  ;;  %v815_v45 = vmul.f32 %v1590_v4, %v1471_v6  ;;  %v833_v23 = vmul.f32 %v1590_v4, %v1412_v43 }
 0x2ef   : > { %917 = vrot.lane.b32.xlu1 %v830_v10, %s1263_s12  ;;  %904 = vrot.lane.b32.xlu0 %v827_v11, %s1264_s28  ;;  %v835_v47 = vmul.f32 %v809_v19, %v1410_v42  ;;  %v834_v58 = vmul.f32 %v1603_v18, %v1431_v52  ;;  %v831_v49 = vmul.f32 %v1603_v18, %v1435_v54 }
 0x2f0   : > { %v832_v21 = vmul.f32 %v809_v19, %v1418_v46  ;;  %v828_v6 = vmul.f32 %v1603_v18, %v1457_v63  ;;  %v829_v42 = vmul.f32 %v809_v19, %v1414_v44  ;;  %v825_v52 = vmul.f32 %v1603_v18, %v1469_v5 }
 0x2f1   : > { %v1189_v25 = vpack.i.bf16 %v834_v58, %v833_v23  ;;  %v826_v54 = vmul.f32 %v809_v19, %v1459_v0  ;;  %v822_v46 = vmul.f32 %v1603_v18, %v1486_v15  ;;  %v823_v43 = vmul.f32 %v809_v19, %v1422_v48 }
 0x2f2   : > { %v1199_v26 = vpack.i.bf16 %v832_v21, %v831_v49  ;;  %v1194_v29 = vpack.i.bf16 %v829_v42, %v828_v6  ;;  %v819_v44 = vmul.f32 %v1603_v18, %v1502_v22  ;;  %v820_v7 = vmul.f32 %v809_v19, %v1488_v16 }
 0x2f3   : > { %891 = vrot.lane.b32.xlu1 %v824_v13, %s1265_s29  ;;  %878 = vrot.lane.b32.xlu0 %v821_v17, %s1266_s14  ;;  %v1209_v63 = vpack.i.bf16 %v826_v54, %v825_v52  ;;  %v1204_v0 = vpack.i.bf16 %v823_v43, %v822_v46  ;;  %v816_v30 = vmul.f32 %v1603_v18, %v1507_v24 }
 0x2f4   : > { %v1219_v5 = vpack.i.bf16 %v820_v7, %v819_v44  ;;  %v817_v15 = vmul.f32 %v809_v19, %v1473_v8  ;;  %v818_v48 = vmul.f32 %v1590_v4, %v1497_v20  ;;  %v813_v16 = vmul.f32 %v1603_v18, %v1531_v37  ;;  %v950_v20 = vld [vmem:[%s1706_s8] sm:$0xff] }
 0x2f5   : > { %v814_v34 = vmul.f32 %v809_v19, %v1523_v32  ;;  %v812_v8 = vmul.f32 %v1590_v4, %v1526_v35 }
 0x2f6   : > { %v1214_v22 = vpack.i.bf16 %v817_v15, %v816_v30 }
 0x2f7   : > { %934 = vrot.lane.b32.xlu1 %v835_v47, %s1262_s11  ;;  %852 = vrot.lane.b32.xlu0 %v815_v45, %s1268_s15  ;;  %v1224_v24 = vpack.i.bf16 %v814_v34, %v813_v16 }
 0x2fb   : > { %1190 = vrot.lane.b32.xlu0 %v1189_v25, %s1262_s11  ;;  %1200 = vrot.lane.b32.xlu1 %v1199_v26, %s1263_s12 }
 0x2ff   : > { %1195 = vrot.lane.b32.xlu0 %v1194_v29, %s1264_s28  ;;  %1210 = vrot.lane.b32.xlu1 %v1209_v63, %s1265_s29 }
 0x303   : > { %1205 = vrot.lane.b32.xlu0 %v1204_v0, %s1266_s14  ;;  %1220 = vrot.lane.b32.xlu1 %v1219_v5, %s1267_s30  ;;  %s381_s14 = scalar_lea.vmem %s1707_s9, %s1094_s24 }
 0x307   : > { %865 = vrot.lane.b32.xlu1 %v818_v48, %s1267_s30  ;;  %1215 = vrot.lane.b32.xlu0 %v1214_v22, %s1268_s15 }
 0x30b   : > { %839 = vrot.lane.b32.xlu1 %v812_v8, %s1269_s17  ;;  %1225 = vrot.lane.b32.xlu0 %v1224_v24, %s1269_s17  ;;  %v811_v8 = vmul.f32 %v1603_v18, %v1572_v27  ;;  %v810_v24 = vmul.f32 %v1590_v4, %v1575_v28 }
 0x30f   : > { %953 = vperm.xlu0 %1147, %v950_v20  }
 0x361   : > { %v918_v37 = vpop.permute.xlu1 %917  ;;  %v905_v36 = vpop.permute.xlu0 %904 }
 0x365   : > { %v892_v32 = vpop.permute.xlu1 %891  ;;  %v879_v38 = vpop.permute.xlu0 %878 }
 0x369   : > { %v935_v39 = vpop.permute.xlu1 %934  ;;  %v853_v9 = vpop.permute.xlu0 %852 }
 0x36d   : > { %v1191_v40 = vpop.permute.xlu0 %1190  ;;  %v1201_v41 = vpop.permute.xlu1 %1200 }
 0x36e   : > { %v1193_v14 = vunpack.i.h.bf16 %v1191_v40  ;;  %v1192_v35 = vunpack.i.l.bf16 %v1191_v40  ;;  %v1203_v50 = vunpack.i.h.bf16 %v1201_v41  ;;  %v1202_v55 = vunpack.i.l.bf16 %v1201_v41 }
 0x370   : > { %v937_v53 = vsel %vm712_vm8, %v1193_v14, %v935_v39  ;;  %v936_v57 = vsel %vm712_vm8, %v1192_v35, %v1193_v14  ;;  %v924_v11 = vsel %vm698_vm10, %v1202_v55, %v1203_v50  ;;  %v923_v13 = vsel %vm698_vm10, %v918_v37, %v1202_v55 }
 0x371   : > { %v1196_v51 = vpop.permute.xlu0 %1195  ;;  %v1211_v56 = vpop.permute.xlu1 %1210  ;;  %v949_v59 = vpack.c.bf16 %v937_v53, %v937_v53  ;;  %v948_v60 = vpack.c.bf16 %v936_v57, %v936_v57 }
 0x372   : > { %v1198_v61 = vunpack.i.h.bf16 %v1196_v51  ;;  %v1197_v62 = vunpack.i.l.bf16 %v1196_v51  ;;  %v1213_v1 = vunpack.i.h.bf16 %v1211_v56  ;;  %v1212_v2 = vunpack.i.l.bf16 %v1211_v56 }
 0x373   : > { %1101 = vmatprep.subr.msk.bf16.mxu1 %vm737_vm9, %v949_v59  ;;  %v960_v3 = vsel %vm737_vm9, %v948_v60, 0 }
 0x374   : > { %972 = vmatpush1.bf16.msra.mxu1 %v960_v3  ;;  %v911_v10 = vsel %vm684_vm11, %v1197_v62, %v1198_v61  ;;  %v910_v12 = vsel %vm684_vm11, %v905_v36, %v1197_v62  ;;  %v898_v21 = vsel %vm670_vm12, %v1212_v2, %v1213_v1  ;;  %v897_v23 = vsel %vm670_vm12, %v892_v32, %v1212_v2 }
 0x375   : > { %v1206_v17 = vpop.permute.xlu0 %1205  ;;  %v1221_v19 = vpop.permute.xlu1 %1220  ;;  %v947_v45 = vpack.c.bf16 %v924_v11, %v911_v10  ;;  %v946_v47 = vpack.c.bf16 %v923_v13, %v910_v12 }
 0x376   : > { %v1208_v58 = vunpack.i.h.bf16 %v1206_v17  ;;  %v1207_v49 = vunpack.i.l.bf16 %v1206_v17  ;;  %v1223_v6 = vunpack.i.h.bf16 %v1221_v19  ;;  %v1222_v42 = vunpack.i.l.bf16 %v1221_v19 }
 0x377   : > { %973 = vmatprep.subr.bf16.mxu1 %v947_v45 }
 0x378   : > { %974 = vmatpush1.bf16.msra.mxu1 %v946_v47  ;;  %v885_v25 = vsel %vm656_vm13, %v1207_v49, %v1208_v58  ;;  %v884_v26 = vsel %vm656_vm13, %v879_v38, %v1207_v49  ;;  %v872_v0 = vsel %vm642_vm14, %v1222_v42, %v1223_v6  ;;  %v797_v38 = vld [vmem:[%s1705_s7] sm:$0xf] }
 0x379   : > { %v866_v52 = vpop.permute.xlu1 %865  ;;  %v1216_v54 = vpop.permute.xlu0 %1215  ;;  %v945_v46 = vpack.c.bf16 %v898_v21, %v885_v25  ;;  %v944_v43 = vpack.c.bf16 %v897_v23, %v884_v26 }
 0x37a   : > { %v1218_v29 = vunpack.i.h.bf16 %v1216_v54  ;;  %v1217_v63 = vunpack.i.l.bf16 %v1216_v54  ;;  %v871_v44 = vsel %vm642_vm14, %v866_v52, %v1222_v42 }
 0x37b   : > { %975 = vmatprep.subr.bf16.mxu1 %v945_v46 }
 0x37c   : > { %976 = vmatpush1.bf16.msra.mxu1 %v944_v43  ;;  %v859_v7 = vsel %vm628_vm15, %v1217_v63, %v1218_v29  ;;  %v858_v5 = vsel %vm628_vm15, %v853_v9, %v1217_v63 }
 0x37d   : > { %v1226_v30 = vpop.permute.xlu0 %1225  ;;  %v943_v15 = vpack.c.bf16 %v872_v0, %v859_v7  ;;  %v942_v48 = vpack.c.bf16 %v871_v44, %v858_v5  ;;  %v840_v34 = vpop.permute.xlu1 %839 }
 0x37e   : > { %v1228_v22 = vunpack.i.h.bf16 %v1226_v30  ;;  %v1227_v16 = vunpack.i.l.bf16 %v1226_v30 }
 0x37f   : > { %977 = vmatprep.subr.bf16.mxu1 %v943_v15 }
 0x380   : > { %978 = vmatpush1.bf16.msra.mxu1 %v942_v48  ;;  %v846_v20 = vsel %vm614_vm0, %v1227_v16, %v1228_v22  ;;  %v845_v37 = vsel %vm614_vm0, %v840_v34, %v1227_v16 }
 0x381   : > { %v941_v36 = vpack.c.bf16 %v846_v20, %v811_v8  ;;  %v940_v32 = vpack.c.bf16 %v845_v37, %v810_v24 }
 0x383   : > { %979 = vmatprep.subr.bf16.mxu1 %v941_v36 }
 0x384   : > { %980 = vmatpush1.bf16.msra.mxu1 %v940_v32 }
 0x387   : > { %1102 = vmatmul.mubr.msk.bf16.vlgmr.msra.gmra.mxu1 %vm733_vm2, %v797_v38 }
 0x38a   : > { %v954_v39 = vpop.permute.xlu0 %953 }
 0x447   : > { %v999_v27 = vpop.f32.mrf.mxu1 }
 0x448   : > { %v1000_v18 = vadd.f32 %v999_v27, %v954_v39 }
 0x449   : > { %v1001_v28 = vpop.f32.mrf.mxu1 }
 0x44a   : > { %v1006_v4 = vadd.f32 %v1000_v18, %v1398_v31  ;;  %v1002_v9 = vadd.f32 %v1001_v28, %v954_v39 }
 0x44b   : > { %v1003_v40 = vpop.f32.mrf.mxu1 }
 0x44c   : > { %1008 = vst [vmem:[%s381_s14] sm:$0xff] %v1006_v4  ;;  %v1007_v41 = vadd.f32 %v1002_v9, %v1401_v33 }
 0x44d   : > { %v1004_v14 = vpop.f32.mrf.mxu1 }
 0x44e   : > { %1009 = vst [vmem:[%s381_s14 + $0x8] sm:$0xff] %v1007_v41 }
 0x44f PF: > { %p16_p9 = scmp.ge.s32.totalorder %s1337_s13, 4   ;;  %s1708_s30 = smov %s1247_s10 }
 0x450   : > { %s1709_s10 = smov %s1346_s16  ;;  %s1710_s11 = smov %s1337_s13 }
 0x451   :  { %18 = sbr.rel (!%p16_p9) target bundleno = 2 (0x2), region = 117 }

// kernel: attention_module_forward.11
= control target key start
LH: loop header
LB: loop body
LE: loop exit
PB: predicated region body
PF: predicated region fallthrough
CT: control target
= control target key end

     0   :  { %s1932_s10 = smov 127   ;;  %vm1672_vm0 = vcmask 7168   ;;  %s4761_s0 = inlined_call_operand.vmem [shape: f32[128,2,8,2], index: 0, kind: input, shape index: {}]   ;;  %s4762_s1 = inlined_call_operand.vmem [shape: f32[128,1,8,1], index: 1, kind: output, shape index: {}]  }
   0x1   :  { %v12_v0 = vld [vmem:[%s4761_s0 + $0x20] sm:$0xff]  ;;  %v14_v2 = vld [vmem:[%s4761_s0 + $0x30] sm:$0xff] }
   0x2   :  { %v1949_v1 = vld [vmem:[%s4761_s0] sm:$0xff]  ;;  %396 = vrot.lane.b32.xlu1 %v12_v0, %s1932_s10  ;;  %v1960_v3 = vld [vmem:[%s4761_s0 + $0x10] sm:$0xff] }
   0x3   :  { %392 = vrot.lane.b32.xlu0 %v1949_v1, %s1932_s10  ;;  %v18_v4 = vld [vmem:[%s4761_s0 + $0x50] sm:$0xff]  ;;  %v16_v5 = vld [vmem:[%s4761_s0 + $0x40] sm:$0xff] }
   0x4   :  { %v22_v6 = vld [vmem:[%s4761_s0 + $0x70] sm:$0xff]  ;;  %v20_v7 = vld [vmem:[%s4761_s0 + $0x60] sm:$0xff] }
   0x5   :  { %v26_v8 = vld [vmem:[%s4761_s0 + $0x90] sm:$0xff]  ;;  %v24_v9 = vld [vmem:[%s4761_s0 + $0x80] sm:$0xff] }
   0x6   :  { %398 = vrot.lane.b32.xlu1 %v14_v2, %s1932_s10  ;;  %v30_v10 = vld [vmem:[%s4761_s0 + $0xb0] sm:$0xff]  ;;  %v28_v11 = vld [vmem:[%s4761_s0 + $0xa0] sm:$0xff] }
   0x7   :  { %394 = vrot.lane.b32.xlu0 %v1960_v3, %s1932_s10  ;;  %v34_v12 = vld [vmem:[%s4761_s0 + $0xd0] sm:$0xff]  ;;  %v32_v13 = vld [vmem:[%s4761_s0 + $0xc0] sm:$0xff] }
   0x8   :  { %v38_v14 = vld [vmem:[%s4761_s0 + $0xf0] sm:$0xff]  ;;  %v36_v15 = vld [vmem:[%s4761_s0 + $0xe0] sm:$0xff] }
   0x9   :  { %v42_v16 = vld [vmem:[%s4761_s0 + $0x110] sm:$0xff]  ;;  %v40_v17 = vld [vmem:[%s4761_s0 + $0x100] sm:$0xff] }
   0xa   :  { %402 = vrot.lane.b32.xlu1 %v18_v4, %s1932_s10  ;;  %v46_v18 = vld [vmem:[%s4761_s0 + $0x130] sm:$0xff]  ;;  %v44_v19 = vld [vmem:[%s4761_s0 + $0x120] sm:$0xff] }
   0xb   :  { %400 = vrot.lane.b32.xlu0 %v16_v5, %s1932_s10  ;;  %v50_v20 = vld [vmem:[%s4761_s0 + $0x150] sm:$0xff]  ;;  %v48_v21 = vld [vmem:[%s4761_s0 + $0x140] sm:$0xff] }
   0xc   :  { %v54_v22 = vld [vmem:[%s4761_s0 + $0x170] sm:$0xff]  ;;  %v52_v23 = vld [vmem:[%s4761_s0 + $0x160] sm:$0xff] }
   0xd   :  { %v58_v24 = vld [vmem:[%s4761_s0 + $0x190] sm:$0xff]  ;;  %v56_v25 = vld [vmem:[%s4761_s0 + $0x180] sm:$0xff] }
   0xe   :  { %406 = vrot.lane.b32.xlu1 %v22_v6, %s1932_s10  ;;  %v62_v26 = vld [vmem:[%s4761_s0 + $0x1b0] sm:$0xff]  ;;  %v60_v27 = vld [vmem:[%s4761_s0 + $0x1a0] sm:$0xff] }
   0xf   :  { %404 = vrot.lane.b32.xlu0 %v20_v7, %s1932_s10  ;;  %v66_v28 = vld [vmem:[%s4761_s0 + $0x1d0] sm:$0xff]  ;;  %v64_v29 = vld [vmem:[%s4761_s0 + $0x1c0] sm:$0xff] }
  0x10   :  { %v70_v30 = vld [vmem:[%s4761_s0 + $0x1f0] sm:$0xff]  ;;  %v68_v31 = vld [vmem:[%s4761_s0 + $0x1e0] sm:$0xff] }
  0x11   :  { %v74_v32 = vld [vmem:[%s4761_s0 + $0x210] sm:$0xff]  ;;  %v72_v33 = vld [vmem:[%s4761_s0 + $0x200] sm:$0xff] }
  0x12   :  { %410 = vrot.lane.b32.xlu1 %v26_v8, %s1932_s10  ;;  %v78_v34 = vld [vmem:[%s4761_s0 + $0x230] sm:$0xff]  ;;  %v76_v35 = vld [vmem:[%s4761_s0 + $0x220] sm:$0xff] }
  0x13   :  { %408 = vrot.lane.b32.xlu0 %v24_v9, %s1932_s10  ;;  %v82_v36 = vld [vmem:[%s4761_s0 + $0x250] sm:$0xff]  ;;  %v80_v37 = vld [vmem:[%s4761_s0 + $0x240] sm:$0xff] }
  0x14   :  { %v86_v38 = vld [vmem:[%s4761_s0 + $0x270] sm:$0xff]  ;;  %v84_v39 = vld [vmem:[%s4761_s0 + $0x260] sm:$0xff] }
  0x15   :  { %v90_v40 = vld [vmem:[%s4761_s0 + $0x290] sm:$0xff]  ;;  %v88_v41 = vld [vmem:[%s4761_s0 + $0x280] sm:$0xff] }
  0x16   :  { %414 = vrot.lane.b32.xlu1 %v30_v10, %s1932_s10  ;;  %v94_v42 = vld [vmem:[%s4761_s0 + $0x2b0] sm:$0xff]  ;;  %v92_v43 = vld [vmem:[%s4761_s0 + $0x2a0] sm:$0xff] }
  0x17   :  { %412 = vrot.lane.b32.xlu0 %v28_v11, %s1932_s10  ;;  %v98_v44 = vld [vmem:[%s4761_s0 + $0x2d0] sm:$0xff]  ;;  %v96_v45 = vld [vmem:[%s4761_s0 + $0x2c0] sm:$0xff] }
  0x18   :  { %v102_v46 = vld [vmem:[%s4761_s0 + $0x2f0] sm:$0xff]  ;;  %v100_v47 = vld [vmem:[%s4761_s0 + $0x2e0] sm:$0xff] }
  0x19   :  { %v106_v48 = vld [vmem:[%s4761_s0 + $0x310] sm:$0xff]  ;;  %v104_v49 = vld [vmem:[%s4761_s0 + $0x300] sm:$0xff] }
  0x1a   :  { %418 = vrot.lane.b32.xlu1 %v34_v12, %s1932_s10  ;;  %v110_v50 = vld [vmem:[%s4761_s0 + $0x330] sm:$0xff]  ;;  %v108_v51 = vld [vmem:[%s4761_s0 + $0x320] sm:$0xff] }
  0x1b   :  { %416 = vrot.lane.b32.xlu0 %v32_v13, %s1932_s10  ;;  %v114_v52 = vld [vmem:[%s4761_s0 + $0x350] sm:$0xff]  ;;  %v112_v53 = vld [vmem:[%s4761_s0 + $0x340] sm:$0xff] }
  0x1c   :  { %v118_v54 = vld [vmem:[%s4761_s0 + $0x370] sm:$0xff]  ;;  %v116_v55 = vld [vmem:[%s4761_s0 + $0x360] sm:$0xff] }
  0x1d   :  { %v122_v56 = vld [vmem:[%s4761_s0 + $0x390] sm:$0xff]  ;;  %v120_v57 = vld [vmem:[%s4761_s0 + $0x380] sm:$0xff] }
  0x1e   :  { %422 = vrot.lane.b32.xlu1 %v38_v14, %s1932_s10  ;;  %v126_v58 = vld [vmem:[%s4761_s0 + $0x3b0] sm:$0xff]  ;;  %v124_v59 = vld [vmem:[%s4761_s0 + $0x3a0] sm:$0xff] }
  0x1f   :  { %420 = vrot.lane.b32.xlu0 %v36_v15, %s1932_s10  ;;  %v130_v62 = vld [vmem:[%s4761_s0 + $0x3d0] sm:$0xff]  ;;  %v128_v63 = vld [vmem:[%s4761_s0 + $0x3c0] sm:$0xff] }
  0x20   :  { %v134_v4 = vld [vmem:[%s4761_s0 + $0x3f0] sm:$0xff]  ;;  %v132_v5 = vld [vmem:[%s4761_s0 + $0x3e0] sm:$0xff] }
  0x21   :  { %v138_v8 = vld [vmem:[%s4761_s0 + $0x410] sm:$0xff]  ;;  %v136_v9 = vld [vmem:[%s4761_s0 + $0x400] sm:$0xff] }
  0x22   :  { %426 = vrot.lane.b32.xlu1 %v42_v16, %s1932_s10  ;;  %v142_v12 = vld [vmem:[%s4761_s0 + $0x430] sm:$0xff]  ;;  %v140_v13 = vld [vmem:[%s4761_s0 + $0x420] sm:$0xff] }
  0x23   :  { %424 = vrot.lane.b32.xlu0 %v40_v17, %s1932_s10  ;;  %v146_v16 = vld [vmem:[%s4761_s0 + $0x450] sm:$0xff]  ;;  %v144_v17 = vld [vmem:[%s4761_s0 + $0x440] sm:$0xff] }
  0x26   :  { %430 = vrot.lane.b32.xlu1 %v46_v18, %s1932_s10 }
  0x27   :  { %428 = vrot.lane.b32.xlu0 %v44_v19, %s1932_s10 }
  0x2a   :  { %434 = vrot.lane.b32.xlu1 %v50_v20, %s1932_s10  ;;  %v150_v20 = vld [vmem:[%s4761_s0 + $0x470] sm:$0xff] }
  0x2b   :  { %432 = vrot.lane.b32.xlu0 %v48_v21, %s1932_s10  ;;  %v148_v21 = vld [vmem:[%s4761_s0 + $0x460] sm:$0xff] }
  0x2e   :  { %438 = vrot.lane.b32.xlu1 %v54_v22, %s1932_s10 }
  0x2f   :  { %436 = vrot.lane.b32.xlu0 %v52_v23, %s1932_s10 }
  0x32   :  { %442 = vrot.lane.b32.xlu1 %v58_v24, %s1932_s10  ;;  %v154_v24 = vld [vmem:[%s4761_s0 + $0x490] sm:$0xff] }
  0x33   :  { %440 = vrot.lane.b32.xlu0 %v56_v25, %s1932_s10  ;;  %v152_v25 = vld [vmem:[%s4761_s0 + $0x480] sm:$0xff] }
  0x36   :  { %446 = vrot.lane.b32.xlu1 %v62_v26, %s1932_s10 }
  0x37   :  { %444 = vrot.lane.b32.xlu0 %v60_v27, %s1932_s10 }
  0x3a   :  { %450 = vrot.lane.b32.xlu1 %v66_v28, %s1932_s10  ;;  %v158_v28 = vld [vmem:[%s4761_s0 + $0x4b0] sm:$0xff] }
  0x3b   :  { %448 = vrot.lane.b32.xlu0 %v64_v29, %s1932_s10  ;;  %v156_v29 = vld [vmem:[%s4761_s0 + $0x4a0] sm:$0xff] }
  0x3e   :  { %454 = vrot.lane.b32.xlu1 %v70_v30, %s1932_s10 }
  0x3f   :  { %452 = vrot.lane.b32.xlu0 %v68_v31, %s1932_s10 }
  0x42   :  { %458 = vrot.lane.b32.xlu1 %v74_v32, %s1932_s10  ;;  %v162_v32 = vld [vmem:[%s4761_s0 + $0x4d0] sm:$0xff] }
  0x43   :  { %456 = vrot.lane.b32.xlu0 %v72_v33, %s1932_s10  ;;  %v160_v33 = vld [vmem:[%s4761_s0 + $0x4c0] sm:$0xff] }
  0x46   :  { %462 = vrot.lane.b32.xlu1 %v78_v34, %s1932_s10 }
  0x47   :  { %460 = vrot.lane.b32.xlu0 %v76_v35, %s1932_s10 }
  0x4a   :  { %466 = vrot.lane.b32.xlu1 %v82_v36, %s1932_s10  ;;  %v166_v36 = vld [vmem:[%s4761_s0 + $0x4f0] sm:$0xff] }
  0x4b   :  { %464 = vrot.lane.b32.xlu0 %v80_v37, %s1932_s10  ;;  %v164_v37 = vld [vmem:[%s4761_s0 + $0x4e0] sm:$0xff] }
  0x4e   :  { %470 = vrot.lane.b32.xlu1 %v86_v38, %s1932_s10 }
  0x4f   :  { %468 = vrot.lane.b32.xlu0 %v84_v39, %s1932_s10 }
  0x52   :  { %474 = vrot.lane.b32.xlu1 %v90_v40, %s1932_s10  ;;  %v170_v40 = vld [vmem:[%s4761_s0 + $0x510] sm:$0xff] }
  0x53   :  { %472 = vrot.lane.b32.xlu0 %v88_v41, %s1932_s10  ;;  %v168_v41 = vld [vmem:[%s4761_s0 + $0x500] sm:$0xff] }
  0x56   :  { %478 = vrot.lane.b32.xlu1 %v94_v42, %s1932_s10 }
  0x57   :  { %476 = vrot.lane.b32.xlu0 %v92_v43, %s1932_s10 }
  0x5a   :  { %482 = vrot.lane.b32.xlu1 %v98_v44, %s1932_s10  ;;  %v174_v44 = vld [vmem:[%s4761_s0 + $0x530] sm:$0xff] }
  0x5b   :  { %480 = vrot.lane.b32.xlu0 %v96_v45, %s1932_s10  ;;  %v172_v45 = vld [vmem:[%s4761_s0 + $0x520] sm:$0xff] }
  0x5e   :  { %486 = vrot.lane.b32.xlu1 %v102_v46, %s1932_s10 }
  0x5f   :  { %484 = vrot.lane.b32.xlu0 %v100_v47, %s1932_s10 }
  0x62   :  { %490 = vrot.lane.b32.xlu1 %v106_v48, %s1932_s10  ;;  %v178_v48 = vld [vmem:[%s4761_s0 + $0x550] sm:$0xff] }
  0x63   :  { %488 = vrot.lane.b32.xlu0 %v104_v49, %s1932_s10  ;;  %v176_v49 = vld [vmem:[%s4761_s0 + $0x540] sm:$0xff] }
  0x66   :  { %494 = vrot.lane.b32.xlu1 %v110_v50, %s1932_s10 }
  0x67   :  { %492 = vrot.lane.b32.xlu0 %v108_v51, %s1932_s10 }
  0x6a   :  { %498 = vrot.lane.b32.xlu1 %v114_v52, %s1932_s10  ;;  %v182_v52 = vld [vmem:[%s4761_s0 + $0x570] sm:$0xff] }
  0x6b   :  { %496 = vrot.lane.b32.xlu0 %v112_v53, %s1932_s10  ;;  %v180_v53 = vld [vmem:[%s4761_s0 + $0x560] sm:$0xff] }
  0x6e   :  { %502 = vrot.lane.b32.xlu1 %v118_v54, %s1932_s10 }
  0x6f   :  { %500 = vrot.lane.b32.xlu0 %v116_v55, %s1932_s10 }
  0x72   :  { %506 = vrot.lane.b32.xlu1 %v122_v56, %s1932_s10  ;;  %v186_v56 = vld [vmem:[%s4761_s0 + $0x590] sm:$0xff] }
  0x73   :  { %504 = vrot.lane.b32.xlu0 %v120_v57, %s1932_s10  ;;  %v184_v57 = vld [vmem:[%s4761_s0 + $0x580] sm:$0xff] }
  0x74   :  { %v2187_v60 = vpop.permute.xlu1 %396 }
  0x75   :  { %v2189_v61 = vpop.permute.xlu0 %392 }
  0x76   :  { %510 = vrot.lane.b32.xlu1 %v126_v58, %s1932_s10 }
  0x77   :  { %508 = vrot.lane.b32.xlu0 %v124_v59, %s1932_s10 }
  0x78   :  { %v2199_v0 = vpop.permute.xlu1 %398 }
  0x79   :  { %v2201_v2 = vpop.permute.xlu0 %394 }
  0x7a   :  { %514 = vrot.lane.b32.xlu1 %v130_v62, %s1932_s10  ;;  %v190_v62 = vld [vmem:[%s4761_s0 + $0x5b0] sm:$0xff] }
  0x7b   :  { %512 = vrot.lane.b32.xlu0 %v128_v63, %s1932_s10  ;;  %v188_v63 = vld [vmem:[%s4761_s0 + $0x5a0] sm:$0xff] }
  0x7c   :  { %v2211_v6 = vpop.permute.xlu1 %402 }
  0x7d   :  { %v2213_v7 = vpop.permute.xlu0 %400 }
  0x7e   :  { %518 = vrot.lane.b32.xlu1 %v134_v4, %s1932_s10 }
  0x7f   :  { %516 = vrot.lane.b32.xlu0 %v132_v5, %s1932_s10 }
  0x80   :  { %v2223_v10 = vpop.permute.xlu1 %406 }
  0x81   :  { %v2225_v11 = vpop.permute.xlu0 %404 }
  0x82   :  { %522 = vrot.lane.b32.xlu1 %v138_v8, %s1932_s10  ;;  %v194_v8 = vld [vmem:[%s4761_s0 + $0x5d0] sm:$0xff] }
  0x83   :  { %520 = vrot.lane.b32.xlu0 %v136_v9, %s1932_s10  ;;  %v192_v9 = vld [vmem:[%s4761_s0 + $0x5c0] sm:$0xff] }
  0x84   :  { %v2235_v14 = vpop.permute.xlu1 %410 }
  0x85   :  { %v2237_v15 = vpop.permute.xlu0 %408 }
  0x86   :  { %526 = vrot.lane.b32.xlu1 %v142_v12, %s1932_s10 }
  0x87   :  { %524 = vrot.lane.b32.xlu0 %v140_v13, %s1932_s10 }
  0x88   :  { %v2247_v18 = vpop.permute.xlu1 %414 }
  0x89   :  { %v2249_v19 = vpop.permute.xlu0 %412 }
  0x8a   :  { %530 = vrot.lane.b32.xlu1 %v146_v16, %s1932_s10  ;;  %v198_v16 = vld [vmem:[%s4761_s0 + $0x5f0] sm:$0xff] }
  0x8b   :  { %528 = vrot.lane.b32.xlu0 %v144_v17, %s1932_s10  ;;  %v196_v17 = vld [vmem:[%s4761_s0 + $0x5e0] sm:$0xff] }
  0x8c   :  { %v2259_v22 = vpop.permute.xlu1 %418 }
  0x8d   :  { %v2261_v23 = vpop.permute.xlu0 %416 }
  0x8e   :  { %534 = vrot.lane.b32.xlu1 %v150_v20, %s1932_s10 }
  0x8f   :  { %532 = vrot.lane.b32.xlu0 %v148_v21, %s1932_s10 }
  0x90   :  { %v2271_v26 = vpop.permute.xlu1 %422 }
  0x91   :  { %v2273_v27 = vpop.permute.xlu0 %420 }
  0x92   :  { %538 = vrot.lane.b32.xlu1 %v154_v24, %s1932_s10  ;;  %v202_v24 = vld [vmem:[%s4761_s0 + $0x610] sm:$0xff] }
  0x93   :  { %536 = vrot.lane.b32.xlu0 %v152_v25, %s1932_s10  ;;  %v200_v25 = vld [vmem:[%s4761_s0 + $0x600] sm:$0xff] }
  0x94   :  { %v2283_v30 = vpop.permute.xlu1 %426 }
  0x95   :  { %v2285_v31 = vpop.permute.xlu0 %424 }
  0x96   :  { %542 = vrot.lane.b32.xlu1 %v158_v28, %s1932_s10 }
  0x97   :  { %540 = vrot.lane.b32.xlu0 %v156_v29, %s1932_s10 }
  0x98   :  { %v2295_v34 = vpop.permute.xlu1 %430 }
  0x99   :  { %v2297_v35 = vpop.permute.xlu0 %428 }
  0x9a   :  { %546 = vrot.lane.b32.xlu1 %v162_v32, %s1932_s10  ;;  %v206_v32 = vld [vmem:[%s4761_s0 + $0x630] sm:$0xff] }
  0x9b   :  { %544 = vrot.lane.b32.xlu0 %v160_v33, %s1932_s10  ;;  %v204_v33 = vld [vmem:[%s4761_s0 + $0x620] sm:$0xff] }
  0x9c   :  { %v2307_v38 = vpop.permute.xlu1 %434 }
  0x9d   :  { %v2309_v39 = vpop.permute.xlu0 %432 }
  0x9e   :  { %550 = vrot.lane.b32.xlu1 %v166_v36, %s1932_s10 }
  0x9f   :  { %548 = vrot.lane.b32.xlu0 %v164_v37, %s1932_s10 }
  0xa0   :  { %v2319_v42 = vpop.permute.xlu1 %438 }
  0xa1   :  { %v2321_v43 = vpop.permute.xlu0 %436 }
  0xa2   :  { %554 = vrot.lane.b32.xlu1 %v170_v40, %s1932_s10  ;;  %v210_v40 = vld [vmem:[%s4761_s0 + $0x650] sm:$0xff] }
  0xa3   :  { %552 = vrot.lane.b32.xlu0 %v168_v41, %s1932_s10  ;;  %v208_v41 = vld [vmem:[%s4761_s0 + $0x640] sm:$0xff] }
  0xa4   :  { %v2331_v46 = vpop.permute.xlu1 %442 }
  0xa5   :  { %v2333_v47 = vpop.permute.xlu0 %440 }
  0xa6   :  { %558 = vrot.lane.b32.xlu1 %v174_v44, %s1932_s10 }
  0xa7   :  { %556 = vrot.lane.b32.xlu0 %v172_v45, %s1932_s10 }
  0xa8   :  { %v2343_v50 = vpop.permute.xlu1 %446 }
  0xa9   :  { %4805 = vst [vmem:[#allocation2_spill] sm:$0xff] %v2343_v50  ;;  %v2345_v51 = vpop.permute.xlu0 %444 }
  0xaa   :  { %4806 = vst [vmem:[#allocation3_spill] sm:$0xff] %v2345_v51  ;;  %562 = vrot.lane.b32.xlu1 %v178_v48, %s1932_s10  ;;  %v214_v48 = vld [vmem:[%s4761_s0 + $0x670] sm:$0xff] }
  0xab   :  { %560 = vrot.lane.b32.xlu0 %v176_v49, %s1932_s10  ;;  %v212_v49 = vld [vmem:[%s4761_s0 + $0x660] sm:$0xff] }
  0xac   :  { %v2355_v54 = vpop.permute.xlu1 %450 }
  0xad   :  { %4807 = vst [vmem:[#allocation4_spill] sm:$0xff] %v2355_v54  ;;  %v2357_v55 = vpop.permute.xlu0 %448  ;;  %v2879_v54 = vld [vmem:[%s4761_s0 + $0x1e8] sm:$0xff] }
  0xae   :  { %4808 = vst [vmem:[#allocation5_spill] sm:$0xff] %v2357_v55  ;;  %566 = vrot.lane.b32.xlu1 %v182_v52, %s1932_s10  ;;  %4884 = vst [vmem:[#allocation81_spill] sm:$0xff] %v2879_v54 }
  0xaf   :  { %564 = vrot.lane.b32.xlu0 %v180_v53, %s1932_s10 }
  0xb0   :  { %v2367_v58 = vpop.permute.xlu1 %454 }
  0xb1   :  { %4809 = vst [vmem:[#allocation6_spill] sm:$0xff] %v2367_v58  ;;  %v2369_v59 = vpop.permute.xlu0 %452  ;;  %v2861_v58 = vld [vmem:[%s4761_s0 + $0x1c8] sm:$0xff] }
  0xb2   :  { %4810 = vst [vmem:[#allocation7_spill] sm:$0xff] %v2369_v59  ;;  %570 = vrot.lane.b32.xlu1 %v186_v56, %s1932_s10  ;;  %v218_v56 = vld [vmem:[%s4761_s0 + $0x690] sm:$0xff]  ;;  %4880 = vst [vmem:[#allocation77_spill] sm:$0xff] %v2861_v58 }
  0xb3   :  { %568 = vrot.lane.b32.xlu0 %v184_v57, %s1932_s10  ;;  %v216_v57 = vld [vmem:[%s4761_s0 + $0x680] sm:$0xff] }
  0xb4   :  { %v2379_v4 = vpop.permute.xlu1 %458 }
  0xb5   :  { %4811 = vst [vmem:[#allocation8_spill] sm:$0xff] %v2379_v4  ;;  %v2381_v5 = vpop.permute.xlu0 %456  ;;  %v2843_v4 = vld [vmem:[%s4761_s0 + $0x1a8] sm:$0xff] }
  0xb6   :  { %4812 = vst [vmem:[#allocation9_spill] sm:$0xff] %v2381_v5  ;;  %574 = vrot.lane.b32.xlu1 %v190_v62, %s1932_s10  ;;  %4876 = vst [vmem:[#allocation73_spill] sm:$0xff] %v2843_v4 }
  0xb7   :  { %572 = vrot.lane.b32.xlu0 %v188_v63, %s1932_s10 }
  0xb8   :  { %v2391_v12 = vpop.permute.xlu1 %462 }
  0xb9   :  { %4813 = vst [vmem:[#allocation10_spill] sm:$0xff] %v2391_v12  ;;  %v2393_v13 = vpop.permute.xlu0 %460  ;;  %v2825_v12 = vld [vmem:[%s4761_s0 + $0x188] sm:$0xff] }
  0xba   :  { %4814 = vst [vmem:[#allocation11_spill] sm:$0xff] %v2393_v13  ;;  %578 = vrot.lane.b32.xlu1 %v194_v8, %s1932_s10  ;;  %v222_v8 = vld [vmem:[%s4761_s0 + $0x6b0] sm:$0xff] }
  0xbb   :  { %576 = vrot.lane.b32.xlu0 %v192_v9, %s1932_s10  ;;  %v220_v9 = vld [vmem:[%s4761_s0 + $0x6a0] sm:$0xff] }
  0xbc   :  { %v2403_v20 = vpop.permute.xlu1 %466 }
  0xbd   :  { %4815 = vst [vmem:[#allocation12_spill] sm:$0xff] %v2403_v20  ;;  %v2405_v21 = vpop.permute.xlu0 %464  ;;  %v2807_v20 = vld [vmem:[%s4761_s0 + $0x168] sm:$0xff] }
  0xbe   :  { %4816 = vst [vmem:[#allocation13_spill] sm:$0xff] %v2405_v21  ;;  %582 = vrot.lane.b32.xlu1 %v198_v16, %s1932_s10 }
  0xbf   :  { %580 = vrot.lane.b32.xlu0 %v196_v17, %s1932_s10 }
  0xc0   :  { %v2415_v28 = vpop.permute.xlu1 %470 }
  0xc1   :  { %4817 = vst [vmem:[#allocation14_spill] sm:$0xff] %v2415_v28  ;;  %v2417_v29 = vpop.permute.xlu0 %468  ;;  %v2789_v28 = vld [vmem:[%s4761_s0 + $0x148] sm:$0xff] }
  0xc2   :  { %4818 = vst [vmem:[#allocation15_spill] sm:$0xff] %v2417_v29  ;;  %586 = vrot.lane.b32.xlu1 %v202_v24, %s1932_s10  ;;  %v226_v24 = vld [vmem:[%s4761_s0 + $0x6d0] sm:$0xff] }
  0xc3   :  { %584 = vrot.lane.b32.xlu0 %v200_v25, %s1932_s10  ;;  %v224_v25 = vld [vmem:[%s4761_s0 + $0x6c0] sm:$0xff] }
  0xc4   :  { %v2427_v36 = vpop.permute.xlu1 %474 }
  0xc5   :  { %4819 = vst [vmem:[#allocation16_spill] sm:$0xff] %v2427_v36  ;;  %v2429_v37 = vpop.permute.xlu0 %472  ;;  %v2771_v36 = vld [vmem:[%s4761_s0 + $0x128] sm:$0xff] }
  0xc6   :  { %4820 = vst [vmem:[#allocation17_spill] sm:$0xff] %v2429_v37  ;;  %590 = vrot.lane.b32.xlu1 %v206_v32, %s1932_s10 }
  0xc7   :  { %588 = vrot.lane.b32.xlu0 %v204_v33, %s1932_s10 }
  0xc8   :  { %v2439_v44 = vpop.permute.xlu1 %478 }
  0xc9   :  { %4821 = vst [vmem:[#allocation18_spill] sm:$0xff] %v2439_v44  ;;  %v2441_v45 = vpop.permute.xlu0 %476  ;;  %v2753_v44 = vld [vmem:[%s4761_s0 + $0x108] sm:$0xff] }
  0xca   :  { %4822 = vst [vmem:[#allocation19_spill] sm:$0xff] %v2441_v45  ;;  %594 = vrot.lane.b32.xlu1 %v210_v40, %s1932_s10  ;;  %v230_v40 = vld [vmem:[%s4761_s0 + $0x6f0] sm:$0xff] }
  0xcb   :  { %592 = vrot.lane.b32.xlu0 %v208_v41, %s1932_s10  ;;  %v228_v41 = vld [vmem:[%s4761_s0 + $0x6e0] sm:$0xff] }
  0xcc   :  { %v2451_v52 = vpop.permute.xlu1 %482 }
  0xcd   :  { %4823 = vst [vmem:[#allocation20_spill] sm:$0xff] %v2451_v52  ;;  %v2453_v53 = vpop.permute.xlu0 %480  ;;  %v2735_v52 = vld [vmem:[%s4761_s0 + $0xe8] sm:$0xff] }
  0xce   :  { %4824 = vst [vmem:[#allocation21_spill] sm:$0xff] %v2453_v53  ;;  %598 = vrot.lane.b32.xlu1 %v214_v48, %s1932_s10 }
  0xcf   :  { %596 = vrot.lane.b32.xlu0 %v212_v49, %s1932_s10 }
  0xd0   :  { %v2463_v62 = vpop.permute.xlu1 %486 }
  0xd1   :  { %4825 = vst [vmem:[#allocation22_spill] sm:$0xff] %v2463_v62  ;;  %v2465_v63 = vpop.permute.xlu0 %484  ;;  %v2717_v62 = vld [vmem:[%s4761_s0 + $0xc8] sm:$0xff] }
  0xd2   :  { %4826 = vst [vmem:[#allocation23_spill] sm:$0xff] %v2465_v63  ;;  %602 = vrot.lane.b32.xlu1 %v218_v56, %s1932_s10  ;;  %v234_v56 = vld [vmem:[%s4761_s0 + $0x710] sm:$0xff] }
  0xd3   :  { %600 = vrot.lane.b32.xlu0 %v216_v57, %s1932_s10  ;;  %v232_v57 = vld [vmem:[%s4761_s0 + $0x700] sm:$0xff] }
  0xd4   :  { %v2475_v16 = vpop.permute.xlu1 %490 }
  0xd5   :  { %4827 = vst [vmem:[#allocation24_spill] sm:$0xff] %v2475_v16  ;;  %v2477_v17 = vpop.permute.xlu0 %488  ;;  %v2699_v16 = vld [vmem:[%s4761_s0 + $0xa8] sm:$0xff] }
  0xd6   :  { %4828 = vst [vmem:[#allocation25_spill] sm:$0xff] %v2477_v17  ;;  %606 = vrot.lane.b32.xlu1 %v222_v8, %s1932_s10 }
  0xd7   :  { %604 = vrot.lane.b32.xlu0 %v220_v9, %s1932_s10 }
  0xd8   :  { %v2487_v32 = vpop.permute.xlu1 %494 }
  0xd9   :  { %4829 = vst [vmem:[#allocation26_spill] sm:$0xff] %v2487_v32  ;;  %v2489_v33 = vpop.permute.xlu0 %492  ;;  %v2681_v32 = vld [vmem:[%s4761_s0 + $0x88] sm:$0xff] }
  0xda   :  { %4830 = vst [vmem:[#allocation27_spill] sm:$0xff] %v2489_v33  ;;  %610 = vrot.lane.b32.xlu1 %v226_v24, %s1932_s10  ;;  %v238_v24 = vld [vmem:[%s4761_s0 + $0x730] sm:$0xff] }
  0xdb   :  { %608 = vrot.lane.b32.xlu0 %v224_v25, %s1932_s10  ;;  %v236_v25 = vld [vmem:[%s4761_s0 + $0x720] sm:$0xff] }
  0xdc   :  { %v2499_v48 = vpop.permute.xlu1 %498 }
  0xdd   :  { %4831 = vst [vmem:[#allocation28_spill] sm:$0xff] %v2499_v48  ;;  %v2501_v49 = vpop.permute.xlu0 %496  ;;  %v2663_v48 = vld [vmem:[%s4761_s0 + $0x68] sm:$0xff] }
  0xde   :  { %4832 = vst [vmem:[#allocation29_spill] sm:$0xff] %v2501_v49  ;;  %614 = vrot.lane.b32.xlu1 %v230_v40, %s1932_s10 }
  0xdf   :  { %612 = vrot.lane.b32.xlu0 %v228_v41, %s1932_s10 }
  0xe0   :  { %v2511_v8 = vpop.permute.xlu1 %502 }
  0xe1   :  { %4833 = vst [vmem:[#allocation30_spill] sm:$0xff] %v2511_v8  ;;  %v2513_v9 = vpop.permute.xlu0 %500 }
  0xe2   :  { %4834 = vst [vmem:[#allocation31_spill] sm:$0xff] %v2513_v9  ;;  %618 = vrot.lane.b32.xlu1 %v234_v56, %s1932_s10  ;;  %v242_v56 = vld [vmem:[%s4761_s0 + $0x750] sm:$0xff] }
  0xe3   :  { %616 = vrot.lane.b32.xlu0 %v232_v57, %s1932_s10  ;;  %v240_v57 = vld [vmem:[%s4761_s0 + $0x740] sm:$0xff] }
  0xe4   :  { %v2523_v40 = vpop.permute.xlu1 %506 }
  0xe5   :  { %4835 = vst [vmem:[#allocation32_spill] sm:$0xff] %v2523_v40  ;;  %v2525_v41 = vpop.permute.xlu0 %504 }
  0xe6   :  { %4836 = vst [vmem:[#allocation33_spill] sm:$0xff] %v2525_v41  ;;  %622 = vrot.lane.b32.xlu1 %v238_v24, %s1932_s10  ;;  %v246_v24 = vld [vmem:[%s4761_s0 + $0x770] sm:$0xff] }
  0xe7   :  { %620 = vrot.lane.b32.xlu0 %v236_v25, %s1932_s10  ;;  %v244_v25 = vld [vmem:[%s4761_s0 + $0x760] sm:$0xff] }
  0xe8   :  { %v2535_v9 = vpop.permute.xlu1 %510 }
  0xe9   :  { %4837 = vst [vmem:[#allocation34_spill] sm:$0xff] %v2535_v9  ;;  %v2537_v8 = vpop.permute.xlu0 %508 }
  0xea   :  { %4838 = vst [vmem:[#allocation35_spill] sm:$0xff] %v2537_v8  ;;  %626 = vrot.lane.b32.xlu1 %v242_v56, %s1932_s10  ;;  %v250_v56 = vld [vmem:[%s4761_s0 + $0x790] sm:$0xff] }
  0xeb   :  { %624 = vrot.lane.b32.xlu0 %v240_v57, %s1932_s10  ;;  %v248_v57 = vld [vmem:[%s4761_s0 + $0x780] sm:$0xff] }
  0xec   :  { %v2547_v41 = vpop.permute.xlu1 %514 }
  0xed   :  { %4839 = vst [vmem:[#allocation36_spill] sm:$0xff] %v2547_v41  ;;  %v2549_v40 = vpop.permute.xlu0 %512 }
  0xee   :  { %4840 = vst [vmem:[#allocation37_spill] sm:$0xff] %v2549_v40  ;;  %630 = vrot.lane.b32.xlu1 %v246_v24, %s1932_s10  ;;  %v254_v24 = vld [vmem:[%s4761_s0 + $0x7b0] sm:$0xff] }
  0xef   :  { %628 = vrot.lane.b32.xlu0 %v244_v25, %s1932_s10  ;;  %v252_v25 = vld [vmem:[%s4761_s0 + $0x7a0] sm:$0xff] }
  0xf0   :  { %v2559_v8 = vpop.permute.xlu1 %518 }
  0xf1   :  { %4841 = vst [vmem:[#allocation38_spill] sm:$0xff] %v2559_v8  ;;  %v2561_v9 = vpop.permute.xlu0 %516 }
  0xf2   :  { %4842 = vst [vmem:[#allocation39_spill] sm:$0xff] %v2561_v9  ;;  %634 = vrot.lane.b32.xlu1 %v250_v56, %s1932_s10  ;;  %v258_v56 = vld [vmem:[%s4761_s0 + $0x7d0] sm:$0xff] }
  0xf3   :  { %632 = vrot.lane.b32.xlu0 %v248_v57, %s1932_s10  ;;  %v256_v57 = vld [vmem:[%s4761_s0 + $0x7c0] sm:$0xff] }
  0xf4   :  { %v2571_v40 = vpop.permute.xlu1 %522 }
  0xf5   :  { %4843 = vst [vmem:[#allocation40_spill] sm:$0xff] %v2571_v40  ;;  %v2573_v41 = vpop.permute.xlu0 %520 }
  0xf6   :  { %4844 = vst [vmem:[#allocation41_spill] sm:$0xff] %v2573_v41  ;;  %638 = vrot.lane.b32.xlu1 %v254_v24, %s1932_s10  ;;  %v262_v24 = vld [vmem:[%s4761_s0 + $0x7f0] sm:$0xff] }
  0xf7   :  { %636 = vrot.lane.b32.xlu0 %v252_v25, %s1932_s10  ;;  %v260_v25 = vld [vmem:[%s4761_s0 + $0x7e0] sm:$0xff] }
  0xf8   :  { %v2583_v9 = vpop.permute.xlu1 %526 }
  0xf9   :  { %4845 = vst [vmem:[#allocation42_spill] sm:$0xff] %v2583_v9  ;;  %v2585_v8 = vpop.permute.xlu0 %524 }
  0xfa   :  { %4846 = vst [vmem:[#allocation43_spill] sm:$0xff] %v2585_v8  ;;  %642 = vrot.lane.b32.xlu1 %v258_v56, %s1932_s10  ;;  %v2604_v56 = vld [vmem:[%s4761_s0 + $0x18] sm:$0xff] }
  0xfb   :  { %640 = vrot.lane.b32.xlu0 %v256_v57, %s1932_s10  ;;  %v2609_v57 = vld [vmem:[%s4761_s0 + $0x8] sm:$0xff] }
  0xfc   :  { %v2595_v41 = vpop.permute.xlu1 %530 }
  0xfd   :  { %4847 = vst [vmem:[#allocation44_spill] sm:$0xff] %v2595_v41  ;;  %v2597_v40 = vpop.permute.xlu0 %528  ;;  %v2645_v41 = vld [vmem:[%s4761_s0 + $0x48] sm:$0xff] }
  0xfe   :  { %4848 = vst [vmem:[#allocation45_spill] sm:$0xff] %v2597_v40  ;;  %646 = vrot.lane.b32.xlu1 %v262_v24, %s1932_s10  ;;  %v2622_v24 = vld [vmem:[%s4761_s0 + $0x38] sm:$0xff] }
  0xff   :  { %644 = vrot.lane.b32.xlu0 %v260_v25, %s1932_s10  ;;  %v2627_v25 = vld [vmem:[%s4761_s0 + $0x28] sm:$0xff] }
 0x100   :  { %v2611_v8 = vpop.permute.xlu1 %534 }
 0x101   :  { %4849 = vst [vmem:[#allocation46_spill] sm:$0xff] %v2611_v8  ;;  %v2613_v9 = vpop.permute.xlu0 %532 }
 0x102   :  { %4850 = vst [vmem:[#allocation47_spill] sm:$0xff] %v2613_v9  ;;  %1034 = vrot.lane.b32.xlu1 %v2604_v56, %s1932_s10  ;;  %v2640_v9 = vld [vmem:[%s4761_s0 + $0x58] sm:$0xff] }
 0x103   :  { %1032 = vrot.lane.b32.xlu0 %v2609_v57, %s1932_s10 }
 0x104   :  { %v2629_v40 = vpop.permute.xlu1 %538 }
 0x105   :  { %4851 = vst [vmem:[#allocation48_spill] sm:$0xff] %v2629_v40  ;;  %v2631_v8 = vpop.permute.xlu0 %536 }
 0x106   :  { %4852 = vst [vmem:[#allocation49_spill] sm:$0xff] %v2631_v8  ;;  %1038 = vrot.lane.b32.xlu1 %v2622_v24, %s1932_s10  ;;  %v2658_v8 = vld [vmem:[%s4761_s0 + $0x78] sm:$0xff] }
 0x107   :  { %1036 = vrot.lane.b32.xlu0 %v2627_v25, %s1932_s10 }
 0x108   :  { %v2647_v49 = vpop.permute.xlu1 %542 }
 0x109   :  { %4853 = vst [vmem:[#allocation50_spill] sm:$0xff] %v2647_v49  ;;  %v2649_v40 = vpop.permute.xlu0 %540 }
 0x10a   :  { %4854 = vst [vmem:[#allocation51_spill] sm:$0xff] %v2649_v40  ;;  %1042 = vrot.lane.b32.xlu1 %v2640_v9, %s1932_s10  ;;  %v2676_v40 = vld [vmem:[%s4761_s0 + $0x98] sm:$0xff] }
 0x10b   :  { %1040 = vrot.lane.b32.xlu0 %v2645_v41, %s1932_s10 }
 0x10c   :  { %v2665_v33 = vpop.permute.xlu1 %546 }
 0x10d   :  { %4855 = vst [vmem:[#allocation52_spill] sm:$0xff] %v2665_v33  ;;  %v2667_v49 = vpop.permute.xlu0 %544 }
 0x10e   :  { %4856 = vst [vmem:[#allocation53_spill] sm:$0xff] %v2667_v49  ;;  %1046 = vrot.lane.b32.xlu1 %v2658_v8, %s1932_s10  ;;  %v2694_v49 = vld [vmem:[%s4761_s0 + $0xb8] sm:$0xff] }
 0x10f   :  { %1044 = vrot.lane.b32.xlu0 %v2663_v48, %s1932_s10 }
 0x110   :  { %v2683_v17 = vpop.permute.xlu1 %550 }
 0x111   :  { %4857 = vst [vmem:[#allocation54_spill] sm:$0xff] %v2683_v17  ;;  %v2685_v33 = vpop.permute.xlu0 %548 }
 0x112   :  { %4858 = vst [vmem:[#allocation55_spill] sm:$0xff] %v2685_v33  ;;  %1050 = vrot.lane.b32.xlu1 %v2676_v40, %s1932_s10  ;;  %v2712_v33 = vld [vmem:[%s4761_s0 + $0xd8] sm:$0xff] }
 0x113   :  { %1048 = vrot.lane.b32.xlu0 %v2681_v32, %s1932_s10 }
 0x114   :  { %v2701_v63 = vpop.permute.xlu1 %554 }
 0x115   :  { %4859 = vst [vmem:[#allocation56_spill] sm:$0xff] %v2701_v63  ;;  %v2703_v17 = vpop.permute.xlu0 %552 }
 0x116   :  { %4860 = vst [vmem:[#allocation57_spill] sm:$0xff] %v2703_v17  ;;  %1054 = vrot.lane.b32.xlu1 %v2694_v49, %s1932_s10  ;;  %v2730_v17 = vld [vmem:[%s4761_s0 + $0xf8] sm:$0xff] }
 0x117   :  { %1052 = vrot.lane.b32.xlu0 %v2699_v16, %s1932_s10 }
 0x118   :  { %v2719_v53 = vpop.permute.xlu1 %558 }
 0x119   :  { %4861 = vst [vmem:[#allocation58_spill] sm:$0xff] %v2719_v53  ;;  %v2721_v63 = vpop.permute.xlu0 %556 }
 0x11a   :  { %4862 = vst [vmem:[#allocation59_spill] sm:$0xff] %v2721_v63  ;;  %1058 = vrot.lane.b32.xlu1 %v2712_v33, %s1932_s10  ;;  %v2748_v63 = vld [vmem:[%s4761_s0 + $0x118] sm:$0xff] }
 0x11b   :  { %1056 = vrot.lane.b32.xlu0 %v2717_v62, %s1932_s10 }
 0x11c   :  { %v2737_v45 = vpop.permute.xlu1 %562 }
 0x11d   :  { %4863 = vst [vmem:[#allocation60_spill] sm:$0xff] %v2737_v45  ;;  %v2739_v53 = vpop.permute.xlu0 %560 }
 0x11e   :  { %4864 = vst [vmem:[#allocation61_spill] sm:$0xff] %v2739_v53  ;;  %1062 = vrot.lane.b32.xlu1 %v2730_v17, %s1932_s10  ;;  %v2766_v53 = vld [vmem:[%s4761_s0 + $0x138] sm:$0xff] }
 0x11f   :  { %1060 = vrot.lane.b32.xlu0 %v2735_v52, %s1932_s10 }
 0x120   :  { %v2755_v37 = vpop.permute.xlu1 %566 }
 0x121   :  { %4865 = vst [vmem:[#allocation62_spill] sm:$0xff] %v2755_v37  ;;  %v2757_v45 = vpop.permute.xlu0 %564 }
 0x122   :  { %4866 = vst [vmem:[#allocation63_spill] sm:$0xff] %v2757_v45  ;;  %1066 = vrot.lane.b32.xlu1 %v2748_v63, %s1932_s10  ;;  %v2784_v45 = vld [vmem:[%s4761_s0 + $0x158] sm:$0xff] }
 0x123   :  { %1064 = vrot.lane.b32.xlu0 %v2753_v44, %s1932_s10 }
 0x124   :  { %v2773_v29 = vpop.permute.xlu1 %570 }
 0x125   :  { %4867 = vst [vmem:[#allocation64_spill] sm:$0xff] %v2773_v29  ;;  %v2775_v37 = vpop.permute.xlu0 %568 }
 0x126   :  { %4868 = vst [vmem:[#allocation65_spill] sm:$0xff] %v2775_v37  ;;  %1070 = vrot.lane.b32.xlu1 %v2766_v53, %s1932_s10  ;;  %v2802_v37 = vld [vmem:[%s4761_s0 + $0x178] sm:$0xff] }
 0x127   :  { %1068 = vrot.lane.b32.xlu0 %v2771_v36, %s1932_s10 }
 0x128   :  { %v2791_v21 = vpop.permute.xlu1 %574 }
 0x129   :  { %4869 = vst [vmem:[#allocation66_spill] sm:$0xff] %v2791_v21  ;;  %v2793_v29 = vpop.permute.xlu0 %572 }
 0x12a   :  { %4870 = vst [vmem:[#allocation67_spill] sm:$0xff] %v2793_v29  ;;  %1074 = vrot.lane.b32.xlu1 %v2784_v45, %s1932_s10  ;;  %v2820_v29 = vld [vmem:[%s4761_s0 + $0x198] sm:$0xff] }
 0x12b   :  { %1072 = vrot.lane.b32.xlu0 %v2789_v28, %s1932_s10 }
 0x12c   :  { %v2809_v13 = vpop.permute.xlu1 %578 }
 0x12d   :  { %4871 = vst [vmem:[#allocation68_spill] sm:$0xff] %v2809_v13  ;;  %v2811_v21 = vpop.permute.xlu0 %576 }
 0x12e   :  { %4872 = vst [vmem:[#allocation69_spill] sm:$0xff] %v2811_v21  ;;  %1078 = vrot.lane.b32.xlu1 %v2802_v37, %s1932_s10  ;;  %v2838_v21 = vld [vmem:[%s4761_s0 + $0x1b8] sm:$0xff] }
 0x12f   :  { %1076 = vrot.lane.b32.xlu0 %v2807_v20, %s1932_s10  ;;  %4875 = vst [vmem:[#allocation72_spill] sm:$0xff] %v2838_v21 }
 0x130   :  { %v2827_v5 = vpop.permute.xlu1 %582 }
 0x131   :  { %4873 = vst [vmem:[#allocation70_spill] sm:$0xff] %v2827_v5  ;;  %v2829_v13 = vpop.permute.xlu0 %580 }
 0x132   :  { %4874 = vst [vmem:[#allocation71_spill] sm:$0xff] %v2829_v13  ;;  %1082 = vrot.lane.b32.xlu1 %v2820_v29, %s1932_s10  ;;  %v2856_v13 = vld [vmem:[%s4761_s0 + $0x1d8] sm:$0xff] }
 0x133   :  { %1080 = vrot.lane.b32.xlu0 %v2825_v12, %s1932_s10  ;;  %4879 = vst [vmem:[#allocation76_spill] sm:$0xff] %v2856_v13 }
 0x134   :  { %v2845_v59 = vpop.permute.xlu1 %586 }
 0x135   :  { %4877 = vst [vmem:[#allocation74_spill] sm:$0xff] %v2845_v59  ;;  %v2847_v5 = vpop.permute.xlu0 %584 }
 0x136   :  { %4878 = vst [vmem:[#allocation75_spill] sm:$0xff] %v2847_v5  ;;  %1086 = vrot.lane.b32.xlu1 %v2838_v21, %s1932_s10  ;;  %v2874_v5 = vld [vmem:[%s4761_s0 + $0x1f8] sm:$0xff] }
 0x137   :  { %1084 = vrot.lane.b32.xlu0 %v2843_v4, %s1932_s10  ;;  %4883 = vst [vmem:[#allocation80_spill] sm:$0xff] %v2874_v5 }
 0x138   :  { %v2863_v55 = vpop.permute.xlu1 %590 }
 0x139   :  { %4881 = vst [vmem:[#allocation78_spill] sm:$0xff] %v2863_v55  ;;  %v2865_v59 = vpop.permute.xlu0 %588 }
 0x13a   :  { %4882 = vst [vmem:[#allocation79_spill] sm:$0xff] %v2865_v59  ;;  %1090 = vrot.lane.b32.xlu1 %v2856_v13, %s1932_s10  ;;  %v2892_v59 = vld [vmem:[%s4761_s0 + $0x218] sm:$0xff] }
 0x13b   :  { %1088 = vrot.lane.b32.xlu0 %v2861_v58, %s1932_s10  ;;  %4887 = vst [vmem:[#allocation84_spill] sm:$0xff] %v2892_v59  ;;  %v2897_v58 = vld [vmem:[%s4761_s0 + $0x208] sm:$0xff] }
 0x13c   :  { %v2881_v4 = vpop.permute.xlu1 %594  ;;  %4888 = vst [vmem:[#allocation85_spill] sm:$0xff] %v2897_v58 }
 0x13d   :  { %4885 = vst [vmem:[#allocation82_spill] sm:$0xff] %v2881_v4  ;;  %v2883_v55 = vpop.permute.xlu0 %592 }
 0x13e   :  { %4886 = vst [vmem:[#allocation83_spill] sm:$0xff] %v2883_v55  ;;  %1094 = vrot.lane.b32.xlu1 %v2874_v5, %s1932_s10  ;;  %v2910_v55 = vld [vmem:[%s4761_s0 + $0x238] sm:$0xff] }
 0x13f   :  { %1092 = vrot.lane.b32.xlu0 %v2879_v54, %s1932_s10  ;;  %4891 = vst [vmem:[#allocation88_spill] sm:$0xff] %v2910_v55  ;;  %v2915_v54 = vld [vmem:[%s4761_s0 + $0x228] sm:$0xff] }
 0x140   :  { %v2899_v13 = vpop.permute.xlu1 %598  ;;  %4892 = vst [vmem:[#allocation89_spill] sm:$0xff] %v2915_v54 }
 0x141   :  { %4889 = vst [vmem:[#allocation86_spill] sm:$0xff] %v2899_v13  ;;  %v2901_v4 = vpop.permute.xlu0 %596 }
 0x142   :  { %4890 = vst [vmem:[#allocation87_spill] sm:$0xff] %v2901_v4  ;;  %1098 = vrot.lane.b32.xlu1 %v2892_v59, %s1932_s10  ;;  %v2928_v4 = vld [vmem:[%s4761_s0 + $0x258] sm:$0xff] }
 0x143   :  { %1096 = vrot.lane.b32.xlu0 %v2897_v58, %s1932_s10  ;;  %4895 = vst [vmem:[#allocation92_spill] sm:$0xff] %v2928_v4  ;;  %v2933_v58 = vld [vmem:[%s4761_s0 + $0x248] sm:$0xff] }
 0x144   :  { %v2917_v5 = vpop.permute.xlu1 %602  ;;  %4896 = vst [vmem:[#allocation93_spill] sm:$0xff] %v2933_v58 }
 0x145   :  { %4893 = vst [vmem:[#allocation90_spill] sm:$0xff] %v2917_v5  ;;  %v2919_v13 = vpop.permute.xlu0 %600 }
 0x146   :  { %4894 = vst [vmem:[#allocation91_spill] sm:$0xff] %v2919_v13  ;;  %1102 = vrot.lane.b32.xlu1 %v2910_v55, %s1932_s10  ;;  %v2946_v13 = vld [vmem:[%s4761_s0 + $0x278] sm:$0xff] }
 0x147   :  { %1100 = vrot.lane.b32.xlu0 %v2915_v54, %s1932_s10  ;;  %4899 = vst [vmem:[#allocation96_spill] sm:$0xff] %v2946_v13  ;;  %v2951_v54 = vld [vmem:[%s4761_s0 + $0x268] sm:$0xff] }
 0x148   :  { %v2935_v59 = vpop.permute.xlu1 %606  ;;  %4900 = vst [vmem:[#allocation97_spill] sm:$0xff] %v2951_v54 }
 0x149   :  { %4897 = vst [vmem:[#allocation94_spill] sm:$0xff] %v2935_v59  ;;  %v2937_v5 = vpop.permute.xlu0 %604 }
 0x14a   :  { %4898 = vst [vmem:[#allocation95_spill] sm:$0xff] %v2937_v5  ;;  %1106 = vrot.lane.b32.xlu1 %v2928_v4, %s1932_s10  ;;  %v2964_v5 = vld [vmem:[%s4761_s0 + $0x298] sm:$0xff] }
 0x14b   :  { %1104 = vrot.lane.b32.xlu0 %v2933_v58, %s1932_s10  ;;  %4903 = vst [vmem:[#allocation100_spill] sm:$0xff] %v2964_v5  ;;  %v2969_v58 = vld [vmem:[%s4761_s0 + $0x288] sm:$0xff] }
 0x14c   :  { %v2953_v55 = vpop.permute.xlu1 %610  ;;  %4904 = vst [vmem:[#allocation101_spill] sm:$0xff] %v2969_v58 }
 0x14d   :  { %4901 = vst [vmem:[#allocation98_spill] sm:$0xff] %v2953_v55  ;;  %v2955_v59 = vpop.permute.xlu0 %608 }
 0x14e   :  { %4902 = vst [vmem:[#allocation99_spill] sm:$0xff] %v2955_v59  ;;  %1110 = vrot.lane.b32.xlu1 %v2946_v13, %s1932_s10  ;;  %v2982_v59 = vld [vmem:[%s4761_s0 + $0x2b8] sm:$0xff] }
 0x14f   :  { %1108 = vrot.lane.b32.xlu0 %v2951_v54, %s1932_s10  ;;  %4907 = vst [vmem:[#allocation104_spill] sm:$0xff] %v2982_v59  ;;  %v2987_v54 = vld [vmem:[%s4761_s0 + $0x2a8] sm:$0xff] }
 0x150   :  { %v2971_v4 = vpop.permute.xlu1 %614  ;;  %4908 = vst [vmem:[#allocation105_spill] sm:$0xff] %v2987_v54 }
 0x151   :  { %4905 = vst [vmem:[#allocation102_spill] sm:$0xff] %v2971_v4  ;;  %v2973_v55 = vpop.permute.xlu0 %612 }
 0x152   :  { %4906 = vst [vmem:[#allocation103_spill] sm:$0xff] %v2973_v55  ;;  %1114 = vrot.lane.b32.xlu1 %v2964_v5, %s1932_s10  ;;  %v3000_v55 = vld [vmem:[%s4761_s0 + $0x2d8] sm:$0xff] }
 0x153   :  { %1112 = vrot.lane.b32.xlu0 %v2969_v58, %s1932_s10  ;;  %4911 = vst [vmem:[#allocation108_spill] sm:$0xff] %v3000_v55  ;;  %v3005_v58 = vld [vmem:[%s4761_s0 + $0x2c8] sm:$0xff] }
 0x154   :  { %v2989_v13 = vpop.permute.xlu1 %618  ;;  %4912 = vst [vmem:[#allocation109_spill] sm:$0xff] %v3005_v58 }
 0x155   :  { %4909 = vst [vmem:[#allocation106_spill] sm:$0xff] %v2989_v13  ;;  %v2991_v4 = vpop.permute.xlu0 %616 }
 0x156   :  { %4910 = vst [vmem:[#allocation107_spill] sm:$0xff] %v2991_v4  ;;  %1118 = vrot.lane.b32.xlu1 %v2982_v59, %s1932_s10  ;;  %v3018_v4 = vld [vmem:[%s4761_s0 + $0x2f8] sm:$0xff] }
 0x157   :  { %1116 = vrot.lane.b32.xlu0 %v2987_v54, %s1932_s10  ;;  %4915 = vst [vmem:[#allocation112_spill] sm:$0xff] %v3018_v4  ;;  %v3023_v54 = vld [vmem:[%s4761_s0 + $0x2e8] sm:$0xff] }
 0x158   :  { %v3007_v5 = vpop.permute.xlu1 %622  ;;  %4916 = vst [vmem:[#allocation113_spill] sm:$0xff] %v3023_v54 }
 0x159   :  { %4913 = vst [vmem:[#allocation110_spill] sm:$0xff] %v3007_v5  ;;  %v3009_v13 = vpop.permute.xlu0 %620 }
 0x15a   :  { %4914 = vst [vmem:[#allocation111_spill] sm:$0xff] %v3009_v13  ;;  %1122 = vrot.lane.b32.xlu1 %v3000_v55, %s1932_s10  ;;  %v3036_v13 = vld [vmem:[%s4761_s0 + $0x318] sm:$0xff] }
 0x15b   :  { %1120 = vrot.lane.b32.xlu0 %v3005_v58, %s1932_s10  ;;  %4919 = vst [vmem:[#allocation116_spill] sm:$0xff] %v3036_v13  ;;  %v3041_v58 = vld [vmem:[%s4761_s0 + $0x308] sm:$0xff] }
 0x15c   :  { %v3025_v59 = vpop.permute.xlu1 %626  ;;  %4920 = vst [vmem:[#allocation117_spill] sm:$0xff] %v3041_v58 }
 0x15d   :  { %4917 = vst [vmem:[#allocation114_spill] sm:$0xff] %v3025_v59  ;;  %v3027_v5 = vpop.permute.xlu0 %624 }
 0x15e   :  { %4918 = vst [vmem:[#allocation115_spill] sm:$0xff] %v3027_v5  ;;  %1126 = vrot.lane.b32.xlu1 %v3018_v4, %s1932_s10  ;;  %v3054_v5 = vld [vmem:[%s4761_s0 + $0x338] sm:$0xff] }
 0x15f   :  { %1124 = vrot.lane.b32.xlu0 %v3023_v54, %s1932_s10  ;;  %4923 = vst [vmem:[#allocation120_spill] sm:$0xff] %v3054_v5  ;;  %v3059_v54 = vld [vmem:[%s4761_s0 + $0x328] sm:$0xff] }
 0x160   :  { %v3043_v55 = vpop.permute.xlu1 %630  ;;  %4924 = vst [vmem:[#allocation121_spill] sm:$0xff] %v3059_v54 }
 0x161   :  { %4921 = vst [vmem:[#allocation118_spill] sm:$0xff] %v3043_v55  ;;  %v3045_v59 = vpop.permute.xlu0 %628 }
 0x162   :  { %4922 = vst [vmem:[#allocation119_spill] sm:$0xff] %v3045_v59  ;;  %1130 = vrot.lane.b32.xlu1 %v3036_v13, %s1932_s10  ;;  %v3072_v59 = vld [vmem:[%s4761_s0 + $0x358] sm:$0xff] }
 0x163   :  { %1128 = vrot.lane.b32.xlu0 %v3041_v58, %s1932_s10  ;;  %4927 = vst [vmem:[#allocation124_spill] sm:$0xff] %v3072_v59  ;;  %v3077_v58 = vld [vmem:[%s4761_s0 + $0x348] sm:$0xff] }
 0x164   :  { %v3061_v4 = vpop.permute.xlu1 %634  ;;  %4928 = vst [vmem:[#allocation125_spill] sm:$0xff] %v3077_v58 }
 0x165   :  { %4925 = vst [vmem:[#allocation122_spill] sm:$0xff] %v3061_v4  ;;  %v3063_v55 = vpop.permute.xlu0 %632 }
 0x166   :  { %4926 = vst [vmem:[#allocation123_spill] sm:$0xff] %v3063_v55  ;;  %1134 = vrot.lane.b32.xlu1 %v3054_v5, %s1932_s10  ;;  %v3090_v55 = vld [vmem:[%s4761_s0 + $0x378] sm:$0xff] }
 0x167   :  { %1132 = vrot.lane.b32.xlu0 %v3059_v54, %s1932_s10  ;;  %4931 = vst [vmem:[#allocation128_spill] sm:$0xff] %v3090_v55  ;;  %v3095_v54 = vld [vmem:[%s4761_s0 + $0x368] sm:$0xff] }
 0x168   :  { %v3079_v13 = vpop.permute.xlu1 %638  ;;  %4932 = vst [vmem:[#allocation129_spill] sm:$0xff] %v3095_v54 }
 0x169   :  { %4929 = vst [vmem:[#allocation126_spill] sm:$0xff] %v3079_v13  ;;  %v3081_v4 = vpop.permute.xlu0 %636 }
 0x16a   :  { %4930 = vst [vmem:[#allocation127_spill] sm:$0xff] %v3081_v4  ;;  %1138 = vrot.lane.b32.xlu1 %v3072_v59, %s1932_s10  ;;  %v3108_v4 = vld [vmem:[%s4761_s0 + $0x398] sm:$0xff] }
 0x16b   :  { %1136 = vrot.lane.b32.xlu0 %v3077_v58, %s1932_s10  ;;  %4935 = vst [vmem:[#allocation132_spill] sm:$0xff] %v3108_v4  ;;  %v3113_v58 = vld [vmem:[%s4761_s0 + $0x388] sm:$0xff] }
 0x16c   :  { %v3097_v5 = vpop.permute.xlu1 %642  ;;  %4936 = vst [vmem:[#allocation133_spill] sm:$0xff] %v3113_v58 }
 0x16d   :  { %4933 = vst [vmem:[#allocation130_spill] sm:$0xff] %v3097_v5  ;;  %v3099_v13 = vpop.permute.xlu0 %640 }
 0x16e   :  { %4934 = vst [vmem:[#allocation131_spill] sm:$0xff] %v3099_v13  ;;  %1142 = vrot.lane.b32.xlu1 %v3090_v55, %s1932_s10  ;;  %v3126_v13 = vld [vmem:[%s4761_s0 + $0x3b8] sm:$0xff] }
 0x16f   :  { %1140 = vrot.lane.b32.xlu0 %v3095_v54, %s1932_s10  ;;  %v3131_v54 = vld [vmem:[%s4761_s0 + $0x3a8] sm:$0xff] }
 0x170   :  { %v3115_v59 = vpop.permute.xlu1 %646 }
 0x171   :  { %4937 = vst [vmem:[#allocation134_spill] sm:$0xff] %v3115_v59  ;;  %v3117_v5 = vpop.permute.xlu0 %644 }
 0x172   :  { %4938 = vst [vmem:[#allocation135_spill] sm:$0xff] %v3117_v5  ;;  %1146 = vrot.lane.b32.xlu1 %v3108_v4, %s1932_s10  ;;  %v776_v5 = vmax.f32 %v1949_v1, %v2189_v61  ;;  %v777_v4 = vmax.f32 %v1960_v3, %v2201_v2  ;;  %v3146_v1 = vld [vmem:[%s4761_s0 + $0x3d8] sm:$0xff]  ;;  %v3151_v3 = vld [vmem:[%s4761_s0 + $0x3c8] sm:$0xff] }
 0x173   :  { %1144 = vrot.lane.b32.xlu0 %v3113_v58, %s1932_s10 }
 0x174   :  { %v1035_v55 = vpop.permute.xlu1 %1034 }
 0x175   :  { %v1033_v59 = vpop.permute.xlu0 %1032  ;;  %v1417_v58 = vmax.f32 %v2604_v56, %v1035_v55  ;;  %v1806_v55 = vld [vmem:[%s4761_s0 + $0x20] sm:$0xff] }
 0x176   :  { %v1416_v21 = vmax.f32 %v2609_v57, %v1033_v59  ;;  %1150 = vrot.lane.b32.xlu1 %v3126_v13, %s1932_s10  ;;  %v778_v59 = vmax.f32 %v1806_v55, %v2187_v60 }
 0x177   :  { %1148 = vrot.lane.b32.xlu0 %v3131_v54, %s1932_s10  ;;  %v1545_v51 = vmax.f32 %v777_v4, %v1417_v58  ;;  %v1807_v58 = vld [vmem:[%s4761_s0 + $0x30] sm:$0xff] }
 0x178   :  { %v1544_v50 = vmax.f32 %v776_v5, %v1416_v21  ;;  %v1039_v61 = vpop.permute.xlu1 %1038  ;;  %v779_v4 = vmax.f32 %v1807_v58, %v2199_v0  ;;  %v3210_v58 = vld [vmem:[%s4761_s0 + $0x418] sm:$0xff] }
 0x179   :  { %v1037_v2 = vpop.permute.xlu0 %1036  ;;  %1674 = vst.msk [vmem:[%s4762_s1 + $0x8] sm:$0xff] %vm1672_vm0, %v1545_v51  ;;  %v1419_v5 = vmax.f32 %v2622_v24, %v1039_v61  ;;  %v3178_v51 = vld [vmem:[%s4761_s0 + $0x3f8] sm:$0xff]  ;;  %v1808_v24 = vld [vmem:[%s4761_s0 + $0x50] sm:$0xff]  ;;  %v1809_v61 = vld [vmem:[%s4761_s0 + $0x40] sm:$0xff] }
 0x17a   :  { %1673 = vst.msk [vmem:[%s4762_s1] sm:$0xff] %vm1672_vm0, %v1544_v50  ;;  %v1418_v60 = vmax.f32 %v2627_v25, %v1037_v2  ;;  %1154 = vrot.lane.b32.xlu1 %v3146_v1, %s1932_s10  ;;  %v3183_v50 = vld [vmem:[%s4761_s0 + $0x3e8] sm:$0xff]  ;;  %v781_v25 = vmax.f32 %v1808_v24, %v2211_v6  ;;  %v780_v2 = vmax.f32 %v1809_v61, %v2213_v7  ;;  %v3242_v24 = vld [vmem:[%s4761_s0 + $0x438] sm:$0xff] }
 0x17b   :  { %1152 = vrot.lane.b32.xlu0 %v3151_v3, %s1932_s10  ;;  %v1547_v0 = vmax.f32 %v779_v4, %v1419_v5  ;;  %v3215_v4 = vld [vmem:[%s4761_s0 + $0x408] sm:$0xff]  ;;  %v1810_v5 = vld [vmem:[%s4761_s0 + $0x70] sm:$0xff] }
 0x17c   :  { %v1546_v21 = vmax.f32 %v778_v59, %v1418_v60  ;;  %v1043_v56 = vpop.permute.xlu1 %1042  ;;  %v783_v60 = vmax.f32 %v1810_v5, %v2223_v10  ;;  %v1812_v61 = vld [vmem:[%s4761_s0 + $0x90] sm:$0xff] }
 0x17d   :  { %v1041_v57 = vpop.permute.xlu0 %1040  ;;  %1676 = vst.msk [vmem:[%s4762_s1 + $0x18] sm:$0xff] %vm1672_vm0, %v1547_v0  ;;  %v1421_v55 = vmax.f32 %v2640_v9, %v1043_v56  ;;  %v1811_v0 = vld [vmem:[%s4761_s0 + $0x60] sm:$0xff]  ;;  %v1814_v5 = vld [vmem:[%s4761_s0 + $0xb0] sm:$0xff] }
 0x17e   :  { %1675 = vst.msk [vmem:[%s4762_s1 + $0x10] sm:$0xff] %vm1672_vm0, %v1546_v21  ;;  %v1420_v6 = vmax.f32 %v2645_v41, %v1041_v57  ;;  %1158 = vrot.lane.b32.xlu1 %v3178_v51, %s1932_s10  ;;  %v782_v21 = vmax.f32 %v1811_v0, %v2225_v11  ;;  %v1815_v0 = vld [vmem:[%s4761_s0 + $0xa0] sm:$0xff] }
 0x17f   :  { %1156 = vrot.lane.b32.xlu0 %v3183_v50, %s1932_s10  ;;  %v1549_v7 = vmax.f32 %v781_v25, %v1421_v55  ;;  %v3247_v25 = vld [vmem:[%s4761_s0 + $0x428] sm:$0xff]  ;;  %v1813_v55 = vld [vmem:[%s4761_s0 + $0x80] sm:$0xff] }
 0x180   :  { %v1548_v59 = vmax.f32 %v780_v2, %v1420_v6  ;;  %v1047_v9 = vpop.permute.xlu1 %1046  ;;  %v785_v2 = vmax.f32 %v1812_v61, %v2235_v14  ;;  %v784_v6 = vmax.f32 %v1813_v55, %v2237_v15  ;;  %v1817_v61 = vld [vmem:[%s4761_s0 + $0xc0] sm:$0xff] }
 0x181   :  { %v1045_v41 = vpop.permute.xlu0 %1044  ;;  %1678 = vst.msk [vmem:[%s4762_s1 + $0x28] sm:$0xff] %vm1672_vm0, %v1549_v7  ;;  %v1423_v56 = vmax.f32 %v2658_v8, %v1047_v9  ;;  %v3274_v9 = vld [vmem:[%s4761_s0 + $0x458] sm:$0xff] }
 0x182   :  { %1677 = vst.msk [vmem:[%s4762_s1 + $0x20] sm:$0xff] %vm1672_vm0, %v1548_v59  ;;  %v1422_v10 = vmax.f32 %v2663_v48, %v1045_v41  ;;  %1162 = vrot.lane.b32.xlu1 %v3210_v58, %s1932_s10  ;;  %v3279_v41 = vld [vmem:[%s4761_s0 + $0x448] sm:$0xff] }
 0x183   :  { %1160 = vrot.lane.b32.xlu0 %v3215_v4, %s1932_s10  ;;  %v1551_v11 = vmax.f32 %v783_v60, %v1423_v56  ;;  %v787_v60 = vmax.f32 %v1814_v5, %v2247_v18 }
 0x184   :  { %v1550_v57 = vmax.f32 %v782_v21, %v1422_v10  ;;  %v1051_v8 = vpop.permute.xlu1 %1050  ;;  %v786_v21 = vmax.f32 %v1815_v0, %v2249_v19  ;;  %v3370_v0 = vld [vmem:[%s4761_s0 + $0x4b8] sm:$0xff] }
 0x185   :  { %v1049_v48 = vpop.permute.xlu0 %1048  ;;  %1680 = vst.msk [vmem:[%s4762_s1 + $0x38] sm:$0xff] %vm1672_vm0, %v1551_v11  ;;  %v1425_v7 = vmax.f32 %v2676_v40, %v1051_v8  ;;  %v3306_v11 = vld [vmem:[%s4761_s0 + $0x478] sm:$0xff]  ;;  %v1816_v8 = vld [vmem:[%s4761_s0 + $0xd0] sm:$0xff] }
 0x186   :  { %1679 = vst.msk [vmem:[%s4762_s1 + $0x30] sm:$0xff] %vm1672_vm0, %v1550_v57  ;;  %v1424_v14 = vmax.f32 %v2681_v32, %v1049_v48  ;;  %1166 = vrot.lane.b32.xlu1 %v3242_v24, %s1932_s10  ;;  %v3311_v57 = vld [vmem:[%s4761_s0 + $0x468] sm:$0xff]  ;;  %v789_v48 = vmax.f32 %v1816_v8, %v2259_v22  ;;  %v3402_v8 = vld [vmem:[%s4761_s0 + $0x4d8] sm:$0xff] }
 0x187   :  { %1164 = vrot.lane.b32.xlu0 %v3247_v25, %s1932_s10  ;;  %v1553_v15 = vmax.f32 %v785_v2, %v1425_v7  ;;  %v788_v2 = vmax.f32 %v1817_v61, %v2261_v23  ;;  %v3338_v7 = vld [vmem:[%s4761_s0 + $0x498] sm:$0xff]  ;;  %v1822_v61 = vld [vmem:[%s4761_s0 + $0x130] sm:$0xff] }
 0x188   :  { %v1552_v59 = vmax.f32 %v784_v6, %v1424_v14  ;;  %v1055_v40 = vpop.permute.xlu1 %1054  ;;  %v3343_v14 = vld [vmem:[%s4761_s0 + $0x488] sm:$0xff] }
 0x189   :  { %v1053_v32 = vpop.permute.xlu0 %1052  ;;  %1682 = vst.msk [vmem:[%s4762_s1 + $0x48] sm:$0xff] %vm1672_vm0, %v1553_v15  ;;  %v1427_v56 = vmax.f32 %v2694_v49, %v1055_v40  ;;  %v1818_v15 = vld [vmem:[%s4761_s0 + $0xf0] sm:$0xff]  ;;  %v1819_v40 = vld [vmem:[%s4761_s0 + $0xe0] sm:$0xff] }
 0x18a   :  { %1681 = vst.msk [vmem:[%s4762_s1 + $0x40] sm:$0xff] %vm1672_vm0, %v1552_v59  ;;  %v1426_v18 = vmax.f32 %v2699_v16, %v1053_v32  ;;  %1170 = vrot.lane.b32.xlu1 %v3274_v9, %s1932_s10  ;;  %v791_v59 = vmax.f32 %v1818_v15, %v2271_v26  ;;  %v790_v32 = vmax.f32 %v1819_v40, %v2273_v27  ;;  %v1824_v15 = vld [vmem:[%s4761_s0 + $0x150] sm:$0xff]  ;;  %v1825_v40 = vld [vmem:[%s4761_s0 + $0x140] sm:$0xff] }
 0x18b   :  { %1168 = vrot.lane.b32.xlu0 %v3279_v41, %s1932_s10  ;;  %v1555_v19 = vmax.f32 %v787_v60, %v1427_v56  ;;  %v1820_v56 = vld [vmem:[%s4761_s0 + $0x110] sm:$0xff] }
 0x18c   :  { %v1554_v10 = vmax.f32 %v786_v21, %v1426_v18  ;;  %v1059_v49 = vpop.permute.xlu1 %1058  ;;  %v3375_v21 = vld [vmem:[%s4761_s0 + $0x4a8] sm:$0xff]  ;;  %v793_v18 = vmax.f32 %v1820_v56, %v2283_v30  ;;  %v1827_v56 = vld [vmem:[%s4761_s0 + $0x160] sm:$0xff] }
 0x18d   :  { %v1057_v16 = vpop.permute.xlu0 %1056  ;;  %1684 = vst.msk [vmem:[%s4762_s1 + $0x58] sm:$0xff] %vm1672_vm0, %v1555_v19  ;;  %v1429_v55 = vmax.f32 %v2712_v33, %v1059_v49  ;;  %v1821_v19 = vld [vmem:[%s4761_s0 + $0x100] sm:$0xff] }
 0x18e   :  { %1683 = vst.msk [vmem:[%s4762_s1 + $0x50] sm:$0xff] %vm1672_vm0, %v1554_v10  ;;  %v1428_v22 = vmax.f32 %v2717_v62, %v1057_v16  ;;  %1174 = vrot.lane.b32.xlu1 %v3306_v11, %s1932_s10  ;;  %v792_v10 = vmax.f32 %v1821_v19, %v2285_v31 }
 0x18f   :  { %1172 = vrot.lane.b32.xlu0 %v3311_v57, %s1932_s10  ;;  %v1557_v23 = vmax.f32 %v789_v48, %v1429_v55  ;;  %v3407_v48 = vld [vmem:[%s4761_s0 + $0x4c8] sm:$0xff]  ;;  %v1823_v55 = vld [vmem:[%s4761_s0 + $0x120] sm:$0xff] }
 0x190   :  { %v1556_v6 = vmax.f32 %v788_v2, %v1428_v22  ;;  %v1063_v33 = vpop.permute.xlu1 %1062  ;;  %v795_v2 = vmax.f32 %v1822_v61, %v2295_v34  ;;  %v794_v22 = vmax.f32 %v1823_v55, %v2297_v35  ;;  %v3530_v55 = vld [vmem:[%s4761_s0 + $0x558] sm:$0xff] }
 0x191   :  { %v1061_v62 = vpop.permute.xlu0 %1060  ;;  %1686 = vst.msk [vmem:[%s4762_s1 + $0x68] sm:$0xff] %vm1672_vm0, %v1557_v23  ;;  %v1431_v5 = vmax.f32 %v2730_v17, %v1063_v33  ;;  %v3434_v33 = vld [vmem:[%s4761_s0 + $0x4f8] sm:$0xff] }
 0x192   :  { %1685 = vst.msk [vmem:[%s4762_s1 + $0x60] sm:$0xff] %vm1672_vm0, %v1556_v6  ;;  %v1430_v26 = vmax.f32 %v2735_v52, %v1061_v62  ;;  %1178 = vrot.lane.b32.xlu1 %v3338_v7, %s1932_s10  ;;  %v3439_v62 = vld [vmem:[%s4761_s0 + $0x4e8] sm:$0xff] }
 0x193   :  { %1176 = vrot.lane.b32.xlu0 %v3343_v14, %s1932_s10  ;;  %v1559_v27 = vmax.f32 %v791_v59, %v1431_v5  ;;  %v797_v59 = vmax.f32 %v1824_v15, %v2307_v38  ;;  %v4941_v15 = vld [vmem:[#allocation72_spill] sm:$0xff] }
 0x194   :  { %v1558_v60 = vmax.f32 %v790_v32, %v1430_v26  ;;  %v1067_v17 = vpop.permute.xlu1 %1066  ;;  %v796_v32 = vmax.f32 %v1825_v40, %v2309_v39  ;;  %v4942_v40 = vld [vmem:[#allocation73_spill] sm:$0xff] }
 0x195   :  { %v1065_v52 = vpop.permute.xlu0 %1064  ;;  %1688 = vst.msk [vmem:[%s4762_s1 + $0x78] sm:$0xff] %vm1672_vm0, %v1559_v27  ;;  %v1433_v49 = vmax.f32 %v2748_v63, %v1067_v17  ;;  %v3466_v27 = vld [vmem:[%s4761_s0 + $0x518] sm:$0xff]  ;;  %v1826_v17 = vld [vmem:[%s4761_s0 + $0x170] sm:$0xff] }
 0x196   :  { %1687 = vst.msk [vmem:[%s4762_s1 + $0x70] sm:$0xff] %vm1672_vm0, %v1558_v60  ;;  %v1432_v30 = vmax.f32 %v2753_v44, %v1065_v52  ;;  %1182 = vrot.lane.b32.xlu1 %v3370_v0, %s1932_s10  ;;  %v3471_v60 = vld [vmem:[%s4761_s0 + $0x508] sm:$0xff]  ;;  %v799_v52 = vmax.f32 %v1826_v17, %v2319_v42  ;;  %v1832_v17 = vld [vmem:[%s4761_s0 + $0x1d0] sm:$0xff] }
 0x197   :  { %1180 = vrot.lane.b32.xlu0 %v3375_v21, %s1932_s10  ;;  %v1561_v31 = vmax.f32 %v793_v18, %v1433_v49  ;;  %v798_v18 = vmax.f32 %v1827_v56, %v2321_v43  ;;  %v3498_v49 = vld [vmem:[%s4761_s0 + $0x538] sm:$0xff] }
 0x198   :  { %v1560_v16 = vmax.f32 %v792_v10, %v1432_v30  ;;  %v1071_v63 = vpop.permute.xlu1 %1070  ;;  %v3503_v30 = vld [vmem:[%s4761_s0 + $0x528] sm:$0xff] }
 0x199   :  { %v1069_v44 = vpop.permute.xlu0 %1068  ;;  %1690 = vst.msk [vmem:[%s4762_s1 + $0x88] sm:$0xff] %vm1672_vm0, %v1561_v31  ;;  %v1435_v23 = vmax.f32 %v2766_v53, %v1071_v63  ;;  %v1828_v31 = vld [vmem:[%s4761_s0 + $0x190] sm:$0xff]  ;;  %v1829_v63 = vld [vmem:[%s4761_s0 + $0x180] sm:$0xff] }
 0x19a   :  { %1689 = vst.msk [vmem:[%s4762_s1 + $0x80] sm:$0xff] %vm1672_vm0, %v1560_v16  ;;  %v1434_v34 = vmax.f32 %v2771_v36, %v1069_v44  ;;  %1186 = vrot.lane.b32.xlu1 %v3402_v8, %s1932_s10  ;;  %v801_v16 = vmax.f32 %v1828_v31, %v2331_v46  ;;  %v800_v44 = vmax.f32 %v1829_v63, %v2333_v47  ;;  %v3594_v63 = vld [vmem:[%s4761_s0 + $0x598] sm:$0xff] }
 0x19b   :  { %1184 = vrot.lane.b32.xlu0 %v3407_v48, %s1932_s10  ;;  %v1563_v35 = vmax.f32 %v795_v2, %v1435_v23  ;;  %v1830_v23 = vld [vmem:[%s4761_s0 + $0x1b0] sm:$0xff] }
 0x19c   :  { %v1562_v6 = vmax.f32 %v794_v22, %v1434_v34  ;;  %v1075_v53 = vpop.permute.xlu1 %1074  ;;  %v3535_v22 = vld [vmem:[%s4761_s0 + $0x548] sm:$0xff]  ;;  %v4939_v34 = vld [vmem:[#allocation2_spill] sm:$0xff] }
 0x19d   :  { %v1073_v36 = vpop.permute.xlu0 %1072  ;;  %1692 = vst.msk [vmem:[%s4762_s1 + $0x98] sm:$0xff] %vm1672_vm0, %v1563_v35  ;;  %v1437_v5 = vmax.f32 %v2784_v45, %v1075_v53  ;;  %v803_v35 = vmax.f32 %v1830_v23, %v4939_v34  ;;  %v4940_v53 = vld [vmem:[#allocation3_spill] sm:$0xff] }
 0x19e   :  { %1691 = vst.msk [vmem:[%s4762_s1 + $0x90] sm:$0xff] %vm1672_vm0, %v1562_v6  ;;  %v1436_v38 = vmax.f32 %v2789_v28, %v1073_v36  ;;  %1190 = vrot.lane.b32.xlu1 %v3434_v33, %s1932_s10  ;;  %v1831_v6 = vld [vmem:[%s4761_s0 + $0x1a0] sm:$0xff]  ;;  %v4948_v23 = vld [vmem:[#allocation7_spill] sm:$0xff] }
 0x19f   :  { %1188 = vrot.lane.b32.xlu0 %v3439_v62, %s1932_s10  ;;  %v1565_v39 = vmax.f32 %v797_v59, %v1437_v5  ;;  %v802_v36 = vmax.f32 %v1831_v6, %v4940_v53  ;;  %v4950_v53 = vld [vmem:[#allocation81_spill] sm:$0xff] }
 0x1a0   :  { %v1564_v26 = vmax.f32 %v796_v32, %v1436_v38  ;;  %v1079_v45 = vpop.permute.xlu1 %1078 }
 0x1a1   :  { %v1077_v28 = vpop.permute.xlu0 %1076  ;;  %1694 = vst.msk [vmem:[%s4762_s1 + $0xa8] sm:$0xff] %vm1672_vm0, %v1565_v39  ;;  %v1439_v19 = vmax.f32 %v2802_v37, %v1079_v45  ;;  %v3562_v39 = vld [vmem:[%s4761_s0 + $0x578] sm:$0xff] }
 0x1a2   :  { %1693 = vst.msk [vmem:[%s4762_s1 + $0xa0] sm:$0xff] %vm1672_vm0, %v1564_v26  ;;  %v1438_v42 = vmax.f32 %v2807_v20, %v1077_v28  ;;  %1194 = vrot.lane.b32.xlu1 %v3466_v27, %s1932_s10  ;;  %v3567_v26 = vld [vmem:[%s4761_s0 + $0x568] sm:$0xff] }
 0x1a3   :  { %1192 = vrot.lane.b32.xlu0 %v3471_v60, %s1932_s10  ;;  %v1567_v43 = vmax.f32 %v799_v52, %v1439_v19  ;;  %v4943_v52 = vld [vmem:[#allocation4_spill] sm:$0xff]  ;;  %v4944_v19 = vld [vmem:[#allocation5_spill] sm:$0xff] }
 0x1a4   :  { %v1566_v10 = vmax.f32 %v798_v18, %v1438_v42  ;;  %v1083_v37 = vpop.permute.xlu1 %1082  ;;  %v805_v56 = vmax.f32 %v1832_v17, %v4943_v52  ;;  %v1833_v18 = vld [vmem:[%s4761_s0 + $0x1c0] sm:$0xff] }
 0x1a5   :  { %v1081_v20 = vpop.permute.xlu0 %1080  ;;  %1696 = vst.msk [vmem:[%s4762_s1 + $0xb8] sm:$0xff] %vm1672_vm0, %v1567_v43  ;;  %v1441_v61 = vmax.f32 %v2820_v29, %v1083_v37  ;;  %v804_v42 = vmax.f32 %v1833_v18, %v4944_v19  ;;  %v4945_v43 = vld [vmem:[#allocation76_spill] sm:$0xff]  ;;  %v4946_v37 = vld [vmem:[#allocation77_spill] sm:$0xff]  ;;  %v1837_v52 = vld [vmem:[%s4761_s0 + $0x200] sm:$0xff] }
 0x1a6   :  { %1695 = vst.msk [vmem:[%s4762_s1 + $0xb0] sm:$0xff] %vm1672_vm0, %v1566_v10  ;;  %v1440_v46 = vmax.f32 %v2825_v12, %v1081_v20  ;;  %1198 = vrot.lane.b32.xlu1 %v3498_v49, %s1932_s10  ;;  %v4953_v19 = vld [vmem:[#allocation84_spill] sm:$0xff] }
 0x1a7   :  { %1196 = vrot.lane.b32.xlu0 %v3503_v30, %s1932_s10  ;;  %v1569_v47 = vmax.f32 %v801_v16, %v1441_v61 }
 0x1a8   :  { %v1568_v2 = vmax.f32 %v800_v44, %v1440_v46  ;;  %v1087_v29 = vpop.permute.xlu1 %1086  ;;  %v3599_v44 = vld [vmem:[%s4761_s0 + $0x588] sm:$0xff] }
 0x1a9   :  { %v1085_v12 = vpop.permute.xlu0 %1084  ;;  %1698 = vst.msk [vmem:[%s4762_s1 + $0xc8] sm:$0xff] %vm1672_vm0, %v1569_v47  ;;  %v1443_v59 = vmax.f32 %v4941_v15, %v1087_v29  ;;  %v1834_v47 = vld [vmem:[%s4761_s0 + $0x1f0] sm:$0xff] }
 0x1aa   :  { %1697 = vst.msk [vmem:[%s4762_s1 + $0xc0] sm:$0xff] %vm1672_vm0, %v1568_v2  ;;  %v1442_v32 = vmax.f32 %v4942_v40, %v1085_v12  ;;  %1202 = vrot.lane.b32.xlu1 %v3530_v55, %s1932_s10  ;;  %v4947_v2 = vld [vmem:[#allocation6_spill] sm:$0xff]  ;;  %v3626_v40 = vld [vmem:[%s4761_s0 + $0x5b8] sm:$0xff] }
 0x1ab   :  { %1200 = vrot.lane.b32.xlu0 %v3535_v22, %s1932_s10  ;;  %v1571_v5 = vmax.f32 %v803_v35, %v1443_v59  ;;  %v807_v29 = vmax.f32 %v1834_v47, %v4947_v2  ;;  %v1835_v12 = vld [vmem:[%s4761_s0 + $0x1e0] sm:$0xff]  ;;  %v4949_v35 = vld [vmem:[#allocation80_spill] sm:$0xff] }
 0x1ac   :  { %v1570_v38 = vmax.f32 %v802_v36, %v1442_v32  ;;  %v1091_v45 = vpop.permute.xlu1 %1090  ;;  %v806_v34 = vmax.f32 %v1835_v12, %v4948_v23  ;;  %v3631_v32 = vld [vmem:[%s4761_s0 + $0x5a8] sm:$0xff]  ;;  %v1838_v47 = vld [vmem:[%s4761_s0 + $0x230] sm:$0xff]  ;;  %v4955_v2 = vld [vmem:[#allocation10_spill] sm:$0xff] }
 0x1ad   :  { %v1089_v28 = vpop.permute.xlu0 %1088  ;;  %1700 = vst.msk [vmem:[%s4762_s1 + $0xd8] sm:$0xff] %vm1672_vm0, %v1571_v5  ;;  %v1445_v10 = vmax.f32 %v4945_v43, %v1091_v45  ;;  %v1836_v45 = vld [vmem:[%s4761_s0 + $0x210] sm:$0xff]  ;;  %v4954_v43 = vld [vmem:[#allocation85_spill] sm:$0xff]  ;;  %v1839_v12 = vld [vmem:[%s4761_s0 + $0x220] sm:$0xff] }
 0x1ae   :  { %1699 = vst.msk [vmem:[%s4762_s1 + $0xd0] sm:$0xff] %vm1672_vm0, %v1570_v38  ;;  %v1444_v20 = vmax.f32 %v4946_v37, %v1089_v28  ;;  %1206 = vrot.lane.b32.xlu1 %v3562_v39, %s1932_s10  ;;  %v4951_v28 = vld [vmem:[#allocation8_spill] sm:$0xff]  ;;  %v4956_v23 = vld [vmem:[#allocation11_spill] sm:$0xff] }
 0x1af   :  { %1204 = vrot.lane.b32.xlu0 %v3567_v26, %s1932_s10  ;;  %v1573_v31 = vmax.f32 %v805_v56, %v1445_v10  ;;  %v809_v17 = vmax.f32 %v1836_v45, %v4951_v28  ;;  %v4952_v56 = vld [vmem:[#allocation9_spill] sm:$0xff] }
 0x1b0   :  { %v1572_v16 = vmax.f32 %v804_v42, %v1444_v20  ;;  %v1095_v61 = vpop.permute.xlu1 %1094  ;;  %v808_v18 = vmax.f32 %v1837_v52, %v4952_v56  ;;  %v4959_v52 = vld [vmem:[#allocation12_spill] sm:$0xff] }
 0x1b1   :  { %v1093_v46 = vpop.permute.xlu0 %1092  ;;  %1702 = vst.msk [vmem:[%s4762_s1 + $0xe8] sm:$0xff] %vm1672_vm0, %v1573_v31  ;;  %v1447_v6 = vmax.f32 %v4949_v35, %v1095_v61  ;;  %v3658_v31 = vld [vmem:[%s4761_s0 + $0x5d8] sm:$0xff]  ;;  %v4957_v35 = vld [vmem:[#allocation88_spill] sm:$0xff] }
 0x1b2   :  { %1701 = vst.msk [vmem:[%s4762_s1 + $0xe0] sm:$0xff] %vm1672_vm0, %v1572_v16  ;;  %v1446_v36 = vmax.f32 %v4950_v53, %v1093_v46  ;;  %1210 = vrot.lane.b32.xlu1 %v3594_v63, %s1932_s10  ;;  %v3663_v16 = vld [vmem:[%s4761_s0 + $0x5c8] sm:$0xff]  ;;  %v4958_v53 = vld [vmem:[#allocation89_spill] sm:$0xff] }
 0x1b3   :  { %1208 = vrot.lane.b32.xlu0 %v3599_v44, %s1932_s10  ;;  %v1575_v15 = vmax.f32 %v807_v29, %v1447_v6  ;;  %v811_v29 = vmax.f32 %v1838_v47, %v4955_v2  ;;  %v3722_v47 = vld [vmem:[%s4761_s0 + $0x618] sm:$0xff]  ;;  %v3727_v2 = vld [vmem:[%s4761_s0 + $0x608] sm:$0xff] }
 0x1b4   :  { %v1574_v59 = vmax.f32 %v806_v34, %v1446_v36  ;;  %v1099_v5 = vpop.permute.xlu1 %1098  ;;  %v810_v34 = vmax.f32 %v1839_v12, %v4956_v23  ;;  %v1842_v23 = vld [vmem:[%s4761_s0 + $0x270] sm:$0xff] }
 0x1b5   :  { %v1097_v38 = vpop.permute.xlu0 %1096  ;;  %1704 = vst.msk [vmem:[%s4762_s1 + $0xf8] sm:$0xff] %vm1672_vm0, %v1575_v15  ;;  %v1449_v42 = vmax.f32 %v4953_v19, %v1099_v5  ;;  %v3690_v5 = vld [vmem:[%s4761_s0 + $0x5f8] sm:$0xff] }
 0x1b6   :  { %1703 = vst.msk [vmem:[%s4762_s1 + $0xf0] sm:$0xff] %vm1672_vm0, %v1574_v59  ;;  %v1448_v10 = vmax.f32 %v4954_v43, %v1097_v38  ;;  %1214 = vrot.lane.b32.xlu1 %v3626_v40, %s1932_s10  ;;  %v3695_v38 = vld [vmem:[%s4761_s0 + $0x5e8] sm:$0xff]  ;;  %v4960_v19 = vld [vmem:[#allocation13_spill] sm:$0xff]  ;;  %v4961_v43 = vld [vmem:[#allocation92_spill] sm:$0xff] }
 0x1b7   :  { %1212 = vrot.lane.b32.xlu0 %v3631_v32, %s1932_s10  ;;  %v1577_v37 = vmax.f32 %v809_v17, %v1449_v42  ;;  %v1840_v17 = vld [vmem:[%s4761_s0 + $0x250] sm:$0xff] }
 0x1b8   :  { %v1576_v20 = vmax.f32 %v808_v18, %v1448_v10  ;;  %v1103_v61 = vpop.permute.xlu1 %1102  ;;  %v813_v56 = vmax.f32 %v1840_v17, %v4959_v52  ;;  %v1841_v18 = vld [vmem:[%s4761_s0 + $0x240] sm:$0xff] }
 0x1b9   :  { %v1101_v46 = vpop.permute.xlu0 %1100  ;;  %1706 = vst.msk [vmem:[%s4762_s1 + $0x108] sm:$0xff] %vm1672_vm0, %v1577_v37  ;;  %v1451_v6 = vmax.f32 %v4957_v35, %v1103_v61  ;;  %v812_v42 = vmax.f32 %v1841_v18, %v4960_v19  ;;  %v4962_v37 = vld [vmem:[#allocation93_spill] sm:$0xff]  ;;  %v3759_v18 = vld [vmem:[%s4761_s0 + $0x628] sm:$0xff] }
 0x1ba   :  { %1705 = vst.msk [vmem:[%s4762_s1 + $0x100] sm:$0xff] %vm1672_vm0, %v1576_v20  ;;  %v1450_v36 = vmax.f32 %v4958_v53, %v1101_v46  ;;  %1218 = vrot.lane.b32.xlu1 %v3658_v31, %s1932_s10  ;;  %v4964_v53 = vld [vmem:[#allocation15_spill] sm:$0xff] }
 0x1bb   :  { %1216 = vrot.lane.b32.xlu0 %v3663_v16, %s1932_s10  ;;  %v1579_v15 = vmax.f32 %v811_v29, %v1451_v6  ;;  %v1843_v6 = vld [vmem:[%s4761_s0 + $0x260] sm:$0xff] }
 0x1bc   :  { %v1578_v59 = vmax.f32 %v810_v34, %v1450_v36  ;;  %v1107_v45 = vpop.permute.xlu1 %1106  ;;  %v4963_v34 = vld [vmem:[#allocation14_spill] sm:$0xff]  ;;  %v814_v36 = vmax.f32 %v1843_v6, %v4964_v53  ;;  %v3786_v53 = vld [vmem:[%s4761_s0 + $0x658] sm:$0xff] }
 0x1bd   :  { %v1105_v28 = vpop.permute.xlu0 %1104  ;;  %1708 = vst.msk [vmem:[%s4762_s1 + $0x118] sm:$0xff] %vm1672_vm0, %v1579_v15  ;;  %v1453_v10 = vmax.f32 %v4961_v43, %v1107_v45  ;;  %v815_v35 = vmax.f32 %v1842_v23, %v4963_v34  ;;  %v4965_v15 = vld [vmem:[#allocation96_spill] sm:$0xff]  ;;  %v4966_v45 = vld [vmem:[#allocation97_spill] sm:$0xff] }
 0x1be   :  { %1707 = vst.msk [vmem:[%s4762_s1 + $0x110] sm:$0xff] %vm1672_vm0, %v1578_v59  ;;  %v1452_v20 = vmax.f32 %v4962_v37, %v1105_v28  ;;  %1222 = vrot.lane.b32.xlu1 %v3690_v5, %s1932_s10  ;;  %v1844_v43 = vld [vmem:[%s4761_s0 + $0x290] sm:$0xff]  ;;  %v4970_v23 = vld [vmem:[#allocation101_spill] sm:$0xff] }
 0x1bf   :  { %1220 = vrot.lane.b32.xlu0 %v3695_v38, %s1932_s10  ;;  %v1581_v61 = vmax.f32 %v813_v56, %v1453_v10  ;;  %v3754_v56 = vld [vmem:[%s4761_s0 + $0x638] sm:$0xff]  ;;  %v4967_v10 = vld [vmem:[#allocation16_spill] sm:$0xff] }
 0x1c0   :  { %v1580_v46 = vmax.f32 %v812_v42, %v1452_v20  ;;  %v1111_v29 = vpop.permute.xlu1 %1110  ;;  %v817_v37 = vmax.f32 %v1844_v43, %v4967_v10  ;;  %v1845_v20 = vld [vmem:[%s4761_s0 + $0x280] sm:$0xff]  ;;  %v4973_v43 = vld [vmem:[#allocation104_spill] sm:$0xff] }
 0x1c1   :  { %v1109_v12 = vpop.permute.xlu0 %1108  ;;  %1710 = vst.msk [vmem:[%s4762_s1 + $0x128] sm:$0xff] %vm1672_vm0, %v1581_v61  ;;  %v1455_v59 = vmax.f32 %v4965_v15, %v1111_v29  ;;  %v4968_v61 = vld [vmem:[#allocation17_spill] sm:$0xff]  ;;  %v4969_v29 = vld [vmem:[#allocation100_spill] sm:$0xff] }
 0x1c2   :  { %1709 = vst.msk [vmem:[%s4762_s1 + $0x120] sm:$0xff] %vm1672_vm0, %v1580_v46  ;;  %v1454_v28 = vmax.f32 %v4966_v45, %v1109_v12  ;;  %1226 = vrot.lane.b32.xlu1 %v3722_v47, %s1932_s10  ;;  %v816_v46 = vmax.f32 %v1845_v20, %v4968_v61  ;;  %v1846_v45 = vld [vmem:[%s4761_s0 + $0x2b0] sm:$0xff] }
 0x1c3   :  { %1224 = vrot.lane.b32.xlu0 %v3727_v2, %s1932_s10  ;;  %v1583_v17 = vmax.f32 %v815_v35, %v1455_v59 }
 0x1c4   :  { %v1582_v52 = vmax.f32 %v814_v36, %v1454_v28  ;;  %v1115_v19 = vpop.permute.xlu1 %1114  ;;  %v3791_v36 = vld [vmem:[%s4761_s0 + $0x648] sm:$0xff]  ;;  %v4971_v28 = vld [vmem:[#allocation18_spill] sm:$0xff] }
 0x1c5   :  { %v1113_v42 = vpop.permute.xlu0 %1112  ;;  %1712 = vst.msk [vmem:[%s4762_s1 + $0x138] sm:$0xff] %vm1672_vm0, %v1583_v17  ;;  %v1457_v12 = vmax.f32 %v4969_v29, %v1115_v19  ;;  %v819_v17 = vmax.f32 %v1846_v45, %v4971_v28  ;;  %v4972_v19 = vld [vmem:[#allocation19_spill] sm:$0xff]  ;;  %v3818_v29 = vld [vmem:[%s4761_s0 + $0x678] sm:$0xff] }
 0x1c6   :  { %1711 = vst.msk [vmem:[%s4762_s1 + $0x130] sm:$0xff] %vm1672_vm0, %v1582_v52  ;;  %v1456_v34 = vmax.f32 %v4970_v23, %v1113_v42  ;;  %1230 = vrot.lane.b32.xlu1 %v3754_v56, %s1932_s10  ;;  %v1847_v52 = vld [vmem:[%s4761_s0 + $0x2a0] sm:$0xff]  ;;  %v4976_v45 = vld [vmem:[#allocation21_spill] sm:$0xff] }
 0x1c7   :  { %1228 = vrot.lane.b32.xlu0 %v3759_v18, %s1932_s10  ;;  %v1585_v35 = vmax.f32 %v817_v37, %v1457_v12  ;;  %v818_v42 = vmax.f32 %v1847_v52, %v4972_v19  ;;  %v4974_v37 = vld [vmem:[#allocation105_spill] sm:$0xff]  ;;  %v3823_v12 = vld [vmem:[%s4761_s0 + $0x668] sm:$0xff] }
 0x1c8   :  { %v1584_v6 = vmax.f32 %v816_v46, %v1456_v34  ;;  %v1119_v15 = vpop.permute.xlu1 %1118  ;;  %v4978_v19 = vld [vmem:[#allocation109_spill] sm:$0xff] }
 0x1c9   :  { %v1117_v59 = vpop.permute.xlu0 %1116  ;;  %1714 = vst.msk [vmem:[%s4762_s1 + $0x148] sm:$0xff] %vm1672_vm0, %v1585_v35  ;;  %v1459_v10 = vmax.f32 %v4973_v43, %v1119_v15  ;;  %v1848_v35 = vld [vmem:[%s4761_s0 + $0x2d0] sm:$0xff] }
 0x1ca   :  { %1713 = vst.msk [vmem:[%s4762_s1 + $0x140] sm:$0xff] %vm1672_vm0, %v1584_v6  ;;  %v1458_v20 = vmax.f32 %v4974_v37, %v1117_v59  ;;  %1234 = vrot.lane.b32.xlu1 %v3786_v53, %s1932_s10  ;;  %v4975_v6 = vld [vmem:[#allocation20_spill] sm:$0xff]  ;;  %v1849_v59 = vld [vmem:[%s4761_s0 + $0x2c0] sm:$0xff]  ;;  %v3850_v37 = vld [vmem:[%s4761_s0 + $0x698] sm:$0xff] }
 0x1cb   :  { %1232 = vrot.lane.b32.xlu0 %v3791_v36, %s1932_s10  ;;  %v1587_v61 = vmax.f32 %v819_v17, %v1459_v10  ;;  %v821_v15 = vmax.f32 %v1848_v35, %v4975_v6  ;;  %v820_v28 = vmax.f32 %v1849_v59, %v4976_v45  ;;  %v4977_v17 = vld [vmem:[#allocation108_spill] sm:$0xff]  ;;  %v1851_v6 = vld [vmem:[%s4761_s0 + $0x2e0] sm:$0xff] }
 0x1cc   :  { %v1586_v46 = vmax.f32 %v818_v42, %v1458_v20  ;;  %v1123_v23 = vpop.permute.xlu1 %1122  ;;  %v3855_v20 = vld [vmem:[%s4761_s0 + $0x688] sm:$0xff]  ;;  %v4981_v45 = vld [vmem:[#allocation112_spill] sm:$0xff] }
 0x1cd   :  { %v1121_v34 = vpop.permute.xlu0 %1120  ;;  %1716 = vst.msk [vmem:[%s4762_s1 + $0x158] sm:$0xff] %vm1672_vm0, %v1587_v61  ;;  %v1461_v52 = vmax.f32 %v4977_v17, %v1123_v23  ;;  %v1850_v23 = vld [vmem:[%s4761_s0 + $0x2f0] sm:$0xff]  ;;  %v4982_v17 = vld [vmem:[#allocation113_spill] sm:$0xff] }
 0x1ce   :  { %1715 = vst.msk [vmem:[%s4762_s1 + $0x150] sm:$0xff] %vm1672_vm0, %v1586_v46  ;;  %v1460_v42 = vmax.f32 %v4978_v19, %v1121_v34  ;;  %1238 = vrot.lane.b32.xlu1 %v3818_v29, %s1932_s10  ;;  %v4979_v34 = vld [vmem:[#allocation22_spill] sm:$0xff] }
 0x1cf   :  { %1236 = vrot.lane.b32.xlu0 %v3823_v12, %s1932_s10  ;;  %v1589_v43 = vmax.f32 %v821_v15, %v1461_v52  ;;  %v823_v35 = vmax.f32 %v1850_v23, %v4979_v34  ;;  %v4980_v15 = vld [vmem:[#allocation23_spill] sm:$0xff]  ;;  %v1852_v23 = vld [vmem:[%s4761_s0 + $0x310] sm:$0xff] }
 0x1d0   :  { %v1588_v10 = vmax.f32 %v820_v28, %v1460_v42  ;;  %v1127_v61 = vpop.permute.xlu1 %1126  ;;  %v822_v59 = vmax.f32 %v1851_v6, %v4980_v15  ;;  %v4984_v34 = vld [vmem:[#allocation24_spill] sm:$0xff]  ;;  %v4985_v15 = vld [vmem:[#allocation25_spill] sm:$0xff] }
 0x1d1   :  { %v1125_v46 = vpop.permute.xlu0 %1124  ;;  %1718 = vst.msk [vmem:[%s4762_s1 + $0x168] sm:$0xff] %vm1672_vm0, %v1589_v43  ;;  %v1463_v28 = vmax.f32 %v4981_v45, %v1127_v61  ;;  %v3882_v43 = vld [vmem:[%s4761_s0 + $0x6b8] sm:$0xff]  ;;  %v825_v6 = vmax.f32 %v1852_v23, %v4984_v34  ;;  %v4986_v45 = vld [vmem:[#allocation116_spill] sm:$0xff] }
 0x1d2   :  { %1717 = vst.msk [vmem:[%s4762_s1 + $0x160] sm:$0xff] %vm1672_vm0, %v1588_v10  ;;  %v1462_v52 = vmax.f32 %v4982_v17, %v1125_v46  ;;  %1242 = vrot.lane.b32.xlu1 %v3850_v37, %s1932_s10  ;;  %v3887_v10 = vld [vmem:[%s4761_s0 + $0x6a8] sm:$0xff]  ;;  %v4987_v17 = vld [vmem:[#allocation117_spill] sm:$0xff] }
 0x1d3   :  { %1240 = vrot.lane.b32.xlu0 %v3855_v20, %s1932_s10  ;;  %v1591_v19 = vmax.f32 %v823_v35, %v1463_v28  ;;  %4983 = vst [vmem:[#allocation2_spill] sm:$0xff] %v3887_v10  ;;  %v1853_v35 = vld [vmem:[%s4761_s0 + $0x300] sm:$0xff] }
 0x1d4   :  { %v1590_v42 = vmax.f32 %v822_v59, %v1462_v52  ;;  %v1131_v61 = vpop.permute.xlu1 %1130  ;;  %v824_v59 = vmax.f32 %v1853_v35, %v4985_v15  ;;  %v1854_v35 = vld [vmem:[%s4761_s0 + $0x330] sm:$0xff]  ;;  %v4990_v15 = vld [vmem:[#allocation26_spill] sm:$0xff] }
 0x1d5   :  { %v1129_v46 = vpop.permute.xlu0 %1128  ;;  %1720 = vst.msk [vmem:[%s4762_s1 + $0x178] sm:$0xff] %vm1672_vm0, %v1591_v19  ;;  %v1465_v28 = vmax.f32 %v4986_v45, %v1131_v61  ;;  %v3914_v19 = vld [vmem:[%s4761_s0 + $0x6d8] sm:$0xff]  ;;  %v827_v45 = vmax.f32 %v1854_v35, %v4990_v15 }
 0x1d6   :  { %1719 = vst.msk [vmem:[%s4762_s1 + $0x170] sm:$0xff] %vm1672_vm0, %v1590_v42  ;;  %v1464_v52 = vmax.f32 %v4987_v17, %v1129_v46  ;;  %1246 = vrot.lane.b32.xlu1 %v3882_v43, %s1932_s10  ;;  %4988 = vst [vmem:[#allocation3_spill] sm:$0xff] %v3914_v19  ;;  %v3919_v42 = vld [vmem:[%s4761_s0 + $0x6c8] sm:$0xff]  ;;  %v4992_v17 = vld [vmem:[#allocation120_spill] sm:$0xff] }
 0x1d7   :  { %1244 = vrot.lane.b32.xlu0 %v3887_v10, %s1932_s10  ;;  %v1593_v23 = vmax.f32 %v825_v6, %v1465_v28  ;;  %4989 = vst [vmem:[#allocation72_spill] sm:$0xff] %v3919_v42  ;;  %v1855_v6 = vld [vmem:[%s4761_s0 + $0x320] sm:$0xff]  ;;  %v4993_v10 = vld [vmem:[#allocation121_spill] sm:$0xff] }
 0x1d8   :  { %v1592_v34 = vmax.f32 %v824_v59, %v1464_v52  ;;  %v1135_v61 = vpop.permute.xlu1 %1134  ;;  %v4991_v59 = vld [vmem:[#allocation27_spill] sm:$0xff] }
 0x1d9   :  { %v1133_v46 = vpop.permute.xlu0 %1132  ;;  %v826_v28 = vmax.f32 %v1855_v6, %v4991_v59  ;;  %1722 = vst.msk [vmem:[%s4762_s1 + $0x188] sm:$0xff] %vm1672_vm0, %v1593_v23  ;;  %v1467_v52 = vmax.f32 %v4992_v17, %v1135_v61  ;;  %v3946_v23 = vld [vmem:[%s4761_s0 + $0x6f8] sm:$0xff]  ;;  %v4996_v59 = vld [vmem:[#allocation28_spill] sm:$0xff] }
 0x1da   :  { %1721 = vst.msk [vmem:[%s4762_s1 + $0x180] sm:$0xff] %vm1672_vm0, %v1592_v34  ;;  %v1466_v35 = vmax.f32 %v4993_v10, %v1133_v46  ;;  %1250 = vrot.lane.b32.xlu1 %v3914_v19, %s1932_s10  ;;  %4994 = vst [vmem:[#allocation73_spill] sm:$0xff] %v3946_v23  ;;  %v3951_v34 = vld [vmem:[%s4761_s0 + $0x6e8] sm:$0xff]  ;;  %v1856_v46 = vld [vmem:[%s4761_s0 + $0x350] sm:$0xff] }
 0x1db   :  { %1248 = vrot.lane.b32.xlu0 %v3919_v42, %s1932_s10  ;;  %v1595_v15 = vmax.f32 %v827_v45, %v1467_v52  ;;  %4995 = vst [vmem:[#allocation4_spill] sm:$0xff] %v3951_v34  ;;  %v829_v17 = vmax.f32 %v1856_v46, %v4996_v59  ;;  %v1857_v45 = vld [vmem:[%s4761_s0 + $0x340] sm:$0xff]  ;;  %v4999_v19 = vld [vmem:[#allocation125_spill] sm:$0xff] }
 0x1dc   :  { %v1594_v6 = vmax.f32 %v826_v28, %v1466_v35  ;;  %v1139_v61 = vpop.permute.xlu1 %1138  ;;  %v4997_v28 = vld [vmem:[#allocation29_spill] sm:$0xff]  ;;  %v4998_v35 = vld [vmem:[#allocation124_spill] sm:$0xff] }
 0x1dd   :  { %v1137_v10 = vpop.permute.xlu0 %1136  ;;  %v828_v52 = vmax.f32 %v1857_v45, %v4997_v28  ;;  %1724 = vst.msk [vmem:[%s4762_s1 + $0x198] sm:$0xff] %vm1672_vm0, %v1595_v15  ;;  %v1469_v42 = vmax.f32 %v4998_v35, %v1139_v61  ;;  %v3978_v15 = vld [vmem:[%s4761_s0 + $0x718] sm:$0xff]  ;;  %v5002_v28 = vld [vmem:[#allocation30_spill] sm:$0xff] }
 0x1de   :  { %1723 = vst.msk [vmem:[%s4762_s1 + $0x190] sm:$0xff] %vm1672_vm0, %v1594_v6  ;;  %v1468_v46 = vmax.f32 %v4999_v19, %v1137_v10  ;;  %1254 = vrot.lane.b32.xlu1 %v3946_v23, %s1932_s10  ;;  %5000 = vst [vmem:[#allocation5_spill] sm:$0xff] %v3978_v15  ;;  %v3983_v6 = vld [vmem:[%s4761_s0 + $0x708] sm:$0xff]  ;;  %v1858_v10 = vld [vmem:[%s4761_s0 + $0x370] sm:$0xff] }
 0x1df   :  { %1252 = vrot.lane.b32.xlu0 %v3951_v34, %s1932_s10  ;;  %v1597_v59 = vmax.f32 %v829_v17, %v1469_v42  ;;  %5001 = vst [vmem:[#allocation76_spill] sm:$0xff] %v3983_v6  ;;  %v831_v35 = vmax.f32 %v1858_v10, %v5002_v28  ;;  %v1859_v42 = vld [vmem:[%s4761_s0 + $0x360] sm:$0xff]  ;;  %v5003_v17 = vld [vmem:[#allocation31_spill] sm:$0xff]  ;;  %v5005_v23 = vld [vmem:[#allocation129_spill] sm:$0xff] }
 0x1e0   :  { %v1596_v45 = vmax.f32 %v828_v52, %v1468_v46  ;;  %v1143_v61 = vpop.permute.xlu1 %1142  ;;  %v830_v52 = vmax.f32 %v1859_v42, %v5003_v17  ;;  %v5004_v46 = vld [vmem:[#allocation128_spill] sm:$0xff] }
 0x1e1   :  { %v1141_v19 = vpop.permute.xlu0 %1140  ;;  %1726 = vst.msk [vmem:[%s4762_s1 + $0x1a8] sm:$0xff] %vm1672_vm0, %v1597_v59  ;;  %v1471_v34 = vmax.f32 %v5004_v46, %v1143_v61  ;;  %v4010_v59 = vld [vmem:[%s4761_s0 + $0x738] sm:$0xff]  ;;  %v5006_v17 = vld [vmem:[#allocation32_spill] sm:$0xff] }
 0x1e2   :  { %1725 = vst.msk [vmem:[%s4762_s1 + $0x1a0] sm:$0xff] %vm1672_vm0, %v1596_v45  ;;  %v1470_v10 = vmax.f32 %v5005_v23, %v1141_v19  ;;  %1258 = vrot.lane.b32.xlu1 %v3978_v15, %s1932_s10  ;;  %v4015_v45 = vld [vmem:[%s4761_s0 + $0x728] sm:$0xff]  ;;  %v1860_v19 = vld [vmem:[%s4761_s0 + $0x390] sm:$0xff]  ;;  %v5009_v15 = vld [vmem:[#allocation133_spill] sm:$0xff] }
 0x1e3   :  { %1256 = vrot.lane.b32.xlu0 %v3983_v6, %s1932_s10  ;;  %v1599_v28 = vmax.f32 %v831_v35, %v1471_v34  ;;  %v833_v46 = vmax.f32 %v1860_v19, %v5006_v17  ;;  %v1861_v34 = vld [vmem:[%s4761_s0 + $0x380] sm:$0xff]  ;;  %v5007_v35 = vld [vmem:[#allocation33_spill] sm:$0xff] }
 0x1e4   :  { %v1598_v42 = vmax.f32 %v830_v52, %v1470_v10  ;;  %v1147_v61 = vpop.permute.xlu1 %1146  ;;  %v832_v52 = vmax.f32 %v1861_v34, %v5007_v35  ;;  %v5008_v10 = vld [vmem:[#allocation132_spill] sm:$0xff]  ;;  %v5010_v35 = vld [vmem:[#allocation34_spill] sm:$0xff] }
 0x1e5   :  { %v1145_v23 = vpop.permute.xlu0 %1144  ;;  %1728 = vst.msk [vmem:[%s4762_s1 + $0x1b8] sm:$0xff] %vm1672_vm0, %v1599_v28  ;;  %v1473_v6 = vmax.f32 %v5008_v10, %v1147_v61  ;;  %v4042_v28 = vld [vmem:[%s4761_s0 + $0x758] sm:$0xff] }
 0x1e6   :  { %1727 = vst.msk [vmem:[%s4762_s1 + $0x1b0] sm:$0xff] %vm1672_vm0, %v1598_v42  ;;  %v1472_v19 = vmax.f32 %v5009_v15, %v1145_v23  ;;  %1262 = vrot.lane.b32.xlu1 %v4010_v59, %s1932_s10  ;;  %v4047_v42 = vld [vmem:[%s4761_s0 + $0x748] sm:$0xff]  ;;  %v1862_v23 = vld [vmem:[%s4761_s0 + $0x3b0] sm:$0xff] }
 0x1e7   :  { %1260 = vrot.lane.b32.xlu0 %v4015_v45, %s1932_s10  ;;  %v1601_v17 = vmax.f32 %v833_v46, %v1473_v6  ;;  %v835_v10 = vmax.f32 %v1862_v23, %v5010_v35  ;;  %v1863_v6 = vld [vmem:[%s4761_s0 + $0x3a0] sm:$0xff]  ;;  %v5011_v46 = vld [vmem:[#allocation35_spill] sm:$0xff] }
 0x1e8   :  { %v1600_v34 = vmax.f32 %v832_v52, %v1472_v19  ;;  %v1151_v61 = vpop.permute.xlu1 %1150  ;;  %v834_v52 = vmax.f32 %v1863_v6, %v5011_v46 }
 0x1e9   :  { %v1149_v15 = vpop.permute.xlu0 %1148  ;;  %1730 = vst.msk [vmem:[%s4762_s1 + $0x1c8] sm:$0xff] %vm1672_vm0, %v1601_v17  ;;  %v1475_v19 = vmax.f32 %v3126_v13, %v1151_v61  ;;  %v4074_v17 = vld [vmem:[%s4761_s0 + $0x778] sm:$0xff]  ;;  %v1864_v61 = vld [vmem:[%s4761_s0 + $0x3d0] sm:$0xff] }
 0x1ea   :  { %1729 = vst.msk [vmem:[%s4762_s1 + $0x1c0] sm:$0xff] %vm1672_vm0, %v1600_v34  ;;  %v1474_v23 = vmax.f32 %v3131_v54, %v1149_v15  ;;  %1266 = vrot.lane.b32.xlu1 %v4042_v28, %s1932_s10  ;;  %v4079_v34 = vld [vmem:[%s4761_s0 + $0x768] sm:$0xff]  ;;  %v5012_v15 = vld [vmem:[#allocation36_spill] sm:$0xff] }
 0x1eb   :  { %1264 = vrot.lane.b32.xlu0 %v4047_v42, %s1932_s10  ;;  %v1603_v35 = vmax.f32 %v835_v10, %v1475_v19  ;;  %v837_v46 = vmax.f32 %v1864_v61, %v5012_v15  ;;  %v1865_v10 = vld [vmem:[%s4761_s0 + $0x3c0] sm:$0xff] }
 0x1ec   :  { %v1602_v6 = vmax.f32 %v834_v52, %v1474_v23  ;;  %v1155_v13 = vpop.permute.xlu1 %1154  ;;  %v5013_v52 = vld [vmem:[#allocation37_spill] sm:$0xff] }
 0x1ed   :  { %v1153_v54 = vpop.permute.xlu0 %1152  ;;  %v836_v19 = vmax.f32 %v1865_v10, %v5013_v52  ;;  %1732 = vst.msk [vmem:[%s4762_s1 + $0x1d8] sm:$0xff] %vm1672_vm0, %v1603_v35  ;;  %v1477_v23 = vmax.f32 %v3146_v1, %v1155_v13  ;;  %v4106_v35 = vld [vmem:[%s4761_s0 + $0x798] sm:$0xff]  ;;  %v1866_v13 = vld [vmem:[%s4761_s0 + $0x3f0] sm:$0xff] }
 0x1ee   :  { %1731 = vst.msk [vmem:[%s4762_s1 + $0x1d0] sm:$0xff] %vm1672_vm0, %v1602_v6  ;;  %v1476_v61 = vmax.f32 %v3151_v3, %v1153_v54  ;;  %1270 = vrot.lane.b32.xlu1 %v4074_v17, %s1932_s10  ;;  %v4111_v6 = vld [vmem:[%s4761_s0 + $0x788] sm:$0xff]  ;;  %v5014_v54 = vld [vmem:[#allocation38_spill] sm:$0xff] }
 0x1ef   :  { %1268 = vrot.lane.b32.xlu0 %v4079_v34, %s1932_s10  ;;  %v1605_v15 = vmax.f32 %v837_v46, %v1477_v23  ;;  %v839_v52 = vmax.f32 %v1866_v13, %v5014_v54  ;;  %v1867_v46 = vld [vmem:[%s4761_s0 + $0x3e0] sm:$0xff] }
 0x1f0   :  { %v1604_v10 = vmax.f32 %v836_v19, %v1476_v61  ;;  %v1159_v1 = vpop.permute.xlu1 %1158  ;;  %v5015_v19 = vld [vmem:[#allocation39_spill] sm:$0xff] }
 0x1f1   :  { %v1157_v3 = vpop.permute.xlu0 %1156  ;;  %v838_v23 = vmax.f32 %v1867_v46, %v5015_v19  ;;  %1734 = vst.msk [vmem:[%s4762_s1 + $0x1e8] sm:$0xff] %vm1672_vm0, %v1605_v15  ;;  %v1479_v61 = vmax.f32 %v3178_v51, %v1159_v1  ;;  %v4138_v15 = vld [vmem:[%s4761_s0 + $0x7b8] sm:$0xff]  ;;  %v1868_v1 = vld [vmem:[%s4761_s0 + $0x410] sm:$0xff] }
 0x1f2   :  { %1733 = vst.msk [vmem:[%s4762_s1 + $0x1e0] sm:$0xff] %vm1672_vm0, %v1604_v10  ;;  %v1478_v13 = vmax.f32 %v3183_v50, %v1157_v3  ;;  %1274 = vrot.lane.b32.xlu1 %v4106_v35, %s1932_s10  ;;  %v4143_v10 = vld [vmem:[%s4761_s0 + $0x7a8] sm:$0xff]  ;;  %v5016_v3 = vld [vmem:[#allocation40_spill] sm:$0xff] }
 0x1f3   :  { %1272 = vrot.lane.b32.xlu0 %v4111_v6, %s1932_s10  ;;  %v1607_v54 = vmax.f32 %v839_v52, %v1479_v61  ;;  %v841_v19 = vmax.f32 %v1868_v1, %v5016_v3  ;;  %v1869_v52 = vld [vmem:[%s4761_s0 + $0x400] sm:$0xff] }
 0x1f4   :  { %v1606_v46 = vmax.f32 %v838_v23, %v1478_v13  ;;  %v1163_v51 = vpop.permute.xlu1 %1162  ;;  %v5017_v23 = vld [vmem:[#allocation41_spill] sm:$0xff] }
 0x1f5   :  { %v1161_v50 = vpop.permute.xlu0 %1160  ;;  %v840_v61 = vmax.f32 %v1869_v52, %v5017_v23  ;;  %1736 = vst.msk [vmem:[%s4762_s1 + $0x1f8] sm:$0xff] %vm1672_vm0, %v1607_v54  ;;  %v1481_v13 = vmax.f32 %v3210_v58, %v1163_v51  ;;  %v4170_v54 = vld [vmem:[%s4761_s0 + $0x7d8] sm:$0xff]  ;;  %v1870_v51 = vld [vmem:[%s4761_s0 + $0x430] sm:$0xff] }
 0x1f6   :  { %1735 = vst.msk [vmem:[%s4762_s1 + $0x1f0] sm:$0xff] %vm1672_vm0, %v1606_v46  ;;  %v1480_v1 = vmax.f32 %v3215_v4, %v1161_v50  ;;  %1278 = vrot.lane.b32.xlu1 %v4138_v15, %s1932_s10  ;;  %5018 = vst [vmem:[#allocation77_spill] sm:$0xff] %v4170_v54  ;;  %v4175_v46 = vld [vmem:[%s4761_s0 + $0x7c8] sm:$0xff]  ;;  %v5020_v50 = vld [vmem:[#allocation42_spill] sm:$0xff] }
 0x1f7   :  { %1276 = vrot.lane.b32.xlu0 %v4143_v10, %s1932_s10  ;;  %v1609_v3 = vmax.f32 %v841_v19, %v1481_v13  ;;  %5019 = vst [vmem:[#allocation6_spill] sm:$0xff] %v4175_v46  ;;  %v843_v23 = vmax.f32 %v1870_v51, %v5020_v50  ;;  %v1871_v19 = vld [vmem:[%s4761_s0 + $0x420] sm:$0xff] }
 0x1f8   :  { %v1608_v52 = vmax.f32 %v840_v61, %v1480_v1  ;;  %v1167_v58 = vpop.permute.xlu1 %1166  ;;  %v5021_v61 = vld [vmem:[#allocation43_spill] sm:$0xff] }
 0x1f9   :  { %v1165_v4 = vpop.permute.xlu0 %1164  ;;  %v842_v13 = vmax.f32 %v1871_v19, %v5021_v61  ;;  %1738 = vst.msk [vmem:[%s4762_s1 + $0x208] sm:$0xff] %vm1672_vm0, %v1609_v3  ;;  %v1483_v1 = vmax.f32 %v3242_v24, %v1167_v58  ;;  %v4202_v3 = vld [vmem:[%s4761_s0 + $0x7f8] sm:$0xff]  ;;  %v1872_v58 = vld [vmem:[%s4761_s0 + $0x450] sm:$0xff] }
 0x1fa   :  { %1737 = vst.msk [vmem:[%s4762_s1 + $0x200] sm:$0xff] %vm1672_vm0, %v1608_v52  ;;  %v1482_v51 = vmax.f32 %v3247_v25, %v1165_v4  ;;  %1282 = vrot.lane.b32.xlu1 %v4170_v54, %s1932_s10  ;;  %v4207_v52 = vld [vmem:[%s4761_s0 + $0x7e8] sm:$0xff]  ;;  %v5023_v4 = vld [vmem:[#allocation44_spill] sm:$0xff]  ;;  %v5025_v54 = vld [vmem:[#allocation46_spill] sm:$0xff] }
 0x1fb   :  { %1280 = vrot.lane.b32.xlu0 %v4175_v46, %s1932_s10  ;;  %v1611_v50 = vmax.f32 %v843_v23, %v1483_v1  ;;  %5022 = vst [vmem:[#allocation7_spill] sm:$0xff] %v4207_v52  ;;  %v845_v61 = vmax.f32 %v1872_v58, %v5023_v4  ;;  %v1873_v23 = vld [vmem:[%s4761_s0 + $0x440] sm:$0xff] }
 0x1fc   :  { %v1610_v19 = vmax.f32 %v842_v13, %v1482_v51  ;;  %v1171_v24 = vpop.permute.xlu1 %1170  ;;  %v5024_v13 = vld [vmem:[#allocation45_spill] sm:$0xff] }
 0x1fd   :  { %v1169_v25 = vpop.permute.xlu0 %1168  ;;  %v844_v1 = vmax.f32 %v1873_v23, %v5024_v13  ;;  %1740 = vst.msk [vmem:[%s4762_s1 + $0x218] sm:$0xff] %vm1672_vm0, %v1611_v50  ;;  %v1485_v51 = vmax.f32 %v3274_v9, %v1171_v24  ;;  %v1874_v50 = vld [vmem:[%s4761_s0 + $0x470] sm:$0xff]  ;;  %v1875_v9 = vld [vmem:[%s4761_s0 + $0x460] sm:$0xff] }
 0x1fe   :  { %1739 = vst.msk [vmem:[%s4762_s1 + $0x210] sm:$0xff] %vm1672_vm0, %v1610_v19  ;;  %v1484_v58 = vmax.f32 %v3279_v41, %v1169_v25  ;;  %1286 = vrot.lane.b32.xlu1 %v4202_v3, %s1932_s10  ;;  %v847_v19 = vmax.f32 %v1874_v50, %v5025_v54  ;;  %v5026_v41 = vld [vmem:[#allocation47_spill] sm:$0xff]  ;;  %v1876_v50 = vld [vmem:[%s4761_s0 + $0x490] sm:$0xff] }
 0x1ff   :  { %1284 = vrot.lane.b32.xlu0 %v4207_v52, %s1932_s10  ;;  %v1613_v4 = vmax.f32 %v845_v61, %v1485_v51  ;;  %v846_v24 = vmax.f32 %v1875_v9, %v5026_v41  ;;  %v5027_v9 = vld [vmem:[#allocation48_spill] sm:$0xff]  ;;  %v5028_v52 = vld [vmem:[#allocation49_spill] sm:$0xff] }
 0x200   :  { %v1612_v23 = vmax.f32 %v844_v1, %v1484_v58  ;;  %v1175_v13 = vpop.permute.xlu1 %1174  ;;  %v849_v41 = vmax.f32 %v1876_v50, %v5027_v9  ;;  %v5030_v50 = vld [vmem:[#allocation51_spill] sm:$0xff] }
 0x201   :  { %v1173_v46 = vpop.permute.xlu0 %1172  ;;  %1742 = vst.msk [vmem:[%s4762_s1 + $0x228] sm:$0xff] %vm1672_vm0, %v1613_v4  ;;  %v1487_v25 = vmax.f32 %v3306_v11, %v1175_v13  ;;  %v1877_v4 = vld [vmem:[%s4761_s0 + $0x480] sm:$0xff] }
 0x202   :  { %1741 = vst.msk [vmem:[%s4762_s1 + $0x220] sm:$0xff] %vm1672_vm0, %v1612_v23  ;;  %v1486_v54 = vmax.f32 %v3311_v57, %v1173_v46  ;;  %v848_v23 = vmax.f32 %v1877_v4, %v5028_v52  ;;  %v1878_v52 = vld [vmem:[%s4761_s0 + $0x4b0] sm:$0xff] }
 0x203   :  { %v1615_v61 = vmax.f32 %v847_v19, %v1487_v25  ;;  %v5029_v25 = vld [vmem:[#allocation50_spill] sm:$0xff]  ;;  %v1880_v4 = vld [vmem:[%s4761_s0 + $0x4d0] sm:$0xff] }
 0x204   :  { %v1614_v1 = vmax.f32 %v846_v24, %v1486_v54  ;;  %v1179_v51 = vpop.permute.xlu1 %1178  ;;  %v851_v54 = vmax.f32 %v1878_v52, %v5029_v25 }
 0x205   :  { %v1177_v58 = vpop.permute.xlu0 %1176  ;;  %1744 = vst.msk [vmem:[%s4762_s1 + $0x238] sm:$0xff] %vm1672_vm0, %v1615_v61  ;;  %v1489_v11 = vmax.f32 %v3338_v7, %v1179_v51  ;;  %v1879_v61 = vld [vmem:[%s4761_s0 + $0x4a0] sm:$0xff] }
 0x206   :  { %1743 = vst.msk [vmem:[%s4762_s1 + $0x230] sm:$0xff] %vm1672_vm0, %v1614_v1  ;;  %v1488_v57 = vmax.f32 %v3343_v14, %v1177_v58  ;;  %v850_v1 = vmax.f32 %v1879_v61, %v5030_v50  ;;  %v5033_v61 = vld [vmem:[#allocation54_spill] sm:$0xff] }
 0x207   :  { %v1617_v46 = vmax.f32 %v849_v41, %v1489_v11 }
 0x208   :  { %v1616_v13 = vmax.f32 %v848_v23, %v1488_v57  ;;  %v1183_v19 = vpop.permute.xlu1 %1182  ;;  %v5031_v23 = vld [vmem:[#allocation52_spill] sm:$0xff]  ;;  %v1881_v57 = vld [vmem:[%s4761_s0 + $0x4c0] sm:$0xff] }
 0x209   :  { %v1181_v24 = vpop.permute.xlu0 %1180  ;;  %1746 = vst.msk [vmem:[%s4762_s1 + $0x248] sm:$0xff] %vm1672_vm0, %v1617_v46  ;;  %v1491_v7 = vmax.f32 %v3370_v0, %v1183_v19  ;;  %v853_v11 = vmax.f32 %v1880_v4, %v5031_v23  ;;  %v5032_v46 = vld [vmem:[#allocation53_spill] sm:$0xff]  ;;  %v1884_v4 = vld [vmem:[%s4761_s0 + $0x510] sm:$0xff] }
 0x20a   :  { %1745 = vst.msk [vmem:[%s4762_s1 + $0x240] sm:$0xff] %vm1672_vm0, %v1616_v13  ;;  %v1490_v14 = vmax.f32 %v3375_v21, %v1181_v24  ;;  %v852_v13 = vmax.f32 %v1881_v57, %v5032_v46  ;;  %v5035_v23 = vld [vmem:[#allocation56_spill] sm:$0xff]  ;;  %v1885_v57 = vld [vmem:[%s4761_s0 + $0x500] sm:$0xff]  ;;  %v5036_v46 = vld [vmem:[#allocation57_spill] sm:$0xff] }
 0x20b   :  { %v1619_v51 = vmax.f32 %v851_v54, %v1491_v7  ;;  %v1882_v54 = vld [vmem:[%s4761_s0 + $0x4f0] sm:$0xff]  ;;  %v5034_v7 = vld [vmem:[#allocation55_spill] sm:$0xff] }
 0x20c   :  { %v1618_v58 = vmax.f32 %v850_v1, %v1490_v14  ;;  %v1187_v9 = vpop.permute.xlu1 %1186  ;;  %v855_v50 = vmax.f32 %v1882_v54, %v5033_v61  ;;  %v1883_v1 = vld [vmem:[%s4761_s0 + $0x4e0] sm:$0xff] }
 0x20d   :  { %v1185_v41 = vpop.permute.xlu0 %1184  ;;  %1748 = vst.msk [vmem:[%s4762_s1 + $0x258] sm:$0xff] %vm1672_vm0, %v1619_v51  ;;  %v1493_v0 = vmax.f32 %v3402_v8, %v1187_v9  ;;  %v854_v14 = vmax.f32 %v1883_v1, %v5034_v7  ;;  %v1887_v61 = vld [vmem:[%s4761_s0 + $0x520] sm:$0xff] }
 0x20e   :  { %1747 = vst.msk [vmem:[%s4762_s1 + $0x250] sm:$0xff] %vm1672_vm0, %v1618_v58  ;;  %v1492_v21 = vmax.f32 %v3407_v48, %v1185_v41 }
 0x20f   :  { %v1621_v19 = vmax.f32 %v853_v11, %v1493_v0  ;;  %v857_v11 = vmax.f32 %v1884_v4, %v5035_v23  ;;  %v5040_v4 = vld [vmem:[#allocation61_spill] sm:$0xff] }
 0x210   :  { %v1620_v24 = vmax.f32 %v852_v13, %v1492_v21  ;;  %v1191_v52 = vpop.permute.xlu1 %1190  ;;  %v856_v13 = vmax.f32 %v1885_v57, %v5036_v46 }
 0x211   :  { %v1189_v25 = vpop.permute.xlu0 %1188  ;;  %1750 = vst.msk [vmem:[%s4762_s1 + $0x268] sm:$0xff] %vm1672_vm0, %v1621_v19  ;;  %v1495_v8 = vmax.f32 %v3434_v33, %v1191_v52  ;;  %v1886_v52 = vld [vmem:[%s4761_s0 + $0x530] sm:$0xff] }
 0x212   :  { %1749 = vst.msk [vmem:[%s4762_s1 + $0x260] sm:$0xff] %vm1672_vm0, %v1620_v24  ;;  %v1494_v48 = vmax.f32 %v3439_v62, %v1189_v25  ;;  %v5037_v25 = vld [vmem:[#allocation58_spill] sm:$0xff] }
 0x213   :  { %v1623_v51 = vmax.f32 %v855_v50, %v1495_v8  ;;  %v859_v54 = vmax.f32 %v1886_v52, %v5037_v25  ;;  %v5038_v50 = vld [vmem:[#allocation59_spill] sm:$0xff] }
 0x214   :  { %v1622_v58 = vmax.f32 %v854_v14, %v1494_v48  ;;  %v1195_v9 = vpop.permute.xlu1 %1194  ;;  %v858_v1 = vmax.f32 %v1887_v61, %v5038_v50  ;;  %v1892_v50 = vld [vmem:[%s4761_s0 + $0x590] sm:$0xff] }
 0x215   :  { %v1193_v41 = vpop.permute.xlu0 %1192  ;;  %1752 = vst.msk [vmem:[%s4762_s1 + $0x278] sm:$0xff] %vm1672_vm0, %v1623_v51  ;;  %v1497_v33 = vmax.f32 %v3466_v27, %v1195_v9  ;;  %v1888_v51 = vld [vmem:[%s4761_s0 + $0x550] sm:$0xff] }
 0x216   :  { %1751 = vst.msk [vmem:[%s4762_s1 + $0x270] sm:$0xff] %vm1672_vm0, %v1622_v58  ;;  %v1496_v62 = vmax.f32 %v3471_v60, %v1193_v41  ;;  %v5039_v58 = vld [vmem:[#allocation60_spill] sm:$0xff]  ;;  %v1889_v41 = vld [vmem:[%s4761_s0 + $0x540] sm:$0xff] }
 0x217   :  { %v1625_v0 = vmax.f32 %v857_v11, %v1497_v33  ;;  %v861_v9 = vmax.f32 %v1888_v51, %v5039_v58  ;;  %v860_v23 = vmax.f32 %v1889_v41, %v5040_v4  ;;  %v1890_v33 = vld [vmem:[%s4761_s0 + $0x570] sm:$0xff]  ;;  %v5045_v41 = vld [vmem:[#allocation66_spill] sm:$0xff] }
 0x218   :  { %v1624_v21 = vmax.f32 %v856_v13, %v1496_v62  ;;  %v1199_v19 = vpop.permute.xlu1 %1198  ;;  %v5041_v62 = vld [vmem:[#allocation62_spill] sm:$0xff] }
 0x219   :  { %v1197_v24 = vpop.permute.xlu0 %1196  ;;  %1754 = vst.msk [vmem:[%s4762_s1 + $0x288] sm:$0xff] %vm1672_vm0, %v1625_v0  ;;  %v1499_v27 = vmax.f32 %v3498_v49, %v1199_v19  ;;  %v863_v0 = vmax.f32 %v1890_v33, %v5041_v62  ;;  %v5042_v19 = vld [vmem:[#allocation63_spill] sm:$0xff]  ;;  %v1896_v33 = vld [vmem:[%s4761_s0 + $0x5d0] sm:$0xff] }
 0x21a   :  { %1753 = vst.msk [vmem:[%s4762_s1 + $0x280] sm:$0xff] %vm1672_vm0, %v1624_v21  ;;  %v1498_v60 = vmax.f32 %v3503_v30, %v1197_v24  ;;  %v1891_v21 = vld [vmem:[%s4761_s0 + $0x560] sm:$0xff]  ;;  %v5047_v62 = vld [vmem:[#allocation68_spill] sm:$0xff] }
 0x21b   :  { %v1627_v7 = vmax.f32 %v859_v54, %v1499_v27  ;;  %v862_v24 = vmax.f32 %v1891_v21, %v5042_v19  ;;  %v1897_v21 = vld [vmem:[%s4761_s0 + $0x5c0] sm:$0xff]  ;;  %v5048_v19 = vld [vmem:[#allocation69_spill] sm:$0xff] }
 0x21c   :  { %v1626_v14 = vmax.f32 %v858_v1, %v1498_v60  ;;  %v1203_v8 = vpop.permute.xlu1 %1202  ;;  %v5043_v1 = vld [vmem:[#allocation64_spill] sm:$0xff]  ;;  %v1893_v60 = vld [vmem:[%s4761_s0 + $0x580] sm:$0xff] }
 0x21d   :  { %v1201_v48 = vpop.permute.xlu0 %1200  ;;  %1756 = vst.msk [vmem:[%s4762_s1 + $0x298] sm:$0xff] %vm1672_vm0, %v1627_v7  ;;  %v1501_v49 = vmax.f32 %v3530_v55, %v1203_v8  ;;  %v865_v27 = vmax.f32 %v1892_v50, %v5043_v1  ;;  %v5044_v7 = vld [vmem:[#allocation65_spill] sm:$0xff]  ;;  %v1899_v1 = vld [vmem:[%s4761_s0 + $0x5e0] sm:$0xff] }
 0x21e   :  { %1755 = vst.msk [vmem:[%s4762_s1 + $0x290] sm:$0xff] %vm1672_vm0, %v1626_v14  ;;  %v1500_v30 = vmax.f32 %v3535_v22, %v1201_v48  ;;  %v864_v14 = vmax.f32 %v1893_v60, %v5044_v7 }
 0x21f   :  { %v1629_v11 = vmax.f32 %v861_v9, %v1501_v49  ;;  %v1894_v9 = vld [vmem:[%s4761_s0 + $0x5b0] sm:$0xff]  ;;  %v5046_v49 = vld [vmem:[#allocation67_spill] sm:$0xff] }
 0x220   :  { %v1628_v57 = vmax.f32 %v860_v23, %v1500_v30  ;;  %v1207_v46 = vpop.permute.xlu1 %1206  ;;  %v867_v4 = vmax.f32 %v1894_v9, %v5045_v41  ;;  %v1895_v23 = vld [vmem:[%s4761_s0 + $0x5a0] sm:$0xff]  ;;  %v5052_v9 = vld [vmem:[#allocation75_spill] sm:$0xff] }
 0x221   :  { %v1205_v13 = vpop.permute.xlu0 %1204  ;;  %1758 = vst.msk [vmem:[%s4762_s1 + $0x2a8] sm:$0xff] %vm1672_vm0, %v1629_v11  ;;  %v1503_v55 = vmax.f32 %v3562_v39, %v1207_v46  ;;  %v866_v30 = vmax.f32 %v1895_v23, %v5046_v49 }
 0x222   :  { %1757 = vst.msk [vmem:[%s4762_s1 + $0x2a0] sm:$0xff] %vm1672_vm0, %v1628_v57  ;;  %v1502_v22 = vmax.f32 %v3567_v26, %v1205_v13 }
 0x223   :  { %v1631_v52 = vmax.f32 %v863_v0, %v1503_v55  ;;  %v869_v0 = vmax.f32 %v1896_v33, %v5047_v62 }
 0x224   :  { %v1630_v25 = vmax.f32 %v862_v24, %v1502_v22  ;;  %v1211_v54 = vpop.permute.xlu1 %1210  ;;  %v868_v24 = vmax.f32 %v1897_v21, %v5048_v19  ;;  %v1904_v19 = vld [vmem:[%s4761_s0 + $0x650] sm:$0xff] }
 0x225   :  { %v1209_v61 = vpop.permute.xlu0 %1208  ;;  %1760 = vst.msk [vmem:[%s4762_s1 + $0x2b8] sm:$0xff] %vm1672_vm0, %v1631_v52  ;;  %v1505_v39 = vmax.f32 %v3594_v63, %v1211_v54  ;;  %v1898_v54 = vld [vmem:[%s4761_s0 + $0x5f0] sm:$0xff] }
 0x226   :  { %1759 = vst.msk [vmem:[%s4762_s1 + $0x2b0] sm:$0xff] %vm1672_vm0, %v1630_v25  ;;  %v1504_v26 = vmax.f32 %v3599_v44, %v1209_v61  ;;  %v5049_v61 = vld [vmem:[#allocation70_spill] sm:$0xff] }
 0x227   :  { %v1633_v8 = vmax.f32 %v865_v27, %v1505_v39  ;;  %v871_v50 = vmax.f32 %v1898_v54, %v5049_v61  ;;  %v5050_v27 = vld [vmem:[#allocation71_spill] sm:$0xff] }
 0x228   :  { %v1632_v48 = vmax.f32 %v864_v14, %v1504_v26  ;;  %v1215_v51 = vpop.permute.xlu1 %1214  ;;  %v870_v60 = vmax.f32 %v1899_v1, %v5050_v27  ;;  %v5057_v1 = vld [vmem:[#allocation86_spill] sm:$0xff] }
 0x229   :  { %v1213_v58 = vpop.permute.xlu0 %1212  ;;  %1762 = vst.msk [vmem:[%s4762_s1 + $0x2c8] sm:$0xff] %vm1672_vm0, %v1633_v8  ;;  %v1507_v63 = vmax.f32 %v3626_v40, %v1215_v51  ;;  %v1900_v8 = vld [vmem:[%s4761_s0 + $0x610] sm:$0xff] }
 0x22a   :  { %1761 = vst.msk [vmem:[%s4762_s1 + $0x2c0] sm:$0xff] %vm1672_vm0, %v1632_v48  ;;  %v1506_v44 = vmax.f32 %v3631_v32, %v1213_v58  ;;  %v5051_v48 = vld [vmem:[#allocation74_spill] sm:$0xff] }
 0x22b   :  { %v1635_v11 = vmax.f32 %v867_v4, %v1507_v63  ;;  %v873_v51 = vmax.f32 %v1900_v8, %v5051_v48  ;;  %v1901_v58 = vld [vmem:[%s4761_s0 + $0x600] sm:$0xff]  ;;  %v1902_v63 = vld [vmem:[%s4761_s0 + $0x630] sm:$0xff] }
 0x22c   :  { %v1634_v57 = vmax.f32 %v866_v30, %v1506_v44  ;;  %v1219_v46 = vpop.permute.xlu1 %1218  ;;  %v872_v41 = vmax.f32 %v1901_v58, %v5052_v9  ;;  %v5053_v44 = vld [vmem:[#allocation78_spill] sm:$0xff]  ;;  %v1908_v8 = vld [vmem:[%s4761_s0 + $0x690] sm:$0xff]  ;;  %v5060_v9 = vld [vmem:[#allocation91_spill] sm:$0xff] }
 0x22d   :  { %v1217_v13 = vpop.permute.xlu0 %1216  ;;  %1764 = vst.msk [vmem:[%s4762_s1 + $0x2d8] sm:$0xff] %vm1672_vm0, %v1635_v11  ;;  %v1509_v40 = vmax.f32 %v3658_v31, %v1219_v46  ;;  %v875_v11 = vmax.f32 %v1902_v63, %v5053_v44  ;;  %v5054_v46 = vld [vmem:[#allocation79_spill] sm:$0xff]  ;;  %v5059_v48 = vld [vmem:[#allocation90_spill] sm:$0xff] }
 0x22e   :  { %1763 = vst.msk [vmem:[%s4762_s1 + $0x2d0] sm:$0xff] %vm1672_vm0, %v1634_v57  ;;  %v1508_v32 = vmax.f32 %v3663_v16, %v1217_v13  ;;  %v1903_v57 = vld [vmem:[%s4761_s0 + $0x620] sm:$0xff] }
 0x22f   :  { %v1637_v55 = vmax.f32 %v869_v0, %v1509_v40  ;;  %v874_v13 = vmax.f32 %v1903_v57, %v5054_v46  ;;  %v1909_v58 = vld [vmem:[%s4761_s0 + $0x680] sm:$0xff] }
 0x230   :  { %v1636_v22 = vmax.f32 %v868_v24, %v1508_v32  ;;  %v1223_v52 = vpop.permute.xlu1 %1222  ;;  %v5055_v24 = vld [vmem:[#allocation82_spill] sm:$0xff] }
 0x231   :  { %v1221_v25 = vpop.permute.xlu0 %1220  ;;  %1766 = vst.msk [vmem:[%s4762_s1 + $0x2e8] sm:$0xff] %vm1672_vm0, %v1637_v55  ;;  %v1511_v31 = vmax.f32 %v3690_v5, %v1223_v52  ;;  %v877_v40 = vmax.f32 %v1904_v19, %v5055_v24  ;;  %v1905_v32 = vld [vmem:[%s4761_s0 + $0x640] sm:$0xff]  ;;  %v5056_v55 = vld [vmem:[#allocation83_spill] sm:$0xff] }
 0x232   :  { %1765 = vst.msk [vmem:[%s4762_s1 + $0x2e0] sm:$0xff] %vm1672_vm0, %v1636_v22  ;;  %v1510_v16 = vmax.f32 %v3695_v38, %v1221_v25  ;;  %v876_v22 = vmax.f32 %v1905_v32, %v5056_v55  ;;  %v1911_v44 = vld [vmem:[%s4761_s0 + $0x6a0] sm:$0xff]  ;;  %v5065_v24 = vld [vmem:[#allocation99_spill] sm:$0xff]  ;;  %v5067_v55 = vld [vmem:[#allocation72_spill] sm:$0xff] }
 0x233   :  { %v1639_v7 = vmax.f32 %v871_v50, %v1511_v31  ;;  %v1906_v50 = vld [vmem:[%s4761_s0 + $0x670] sm:$0xff]  ;;  %v5058_v31 = vld [vmem:[#allocation87_spill] sm:$0xff]  ;;  %v1913_v19 = vld [vmem:[%s4761_s0 + $0x6c0] sm:$0xff] }
 0x234   :  { %v1638_v14 = vmax.f32 %v870_v60, %v1510_v16  ;;  %v1227_v39 = vpop.permute.xlu1 %1226  ;;  %v879_v27 = vmax.f32 %v1906_v50, %v5057_v1  ;;  %v1907_v60 = vld [vmem:[%s4761_s0 + $0x660] sm:$0xff] }
 0x235   :  { %v1225_v26 = vpop.permute.xlu0 %1224  ;;  %1768 = vst.msk [vmem:[%s4762_s1 + $0x2f8] sm:$0xff] %vm1672_vm0, %v1639_v7  ;;  %v1513_v5 = vmax.f32 %v3722_v47, %v1227_v39  ;;  %v878_v16 = vmax.f32 %v1907_v60, %v5058_v31  ;;  %v1915_v1 = vld [vmem:[%s4761_s0 + $0x6e0] sm:$0xff]  ;;  %v5070_v31 = vld [vmem:[#allocation73_spill] sm:$0xff] }
 0x236   :  { %1767 = vst.msk [vmem:[%s4762_s1 + $0x2f0] sm:$0xff] %vm1672_vm0, %v1638_v14  ;;  %v1512_v38 = vmax.f32 %v3727_v2, %v1225_v26 }
 0x237   :  { %v1641_v4 = vmax.f32 %v873_v51, %v1513_v5  ;;  %v881_v51 = vmax.f32 %v1908_v8, %v5059_v48  ;;  %v1916_v8 = vld [vmem:[%s4761_s0 + $0x710] sm:$0xff]  ;;  %v5072_v48 = vld [vmem:[#allocation106_spill] sm:$0xff] }
 0x238   :  { %v1640_v23 = vmax.f32 %v872_v41, %v1512_v38  ;;  %v1231_v49 = vpop.permute.xlu1 %1230  ;;  %v880_v41 = vmax.f32 %v1909_v58, %v5060_v9  ;;  %v1917_v58 = vld [vmem:[%s4761_s0 + $0x700] sm:$0xff]  ;;  %v5073_v9 = vld [vmem:[#allocation107_spill] sm:$0xff] }
 0x239   :  { %v1229_v30 = vpop.permute.xlu0 %1228  ;;  %1770 = vst.msk [vmem:[%s4762_s1 + $0x308] sm:$0xff] %vm1672_vm0, %v1641_v4  ;;  %v1515_v47 = vmax.f32 %v3754_v56, %v1231_v49  ;;  %v1910_v49 = vld [vmem:[%s4761_s0 + $0x6b0] sm:$0xff] }
 0x23a   :  { %1769 = vst.msk [vmem:[%s4762_s1 + $0x300] sm:$0xff] %vm1672_vm0, %v1640_v23  ;;  %v1514_v2 = vmax.f32 %v3759_v18, %v1229_v30  ;;  %v5061_v30 = vld [vmem:[#allocation94_spill] sm:$0xff] }
 0x23b   :  { %v1643_v33 = vmax.f32 %v875_v11, %v1515_v47  ;;  %v883_v63 = vmax.f32 %v1910_v49, %v5061_v30  ;;  %v5062_v11 = vld [vmem:[#allocation95_spill] sm:$0xff] }
 0x23c   :  { %v1642_v62 = vmax.f32 %v874_v13, %v1514_v2  ;;  %v1235_v0 = vpop.permute.xlu1 %1234  ;;  %v882_v57 = vmax.f32 %v1911_v44, %v5062_v11  ;;  %v5076_v44 = vld [vmem:[#allocation110_spill] sm:$0xff] }
 0x23d   :  { %v1233_v21 = vpop.permute.xlu0 %1232  ;;  %1772 = vst.msk [vmem:[%s4762_s1 + $0x318] sm:$0xff] %vm1672_vm0, %v1643_v33  ;;  %v1517_v56 = vmax.f32 %v3786_v53, %v1235_v0  ;;  %v5064_v0 = vld [vmem:[#allocation98_spill] sm:$0xff] }
 0x23e   :  { %1771 = vst.msk [vmem:[%s4762_s1 + $0x310] sm:$0xff] %vm1672_vm0, %v1642_v62  ;;  %v1516_v18 = vmax.f32 %v3791_v36, %v1233_v21  ;;  %v1912_v62 = vld [vmem:[%s4761_s0 + $0x6d0] sm:$0xff] }
 0x23f   :  { %v1645_v52 = vmax.f32 %v877_v40, %v1517_v56  ;;  %v885_v21 = vmax.f32 %v1912_v62, %v5064_v0  ;;  %v884_v40 = vmax.f32 %v1913_v19, %v5065_v24  ;;  %v1920_v0 = vld [vmem:[%s4761_s0 + $0x750] sm:$0xff]  ;;  %v1921_v24 = vld [vmem:[%s4761_s0 + $0x740] sm:$0xff] }
 0x240   :  { %v1644_v25 = vmax.f32 %v876_v22, %v1516_v18  ;;  %v1239_v54 = vpop.permute.xlu1 %1238 }
 0x241   :  { %v1237_v61 = vpop.permute.xlu0 %1236  ;;  %1774 = vst.msk [vmem:[%s4762_s1 + $0x328] sm:$0xff] %vm1672_vm0, %v1645_v52  ;;  %v1519_v53 = vmax.f32 %v3818_v29, %v1239_v54  ;;  %v1914_v54 = vld [vmem:[%s4761_s0 + $0x6f0] sm:$0xff] }
 0x242   :  { %1773 = vst.msk [vmem:[%s4762_s1 + $0x320] sm:$0xff] %vm1672_vm0, %v1644_v25  ;;  %v1518_v36 = vmax.f32 %v3823_v12, %v1237_v61  ;;  %v5068_v61 = vld [vmem:[#allocation102_spill] sm:$0xff] }
 0x243   :  { %v1647_v7 = vmax.f32 %v879_v27, %v1519_v53  ;;  %v887_v50 = vmax.f32 %v1914_v54, %v5068_v61  ;;  %v5069_v27 = vld [vmem:[#allocation103_spill] sm:$0xff]  ;;  %v5071_v53 = vld [vmem:[#allocation4_spill] sm:$0xff]  ;;  %v1923_v54 = vld [vmem:[%s4761_s0 + $0x760] sm:$0xff] }
 0x244   :  { %v1646_v14 = vmax.f32 %v878_v16, %v1518_v36  ;;  %v1243_v39 = vpop.permute.xlu1 %1242  ;;  %v886_v60 = vmax.f32 %v1915_v1, %v5069_v27  ;;  %v5081_v61 = vld [vmem:[#allocation119_spill] sm:$0xff] }
 0x245   :  { %v1241_v26 = vpop.permute.xlu0 %1240  ;;  %1776 = vst.msk [vmem:[%s4762_s1 + $0x338] sm:$0xff] %vm1672_vm0, %v1647_v7  ;;  %v1521_v29 = vmax.f32 %v3850_v37, %v1243_v39 }
 0x246   :  { %1775 = vst.msk [vmem:[%s4762_s1 + $0x330] sm:$0xff] %vm1672_vm0, %v1646_v14  ;;  %v1520_v12 = vmax.f32 %v3855_v20, %v1241_v26  ;;  %v5063_v20 = vld [vmem:[#allocation2_spill] sm:$0xff] }
 0x247   :  { %v1649_v5 = vmax.f32 %v881_v51, %v1521_v29  ;;  %v889_v51 = vmax.f32 %v1916_v8, %v5072_v48  ;;  %v5074_v29 = vld [vmem:[#allocation5_spill] sm:$0xff] }
 0x248   :  { %v1648_v38 = vmax.f32 %v880_v41, %v1520_v12  ;;  %v1247_v4 = vpop.permute.xlu1 %1246  ;;  %v888_v41 = vmax.f32 %v1917_v58, %v5073_v9  ;;  %v1926_v58 = vld [vmem:[%s4761_s0 + $0x7b0] sm:$0xff]  ;;  %v5084_v9 = vld [vmem:[#allocation126_spill] sm:$0xff] }
 0x249   :  { %v1245_v23 = vpop.permute.xlu0 %1244  ;;  %1778 = vst.msk [vmem:[%s4762_s1 + $0x348] sm:$0xff] %vm1672_vm0, %v1649_v5  ;;  %v1523_v37 = vmax.f32 %v3882_v43, %v1247_v4  ;;  %v5066_v43 = vld [vmem:[#allocation3_spill] sm:$0xff]  ;;  %v5075_v5 = vld [vmem:[#allocation76_spill] sm:$0xff] }
 0x24a   :  { %1777 = vst.msk [vmem:[%s4762_s1 + $0x340] sm:$0xff] %vm1672_vm0, %v1648_v38  ;;  %v1522_v46 = vmax.f32 %v5063_v20, %v1245_v23 }
 0x24b   :  { %v1651_v13 = vmax.f32 %v883_v63, %v1523_v37  ;;  %v1918_v63 = vld [vmem:[%s4761_s0 + $0x730] sm:$0xff]  ;;  %v5077_v37 = vld [vmem:[#allocation111_spill] sm:$0xff] }
 0x24c   :  { %v1650_v47 = vmax.f32 %v882_v57, %v1522_v46  ;;  %v1251_v2 = vpop.permute.xlu1 %1250  ;;  %v891_v11 = vmax.f32 %v1918_v63, %v5076_v44  ;;  %v1919_v57 = vld [vmem:[%s4761_s0 + $0x720] sm:$0xff] }
 0x24d   :  { %v1249_v33 = vpop.permute.xlu0 %1248  ;;  %1780 = vst.msk [vmem:[%s4762_s1 + $0x358] sm:$0xff] %vm1672_vm0, %v1651_v13  ;;  %v1525_v32 = vmax.f32 %v5066_v43, %v1251_v2  ;;  %v890_v20 = vmax.f32 %v1919_v57, %v5077_v37  ;;  %v5086_v63 = vld [vmem:[#allocation130_spill] sm:$0xff]  ;;  %v5087_v57 = vld [vmem:[#allocation131_spill] sm:$0xff] }
 0x24e   :  { %1779 = vst.msk [vmem:[%s4762_s1 + $0x350] sm:$0xff] %vm1672_vm0, %v1650_v47  ;;  %v1524_v22 = vmax.f32 %v5067_v55, %v1249_v33 }
 0x24f   :  { %v1653_v56 = vmax.f32 %v885_v21, %v1525_v32  ;;  %v5078_v21 = vld [vmem:[#allocation114_spill] sm:$0xff] }
 0x250   :  { %v1652_v18 = vmax.f32 %v884_v40, %v1524_v22  ;;  %v1255_v52 = vpop.permute.xlu1 %1254  ;;  %v893_v19 = vmax.f32 %v1920_v0, %v5078_v21  ;;  %v5079_v40 = vld [vmem:[#allocation115_spill] sm:$0xff]  ;;  %v5090_v0 = vld [vmem:[#allocation134_spill] sm:$0xff] }
 0x251   :  { %v1253_v25 = vpop.permute.xlu0 %1252  ;;  %1782 = vst.msk [vmem:[%s4762_s1 + $0x368] sm:$0xff] %vm1672_vm0, %v1653_v56  ;;  %v1527_v16 = vmax.f32 %v5070_v31, %v1255_v52  ;;  %v892_v43 = vmax.f32 %v1921_v24, %v5079_v40  ;;  %v5080_v52 = vld [vmem:[#allocation118_spill] sm:$0xff]  ;;  %v5091_v24 = vld [vmem:[#allocation135_spill] sm:$0xff] }
 0x252   :  { %1781 = vst.msk [vmem:[%s4762_s1 + $0x360] sm:$0xff] %vm1672_vm0, %v1652_v18  ;;  %v1526_v36 = vmax.f32 %v5071_v53, %v1253_v25  ;;  %v1922_v18 = vld [vmem:[%s4761_s0 + $0x770] sm:$0xff]  ;;  %v5082_v53 = vld [vmem:[#allocation122_spill] sm:$0xff] }
 0x253   :  { %v1655_v7 = vmax.f32 %v887_v50, %v1527_v16  ;;  %v895_v25 = vmax.f32 %v1922_v18, %v5080_v52  ;;  %v894_v50 = vmax.f32 %v1923_v54, %v5081_v61  ;;  %v1924_v16 = vld [vmem:[%s4761_s0 + $0x790] sm:$0xff] }
 0x254   :  { %v1654_v14 = vmax.f32 %v886_v60, %v1526_v36  ;;  %v1259_v39 = vpop.permute.xlu1 %1258  ;;  %v897_v36 = vmax.f32 %v1924_v16, %v5082_v53 }
 0x255   :  { %v1257_v26 = vpop.permute.xlu0 %1256  ;;  %1784 = vst.msk [vmem:[%s4762_s1 + $0x378] sm:$0xff] %vm1672_vm0, %v1655_v7  ;;  %v1529_v12 = vmax.f32 %v5074_v29, %v1259_v39  ;;  %v1925_v7 = vld [vmem:[%s4761_s0 + $0x780] sm:$0xff] }
 0x256   :  { %1783 = vst.msk [vmem:[%s4762_s1 + $0x370] sm:$0xff] %vm1672_vm0, %v1654_v14  ;;  %v1528_v38 = vmax.f32 %v5075_v5, %v1257_v26  ;;  %v5083_v14 = vld [vmem:[#allocation123_spill] sm:$0xff]  ;;  %v1927_v29 = vld [vmem:[%s4761_s0 + $0x7a0] sm:$0xff] }
 0x257   :  { %v1657_v4 = vmax.f32 %v889_v51, %v1529_v12  ;;  %v896_v39 = vmax.f32 %v1925_v7, %v5083_v14  ;;  %v5085_v12 = vld [vmem:[#allocation127_spill] sm:$0xff] }
 0x258   :  { %v1656_v23 = vmax.f32 %v888_v41, %v1528_v38  ;;  %v1263_v49 = vpop.permute.xlu1 %1262  ;;  %v899_v41 = vmax.f32 %v1926_v58, %v5084_v9  ;;  %v898_v5 = vmax.f32 %v1927_v29, %v5085_v12 }
 0x259   :  { %v1261_v30 = vpop.permute.xlu0 %1260  ;;  %1786 = vst.msk [vmem:[%s4762_s1 + $0x388] sm:$0xff] %vm1672_vm0, %v1657_v4  ;;  %v1531_v46 = vmax.f32 %v4010_v59, %v1263_v49 }
 0x25a   :  { %1785 = vst.msk [vmem:[%s4762_s1 + $0x380] sm:$0xff] %vm1672_vm0, %v1656_v23  ;;  %v1530_v13 = vmax.f32 %v4015_v45, %v1261_v30  ;;  %v1928_v30 = vld [vmem:[%s4761_s0 + $0x7d0] sm:$0xff] }
 0x25b   :  { %v1659_v47 = vmax.f32 %v891_v11, %v1531_v46  ;;  %v901_v44 = vmax.f32 %v1928_v30, %v5086_v63  ;;  %v1929_v11 = vld [vmem:[%s4761_s0 + $0x7c0] sm:$0xff] }
 0x25c   :  { %v1658_v2 = vmax.f32 %v890_v20, %v1530_v13  ;;  %v1267_v33 = vpop.permute.xlu1 %1266  ;;  %v900_v37 = vmax.f32 %v1929_v11, %v5087_v57  ;;  %v5089_v20 = vld [vmem:[#allocation6_spill] sm:$0xff] }
 0x25d   :  { %v1265_v62 = vpop.permute.xlu0 %1264  ;;  %1788 = vst.msk [vmem:[%s4762_s1 + $0x398] sm:$0xff] %vm1672_vm0, %v1659_v47  ;;  %v1533_v59 = vmax.f32 %v4042_v28, %v1267_v33 }
 0x25e   :  { %1787 = vst.msk [vmem:[%s4762_s1 + $0x390] sm:$0xff] %vm1672_vm0, %v1658_v2  ;;  %v1532_v45 = vmax.f32 %v4047_v42, %v1265_v62  ;;  %v1930_v62 = vld [vmem:[%s4761_s0 + $0x7f0] sm:$0xff] }
 0x25f   :  { %v1661_v32 = vmax.f32 %v893_v19, %v1533_v59  ;;  %v903_v21 = vmax.f32 %v1930_v62, %v5090_v0  ;;  %v1931_v19 = vld [vmem:[%s4761_s0 + $0x7e0] sm:$0xff]  ;;  %v5092_v59 = vld [vmem:[#allocation7_spill] sm:$0xff] }
 0x260   :  { %v1660_v55 = vmax.f32 %v892_v43, %v1532_v45  ;;  %v1271_v22 = vpop.permute.xlu1 %1270  ;;  %v902_v40 = vmax.f32 %v1931_v19, %v5091_v24 }
 0x261   :  { %v1269_v56 = vpop.permute.xlu0 %1268  ;;  %1790 = vst.msk [vmem:[%s4762_s1 + $0x3a8] sm:$0xff] %vm1672_vm0, %v1661_v32  ;;  %v1535_v28 = vmax.f32 %v4074_v17, %v1271_v22 }
 0x262   :  { %1789 = vst.msk [vmem:[%s4762_s1 + $0x3a0] sm:$0xff] %vm1672_vm0, %v1660_v55  ;;  %v1534_v42 = vmax.f32 %v4079_v34, %v1269_v56 }
 0x263   :  { %v1663_v1 = vmax.f32 %v895_v25, %v1535_v28 }
 0x264   :  { %v1662_v27 = vmax.f32 %v894_v50, %v1534_v42  ;;  %v1275_v60 = vpop.permute.xlu1 %1274 }
 0x265   :  { %v1273_v31 = vpop.permute.xlu0 %1272  ;;  %1792 = vst.msk [vmem:[%s4762_s1 + $0x3b8] sm:$0xff] %vm1672_vm0, %v1663_v1  ;;  %v1537_v17 = vmax.f32 %v4106_v35, %v1275_v60 }
 0x266   :  { %1791 = vst.msk [vmem:[%s4762_s1 + $0x3b0] sm:$0xff] %vm1672_vm0, %v1662_v27  ;;  %v1536_v34 = vmax.f32 %v4111_v6, %v1273_v31 }
 0x267   :  { %v1665_v26 = vmax.f32 %v897_v36, %v1537_v17 }
 0x268   :  { %v1664_v8 = vmax.f32 %v896_v39, %v1536_v34  ;;  %v1279_v48 = vpop.permute.xlu1 %1278 }
 0x269   :  { %v1277_v51 = vpop.permute.xlu0 %1276  ;;  %1794 = vst.msk [vmem:[%s4762_s1 + $0x3c8] sm:$0xff] %vm1672_vm0, %v1665_v26  ;;  %v1539_v35 = vmax.f32 %v4138_v15, %v1279_v48  ;;  %v5088_v15 = vld [vmem:[#allocation77_spill] sm:$0xff] }
 0x26a   :  { %1793 = vst.msk [vmem:[%s4762_s1 + $0x3c0] sm:$0xff] %vm1672_vm0, %v1664_v8  ;;  %v1538_v6 = vmax.f32 %v4143_v10, %v1277_v51 }
 0x26b   :  { %v1667_v38 = vmax.f32 %v899_v41, %v1539_v35 }
 0x26c   :  { %v1666_v4 = vmax.f32 %v898_v5, %v1538_v6  ;;  %v1283_v23 = vpop.permute.xlu1 %1282 }
 0x26d   :  { %v1281_v49 = vpop.permute.xlu0 %1280  ;;  %1796 = vst.msk [vmem:[%s4762_s1 + $0x3d8] sm:$0xff] %vm1672_vm0, %v1667_v38  ;;  %v1541_v10 = vmax.f32 %v5088_v15, %v1283_v23 }
 0x26e   :  { %1795 = vst.msk [vmem:[%s4762_s1 + $0x3d0] sm:$0xff] %vm1672_vm0, %v1666_v4  ;;  %v1540_v46 = vmax.f32 %v5089_v20, %v1281_v49 }
 0x26f   :  { %v1669_v13 = vmax.f32 %v901_v44, %v1541_v10 }
 0x270   :  { %v1668_v47 = vmax.f32 %v900_v37, %v1540_v46  ;;  %v1287_v2 = vpop.permute.xlu1 %1286 }
 0x271   :  { %v1285_v33 = vpop.permute.xlu0 %1284  ;;  %1798 = vst.msk [vmem:[%s4762_s1 + $0x3e8] sm:$0xff] %vm1672_vm0, %v1669_v13  ;;  %v1543_v43 = vmax.f32 %v4202_v3, %v1287_v2 }
 0x272   :  { %1797 = vst.msk [vmem:[%s4762_s1 + $0x3e0] sm:$0xff] %vm1672_vm0, %v1668_v47  ;;  %v1542_v45 = vmax.f32 %v5092_v59, %v1285_v33 }
 0x273   :  { %v1671_v32 = vmax.f32 %v903_v21, %v1543_v43 }
 0x274   :  { %v1670_v55 = vmax.f32 %v902_v40, %v1542_v45 }
 0x275   :  { %1800 = vst.msk [vmem:[%s4762_s1 + $0x3f8] sm:$0xff] %vm1672_vm0, %v1671_v32 }
 0x276   :  { %1799 = vst.msk [vmem:[%s4762_s1 + $0x3f0] sm:$0xff] %vm1672_vm0, %v1670_v55 }

// kernel: attention_module_forward.12
= control target key start
LH: loop header
LB: loop body
LE: loop exit
PB: predicated region body
PF: predicated region fallthrough
CT: control target
= control target key end

     0   :  { %v58_v0 = vlaneseq  ;;  %v578_v1 = vmov 0   ;;  %s580_s15 = smov 9   ;;  %s582_s16 = smov 1   ;;  %vm55_vm0 = vcmask 72704   ;;  %v587_v33 = vmov 0.0   ;;  %s833_s2 = inlined_call_operand.vmem [shape: f32[8,1], index: 2, kind: input, shape index: {}]   ;;  %s834_s3 = inlined_call_operand.vmem [shape: f32[8,1], index: 3, kind: input, shape index: {}]   ;;  %s835_s1 = inlined_call_operand.vmem [shape: f32[9,128], index: 1, kind: input, shape index: {}]   ;;  %s836_s0 = inlined_call_operand.vmem [shape: f32[8,128], index: 0, kind: input, shape index: {}]   ;;  %s837_s6 = inlined_call_operand.vmem [shape: f32[8,1], index: 6, kind: input, shape index: {}]   ;;  %s838_s5 = inlined_call_operand.vmem [shape: f32[8,1], index: 5, kind: input, shape index: {}]   ;;  %s839_s4 = inlined_call_operand.vmem [shape: bf16[8,72], index: 4, kind: input, shape index: {}]   ;;  %s840_s8 = inlined_call_operand.vmem [shape: f32[8,1], index: 8, kind: input, shape index: {}]   ;;  %s841_s7 = inlined_call_operand.vmem [shape: bf16[8,72], index: 7, kind: input, shape index: {}]   ;;  %s842_s9 = inlined_call_operand.vmem [shape: f32[8,128], index: 9, kind: output, shape index: {}]  }
   0x1   :  { %496 = vset.pattern.permute.xlu0 %v578_v1  ;;  %v36_v2 = vld [vmem:[%s833_s2] sm:$0xff]  ;;  %537 = vset.pattern.permute.xlu1 %v578_v1  ;;  %s579_s2 = smov 16   ;;  %v434_v20 = vld [vmem:[%s835_s1 + $0x8] ss:$0 sm:$0xff]  ;;  %s583_s21 = smov 18   ;;  %vm595_vm1 = vmmov 0  }
   0x2   :  { %39 = vperm.xlu0 %496, %v36_v2   ;;  %v650_v3 = vshrl.u32 %v58_v0, 7  ;;  %v43_v4 = vld [vmem:[%s834_s3] sm:$0xff]  ;;  %s581_s3 = smov 2   ;;  %s585_s22 = smov 10   ;;  %449 = vmatprep.subr.bf16.mxu0 %v587_v33  ;;  %vm212_vm2 = vcmask 900096   ;;  %vm230_vm3 = vcmask 1043456  }
   0x3   :  { %v658_v5 = vld [vmem:[%s835_s1] sm:$0xff]  ;;  %s586_s23 = smov 8   ;;  %463 = vmatprep.subr.bf16.mxu1 %v587_v33  ;;  %s588_s1 = smov 112   ;;  %459 = vmatprep.mubr.msk.bf16.mxu0 %vm595_vm1, %v587_v33  ;;  %vm194_vm4 = vcmask 916480   ;;  %vm203_vm5 = vcmask 908288   ;;  %vm176_vm6 = vcmask 973824  }
   0x4   :  { %v115_v6 = vsub.s32 6, %v650_v3  ;;  %v95_v8 = vsub.s32 4, %v650_v3  ;;  %v75_v10 = vsub.s32 2, %v650_v3  ;;  %v65_v12 = vsub.s32 1, %v650_v3  ;;  %v672_v15 = vld [vmem:[%s836_s0] sm:$0xff]  ;;  %s584_s0 = smov 17   ;;  %473 = vmatprep.mubr.msk.bf16.mxu1 %vm595_vm1, %v587_v33 }
   0x5   :  { %v125_v19 = vsub.s32 7, %v650_v3  ;;  %v105_v22 = vsub.s32 5, %v650_v3  ;;  %v85_v24 = vsub.s32 3, %v650_v3  ;;  %s589_s24 = smov 110   ;;  %s590_s25 = smov 119   ;;  %v275_v62 = vld [vmem:[%s837_s6] sm:$0xff] }
   0x6   :  { %46 = vperm.xlu0 %496, %v43_v4   ;;  %v116_v7 = vrot.slane %v658_v5, %v115_v6  ;;  %v96_v9 = vrot.slane %v658_v5, %v95_v8  ;;  %v76_v11 = vrot.slane %v658_v5, %v75_v10  ;;  %v66_v13 = vrot.slane %v658_v5, %v65_v12  ;;  %s591_s26 = smov 111   ;;  %s592_s27 = smov 126   ;;  %v220_v63 = vld [vmem:[%s838_s5] sm:$0xff] }
   0x7   :  { %v126_v21 = vrot.slane %v658_v5, %v125_v19  ;;  %v106_v23 = vrot.slane %v658_v5, %v105_v22  ;;  %v86_v25 = vrot.slane %v658_v5, %v85_v24  ;;  %s593_s28 = smov 118   ;;  %s594_s29 = smov 127   ;;  %vm185_vm7 = vcmask 965632  }
   0x8   :  { %s596_s11 = smov 120   ;;  %vm158_vm8 = vcmask 1031168   ;;  %vm167_vm9 = vcmask 982016   ;;  %vm149_vm10 = vcmask 1039360   ;;  %vm226_vm11 = vcmask 588800  }
   0xa   :  { %118 = vrot.lane.b32.xlu0 %v116_v7, %s579_s2 }
   0xe   :  { %98 = vrot.lane.b32.xlu0 %v96_v9, %s580_s15 }
  0x12   :  { %78 = vrot.lane.b32.xlu0 %v76_v11, %s581_s3 }
  0x16   :  { %68 = vrot.lane.b32.xlu0 %v66_v13, %s582_s16 }
  0x7d   :  { %v40_v14 = vpop.permute.xlu0 %39 }
  0x7e   :  { %v42_v16 = vmul.f32 %v40_v14, %v672_v15 }
  0x81   :  { %v47_v17 = vpop.permute.xlu0 %46 }
  0x82   :  { %v49_v18 = vadd.f32 %v47_v17, %v42_v16 }
  0x84   :  { %52 = vrot.lane.b32.xlu1 %v49_v18, %s580_s15 }
  0x85   :  { %v685_v26 = vpop.permute.xlu0 %118 }
  0x88   :  { %138 = vrot.lane.b32.xlu1 %v434_v20, %s583_s21 }
  0x89   :  { %v687_v27 = vpop.permute.xlu0 %98 }
  0x8c   :  { %128 = vrot.lane.b32.xlu1 %v126_v21, %s584_s0 }
  0x8d   :  { %v697_v34 = vpop.permute.xlu0 %78 }
  0x90   :  { %108 = vrot.lane.b32.xlu1 %v106_v23, %s585_s22 }
  0x91   :  { %v714_v46 = vpop.permute.xlu0 %68 }
  0x94   :  { %88 = vrot.lane.b32.xlu1 %v86_v25, %s586_s23  ;;  %v60_v25 = vsub.s32 0, %v650_v3 }
  0xf6   :  { %v53_v28 = vpop.permute.xlu1 %52 }
  0xf7   :  { %v690_v29 = vsel %vm55_vm0, 0.0, %v53_v28  ;;  %v57_v30 = vsel %vm55_vm0, %v53_v28, 0.0 }
  0xf8   :  { %v121_v31 = vmul.f32 %v685_v26, %v690_v29  ;;  %v122_v32 = vmul.f32 %v685_v26, %v57_v30  ;;  %v101_v37 = vmul.f32 %v687_v27, %v690_v29  ;;  %v102_v38 = vmul.f32 %v687_v27, %v57_v30 }
  0xf9   :  { %v81_v44 = vmul.f32 %v697_v34, %v690_v29  ;;  %v82_v45 = vmul.f32 %v697_v34, %v57_v30  ;;  %v71_v50 = vmul.f32 %v714_v46, %v690_v29  ;;  %v72_v51 = vmul.f32 %v714_v46, %v57_v30 }
  0xfa   :  { %v700_v35 = vpop.permute.xlu1 %138  ;;  %v502_v36 = vpack.i.bf16 %v122_v32, %v121_v31  ;;  %v512_v43 = vpack.i.bf16 %v102_v38, %v101_v37 }
  0xfb   :  { %v141_v39 = vmul.f32 %v700_v35, %v690_v29  ;;  %v142_v40 = vmul.f32 %v700_v35, %v57_v30  ;;  %v522_v53 = vpack.i.bf16 %v82_v45, %v81_v44  ;;  %v532_v58 = vpack.i.bf16 %v72_v51, %v71_v50  ;;  %v50_v51 = vld [vmem:[%s839_s4] sm:$0xf] }
  0xfc   :  { %503 = vrot.lane.b32.xlu0 %v502_v36, %s588_s1  ;;  %v759_v45 = vrot.slane %v658_v5, %v60_v25 }
  0xfd   :  { %v497_v41 = vpack.i.bf16 %v142_v40, %v141_v39 }
  0xfe   :  { %v709_v42 = vpop.permute.xlu1 %128 }
  0xff   :  { %v131_v47 = vmul.f32 %v709_v42, %v690_v29  ;;  %v132_v48 = vmul.f32 %v709_v42, %v57_v30  ;;  %498 = vrot.lane.b32.xlu1 %v497_v41, %s589_s24 }
 0x100   :  { %513 = vrot.lane.b32.xlu0 %v512_v43, %s590_s25 }
 0x101   :  { %v507_v49 = vpack.i.bf16 %v132_v48, %v131_v47 }
 0x102   :  { %v724_v52 = vpop.permute.xlu1 %108 }
 0x103   :  { %v111_v54 = vmul.f32 %v724_v52, %v690_v29  ;;  %v112_v55 = vmul.f32 %v724_v52, %v57_v30  ;;  %508 = vrot.lane.b32.xlu1 %v507_v49, %s591_s26  ;;  %v62_v49 = vmul.f32 %v759_v45, %v690_v29 }
 0x104   :  { %523 = vrot.lane.b32.xlu0 %v522_v53, %s592_s27 }
 0x105   :  { %v517_v56 = vpack.i.bf16 %v112_v55, %v111_v54 }
 0x106   :  { %v731_v57 = vpop.permute.xlu1 %88 }
 0x107   :  { %v91_v59 = vmul.f32 %v731_v57, %v690_v29  ;;  %v92_v60 = vmul.f32 %v731_v57, %v57_v30  ;;  %518 = vrot.lane.b32.xlu1 %v517_v56, %s593_s28 }
 0x108   :  { %533 = vrot.lane.b32.xlu0 %v532_v58, %s594_s29 }
 0x109   :  { %v527_v61 = vpack.i.bf16 %v92_v60, %v91_v59 }
 0x10b   :  { %528 = vrot.lane.b32.xlu1 %v527_v61, %s596_s11 }
 0x10c   :  { %278 = vperm.xlu0 %496, %v275_v62  }
 0x10f   :  { %223 = vperm.xlu1 %537, %v220_v63  }
 0x16e   :  { %v504_v0 = vpop.permute.xlu0 %503 }
 0x16f   :  { %v506_v7 = vunpack.i.h.bf16 %v504_v0  ;;  %v505_v8 = vunpack.i.l.bf16 %v504_v0 }
 0x171   :  { %v499_v1 = vpop.permute.xlu1 %498  ;;  %v195_v19 = vsel %vm194_vm4, %v505_v8, %v506_v7 }
 0x172   :  { %v501_v2 = vunpack.i.h.bf16 %v499_v1  ;;  %v500_v4 = vunpack.i.l.bf16 %v499_v1  ;;  %v514_v6 = vpop.permute.xlu0 %513 }
 0x173   :  { %v516_v17 = vunpack.i.h.bf16 %v514_v6  ;;  %v515_v18 = vunpack.i.l.bf16 %v514_v6 }
 0x174   :  { %v213_v9 = vsel %vm212_vm2, %v500_v4, %v501_v2 }
 0x175   :  { %v509_v10 = vpop.permute.xlu1 %508  ;;  %v219_v11 = vpack.c.bf16 %v213_v9, %v213_v9  ;;  %v177_v32 = vsel %vm176_vm6, %v515_v18, %v516_v17 }
 0x176   :  { %v511_v12 = vunpack.i.h.bf16 %v509_v10  ;;  %v510_v13 = vunpack.i.l.bf16 %v509_v10  ;;  %v524_v14 = vpop.permute.xlu0 %523 }
 0x177   :  { %v232_v16 = vsel %vm230_vm3, %v219_v11, 0  ;;  %v526_v28 = vunpack.i.h.bf16 %v524_v14  ;;  %v525_v30 = vunpack.i.l.bf16 %v524_v14 }
 0x178   :  { %450 = vmatpush3.bf16.msra.mxu0 %v232_v16  ;;  %v204_v20 = vsel %vm203_vm5, %v510_v13, %v511_v12 }
 0x179   :  { %v519_v21 = vpop.permute.xlu1 %518  ;;  %451 = vmatprep.subr.bf16.mxu0 %v587_v33  ;;  %v218_v22 = vpack.c.bf16 %v204_v20, %v195_v19  ;;  %v159_v3 = vsel %vm158_vm8, %v525_v30, %v526_v28 }
 0x17a   :  { %v521_v23 = vunpack.i.h.bf16 %v519_v21  ;;  %v520_v24 = vunpack.i.l.bf16 %v519_v21  ;;  %v534_v31 = vpop.permute.xlu0 %533  ;;  %v376_v21 = vld [vmem:[%s840_s8] sm:$0xff] }
 0x17b   :  { %v536_v41 = vunpack.i.h.bf16 %v534_v31  ;;  %v535_v43 = vunpack.i.l.bf16 %v534_v31 }
 0x17c   :  { %452 = vmatpush3.bf16.msra.mxu0 %v218_v22  ;;  %v186_v36 = vsel %vm185_vm7, %v520_v24, %v521_v23 }
 0x17d   :  { %v529_v37 = vpop.permute.xlu1 %528  ;;  %453 = vmatprep.subr.bf16.mxu0 %v587_v33  ;;  %v217_v38 = vpack.c.bf16 %v186_v36, %v177_v32  ;;  %v150_v48 = vsel %vm149_vm10, %v535_v43, %v536_v41 }
 0x17e   :  { %v531_v39 = vunpack.i.h.bf16 %v529_v37  ;;  %v530_v40 = vunpack.i.l.bf16 %v529_v37  ;;  %v215_v50 = vpack.c.bf16 %v150_v48, %v62_v49 }
 0x180   :  { %454 = vmatpush3.bf16.msra.mxu0 %v217_v38  ;;  %v168_v44 = vsel %vm167_vm9, %v530_v40, %v531_v39 }
 0x181   :  { %455 = vmatprep.subr.bf16.mxu0 %v587_v33  ;;  %v216_v47 = vpack.c.bf16 %v168_v44, %v159_v3 }
 0x184   :  { %456 = vmatpush3.bf16.msra.mxu0 %v216_v47 }
 0x185   :  { %457 = vmatprep.subr.bf16.mxu0 %v587_v33 }
 0x187   :  { %v279_v55 = vpop.permute.xlu0 %278 }
 0x188   :  { %458 = vmatpush3.bf16.msra.mxu0 %v215_v50 }
 0x18a   :  { %v224_v5 = vpop.permute.xlu1 %223 }
 0x18b   :  { %460 = vmatmul.mubr.msk.bf16.vlgmr.msra.gmra.mxu0 %vm226_vm11, %v50_v51 }
 0x24b   :  { %v268_v53 = vpop.f32.mrf.mxu0 }
 0x24c   :  { %v269_v54 = vadd.f32 %v268_v53, %v224_v5 }
 0x24d   :  { %v461_v56 = vpop.f32.mrf.mxu0 }
 0x24e   :  { %v281_v58 = vmul.f32 %v279_v55, %v269_v54  ;;  %vm274_vm12 = vcmp.gt.f32.partialorder %v269_v54, 0.0 }
 0x24f   :  { %v271_v59 = vpop.f32.mrf.mxu0 }
 0x250   :  { %v282_v29 = vsel %vm274_vm12, %v269_v54, %v281_v58 }
 0x251   :  { %285 = vrot.lane.b32.xlu1 %v282_v29, %s580_s15  ;;  %v462_v60 = vpop.f32.mrf.mxu0 }
 0x2c3   :  { %v286_v61 = vpop.permute.xlu1 %285 }
 0x2c4   :  { %v772_v62 = vsel %vm55_vm0, 0.0, %v286_v61  ;;  %v289_v63 = vsel %vm55_vm0, %v286_v61, 0.0 }
 0x2c5   :  { %v305_v0 = vmul.f32 %v772_v62, %v700_v35  ;;  %v306_v1 = vmul.f32 %v289_v63, %v700_v35  ;;  %v301_v2 = vmul.f32 %v772_v62, %v685_v26  ;;  %v302_v4 = vmul.f32 %v289_v63, %v685_v26 }
 0x2c6   :  { %v303_v6 = vmul.f32 %v772_v62, %v709_v42  ;;  %v304_v7 = vmul.f32 %v289_v63, %v709_v42  ;;  %v297_v10 = vmul.f32 %v772_v62, %v687_v27  ;;  %v298_v11 = vmul.f32 %v289_v63, %v687_v27 }
 0x2c7   :  { %v538_v8 = vpack.i.bf16 %v306_v1, %v305_v0  ;;  %v543_v9 = vpack.i.bf16 %v302_v4, %v301_v2  ;;  %v299_v35 = vmul.f32 %v772_v62, %v724_v52  ;;  %v300_v26 = vmul.f32 %v289_v63, %v724_v52 }
 0x2c8   :  { %v548_v12 = vpack.i.bf16 %v304_v7, %v303_v6  ;;  %v553_v13 = vpack.i.bf16 %v298_v11, %v297_v10  ;;  %v293_v42 = vmul.f32 %v772_v62, %v697_v34  ;;  %v294_v14 = vmul.f32 %v289_v63, %v697_v34  ;;  %v283_v6 = vld [vmem:[%s841_s7] sm:$0xf] }
 0x2c9   :  { %539 = vrot.lane.b32.xlu0 %v538_v8, %s589_s24  ;;  %544 = vrot.lane.b32.xlu1 %v543_v9, %s588_s1  ;;  %v558_v27 = vpack.i.bf16 %v300_v26, %v299_v35  ;;  %v295_v16 = vmul.f32 %v772_v62, %v731_v57  ;;  %v296_v18 = vmul.f32 %v289_v63, %v731_v57 }
 0x2ca   :  { %v563_v17 = vpack.i.bf16 %v294_v14, %v293_v42  ;;  %v291_v52 = vmul.f32 %v772_v62, %v714_v46  ;;  %v292_v19 = vmul.f32 %v289_v63, %v714_v46  ;;  %v290_v2 = vmul.f32 %v772_v62, %v759_v45 }
 0x2cb   :  { %v568_v34 = vpack.i.bf16 %v296_v18, %v295_v16 }
 0x2cc   :  { %v573_v20 = vpack.i.bf16 %v292_v19, %v291_v52 }
 0x2cd   :  { %549 = vrot.lane.b32.xlu0 %v548_v12, %s591_s26  ;;  %554 = vrot.lane.b32.xlu1 %v553_v13, %s590_s25 }
 0x2d1   :  { %559 = vrot.lane.b32.xlu0 %v558_v27, %s593_s28  ;;  %564 = vrot.lane.b32.xlu1 %v563_v17, %s592_s27 }
 0x2d5   :  { %569 = vrot.lane.b32.xlu0 %v568_v34, %s596_s11  ;;  %574 = vrot.lane.b32.xlu1 %v573_v20, %s594_s29 }
 0x2d9   :  { %379 = vperm.xlu0 %496, %v376_v21  }
 0x33b   :  { %v540_v57 = vpop.permute.xlu0 %539  ;;  %v545_v22 = vpop.permute.xlu1 %544 }
 0x33c   :  { %v542_v23 = vunpack.i.h.bf16 %v540_v57  ;;  %v541_v24 = vunpack.i.l.bf16 %v540_v57  ;;  %v547_v46 = vunpack.i.h.bf16 %v545_v22  ;;  %v546_v25 = vunpack.i.l.bf16 %v545_v22 }
 0x33e   :  { %v369_v28 = vsel %vm212_vm2, %v541_v24, %v542_v23  ;;  %v353_v41 = vsel %vm194_vm4, %v546_v25, %v547_v46 }
 0x33f   :  { %v550_v30 = vpop.permute.xlu0 %549  ;;  %v555_v31 = vpop.permute.xlu1 %554  ;;  %v375_v32 = vpack.c.bf16 %v369_v28, %v369_v28 }
 0x340   :  { %v552_v36 = vunpack.i.h.bf16 %v550_v30  ;;  %v551_v37 = vunpack.i.l.bf16 %v550_v30  ;;  %v557_v39 = vunpack.i.h.bf16 %v555_v31  ;;  %v556_v40 = vunpack.i.l.bf16 %v555_v31 }
 0x341   :  { %v386_v38 = vsel %vm230_vm3, %v375_v32, 0 }
 0x342   :  { %464 = vmatpush3.bf16.msra.mxu1 %v386_v38  ;;  %v361_v43 = vsel %vm203_vm5, %v551_v37, %v552_v36  ;;  %v337_v5 = vsel %vm176_vm6, %v556_v40, %v557_v39 }
 0x343   :  { %v560_v3 = vpop.permute.xlu0 %559  ;;  %v565_v44 = vpop.permute.xlu1 %564  ;;  %465 = vmatprep.subr.bf16.mxu1 %v587_v33  ;;  %v374_v47 = vpack.c.bf16 %v361_v43, %v353_v41 }
 0x344   :  { %v562_v48 = vunpack.i.h.bf16 %v560_v3  ;;  %v561_v49 = vunpack.i.l.bf16 %v560_v3  ;;  %v567_v50 = vunpack.i.h.bf16 %v565_v44  ;;  %v566_v51 = vunpack.i.l.bf16 %v565_v44 }
 0x346   :  { %466 = vmatpush3.bf16.msra.mxu1 %v374_v47  ;;  %v345_v53 = vsel %vm185_vm7, %v561_v49, %v562_v48  ;;  %v321_v61 = vsel %vm158_vm8, %v566_v51, %v567_v50 }
 0x347   :  { %v570_v54 = vpop.permute.xlu0 %569  ;;  %v575_v55 = vpop.permute.xlu1 %574  ;;  %467 = vmatprep.subr.bf16.mxu1 %v587_v33  ;;  %v373_v56 = vpack.c.bf16 %v345_v53, %v337_v5 }
 0x348   :  { %v572_v58 = vunpack.i.h.bf16 %v570_v54  ;;  %v571_v59 = vunpack.i.l.bf16 %v570_v54  ;;  %v577_v29 = vunpack.i.h.bf16 %v575_v55  ;;  %v576_v60 = vunpack.i.l.bf16 %v575_v55 }
 0x34a   :  { %468 = vmatpush3.bf16.msra.mxu1 %v373_v56  ;;  %v329_v63 = vsel %vm167_vm9, %v571_v59, %v572_v58  ;;  %v313_v1 = vsel %vm149_vm10, %v576_v60, %v577_v29 }
 0x34b   :  { %469 = vmatprep.subr.bf16.mxu1 %v587_v33  ;;  %v372_v0 = vpack.c.bf16 %v329_v63, %v321_v61  ;;  %v371_v4 = vpack.c.bf16 %v313_v1, %v290_v2 }
 0x34e   :  { %470 = vmatpush3.bf16.msra.mxu1 %v372_v0 }
 0x34f   :  { %471 = vmatprep.subr.bf16.mxu1 %v587_v33 }
 0x352   :  { %472 = vmatpush3.bf16.msra.mxu1 %v371_v4 }
 0x354   :  { %v380_v7 = vpop.permute.xlu0 %379 }
 0x355   :  { %474 = vmatmul.mubr.msk.bf16.vlgmr.msra.gmra.mxu1 %vm226_vm11, %v283_v6 }
 0x415   :  { %v422_v8 = vpop.f32.mrf.mxu1 }
 0x416   :  { %v423_v9 = vadd.f32 %v422_v8, %v380_v7 }
 0x417   :  { %v475_v10 = vpop.f32.mrf.mxu1 }
 0x418   :  { %v428_v11 = vadd.f32 %v423_v9, %v672_v15 }
 0x419   :  { %v425_v35 = vpop.f32.mrf.mxu1 }
 0x41a   :  { %429 = vst [vmem:[%s842_s9] sm:$0xff] %v428_v11 }
 0x41b   :  { %v476_v33 = vpop.f32.mrf.mxu1 }

// kernel: attention_module_forward.14
= control target key start
LH: loop header
LB: loop body
LE: loop exit
PB: predicated region body
PF: predicated region fallthrough
CT: control target
= control target key end

     0   :  { %s571_s21 = smov 0   ;;  %s614_s0 = inlined_call_operand.vmem [shape: f32[8,512], index: 0, kind: input, shape index: {}]   ;;  %s615_s1 = inlined_call_operand.vmem [shape: f32[8,512], index: 1, kind: input, shape index: {}]   ;;  %s616_s2 = inlined_call_operand.vmem [shape: bf16[8,8], index: 2, kind: input, shape index: {}]   ;;  %s617_s3 = inlined_call_operand.vmem [shape: f32[8,1], index: 3, kind: input, shape index: {}]   ;;  %s618_s4 = inlined_call_operand.vmem [shape: bf16[8,8], index: 4, kind: input, shape index: {}]   ;;  %s619_s5 = inlined_call_operand.vmem [shape: f32[8,1], index: 5, kind: input, shape index: {}]   ;;  %s620_s6 = inlined_call_operand.vmem [shape: f32[8,512], index: 6, kind: output, shape index: {}]  }
   0x1 LB: > { %s490_s22 = sadd.s32 4294967295, %s533_s21   ;;  %p494_p0 = scmp.ge.s32.totalorder %s533_s21, 1  ;;  %s533_s21 = sphi %s571_s21, %s16_s21  }
   0x2   : > { %p224_p1 = scmp.lt.s32.totalorder %s533_s21, 3 }
   0x4   : > { %p225_p2 = pnand %p494_p0, %p224_p1 }
   0x5   : > { %s495_s23 = sshll.u32 (!%p225_p2), %s490_s22, 1 }
   0x6   : > { %228 = sbr.rel (%p225_p2) target bundleno = 460 (0x1cc), region = 44  ;;  %p260_p3 = scmp.lt.s32.totalorder (!%p225_p2), %s495_s23, 3 }
   0xb   : > { %v535_v0 = vmov 0   ;;  %v283_v1 = vld [vmem:[%s617_s3] sm:$0xff]  ;;  %s622_s23 = smov (!%p260_p3, %s495_s23), 3  ;;  %vm293_vm0 = vcmask 1043456   ;;  %vm289_vm1 = vcmask 64512  }
   0xc   : > { %332 = vmatprep.mubr.bf16.mxu0 %v535_v0  ;;  %518 = vset.pattern.permute.xlu0 %v535_v0  ;;  %v346_v2 = vld [vmem:[%s619_s5] sm:$0xff]  ;;  %s585_s28 = sshll.u32 %s622_s23, 3 }
   0xd   : > { %286 = vperm.xlu0 %518, %v283_v1   ;;  %393 = vmatprep.mubr.bf16.mxu1 %v535_v0  ;;  %s263_s7 = scalar_lea.vmem %s614_s0, %s585_s28  ;;  %v280_v8 = vld [vmem:[%s616_s2] sm:$0xf]  ;;  %s269_s14 = scalar_lea.vmem %s615_s1, %s585_s28 }
   0xe   : > { %v279_v3 = vld [vmem:[%s263_s7 + $0x8] sm:$0xff]  ;;  %v278_v5 = vld [vmem:[%s263_s7] sm:$0xff]  ;;  %s275_s17 = scalar_lea.vmem %s620_s6, %s585_s28 }
   0xf   : > { %v282_v4 = vpack.c.bf16 %v279_v3, %v279_v3  ;;  %v281_v6 = vpack.c.bf16 %v278_v5, %v278_v5  ;;  %v343_v21 = vld [vmem:[%s618_s4] sm:$0xf]  ;;  %v415_v39 = vld [vmem:[%s269_s14 + $0x8] sm:$0xff] }
  0x10   : > { %v414_v36 = vld [vmem:[%s269_s14] sm:$0xff] }
  0x11   : > { %349 = vperm.xlu0 %518, %v346_v2   ;;  %501 = vmatprep.subr.msk.bf16.mxu0 %vm293_vm0, %v282_v4  ;;  %v295_v7 = vsel %vm293_vm0, %v281_v6, 0 }
  0x12   : > { %315 = vmatpush1.bf16.msra.mxu0 %v295_v7 }
  0x15   : > { %502 = vmatmul.mubr.msk.bf16.vlgmr.msra.gmra.mxu0 %vm289_vm1, %v280_v8 }
  0x88   : > { %v287_v9 = vpop.permute.xlu0 %286 }
  0x8c   : > { %v350_v22 = vpop.permute.xlu0 %349 }
  0xd5   : > { %v334_v10 = vpop.f32.mrf.mxu0 }
  0xd6   : > { %v335_v11 = vadd.f32 %v334_v10, %v287_v9 }
  0xd7   : > { %v336_v12 = vpop.f32.mrf.mxu0 }
  0xd8   : > { %v341_v13 = vmax.f32 %v335_v11, 0.0  ;;  %v337_v14 = vadd.f32 %v336_v12, %v287_v9 }
  0xd9   : > { %v338_v15 = vpop.f32.mrf.mxu0 }
  0xda   : > { %v344_v16 = vpack.c.bf16 %v341_v13, %v341_v13  ;;  %v342_v17 = vmax.f32 %v337_v14, 0.0 }
  0xdb   : > { %v339_v18 = vpop.f32.mrf.mxu0 }
  0xdc   : > { %v345_v19 = vpack.c.bf16 %v342_v17, %v342_v17  ;;  %v356_v20 = vsel %vm293_vm0, %v344_v16, 0 }
  0xde   : > { %503 = vmatprep.subr.msk.bf16.mxu1 %vm293_vm0, %v345_v19 }
  0xdf   : > { %376 = vmatpush1.bf16.msra.mxu1 %v356_v20 }
  0xe2   : > { %504 = vmatmul.mubr.msk.bf16.vlgmr.msra.gmra.mxu1 %vm289_vm1, %v343_v21 }
 0x1a2   : > { %v395_v23 = vpop.f32.mrf.mxu1 }
 0x1a3   : > { %v396_v24 = vadd.f32 %v395_v23, %v350_v22 }
 0x1a4   : > { %v397_v25 = vpop.f32.mrf.mxu1 }
 0x1a5   : > { %v505_v26 = vmul.f32 -1.442695, %v396_v24  ;;  %v398_v27 = vadd.f32 %v397_v25, %v350_v22 }
 0x1a6   : > { %v399_v28 = vpop.f32.mrf.mxu1 }
 0x1a7   : > { %519 = vpow2.f32 %v505_v26  ;;  %v506_v29 = vmul.f32 -1.442695, %v398_v27 }
 0x1a8   : > { %v400_v30 = vpop.f32.mrf.mxu1 }
 0x1a9   : > { %521 = vpow2.f32 %v506_v29 }
 0x1b4   : > { %v520_v31 = vpop.eup %519 }
 0x1b5   : > { %v408_v32 = vadd.f32 1.0, %v520_v31 }
 0x1b6   : > { %v522_v33 = vpop.eup %521 }
 0x1b7   : > { %523 = vrcp.f32 %v408_v32  ;;  %v409_v34 = vadd.f32 1.0, %v522_v33 }
 0x1b9   : > { %525 = vrcp.f32 %v409_v34 }
 0x1c4   : > { %v524_v35 = vpop.eup %523 }
 0x1c5   : > { %v416_v37 = vadd.f32 1.0, %v524_v35 }
 0x1c6   : > { %v526_v38 = vpop.eup %525 }
 0x1c7   : > { %v418_v40 = vmul.f32 %v416_v37, %v414_v36  ;;  %v417_v41 = vadd.f32 1.0, %v526_v38 }
 0x1c9   : > { %420 = vst [vmem:[%s275_s17] sm:$0xff] %v418_v40  ;;  %v419_v42 = vmul.f32 %v417_v41, %v415_v39 }
 0x1cb   : > { %421 = vst [vmem:[%s275_s17 + $0x8] sm:$0xff] %v419_v42 }
 0x1cc PF: > { %s16_s21 = sadd.s32 1, %s533_s21  }
 0x1cd   : > { %p13_p4 = scmp.ge.s32.totalorder %s16_s21, 4  }
 0x1cf   :  { %15 = sbr.rel (!%p13_p4) target bundleno = 1 (0x1), region = 77 }

// kernel: attention_module_forward.13
= control target key start
LH: loop header
LB: loop body
LE: loop exit
PB: predicated region body
PF: predicated region fallthrough
CT: control target
= control target key end

     0   :  { %vm33_vm0 = vcmask 64512   ;;  %vm2536_vm1 = vcmask 130048   ;;  %s3232_s0 = inlined_call_operand.vmem [shape: f32[16,8,8], index: 0, kind: input, shape index: {}]   ;;  %s3233_s1 = inlined_call_operand.vmem [shape: f32[16,8], index: 1, kind: input, shape index: {}]   ;;  %s3234_s2 = inlined_call_operand.vmem [shape: f32[8,16], index: 2, kind: input, shape index: {}]   ;;  %s3235_s3 = inlined_call_operand.vmem [shape: f32[16,16,16], index: 3, kind: output, shape index: {}]  }
   0x1   :  { %v14_v0 = vld [vmem:[%s3232_s0] sm:$0xff]  ;;  %v15_v1 = vld [vmem:[%s3232_s0 + $0x8] sm:$0xff]  ;;  %v16_v4 = vld [vmem:[%s3232_s0 + $0x10] sm:$0xff] }
   0x2   :  { %v2922_v2 = vld [vmem:[%s3233_s1] sm:$0xff]  ;;  %2733 = vmatprep.subr.mxu0 %v14_v0  ;;  %2738 = vmatprep.subr.mxu1 %v15_v1  ;;  %v2927_v3 = vld [vmem:[%s3233_s1 + $0x8] sm:$0xff]  ;;  %v17_v5 = vld [vmem:[%s3232_s0 + $0x18] sm:$0xff] }
   0x3   :  { %2734 = vmatpush3.msra.mxu0 %v14_v0  ;;  %2735 = vmatprep.mubr.msk.f32.mxu0 %vm33_vm0, %v2922_v2  ;;  %v18_v6 = vld [vmem:[%s3232_s0 + $0x20] sm:$0xff]  ;;  %v19_v7 = vld [vmem:[%s3232_s0 + $0x28] sm:$0xff]  ;;  %v20_v8 = vld [vmem:[%s3232_s0 + $0x30] sm:$0xff] }
   0x4   :  { %2739 = vmatpush3.msra.mxu1 %v15_v1  ;;  %2740 = vmatprep.mubr.msk.f32.mxu1 %vm33_vm0, %v2922_v2  ;;  %v21_v9 = vld [vmem:[%s3232_s0 + $0x38] sm:$0xff]  ;;  %v22_v10 = vld [vmem:[%s3232_s0 + $0x40] sm:$0xff]  ;;  %v23_v11 = vld [vmem:[%s3232_s0 + $0x48] sm:$0xff] }
   0x5   :  { %2736 = vmatmul.mubr.msk.f32.vlgmr.msra.gmra.mxu0 %vm33_vm0, %v2927_v3  ;;  %2741 = vmatmul.mubr.msk.f32.vlgmr.msra.gmra.mxu1 %vm33_vm0, %v2927_v3  ;;  %v24_v12 = vld [vmem:[%s3232_s0 + $0x50] sm:$0xff]  ;;  %v25_v13 = vld [vmem:[%s3232_s0 + $0x58] sm:$0xff]  ;;  %v26_v14 = vld [vmem:[%s3232_s0 + $0x60] sm:$0xff] }
   0x6   :  { %2743 = vmatprep.subr.mxu0 %v16_v4  ;;  %2748 = vmatprep.subr.mxu1 %v17_v5  ;;  %v27_v15 = vld [vmem:[%s3232_s0 + $0x68] sm:$0xff]  ;;  %v28_v16 = vld [vmem:[%s3232_s0 + $0x70] sm:$0xff]  ;;  %v29_v17 = vld [vmem:[%s3232_s0 + $0x78] sm:$0xff] }
   0x7   :  { %2744 = vmatpush3.msra.mxu0 %v16_v4  ;;  %2749 = vmatpush3.msra.mxu1 %v17_v5  ;;  %v3038_v18 = vld [vmem:[%s3234_s2] sm:$0xff] }
   0x8   :  { %2745 = vmatprep.mubr.msk.f32.mxu0 %vm33_vm0, %v2922_v2  ;;  %2750 = vmatprep.mubr.msk.f32.mxu1 %vm33_vm0, %v2922_v2 }
   0x9   :  { %2746 = vmatmul.mubr.msk.f32.vlgmr.msra.gmra.mxu0 %vm33_vm0, %v2927_v3  ;;  %2751 = vmatmul.mubr.msk.f32.vlgmr.msra.gmra.mxu1 %vm33_vm0, %v2927_v3 }
   0xa   :  { %2753 = vmatprep.subr.mxu0 %v18_v6  ;;  %2758 = vmatprep.subr.mxu1 %v19_v7 }
   0xb   :  { %2754 = vmatpush3.msra.mxu0 %v18_v6  ;;  %2759 = vmatpush3.msra.mxu1 %v19_v7 }
   0xc   :  { %2755 = vmatprep.mubr.msk.f32.mxu0 %vm33_vm0, %v2922_v2  ;;  %2760 = vmatprep.mubr.msk.f32.mxu1 %vm33_vm0, %v2922_v2 }
   0xd   :  { %2756 = vmatmul.mubr.msk.f32.vlgmr.msra.gmra.mxu0 %vm33_vm0, %v2927_v3  ;;  %2761 = vmatmul.mubr.msk.f32.vlgmr.msra.gmra.mxu1 %vm33_vm0, %v2927_v3 }
   0xe   :  { %2763 = vmatprep.subr.mxu0 %v20_v8  ;;  %2768 = vmatprep.subr.mxu1 %v21_v9 }
   0xf   :  { %2764 = vmatpush3.msra.mxu0 %v20_v8  ;;  %2769 = vmatpush3.msra.mxu1 %v21_v9 }
  0x10   :  { %2765 = vmatprep.mubr.msk.f32.mxu0 %vm33_vm0, %v2922_v2  ;;  %2770 = vmatprep.mubr.msk.f32.mxu1 %vm33_vm0, %v2922_v2 }
  0x11   :  { %2766 = vmatmul.mubr.msk.f32.vlgmr.msra.gmra.mxu0 %vm33_vm0, %v2927_v3  ;;  %2771 = vmatmul.mubr.msk.f32.vlgmr.msra.gmra.mxu1 %vm33_vm0, %v2927_v3 }
  0x12   :  { %2773 = vmatprep.subr.mxu0 %v22_v10  ;;  %2778 = vmatprep.subr.mxu1 %v23_v11 }
  0x13   :  { %2774 = vmatpush3.msra.mxu0 %v22_v10  ;;  %2779 = vmatpush3.msra.mxu1 %v23_v11 }
  0x14   :  { %2775 = vmatprep.mubr.msk.f32.mxu0 %vm33_vm0, %v2922_v2  ;;  %2780 = vmatprep.mubr.msk.f32.mxu1 %vm33_vm0, %v2922_v2 }
  0x15   :  { %2776 = vmatmul.mubr.msk.f32.vlgmr.msra.gmra.mxu0 %vm33_vm0, %v2927_v3  ;;  %2781 = vmatmul.mubr.msk.f32.vlgmr.msra.gmra.mxu1 %vm33_vm0, %v2927_v3 }
  0x16   :  { %2783 = vmatprep.subr.mxu0 %v24_v12  ;;  %2788 = vmatprep.subr.mxu1 %v25_v13 }
  0x17   :  { %2784 = vmatpush3.msra.mxu0 %v24_v12  ;;  %2789 = vmatpush3.msra.mxu1 %v25_v13 }
  0x18   :  { %2785 = vmatprep.mubr.msk.f32.mxu0 %vm33_vm0, %v2922_v2  ;;  %2790 = vmatprep.mubr.msk.f32.mxu1 %vm33_vm0, %v2922_v2 }
  0x19   :  { %2786 = vmatmul.mubr.msk.f32.vlgmr.msra.gmra.mxu0 %vm33_vm0, %v2927_v3  ;;  %2791 = vmatmul.mubr.msk.f32.vlgmr.msra.gmra.mxu1 %vm33_vm0, %v2927_v3 }
  0x1a   :  { %2793 = vmatprep.subr.mxu0 %v26_v14  ;;  %2798 = vmatprep.subr.mxu1 %v27_v15 }
  0x1b   :  { %2794 = vmatpush3.msra.mxu0 %v26_v14  ;;  %2799 = vmatpush3.msra.mxu1 %v27_v15 }
  0x1c   :  { %2795 = vmatprep.mubr.msk.f32.mxu0 %vm33_vm0, %v2922_v2  ;;  %2800 = vmatprep.mubr.msk.f32.mxu1 %vm33_vm0, %v2922_v2 }
  0x1d   :  { %2796 = vmatmul.mubr.msk.f32.vlgmr.msra.gmra.mxu0 %vm33_vm0, %v2927_v3  ;;  %2801 = vmatmul.mubr.msk.f32.vlgmr.msra.gmra.mxu1 %vm33_vm0, %v2927_v3 }
  0x1e   :  { %2803 = vmatprep.subr.mxu0 %v28_v16  ;;  %2808 = vmatprep.subr.mxu1 %v29_v17 }
  0x1f   :  { %2804 = vmatpush3.msra.mxu0 %v28_v16  ;;  %2809 = vmatpush3.msra.mxu1 %v29_v17 }
  0x20   :  { %2805 = vmatprep.mubr.msk.f32.mxu0 %vm33_vm0, %v2922_v2  ;;  %2810 = vmatprep.mubr.msk.f32.mxu1 %vm33_vm0, %v2922_v2 }
  0x21   :  { %2806 = vmatmul.mubr.msk.f32.vlgmr.msra.gmra.mxu0 %vm33_vm0, %v2927_v3  ;;  %2811 = vmatmul.mubr.msk.f32.vlgmr.msra.gmra.mxu1 %vm33_vm0, %v2927_v3 }
  0x22   :  { %2813 = vmatprep.subr.mxu0 %v3038_v18  ;;  %2818 = vmatprep.subr.mxu1 %v3038_v18 }
  0x23   :  { %2814 = vmatpush3.msra.mxu0 %v3038_v18  ;;  %2819 = vmatpush3.msra.mxu1 %v3038_v18 }
  0x24   :  { %2823 = vmatprep.subr.mxu0 %v3038_v18  ;;  %2828 = vmatprep.subr.mxu1 %v3038_v18 }
  0xc5   :  { %v2737_v19 = vpop.f32.mrf.mxu0  ;;  %v2742_v20 = vpop.f32.mrf.mxu1 }
  0xc7   :  { %v106_v21 = vpop.f32.mrf.mxu0  ;;  %v181_v22 = vpop.f32.mrf.mxu1 }
  0xc8   :  { %2815 = vmatprep.mubr.msk.f32.mxu0 %vm33_vm0, %v106_v21  ;;  %2820 = vmatprep.mubr.msk.f32.mxu1 %vm33_vm0, %v181_v22 }
  0xc9   :  { %v2747_v23 = vpop.f32.mrf.mxu0  ;;  %v2752_v24 = vpop.f32.mrf.mxu1  ;;  %2816 = vmatmul.mubr.msk.f32.vlgmr.msra.gmra.mxu0 %vm33_vm0, %v2737_v19  ;;  %2821 = vmatmul.mubr.msk.f32.vlgmr.msra.gmra.mxu1 %vm33_vm0, %v2742_v20 }
  0xca   :  { %2824 = vmatpush3.msra.mxu0 %v3038_v18  ;;  %2829 = vmatpush3.msra.mxu1 %v3038_v18 }
  0xcb   :  { %v256_v25 = vpop.f32.mrf.mxu0  ;;  %v331_v26 = vpop.f32.mrf.mxu1  ;;  %2833 = vmatprep.subr.mxu0 %v3038_v18  ;;  %2838 = vmatprep.subr.mxu1 %v3038_v18 }
  0xcc   :  { %2825 = vmatprep.mubr.msk.f32.mxu0 %vm33_vm0, %v256_v25  ;;  %2830 = vmatprep.mubr.msk.f32.mxu1 %vm33_vm0, %v331_v26 }
  0xcd   :  { %v2757_v27 = vpop.f32.mrf.mxu0  ;;  %v2762_v28 = vpop.f32.mrf.mxu1  ;;  %2826 = vmatmul.mubr.msk.f32.vlgmr.msra.gmra.mxu0 %vm33_vm0, %v2747_v23  ;;  %2831 = vmatmul.mubr.msk.f32.vlgmr.msra.gmra.mxu1 %vm33_vm0, %v2752_v24 }
  0xce   :  { %2834 = vmatpush3.msra.mxu0 %v3038_v18  ;;  %2839 = vmatpush3.msra.mxu1 %v3038_v18 }
  0xcf   :  { %v406_v29 = vpop.f32.mrf.mxu0  ;;  %v481_v30 = vpop.f32.mrf.mxu1  ;;  %2843 = vmatprep.subr.mxu0 %v3038_v18  ;;  %2848 = vmatprep.subr.mxu1 %v3038_v18 }
  0xd0   :  { %2835 = vmatprep.mubr.msk.f32.mxu0 %vm33_vm0, %v406_v29  ;;  %2840 = vmatprep.mubr.msk.f32.mxu1 %vm33_vm0, %v481_v30 }
  0xd1   :  { %v2767_v31 = vpop.f32.mrf.mxu0  ;;  %v2772_v32 = vpop.f32.mrf.mxu1  ;;  %2836 = vmatmul.mubr.msk.f32.vlgmr.msra.gmra.mxu0 %vm33_vm0, %v2757_v27  ;;  %2841 = vmatmul.mubr.msk.f32.vlgmr.msra.gmra.mxu1 %vm33_vm0, %v2762_v28 }
  0xd2   :  { %2844 = vmatpush3.msra.mxu0 %v3038_v18  ;;  %2849 = vmatpush3.msra.mxu1 %v3038_v18 }
  0xd3   :  { %v556_v33 = vpop.f32.mrf.mxu0  ;;  %v631_v34 = vpop.f32.mrf.mxu1  ;;  %2853 = vmatprep.subr.mxu0 %v3038_v18  ;;  %2858 = vmatprep.subr.mxu1 %v3038_v18 }
  0xd4   :  { %2845 = vmatprep.mubr.msk.f32.mxu0 %vm33_vm0, %v556_v33  ;;  %2850 = vmatprep.mubr.msk.f32.mxu1 %vm33_vm0, %v631_v34 }
  0xd5   :  { %v2777_v35 = vpop.f32.mrf.mxu0  ;;  %v2782_v36 = vpop.f32.mrf.mxu1  ;;  %2846 = vmatmul.mubr.msk.f32.vlgmr.msra.gmra.mxu0 %vm33_vm0, %v2767_v31  ;;  %2851 = vmatmul.mubr.msk.f32.vlgmr.msra.gmra.mxu1 %vm33_vm0, %v2772_v32 }
  0xd6   :  { %2854 = vmatpush3.msra.mxu0 %v3038_v18  ;;  %2859 = vmatpush3.msra.mxu1 %v3038_v18 }
  0xd7   :  { %v706_v37 = vpop.f32.mrf.mxu0  ;;  %v781_v38 = vpop.f32.mrf.mxu1  ;;  %2863 = vmatprep.subr.mxu0 %v3038_v18  ;;  %2868 = vmatprep.subr.mxu1 %v3038_v18 }
  0xd8   :  { %2855 = vmatprep.mubr.msk.f32.mxu0 %vm33_vm0, %v706_v37  ;;  %2860 = vmatprep.mubr.msk.f32.mxu1 %vm33_vm0, %v781_v38 }
  0xd9   :  { %v2787_v39 = vpop.f32.mrf.mxu0  ;;  %v2792_v40 = vpop.f32.mrf.mxu1  ;;  %2856 = vmatmul.mubr.msk.f32.vlgmr.msra.gmra.mxu0 %vm33_vm0, %v2777_v35  ;;  %2861 = vmatmul.mubr.msk.f32.vlgmr.msra.gmra.mxu1 %vm33_vm0, %v2782_v36 }
  0xda   :  { %2864 = vmatpush3.msra.mxu0 %v3038_v18  ;;  %2869 = vmatpush3.msra.mxu1 %v3038_v18 }
  0xdb   :  { %v856_v41 = vpop.f32.mrf.mxu0  ;;  %v931_v42 = vpop.f32.mrf.mxu1  ;;  %2873 = vmatprep.subr.mxu0 %v3038_v18  ;;  %2878 = vmatprep.subr.mxu1 %v3038_v18 }
  0xdc   :  { %2865 = vmatprep.mubr.msk.f32.mxu0 %vm33_vm0, %v856_v41  ;;  %2870 = vmatprep.mubr.msk.f32.mxu1 %vm33_vm0, %v931_v42 }
  0xdd   :  { %v2797_v43 = vpop.f32.mrf.mxu0  ;;  %v2802_v44 = vpop.f32.mrf.mxu1  ;;  %2866 = vmatmul.mubr.msk.f32.vlgmr.msra.gmra.mxu0 %vm33_vm0, %v2787_v39  ;;  %2871 = vmatmul.mubr.msk.f32.vlgmr.msra.gmra.mxu1 %vm33_vm0, %v2792_v40 }
  0xde   :  { %2874 = vmatpush3.msra.mxu0 %v3038_v18  ;;  %2879 = vmatpush3.msra.mxu1 %v3038_v18 }
  0xdf   :  { %v1006_v45 = vpop.f32.mrf.mxu0  ;;  %v1081_v46 = vpop.f32.mrf.mxu1  ;;  %2883 = vmatprep.subr.mxu0 %v3038_v18  ;;  %2888 = vmatprep.subr.mxu1 %v3038_v18 }
  0xe0   :  { %2875 = vmatprep.mubr.msk.f32.mxu0 %vm33_vm0, %v1006_v45  ;;  %2880 = vmatprep.mubr.msk.f32.mxu1 %vm33_vm0, %v1081_v46 }
  0xe1   :  { %v2807_v47 = vpop.f32.mrf.mxu0  ;;  %v2812_v48 = vpop.f32.mrf.mxu1  ;;  %2876 = vmatmul.mubr.msk.f32.vlgmr.msra.gmra.mxu0 %vm33_vm0, %v2797_v43  ;;  %2881 = vmatmul.mubr.msk.f32.vlgmr.msra.gmra.mxu1 %vm33_vm0, %v2802_v44 }
  0xe2   :  { %2884 = vmatpush3.msra.mxu0 %v3038_v18  ;;  %2889 = vmatpush3.msra.mxu1 %v3038_v18 }
  0xe3   :  { %v1156_v49 = vpop.f32.mrf.mxu0  ;;  %v1231_v50 = vpop.f32.mrf.mxu1 }
  0xe4   :  { %2885 = vmatprep.mubr.msk.f32.mxu0 %vm33_vm0, %v1156_v49  ;;  %2890 = vmatprep.mubr.msk.f32.mxu1 %vm33_vm0, %v1231_v50 }
  0xe5   :  { %2886 = vmatmul.mubr.msk.f32.vlgmr.msra.gmra.mxu0 %vm33_vm0, %v2807_v47  ;;  %2891 = vmatmul.mubr.msk.f32.vlgmr.msra.gmra.mxu1 %vm33_vm0, %v2812_v48 }
 0x189   :  { %v2817_v51 = vpop.f32.mrf.mxu0  ;;  %v2822_v52 = vpop.f32.mrf.mxu1 }
 0x18a   :  { %2538 = vst.msk [vmem:[%s3235_s3 + $0x8] sm:$0xff] %vm2536_vm1, %v2817_v51  ;;  %2540 = vst.msk [vmem:[%s3235_s3 + $0x18] sm:$0xff] %vm2536_vm1, %v2822_v52 }
 0x18b   :  { %v1312_v53 = vpop.f32.mrf.mxu0  ;;  %v1393_v54 = vpop.f32.mrf.mxu1 }
 0x18c   :  { %2537 = vst.msk [vmem:[%s3235_s3] sm:$0xff] %vm2536_vm1, %v1312_v53  ;;  %2539 = vst.msk [vmem:[%s3235_s3 + $0x10] sm:$0xff] %vm2536_vm1, %v1393_v54 }
 0x18d   :  { %v2827_v55 = vpop.f32.mrf.mxu0  ;;  %v2832_v56 = vpop.f32.mrf.mxu1 }
 0x18e   :  { %2542 = vst.msk [vmem:[%s3235_s3 + $0x28] sm:$0xff] %vm2536_vm1, %v2827_v55  ;;  %2544 = vst.msk [vmem:[%s3235_s3 + $0x38] sm:$0xff] %vm2536_vm1, %v2832_v56 }
 0x18f   :  { %v1474_v57 = vpop.f32.mrf.mxu0  ;;  %v1555_v58 = vpop.f32.mrf.mxu1 }
 0x190   :  { %2541 = vst.msk [vmem:[%s3235_s3 + $0x20] sm:$0xff] %vm2536_vm1, %v1474_v57  ;;  %2543 = vst.msk [vmem:[%s3235_s3 + $0x30] sm:$0xff] %vm2536_vm1, %v1555_v58 }
 0x191   :  { %v2837_v59 = vpop.f32.mrf.mxu0  ;;  %v2842_v60 = vpop.f32.mrf.mxu1 }
 0x192   :  { %2546 = vst.msk [vmem:[%s3235_s3 + $0x48] sm:$0xff] %vm2536_vm1, %v2837_v59  ;;  %2548 = vst.msk [vmem:[%s3235_s3 + $0x58] sm:$0xff] %vm2536_vm1, %v2842_v60 }
 0x193   :  { %v1636_v61 = vpop.f32.mrf.mxu0  ;;  %v1717_v62 = vpop.f32.mrf.mxu1 }
 0x194   :  { %2545 = vst.msk [vmem:[%s3235_s3 + $0x40] sm:$0xff] %vm2536_vm1, %v1636_v61  ;;  %2547 = vst.msk [vmem:[%s3235_s3 + $0x50] sm:$0xff] %vm2536_vm1, %v1717_v62 }
 0x195   :  { %v2847_v63 = vpop.f32.mrf.mxu0  ;;  %v2852_v0 = vpop.f32.mrf.mxu1 }
 0x196   :  { %2550 = vst.msk [vmem:[%s3235_s3 + $0x68] sm:$0xff] %vm2536_vm1, %v2847_v63  ;;  %2552 = vst.msk [vmem:[%s3235_s3 + $0x78] sm:$0xff] %vm2536_vm1, %v2852_v0 }
 0x197   :  { %v1798_v1 = vpop.f32.mrf.mxu0  ;;  %v1879_v2 = vpop.f32.mrf.mxu1 }
 0x198   :  { %2549 = vst.msk [vmem:[%s3235_s3 + $0x60] sm:$0xff] %vm2536_vm1, %v1798_v1  ;;  %2551 = vst.msk [vmem:[%s3235_s3 + $0x70] sm:$0xff] %vm2536_vm1, %v1879_v2 }
 0x199   :  { %v2857_v3 = vpop.f32.mrf.mxu0  ;;  %v2862_v4 = vpop.f32.mrf.mxu1 }
 0x19a   :  { %2554 = vst.msk [vmem:[%s3235_s3 + $0x88] sm:$0xff] %vm2536_vm1, %v2857_v3  ;;  %2556 = vst.msk [vmem:[%s3235_s3 + $0x98] sm:$0xff] %vm2536_vm1, %v2862_v4 }
 0x19b   :  { %v1960_v5 = vpop.f32.mrf.mxu0  ;;  %v2041_v6 = vpop.f32.mrf.mxu1 }
 0x19c   :  { %2553 = vst.msk [vmem:[%s3235_s3 + $0x80] sm:$0xff] %vm2536_vm1, %v1960_v5  ;;  %2555 = vst.msk [vmem:[%s3235_s3 + $0x90] sm:$0xff] %vm2536_vm1, %v2041_v6 }
 0x19d   :  { %v2867_v7 = vpop.f32.mrf.mxu0  ;;  %v2872_v8 = vpop.f32.mrf.mxu1 }
 0x19e   :  { %2558 = vst.msk [vmem:[%s3235_s3 + $0xa8] sm:$0xff] %vm2536_vm1, %v2867_v7  ;;  %2560 = vst.msk [vmem:[%s3235_s3 + $0xb8] sm:$0xff] %vm2536_vm1, %v2872_v8 }
 0x19f   :  { %v2122_v9 = vpop.f32.mrf.mxu0  ;;  %v2203_v10 = vpop.f32.mrf.mxu1 }
 0x1a0   :  { %2557 = vst.msk [vmem:[%s3235_s3 + $0xa0] sm:$0xff] %vm2536_vm1, %v2122_v9  ;;  %2559 = vst.msk [vmem:[%s3235_s3 + $0xb0] sm:$0xff] %vm2536_vm1, %v2203_v10 }
 0x1a1   :  { %v2877_v11 = vpop.f32.mrf.mxu0  ;;  %v2882_v12 = vpop.f32.mrf.mxu1 }
 0x1a2   :  { %2562 = vst.msk [vmem:[%s3235_s3 + $0xc8] sm:$0xff] %vm2536_vm1, %v2877_v11  ;;  %2564 = vst.msk [vmem:[%s3235_s3 + $0xd8] sm:$0xff] %vm2536_vm1, %v2882_v12 }
 0x1a3   :  { %v2284_v13 = vpop.f32.mrf.mxu0  ;;  %v2365_v14 = vpop.f32.mrf.mxu1 }
 0x1a4   :  { %2561 = vst.msk [vmem:[%s3235_s3 + $0xc0] sm:$0xff] %vm2536_vm1, %v2284_v13  ;;  %2563 = vst.msk [vmem:[%s3235_s3 + $0xd0] sm:$0xff] %vm2536_vm1, %v2365_v14 }
 0x1a5   :  { %v2887_v15 = vpop.f32.mrf.mxu0  ;;  %v2892_v16 = vpop.f32.mrf.mxu1 }
 0x1a6   :  { %2566 = vst.msk [vmem:[%s3235_s3 + $0xe8] sm:$0xff] %vm2536_vm1, %v2887_v15  ;;  %2568 = vst.msk [vmem:[%s3235_s3 + $0xf8] sm:$0xff] %vm2536_vm1, %v2892_v16 }
 0x1a7   :  { %v2446_v17 = vpop.f32.mrf.mxu0  ;;  %v2527_v18 = vpop.f32.mrf.mxu1 }
 0x1a8   :  { %2565 = vst.msk [vmem:[%s3235_s3 + $0xe0] sm:$0xff] %vm2536_vm1, %v2446_v17  ;;  %2567 = vst.msk [vmem:[%s3235_s3 + $0xf0] sm:$0xff] %vm2536_vm1, %v2527_v18 }

</bundles_post_ra>
